<compile_context>
chip_gen: v6e
topology: v6e:2x2x1
jax: 0.10.0
libtpu: 0.0.40
codegen_flags: <defaults>
</compile_context>

<pallas_src>
import jax
import jax.numpy as jnp
from jax.experimental import pallas as pl
from jax.experimental.pallas import tpu as pltpu

LN_EPS = 1e-5       # torch.nn.LayerNorm default
ROW_ALIGN = 16      # bf16 packs 16 sublanes per vreg
MAX_BLOCK_ROWS = 8192


# --------------------------------------------------------------------------
# helpers
# --------------------------------------------------------------------------
def _cdiv(a, b):
    return (a + b - 1) // b


def _round_up(a, m):
    return _cdiv(a, m) * m


def _apply_act(h, act):
    if act == "relu":
        return jnp.maximum(h, 0.0)
    if act == "tanh":
        return jnp.tanh(h)
    return h


def _choose_block_rows(rows, max_block=MAX_BLOCK_ROWS):
    """Pick (block_rows, padded_rows).  Small/medium graphs: one big tile
    (no pointless split on single-TC chips).  Large graphs: an even number of
    <=max_block tiles so a "parallel" grid load-balances v7x's 2 TCs."""
    padded = _round_up(max(rows, 1), ROW_ALIGN)
    if padded <= max_block // 2:
        return padded, padded
    nsteps = max(2, _cdiv(padded, max_block))
    if nsteps % 2:
        nsteps += 1
    block = _round_up(_cdiv(padded, nsteps), ROW_ALIGN)
    padded = _round_up(padded, block)
    return block, padded


def _pad_rows(a, padded_rows):
    rows = a.shape[0]
    if rows == padded_rows:
        return a
    return jnp.pad(a, ((0, padded_rows - rows), (0, 0)))


# --------------------------------------------------------------------------
# fused MLP body: [Linear -> LayerNorm? -> act?] * L   (no input concat:
# first layer uses pre-split weights, h = sum_j x_j @ W_j + b)
# --------------------------------------------------------------------------
def _mlp_body(xs, param_refs, layer_cfg, mxu_dtype):
    """layer_cfg: tuple of (n_weight_pieces, has_layernorm, act)."""
    p = 0
    h = None
    for li, (n_w, has_ln, act) in enumerate(layer_cfg):
        if li == 0:
            acc = None
            for j in range(n_w):
                w = param_refs[p][...]
                p += 1
                part = jnp.dot(xs[j].astype(mxu_dtype), w,
                               preferred_element_type=jnp.float32)
                acc = part if acc is None else acc + part
            h = acc + param_refs[p][...]
            p += 1
        else:
            w = param_refs[p][...]
            b = param_refs[p + 1][...]
            p += 2
            h = jnp.dot(h.astype(mxu_dtype), w,
                        preferred_element_type=jnp.float32) + b
        if has_ln:
            gamma = param_refs[p][...]
            beta = param_refs[p + 1][...]
            p += 2
            mean = jnp.mean(h, axis=-1, keepdims=True)            # (blk,1)
            var = jnp.mean(h * h, axis=-1, keepdims=True) - mean * mean
            inv = jax.lax.rsqrt(jnp.maximum(var, 0.0) + LN_EPS)   # (blk,1)
            h = (h - mean) * inv                                  # normalize
            h = h * gamma + beta                                  # affine
        h = _apply_act(h, act)
    assert p == len(param_refs), "param/config mismatch"
    return h


def build_input_kernel(layer_cfg, mxu_dtype):
    """Input MLP -> fused concat with raw x:  out = [MLP(x) || x]."""
    def kernel(x_ref, *rest):
        param_refs = rest[:-1]
        out_ref = rest[-1]
        x = x_ref[...]
        h = _mlp_body([x], param_refs, layer_cfg, mxu_dtype)
        out_ref[...] = jnp.concatenate([h, x], axis=-1).astype(out_ref.dtype)
    return kernel


def build_edge_weight_kernel(layer_cfg, mxu_dtype):
    """Edge MLP -> sigmoid -> emit one lane-dense slab [e*x_s || e*x_e]."""
    def kernel(xs_ref, xe_ref, *rest):
        param_refs = rest[:-1]
        out_ref = rest[-1]
        xs = xs_ref[...]
        xe = xe_ref[...]
        logit = _mlp_body([xs, xe], param_refs, layer_cfg, mxu_dtype)  # (b,1)
        e = jax.nn.sigmoid(logit)                                      # f32
        wxs = e * xs.astype(jnp.float32)
        wxe = e * xe.astype(jnp.float32)
        out_ref[...] = jnp.concatenate([wxs, wxe], axis=-1
                                       ).astype(out_ref.dtype)
    return kernel


def build_node_kernel(layer_cfg, mxu_dtype):
    """Node MLP -> fused residual + concat-with-input_x epilogue (f32 add):
       out = h + concat([MLP([msg, h]), input_x], axis=-1)."""
    def kernel(msg_ref, h_ref, ix_ref, *rest):
        param_refs = rest[:-1]
        out_ref = rest[-1]
        msg = msg_ref[...]                       # f32
        h = h_ref[...]                           # bf16 residency
        ix = ix_ref[...]                         # f32
        hn = _mlp_body([msg, h], param_refs, layer_cfg, mxu_dtype)
        out_ref[...] = (h.astype(jnp.float32)
                        + jnp.concatenate([hn, ix], axis=-1)
                        ).astype(out_ref.dtype)
    return kernel


def build_logit_kernel(layer_cfg, mxu_dtype):
    """Edge MLP -> raw logits (final readout)."""
    def kernel(xs_ref, xe_ref, *rest):
        param_refs = rest[:-1]
        out_ref = rest[-1]
        logit = _mlp_body([xs_ref[...], xe_ref[...]],
                          param_refs, layer_cfg, mxu_dtype)
        out_ref[...] = logit.astype(out_ref.dtype)
    return kernel


# --------------------------------------------------------------------------
# pallas_call runner: row-tiled, pipelined, megacore-parallel.
# Inputs arrive already padded; outputs returned padded (no slicing here).
# --------------------------------------------------------------------------
def _run_rowwise(kernel, row_inputs, params_flat, out_dim, out_dtype, block):
    padded = row_inputs[0].shape[0]
    grid = (padded // block,)

    in_specs = [pl.BlockSpec((block, a.shape[1]), lambda i: (i, 0))
                for a in row_inputs]
    in_specs += [pl.BlockSpec(prm.shape, lambda i: (0, 0))
                 for prm in params_flat]

    return pl.pallas_call(
        kernel,
        out_shape=jax.ShapeDtypeStruct((padded, out_dim), out_dtype),
        grid=grid,
        in_specs=in_specs,
        out_specs=pl.BlockSpec((block, out_dim), lambda i: (i, 0)),
        compiler_params=pltpu.CompilerParams(
            dimension_semantics=("parallel",)),
    )(*row_inputs, *params_flat)


# --------------------------------------------------------------------------
# Parameter construction mirroring make_mlp(...)
# --------------------------------------------------------------------------
def _linear_params(key, d_in, d_out):
    kw, kb = jax.random.split(key)
    bound = 1.0 / (d_in ** 0.5)
    w = jax.random.uniform(kw, (d_in, d_out), jnp.float32, -bound, bound)
    b = jax.random.uniform(kb, (1, d_out), jnp.float32, -bound, bound)
    return w, b


def init_make_mlp(key, input_size, sizes, hidden_activation, output_activation,
                  layer_norm):
    """Mirrors exatrkx make_mlp: hidden layers get Linear+LN+act, the final
    layer gets Linear (+LN+act only if output_activation is given)."""
    act_map = {"Tanh": "tanh", "ReLU": "relu", None: None}
    dims = [input_size] + list(sizes)
    n_layers = len(sizes)
    keys = jax.random.split(key, n_layers)

    def ln_pair(d):
        if layer_norm:
            return jnp.ones((1, d), jnp.float32), jnp.zeros((1, d), jnp.float32)
        return None, None

    layers = []
    for i in range(n_layers - 1):
        w, b = _linear_params(keys[i], dims[i], dims[i + 1])
        g, bt = ln_pair(dims[i + 1])
        layers.append(dict(w=w, b=b, gamma=g, beta=bt,
                           act=act_map[hidden_activation]))
    w, b = _linear_params(keys[-1], dims[-2], dims[-1])
    if output_activation is not None:
        g, bt = ln_pair(dims[-1])
        layers.append(dict(w=w, b=b, gamma=g, beta=bt,
                           act=act_map[output_activation]))
    else:
        layers.append(dict(w=w, b=b, gamma=None, beta=None, act=None))
    return layers


def _flatten_params(layers, in_feats, use_bf16):
    """Flatten params; split layer-0 weight per input (removes in-kernel
    concat on the matmul path); cast matmul weights to bf16 (biases/LN f32)."""
    wdt = jnp.bfloat16 if use_bf16 else jnp.float32
    flat, cfg = [], []
    for li, layer in enumerate(layers):
        w = layer["w"]
        if li == 0 and len(in_feats) > 1:
            off = 0
            for f in in_feats:
                flat.append(w[off:off + f, :].astype(wdt))
                off += f
            n_w = len(in_feats)
        else:
            flat.append(w.astype(wdt))
            n_w = 1
        flat.append(layer["b"])
        has_ln = layer["gamma"] is not None
        if has_ln:
            flat += [layer["gamma"], layer["beta"]]
        cfg.append((n_w, has_ln, layer["act"]))
    return flat, tuple(cfg)


# --------------------------------------------------------------------------
# ResAGNN forward (gather/scatter + iteration glue in plain JAX)
# --------------------------------------------------------------------------
class ResAGNNPallas:
    def __init__(self, key, in_channels=3, hidden=32, n_graph_iters=2,
                 nb_node_layer=3, nb_edge_layer=3, layernorm=True,
                 hidden_activation="Tanh", use_bf16_matmul=True):
        self.in_channels = in_channels
        self.hidden = hidden
        self.n_graph_iters = n_graph_iters
        self.D = in_channels + hidden      # concatenated node state width

        k1, k2, k3 = jax.random.split(key, 3)
        # input_network = make_mlp(in_channels, [hidden]*nb_node_layer,
        #                          output_activation=hidden_activation, ln)
        # NOTE: make_mlp's hidden_activation keeps its default 'ReLU' here.
        input_layers = init_make_mlp(k1, in_channels, [hidden] * nb_node_layer,
                                     "ReLU", hidden_activation, layernorm)
        # edge_network = make_mlp(D*2, [D]*nb_edge_layer + [1], Tanh, None, ln)
        edge_layers = init_make_mlp(k2, self.D * 2,
                                    [self.D] * nb_edge_layer + [1],
                                    hidden_activation, None, layernorm)
        # node_network = make_mlp(D*2, [hidden]*nb_node_layer, Tanh, None, ln)
        node_layers = init_make_mlp(k3, self.D * 2,
                                    [hidden] * nb_node_layer,
                                    hidden_activation, None, layernorm)

        bf16 = use_bf16_matmul
        self.h_dtype = jnp.bfloat16 if bf16 else jnp.float32
        self.input_flat, input_cfg = _flatten_params(
            input_layers, [in_channels], bf16)
        self.edge_flat, edge_cfg = _flatten_params(
            edge_layers, [self.D, self.D], bf16)
        self.node_flat, node_cfg = _flatten_params(
            node_layers, [self.D, self.D], bf16)

        mxu_dtype = jnp.bfloat16 if bf16 else jnp.float32
        self.input_kernel = build_input_kernel(input_cfg, mxu_dtype)
        self.edge_weight_kernel = build_edge_weight_kernel(edge_cfg, mxu_dtype)
        self.edge_logit_kernel = build_logit_kernel(edge_cfg, mxu_dtype)
        self.node_kernel = build_node_kernel(node_cfg, mxu_dtype)

    def __call__(self, x, edge_index):
        N = x.shape[0]
        E = edge_index.shape[1]
        D = self.D

        # ---- pad ONCE (hoisted out of the iteration loop) ----------------
        eblock, Ep = _choose_block_rows(E)
        need_dummy = Ep > E
        nblock, Np = _choose_block_rows(N + (1 if need_dummy else 0))
        dummy = N                       # padded edges scatter into this row

        start = edge_index[0].astype(jnp.int32)
        end = edge_index[1].astype(jnp.int32)
        if need_dummy:
            start = jnp.pad(start, (0, Ep - E), constant_values=dummy)
            end = jnp.pad(end, (0, Ep - E), constant_values=dummy)
        x_p = _pad_rows(x, Np)                              # (Np, in_ch) f32

        # fused: h = [input_MLP(x) || x]   (bf16 residency in HBM)
        h = _run_rowwise(self.input_kernel, [x_p], self.input_flat,
                         D, self.h_dtype, nblock)

        for _ in range(self.n_graph_iters):  # checkpoint() == identity in fwd
            # gather (plain-JAX glue, bf16 -> half the HBM bytes)
            xs = h[start]
            xe = h[end]
            # fused: edge MLP -> sigmoid -> [e*x_s || e*x_e] slab (bf16)
            w_slab = _run_rowwise(self.edge_weight_kernel, [xs, xe],
                                  self.edge_flat, 2 * D, self.h_dtype, eblock)
            # scatter_add aggregation (plain-JAX glue, f32 accumulation)
            msg = jnp.zeros((Np, D), jnp.float32)
            msg = msg.at[end].add(w_slab[:, :D].astype(jnp.float32))
            msg = msg.at[start].add(w_slab[:, D:].astype(jnp.float32))
            # fused: node MLP + residual(f32) + concat(input_x)
            h = _run_rowwise(self.node_kernel, [msg, h, x_p],
                             self.node_flat, D, self.h_dtype, nblock)

        # final raw edge logits, shape (E,)
        xs = h[start]
        xe = h[end]
        logits = _run_rowwise(self.edge_logit_kernel, [xs, xe],
                              self.edge_flat, 1, jnp.float32, eblock)
        return logits[:E, 0]


# --------------------------------------------------------------------------
if __name__ == "__main__":
    key = jax.random.PRNGKey(0)
    k_param, k_x, k_edge = jax.random.split(key, 3)

    # small synthetic graph (non-multiple-of-16 sizes exercise the hoisted
    # padding + dummy-node path)
    N, E = 50, 100
    in_channels, hidden, n_graph_iters = 3, 32, 2

    x = jax.random.normal(k_x, (N, in_channels), jnp.float32)
    edge_index = jax.random.randint(k_edge, (2, E), 0, N, dtype=jnp.int32)

    model = ResAGNNPallas(k_param, in_channels=in_channels, hidden=hidden,
                          n_graph_iters=n_graph_iters,
                          nb_node_layer=3, nb_edge_layer=3,
                          layernorm=True, hidden_activation="Tanh",
                          use_bf16_matmul=True)

    forward = jax.jit(model.__call__)
    out = forward(x, edge_index)
    out = jax.block_until_ready(out)
    assert out.shape == (E,) and out.dtype == jnp.float32
    assert bool(jnp.all(jnp.isfinite(out)))
    print("KERNEL_OK")
</pallas_src>

<mosaic_0001>
module attributes {stable_mosaic.version = 11 : i64} {
  func.func @kernel(%arg0: i32, %arg1: memref<112x35xbf16, #tpu.memory_space<vmem>>, %arg2: memref<112x35xbf16, #tpu.memory_space<vmem>>, %arg3: memref<35x35xbf16, #tpu.memory_space<vmem>>, %arg4: memref<35x35xbf16, #tpu.memory_space<vmem>>, %arg5: memref<1x35xf32, #tpu.memory_space<vmem>>, %arg6: memref<1x35xf32, #tpu.memory_space<vmem>>, %arg7: memref<1x35xf32, #tpu.memory_space<vmem>>, %arg8: memref<35x35xbf16, #tpu.memory_space<vmem>>, %arg9: memref<1x35xf32, #tpu.memory_space<vmem>>, %arg10: memref<1x35xf32, #tpu.memory_space<vmem>>, %arg11: memref<1x35xf32, #tpu.memory_space<vmem>>, %arg12: memref<35x35xbf16, #tpu.memory_space<vmem>>, %arg13: memref<1x35xf32, #tpu.memory_space<vmem>>, %arg14: memref<1x35xf32, #tpu.memory_space<vmem>>, %arg15: memref<1x35xf32, #tpu.memory_space<vmem>>, %arg16: memref<35x1xbf16, #tpu.memory_space<vmem>>, %arg17: memref<1x1xf32, #tpu.memory_space<vmem>>, %arg18: memref<112x70xbf16, #tpu.memory_space<vmem>>) attributes {dimension_semantics = [#tpu.dimension_semantics<parallel>], iteration_bounds = array<i64: 1>, scalar_prefetch = 0 : i64, scratch_operands = 0 : i64, tpu.core_type = #tpu.core_type<tc>, window_params = [{transform_indices = @transform_0, window_bounds = array<i64: 112, 35>}, {transform_indices = @transform_1, window_bounds = array<i64: 112, 35>}, {pipeline_mode = #tpu.pipeline_mode<synchronous>, transform_indices = @transform_2, window_bounds = array<i64: 35, 35>}, {pipeline_mode = #tpu.pipeline_mode<synchronous>, transform_indices = @transform_3, window_bounds = array<i64: 35, 35>}, {pipeline_mode = #tpu.pipeline_mode<synchronous>, transform_indices = @transform_4, window_bounds = array<i64: 1, 35>}, {pipeline_mode = #tpu.pipeline_mode<synchronous>, transform_indices = @transform_5, window_bounds = array<i64: 1, 35>}, {pipeline_mode = #tpu.pipeline_mode<synchronous>, transform_indices = @transform_6, window_bounds = array<i64: 1, 35>}, {pipeline_mode = #tpu.pipeline_mode<synchronous>, transform_indices = @transform_7, window_bounds = array<i64: 35, 35>}, {pipeline_mode = #tpu.pipeline_mode<synchronous>, transform_indices = @transform_8, window_bounds = array<i64: 1, 35>}, {pipeline_mode = #tpu.pipeline_mode<synchronous>, transform_indices = @transform_9, window_bounds = array<i64: 1, 35>}, {pipeline_mode = #tpu.pipeline_mode<synchronous>, transform_indices = @transform_10, window_bounds = array<i64: 1, 35>}, {pipeline_mode = #tpu.pipeline_mode<synchronous>, transform_indices = @transform_11, window_bounds = array<i64: 35, 35>}, {pipeline_mode = #tpu.pipeline_mode<synchronous>, transform_indices = @transform_12, window_bounds = array<i64: 1, 35>}, {pipeline_mode = #tpu.pipeline_mode<synchronous>, transform_indices = @transform_13, window_bounds = array<i64: 1, 35>}, {pipeline_mode = #tpu.pipeline_mode<synchronous>, transform_indices = @transform_14, window_bounds = array<i64: 1, 35>}, {pipeline_mode = #tpu.pipeline_mode<synchronous>, transform_indices = @transform_15, window_bounds = array<i64: 35, 1>}, {pipeline_mode = #tpu.pipeline_mode<synchronous>, transform_indices = @transform_16, window_bounds = array<i64: 1, 1>}, {transform_indices = @transform_17, window_bounds = array<i64: 112, 70>}]} {
    %c0 = arith.constant 0 : index
    %c0_0 = arith.constant 0 : index
    %0 = vector.load %arg1[%c0, %c0_0] : memref<112x35xbf16, #tpu.memory_space<vmem>>, vector<112x35xbf16>
    %c0_1 = arith.constant 0 : index
    %c0_2 = arith.constant 0 : index
    %1 = vector.load %arg2[%c0_1, %c0_2] : memref<112x35xbf16, #tpu.memory_space<vmem>>, vector<112x35xbf16>
    %c0_3 = arith.constant 0 : index
    %c0_4 = arith.constant 0 : index
    %2 = vector.load %arg3[%c0_3, %c0_4] : memref<35x35xbf16, #tpu.memory_space<vmem>>, vector<35x35xbf16>
    %cst = arith.constant dense<0.000000e+00> : vector<112x35xf32>
    %3 = tpu.matmul %0, %2, %cst {dimension_numbers = #tpu.dot_dimension_numbers<[1], [0], [0], [1], [0, 0, 1, 1], [], []>} : vector<112x35xbf16>, vector<35x35xbf16>, vector<112x35xf32> -> vector<112x35xf32>
    %c0_5 = arith.constant 0 : index
    %c0_6 = arith.constant 0 : index
    %4 = vector.load %arg4[%c0_5, %c0_6] : memref<35x35xbf16, #tpu.memory_space<vmem>>, vector<35x35xbf16>
    %cst_7 = arith.constant dense<0.000000e+00> : vector<112x35xf32>
    %5 = tpu.matmul %1, %4, %cst_7 {dimension_numbers = #tpu.dot_dimension_numbers<[1], [0], [0], [1], [0, 0, 1, 1], [], []>} : vector<112x35xbf16>, vector<35x35xbf16>, vector<112x35xf32> -> vector<112x35xf32>
    %6 = arith.addf %3, %5 : vector<112x35xf32>
    %c0_8 = arith.constant 0 : index
    %c0_9 = arith.constant 0 : index
    %7 = vector.load %arg5[%c0_8, %c0_9] : memref<1x35xf32, #tpu.memory_space<vmem>>, vector<1x35xf32>
    %8 = vector.broadcast %7 : vector<1x35xf32> to vector<112x35xf32>
    %9 = arith.addf %6, %8 : vector<112x35xf32>
    %c0_10 = arith.constant 0 : index
    %c0_11 = arith.constant 0 : index
    %10 = vector.load %arg6[%c0_10, %c0_11] : memref<1x35xf32, #tpu.memory_space<vmem>>, vector<1x35xf32>
    %c0_12 = arith.constant 0 : index
    %c0_13 = arith.constant 0 : index
    %11 = vector.load %arg7[%c0_12, %c0_13] : memref<1x35xf32, #tpu.memory_space<vmem>>, vector<1x35xf32>
    %cst_14 = arith.constant dense<0.000000e+00> : vector<112xf32>
    %12 = vector.multi_reduction <add>, %9, %cst_14 [1] : vector<112x35xf32> to vector<112xf32>
    %13 = vector.shape_cast %12 : vector<112xf32> to vector<112x1xf32>
    %cst_15 = arith.constant 3.500000e+01 : f32
    %14 = vector.broadcast %cst_15 : f32 to vector<112x1xf32>
    %15 = arith.divf %13, %14 : vector<112x1xf32>
    %16 = arith.mulf %9, %9 : vector<112x35xf32>
    %cst_16 = arith.constant dense<0.000000e+00> : vector<112xf32>
    %17 = vector.multi_reduction <add>, %16, %cst_16 [1] : vector<112x35xf32> to vector<112xf32>
    %18 = vector.shape_cast %17 : vector<112xf32> to vector<112x1xf32>
    %cst_17 = arith.constant 3.500000e+01 : f32
    %19 = vector.broadcast %cst_17 : f32 to vector<112x1xf32>
    %20 = arith.divf %18, %19 : vector<112x1xf32>
    %21 = arith.mulf %15, %15 : vector<112x1xf32>
    %22 = arith.subf %20, %21 : vector<112x1xf32>
    %cst_18 = arith.constant 0.000000e+00 : f32
    %23 = vector.broadcast %cst_18 : f32 to vector<112x1xf32>
    %24 = arith.maximumf %22, %23 : vector<112x1xf32>
    %cst_19 = arith.constant 9.99999974E-6 : f32
    %25 = vector.broadcast %cst_19 : f32 to vector<112x1xf32>
    %26 = arith.addf %24, %25 : vector<112x1xf32>
    %27 = math.rsqrt %26 : vector<112x1xf32>
    %28 = vector.broadcast %15 : vector<112x1xf32> to vector<112x35xf32>
    %29 = arith.subf %9, %28 : vector<112x35xf32>
    %30 = vector.broadcast %27 : vector<112x1xf32> to vector<112x35xf32>
    %31 = arith.mulf %29, %30 : vector<112x35xf32>
    %32 = vector.broadcast %10 : vector<1x35xf32> to vector<112x35xf32>
    %33 = arith.mulf %31, %32 : vector<112x35xf32>
    %34 = vector.broadcast %11 : vector<1x35xf32> to vector<112x35xf32>
    %35 = arith.addf %33, %34 : vector<112x35xf32>
    %36 = math.tanh %35 : vector<112x35xf32>
    %c0_20 = arith.constant 0 : index
    %c0_21 = arith.constant 0 : index
    %37 = vector.load %arg8[%c0_20, %c0_21] : memref<35x35xbf16, #tpu.memory_space<vmem>>, vector<35x35xbf16>
    %c0_22 = arith.constant 0 : index
    %c0_23 = arith.constant 0 : index
    %38 = vector.load %arg9[%c0_22, %c0_23] : memref<1x35xf32, #tpu.memory_space<vmem>>, vector<1x35xf32>
    %39 = arith.truncf %36 : vector<112x35xf32> to vector<112x35xbf16>
    %cst_24 = arith.constant dense<0.000000e+00> : vector<112x35xf32>
    %40 = tpu.matmul %39, %37, %cst_24 {dimension_numbers = #tpu.dot_dimension_numbers<[1], [0], [0], [1], [0, 0, 1, 1], [], []>} : vector<112x35xbf16>, vector<35x35xbf16>, vector<112x35xf32> -> vector<112x35xf32>
    %41 = vector.broadcast %38 : vector<1x35xf32> to vector<112x35xf32>
    %42 = arith.addf %40, %41 : vector<112x35xf32>
    %c0_25 = arith.constant 0 : index
    %c0_26 = arith.constant 0 : index
    %43 = vector.load %arg10[%c0_25, %c0_26] : memref<1x35xf32, #tpu.memory_space<vmem>>, vector<1x35xf32>
    %c0_27 = arith.constant 0 : index
    %c0_28 = arith.constant 0 : index
    %44 = vector.load %arg11[%c0_27, %c0_28] : memref<1x35xf32, #tpu.memory_space<vmem>>, vector<1x35xf32>
    %cst_29 = arith.constant dense<0.000000e+00> : vector<112xf32>
    %45 = vector.multi_reduction <add>, %42, %cst_29 [1] : vector<112x35xf32> to vector<112xf32>
    %46 = vector.shape_cast %45 : vector<112xf32> to vector<112x1xf32>
    %cst_30 = arith.constant 3.500000e+01 : f32
    %47 = vector.broadcast %cst_30 : f32 to vector<112x1xf32>
    %48 = arith.divf %46, %47 : vector<112x1xf32>
    %49 = arith.mulf %42, %42 : vector<112x35xf32>
    %cst_31 = arith.constant dense<0.000000e+00> : vector<112xf32>
    %50 = vector.multi_reduction <add>, %49, %cst_31 [1] : vector<112x35xf32> to vector<112xf32>
    %51 = vector.shape_cast %50 : vector<112xf32> to vector<112x1xf32>
    %cst_32 = arith.constant 3.500000e+01 : f32
    %52 = vector.broadcast %cst_32 : f32 to vector<112x1xf32>
    %53 = arith.divf %51, %52 : vector<112x1xf32>
    %54 = arith.mulf %48, %48 : vector<112x1xf32>
    %55 = arith.subf %53, %54 : vector<112x1xf32>
    %cst_33 = arith.constant 0.000000e+00 : f32
    %56 = vector.broadcast %cst_33 : f32 to vector<112x1xf32>
    %57 = arith.maximumf %55, %56 : vector<112x1xf32>
    %cst_34 = arith.constant 9.99999974E-6 : f32
    %58 = vector.broadcast %cst_34 : f32 to vector<112x1xf32>
    %59 = arith.addf %57, %58 : vector<112x1xf32>
    %60 = math.rsqrt %59 : vector<112x1xf32>
    %61 = vector.broadcast %48 : vector<112x1xf32> to vector<112x35xf32>
    %62 = arith.subf %42, %61 : vector<112x35xf32>
    %63 = vector.broadcast %60 : vector<112x1xf32> to vector<112x35xf32>
    %64 = arith.mulf %62, %63 : vector<112x35xf32>
    %65 = vector.broadcast %43 : vector<1x35xf32> to vector<112x35xf32>
    %66 = arith.mulf %64, %65 : vector<112x35xf32>
    %67 = vector.broadcast %44 : vector<1x35xf32> to vector<112x35xf32>
    %68 = arith.addf %66, %67 : vector<112x35xf32>
    %69 = math.tanh %68 : vector<112x35xf32>
    %c0_35 = arith.constant 0 : index
    %c0_36 = arith.constant 0 : index
    %70 = vector.load %arg12[%c0_35, %c0_36] : memref<35x35xbf16, #tpu.memory_space<vmem>>, vector<35x35xbf16>
    %c0_37 = arith.constant 0 : index
    %c0_38 = arith.constant 0 : index
    %71 = vector.load %arg13[%c0_37, %c0_38] : memref<1x35xf32, #tpu.memory_space<vmem>>, vector<1x35xf32>
    %72 = arith.truncf %69 : vector<112x35xf32> to vector<112x35xbf16>
    %cst_39 = arith.constant dense<0.000000e+00> : vector<112x35xf32>
    %73 = tpu.matmul %72, %70, %cst_39 {dimension_numbers = #tpu.dot_dimension_numbers<[1], [0], [0], [1], [0, 0, 1, 1], [], []>} : vector<112x35xbf16>, vector<35x35xbf16>, vector<112x35xf32> -> vector<112x35xf32>
    %74 = vector.broadcast %71 : vector<1x35xf32> to vector<112x35xf32>
    %75 = arith.addf %73, %74 : vector<112x35xf32>
    %c0_40 = arith.constant 0 : index
    %c0_41 = arith.constant 0 : index
    %76 = vector.load %arg14[%c0_40, %c0_41] : memref<1x35xf32, #tpu.memory_space<vmem>>, vector<1x35xf32>
    %c0_42 = arith.constant 0 : index
    %c0_43 = arith.constant 0 : index
    %77 = vector.load %arg15[%c0_42, %c0_43] : memref<1x35xf32, #tpu.memory_space<vmem>>, vector<1x35xf32>
    %cst_44 = arith.constant dense<0.000000e+00> : vector<112xf32>
    %78 = vector.multi_reduction <add>, %75, %cst_44 [1] : vector<112x35xf32> to vector<112xf32>
    %79 = vector.shape_cast %78 : vector<112xf32> to vector<112x1xf32>
    %cst_45 = arith.constant 3.500000e+01 : f32
    %80 = vector.broadcast %cst_45 : f32 to vector<112x1xf32>
    %81 = arith.divf %79, %80 : vector<112x1xf32>
    %82 = arith.mulf %75, %75 : vector<112x35xf32>
    %cst_46 = arith.constant dense<0.000000e+00> : vector<112xf32>
    %83 = vector.multi_reduction <add>, %82, %cst_46 [1] : vector<112x35xf32> to vector<112xf32>
    %84 = vector.shape_cast %83 : vector<112xf32> to vector<112x1xf32>
    %cst_47 = arith.constant 3.500000e+01 : f32
    %85 = vector.broadcast %cst_47 : f32 to vector<112x1xf32>
    %86 = arith.divf %84, %85 : vector<112x1xf32>
    %87 = arith.mulf %81, %81 : vector<112x1xf32>
    %88 = arith.subf %86, %87 : vector<112x1xf32>
    %cst_48 = arith.constant 0.000000e+00 : f32
    %89 = vector.broadcast %cst_48 : f32 to vector<112x1xf32>
    %90 = arith.maximumf %88, %89 : vector<112x1xf32>
    %cst_49 = arith.constant 9.99999974E-6 : f32
    %91 = vector.broadcast %cst_49 : f32 to vector<112x1xf32>
    %92 = arith.addf %90, %91 : vector<112x1xf32>
    %93 = math.rsqrt %92 : vector<112x1xf32>
    %94 = vector.broadcast %81 : vector<112x1xf32> to vector<112x35xf32>
    %95 = arith.subf %75, %94 : vector<112x35xf32>
    %96 = vector.broadcast %93 : vector<112x1xf32> to vector<112x35xf32>
    %97 = arith.mulf %95, %96 : vector<112x35xf32>
    %98 = vector.broadcast %76 : vector<1x35xf32> to vector<112x35xf32>
    %99 = arith.mulf %97, %98 : vector<112x35xf32>
    %100 = vector.broadcast %77 : vector<1x35xf32> to vector<112x35xf32>
    %101 = arith.addf %99, %100 : vector<112x35xf32>
    %102 = math.tanh %101 : vector<112x35xf32>
    %c0_50 = arith.constant 0 : index
    %c0_51 = arith.constant 0 : index
    %103 = vector.load %arg16[%c0_50, %c0_51] : memref<35x1xbf16, #tpu.memory_space<vmem>>, vector<35x1xbf16>
    %c0_52 = arith.constant 0 : index
    %c0_53 = arith.constant 0 : index
    %104 = vector.load %arg17[%c0_52, %c0_53] : memref<1x1xf32, #tpu.memory_space<vmem>>, vector<1x1xf32>
    %105 = arith.truncf %102 : vector<112x35xf32> to vector<112x35xbf16>
    %cst_54 = arith.constant dense<0.000000e+00> : vector<112x1xf32>
    %106 = tpu.matmul %105, %103, %cst_54 {dimension_numbers = #tpu.dot_dimension_numbers<[1], [0], [0], [1], [0, 0, 1, 1], [], []>} : vector<112x35xbf16>, vector<35x1xbf16>, vector<112x1xf32> -> vector<112x1xf32>
    %107 = vector.broadcast %104 : vector<1x1xf32> to vector<112x1xf32>
    %108 = arith.addf %106, %107 : vector<112x1xf32>
    %109 = arith.negf %108 : vector<112x1xf32>
    %110 = math.exp %109 : vector<112x1xf32>
    %cst_55 = arith.constant 1.000000e+00 : f32
    %111 = vector.broadcast %cst_55 : f32 to vector<112x1xf32>
    %112 = arith.addf %111, %110 : vector<112x1xf32>
    %113 = arith.divf %111, %112 : vector<112x1xf32>
    %114 = arith.extf %0 : vector<112x35xbf16> to vector<112x35xf32>
    %115 = vector.broadcast %113 : vector<112x1xf32> to vector<112x35xf32>
    %116 = arith.mulf %115, %114 : vector<112x35xf32>
    %117 = arith.extf %1 : vector<112x35xbf16> to vector<112x35xf32>
    %118 = vector.broadcast %113 : vector<112x1xf32> to vector<112x35xf32>
    %119 = arith.mulf %118, %117 : vector<112x35xf32>
    %120 = tpu.concatenate %116, %119 in 1 : vector<112x35xf32>, vector<112x35xf32> -> vector<112x70xf32>
    %121 = arith.truncf %120 : vector<112x70xf32> to vector<112x70xbf16>
    %c0_56 = arith.constant 0 : index
    %c0_57 = arith.constant 0 : index
    %122 = vector.load %arg18[%c0_56, %c0_57] : memref<112x70xbf16, #tpu.memory_space<vmem>>, vector<112x70xbf16>
    tpu.vector_store %arg18[%c0_56, %c0_57], %121 {strides = array<i32>} : memref<112x70xbf16, #tpu.memory_space<vmem>>, vector<112x70xbf16>,
    return
  }
  func.func @transform_0(%arg0: i32) -> (i32, i32) {
    %c0_i32 = arith.constant 0 : i32
    %c0_i32_0 = arith.constant 0 : i32
    return %arg0, %c0_i32 : i32, i32
  }
  func.func @transform_1(%arg0: i32) -> (i32, i32) {
    %c0_i32 = arith.constant 0 : i32
    %c0_i32_0 = arith.constant 0 : i32
    return %arg0, %c0_i32 : i32, i32
  }
  func.func @transform_2(%arg0: i32) -> (i32, i32) {
    %c0_i32 = arith.constant 0 : i32
    %c0_i32_0 = arith.constant 0 : i32
    %c0_i32_1 = arith.constant 0 : i32
    return %c0_i32, %c0_i32_0 : i32, i32
  }
  func.func @transform_3(%arg0: i32) -> (i32, i32) {
    %c0_i32 = arith.constant 0 : i32
    %c0_i32_0 = arith.constant 0 : i32
    %c0_i32_1 = arith.constant 0 : i32
    return %c0_i32, %c0_i32_0 : i32, i32
  }
  func.func @transform_4(%arg0: i32) -> (i32, i32) {
    %c0_i32 = arith.constant 0 : i32
    %c0_i32_0 = arith.constant 0 : i32
    %c0_i32_1 = arith.constant 0 : i32
    return %c0_i32, %c0_i32_0 : i32, i32
  }
  func.func @transform_5(%arg0: i32) -> (i32, i32) {
    %c0_i32 = arith.constant 0 : i32
    %c0_i32_0 = arith.constant 0 : i32
    %c0_i32_1 = arith.constant 0 : i32
    return %c0_i32, %c0_i32_0 : i32, i32
  }
  func.func @transform_6(%arg0: i32) -> (i32, i32) {
    %c0_i32 = arith.constant 0 : i32
    %c0_i32_0 = arith.constant 0 : i32
    %c0_i32_1 = arith.constant 0 : i32
    return %c0_i32, %c0_i32_0 : i32, i32
  }
  func.func @transform_7(%arg0: i32) -> (i32, i32) {
    %c0_i32 = arith.constant 0 : i32
    %c0_i32_0 = arith.constant 0 : i32
    %c0_i32_1 = arith.constant 0 : i32
    return %c0_i32, %c0_i32_0 : i32, i32
  }
  func.func @transform_8(%arg0: i32) -> (i32, i32) {
    %c0_i32 = arith.constant 0 : i32
    %c0_i32_0 = arith.constant 0 : i32
    %c0_i32_1 = arith.constant 0 : i32
    return %c0_i32, %c0_i32_0 : i32, i32
  }
  func.func @transform_9(%arg0: i32) -> (i32, i32) {
    %c0_i32 = arith.constant 0 : i32
    %c0_i32_0 = arith.constant 0 : i32
    %c0_i32_1 = arith.constant 0 : i32
    return %c0_i32, %c0_i32_0 : i32, i32
  }
  func.func @transform_10(%arg0: i32) -> (i32, i32) {
    %c0_i32 = arith.constant 0 : i32
    %c0_i32_0 = arith.constant 0 : i32
    %c0_i32_1 = arith.constant 0 : i32
    return %c0_i32, %c0_i32_0 : i32, i32
  }
  func.func @transform_11(%arg0: i32) -> (i32, i32) {
    %c0_i32 = arith.constant 0 : i32
    %c0_i32_0 = arith.constant 0 : i32
    %c0_i32_1 = arith.constant 0 : i32
    return %c0_i32, %c0_i32_0 : i32, i32
  }
  func.func @transform_12(%arg0: i32) -> (i32, i32) {
    %c0_i32 = arith.constant 0 : i32
    %c0_i32_0 = arith.constant 0 : i32
    %c0_i32_1 = arith.constant 0 : i32
    return %c0_i32, %c0_i32_0 : i32, i32
  }
  func.func @transform_13(%arg0: i32) -> (i32, i32) {
    %c0_i32 = arith.constant 0 : i32
    %c0_i32_0 = arith.constant 0 : i32
    %c0_i32_1 = arith.constant 0 : i32
    return %c0_i32, %c0_i32_0 : i32, i32
  }
  func.func @transform_14(%arg0: i32) -> (i32, i32) {
    %c0_i32 = arith.constant 0 : i32
    %c0_i32_0 = arith.constant 0 : i32
    %c0_i32_1 = arith.constant 0 : i32
    return %c0_i32, %c0_i32_0 : i32, i32
  }
  func.func @transform_15(%arg0: i32) -> (i32, i32) {
    %c0_i32 = arith.constant 0 : i32
    %c0_i32_0 = arith.constant 0 : i32
    %c0_i32_1 = arith.constant 0 : i32
    return %c0_i32, %c0_i32_0 : i32, i32
  }
  func.func @transform_16(%arg0: i32) -> (i32, i32) {
    %c0_i32 = arith.constant 0 : i32
    %c0_i32_0 = arith.constant 0 : i32
    %c0_i32_1 = arith.constant 0 : i32
    return %c0_i32, %c0_i32_0 : i32, i32
  }
  func.func @transform_17(%arg0: i32) -> (i32, i32) {
    %c0_i32 = arith.constant 0 : i32
    %c0_i32_0 = arith.constant 0 : i32
    return %arg0, %c0_i32 : i32, i32
  }
}

module attributes {stable_mosaic.version = 11 : i64} {
  func.func @kernel(%arg0: i32, %arg1: memref<64x3xf32, #tpu.memory_space<vmem>>, %arg2: memref<3x32xbf16, #tpu.memory_space<vmem>>, %arg3: memref<1x32xf32, #tpu.memory_space<vmem>>, %arg4: memref<1x32xf32, #tpu.memory_space<vmem>>, %arg5: memref<1x32xf32, #tpu.memory_space<vmem>>, %arg6: memref<32x32xbf16, #tpu.memory_space<vmem>>, %arg7: memref<1x32xf32, #tpu.memory_space<vmem>>, %arg8: memref<1x32xf32, #tpu.memory_space<vmem>>, %arg9: memref<1x32xf32, #tpu.memory_space<vmem>>, %arg10: memref<32x32xbf16, #tpu.memory_space<vmem>>, %arg11: memref<1x32xf32, #tpu.memory_space<vmem>>, %arg12: memref<1x32xf32, #tpu.memory_space<vmem>>, %arg13: memref<1x32xf32, #tpu.memory_space<vmem>>, %arg14: memref<64x35xbf16, #tpu.memory_space<vmem>>) attributes {dimension_semantics = [#tpu.dimension_semantics<parallel>], iteration_bounds = array<i64: 1>, scalar_prefetch = 0 : i64, scratch_operands = 0 : i64, tpu.core_type = #tpu.core_type<tc>, window_params = [{transform_indices = @transform_0, window_bounds = array<i64: 64, 3>}, {pipeline_mode = #tpu.pipeline_mode<synchronous>, transform_indices = @transform_1, window_bounds = array<i64: 3, 32>}, {pipeline_mode = #tpu.pipeline_mode<synchronous>, transform_indices = @transform_2, window_bounds = array<i64: 1, 32>}, {pipeline_mode = #tpu.pipeline_mode<synchronous>, transform_indices = @transform_3, window_bounds = array<i64: 1, 32>}, {pipeline_mode = #tpu.pipeline_mode<synchronous>, transform_indices = @transform_4, window_bounds = array<i64: 1, 32>}, {pipeline_mode = #tpu.pipeline_mode<synchronous>, transform_indices = @transform_5, window_bounds = array<i64: 32, 32>}, {pipeline_mode = #tpu.pipeline_mode<synchronous>, transform_indices = @transform_6, window_bounds = array<i64: 1, 32>}, {pipeline_mode = #tpu.pipeline_mode<synchronous>, transform_indices = @transform_7, window_bounds = array<i64: 1, 32>}, {pipeline_mode = #tpu.pipeline_mode<synchronous>, transform_indices = @transform_8, window_bounds = array<i64: 1, 32>}, {pipeline_mode = #tpu.pipeline_mode<synchronous>, transform_indices = @transform_9, window_bounds = array<i64: 32, 32>}, {pipeline_mode = #tpu.pipeline_mode<synchronous>, transform_indices = @transform_10, window_bounds = array<i64: 1, 32>}, {pipeline_mode = #tpu.pipeline_mode<synchronous>, transform_indices = @transform_11, window_bounds = array<i64: 1, 32>}, {pipeline_mode = #tpu.pipeline_mode<synchronous>, transform_indices = @transform_12, window_bounds = array<i64: 1, 32>}, {transform_indices = @transform_13, window_bounds = array<i64: 64, 35>}]} {
    %c0 = arith.constant 0 : index
    %c0_0 = arith.constant 0 : index
    %0 = vector.load %arg1[%c0, %c0_0] : memref<64x3xf32, #tpu.memory_space<vmem>>, vector<64x3xf32>
    %c0_1 = arith.constant 0 : index
    %c0_2 = arith.constant 0 : index
    %1 = vector.load %arg2[%c0_1, %c0_2] : memref<3x32xbf16, #tpu.memory_space<vmem>>, vector<3x32xbf16>
    %2 = arith.truncf %0 : vector<64x3xf32> to vector<64x3xbf16>
    %cst = arith.constant dense<0.000000e+00> : vector<64x32xf32>
    %3 = tpu.matmul %2, %1, %cst {dimension_numbers = #tpu.dot_dimension_numbers<[1], [0], [0], [1], [0, 0, 1, 1], [], []>} : vector<64x3xbf16>, vector<3x32xbf16>, vector<64x32xf32> -> vector<64x32xf32>
    %c0_3 = arith.constant 0 : index
    %c0_4 = arith.constant 0 : index
    %4 = vector.load %arg3[%c0_3, %c0_4] : memref<1x32xf32, #tpu.memory_space<vmem>>, vector<1x32xf32>
    %5 = vector.broadcast %4 : vector<1x32xf32> to vector<64x32xf32>
    %6 = arith.addf %3, %5 : vector<64x32xf32>
    %c0_5 = arith.constant 0 : index
    %c0_6 = arith.constant 0 : index
    %7 = vector.load %arg4[%c0_5, %c0_6] : memref<1x32xf32, #tpu.memory_space<vmem>>, vector<1x32xf32>
    %c0_7 = arith.constant 0 : index
    %c0_8 = arith.constant 0 : index
    %8 = vector.load %arg5[%c0_7, %c0_8] : memref<1x32xf32, #tpu.memory_space<vmem>>, vector<1x32xf32>
    %cst_9 = arith.constant dense<0.000000e+00> : vector<64xf32>
    %9 = vector.multi_reduction <add>, %6, %cst_9 [1] : vector<64x32xf32> to vector<64xf32>
    %10 = vector.shape_cast %9 : vector<64xf32> to vector<64x1xf32>
    %cst_10 = arith.constant 3.200000e+01 : f32
    %11 = vector.broadcast %cst_10 : f32 to vector<64x1xf32>
    %12 = arith.divf %10, %11 : vector<64x1xf32>
    %13 = arith.mulf %6, %6 : vector<64x32xf32>
    %cst_11 = arith.constant dense<0.000000e+00> : vector<64xf32>
    %14 = vector.multi_reduction <add>, %13, %cst_11 [1] : vector<64x32xf32> to vector<64xf32>
    %15 = vector.shape_cast %14 : vector<64xf32> to vector<64x1xf32>
    %cst_12 = arith.constant 3.200000e+01 : f32
    %16 = vector.broadcast %cst_12 : f32 to vector<64x1xf32>
    %17 = arith.divf %15, %16 : vector<64x1xf32>
    %18 = arith.mulf %12, %12 : vector<64x1xf32>
    %19 = arith.subf %17, %18 : vector<64x1xf32>
    %cst_13 = arith.constant 0.000000e+00 : f32
    %20 = vector.broadcast %cst_13 : f32 to vector<64x1xf32>
    %21 = arith.maximumf %19, %20 : vector<64x1xf32>
    %cst_14 = arith.constant 9.99999974E-6 : f32
    %22 = vector.broadcast %cst_14 : f32 to vector<64x1xf32>
    %23 = arith.addf %21, %22 : vector<64x1xf32>
    %24 = math.rsqrt %23 : vector<64x1xf32>
    %25 = vector.broadcast %12 : vector<64x1xf32> to vector<64x32xf32>
    %26 = arith.subf %6, %25 : vector<64x32xf32>
    %27 = vector.broadcast %24 : vector<64x1xf32> to vector<64x32xf32>
    %28 = arith.mulf %26, %27 : vector<64x32xf32>
    %29 = vector.broadcast %7 : vector<1x32xf32> to vector<64x32xf32>
    %30 = arith.mulf %28, %29 : vector<64x32xf32>
    %31 = vector.broadcast %8 : vector<1x32xf32> to vector<64x32xf32>
    %32 = arith.addf %30, %31 : vector<64x32xf32>
    %cst_15 = arith.constant 0.000000e+00 : f32
    %33 = vector.broadcast %cst_15 : f32 to vector<64x32xf32>
    %34 = arith.maximumf %32, %33 : vector<64x32xf32>
    %c0_16 = arith.constant 0 : index
    %c0_17 = arith.constant 0 : index
    %35 = vector.load %arg6[%c0_16, %c0_17] : memref<32x32xbf16, #tpu.memory_space<vmem>>, vector<32x32xbf16>
    %c0_18 = arith.constant 0 : index
    %c0_19 = arith.constant 0 : index
    %36 = vector.load %arg7[%c0_18, %c0_19] : memref<1x32xf32, #tpu.memory_space<vmem>>, vector<1x32xf32>
    %37 = arith.truncf %34 : vector<64x32xf32> to vector<64x32xbf16>
    %cst_20 = arith.constant dense<0.000000e+00> : vector<64x32xf32>
    %38 = tpu.matmul %37, %35, %cst_20 {dimension_numbers = #tpu.dot_dimension_numbers<[1], [0], [0], [1], [0, 0, 1, 1], [], []>} : vector<64x32xbf16>, vector<32x32xbf16>, vector<64x32xf32> -> vector<64x32xf32>
    %39 = vector.broadcast %36 : vector<1x32xf32> to vector<64x32xf32>
    %40 = arith.addf %38, %39 : vector<64x32xf32>
    %c0_21 = arith.constant 0 : index
    %c0_22 = arith.constant 0 : index
    %41 = vector.load %arg8[%c0_21, %c0_22] : memref<1x32xf32, #tpu.memory_space<vmem>>, vector<1x32xf32>
    %c0_23 = arith.constant 0 : index
    %c0_24 = arith.constant 0 : index
    %42 = vector.load %arg9[%c0_23, %c0_24] : memref<1x32xf32, #tpu.memory_space<vmem>>, vector<1x32xf32>
    %cst_25 = arith.constant dense<0.000000e+00> : vector<64xf32>
    %43 = vector.multi_reduction <add>, %40, %cst_25 [1] : vector<64x32xf32> to vector<64xf32>
    %44 = vector.shape_cast %43 : vector<64xf32> to vector<64x1xf32>
    %cst_26 = arith.constant 3.200000e+01 : f32
    %45 = vector.broadcast %cst_26 : f32 to vector<64x1xf32>
    %46 = arith.divf %44, %45 : vector<64x1xf32>
    %47 = arith.mulf %40, %40 : vector<64x32xf32>
    %cst_27 = arith.constant dense<0.000000e+00> : vector<64xf32>
    %48 = vector.multi_reduction <add>, %47, %cst_27 [1] : vector<64x32xf32> to vector<64xf32>
    %49 = vector.shape_cast %48 : vector<64xf32> to vector<64x1xf32>
    %cst_28 = arith.constant 3.200000e+01 : f32
    %50 = vector.broadcast %cst_28 : f32 to vector<64x1xf32>
    %51 = arith.divf %49, %50 : vector<64x1xf32>
    %52 = arith.mulf %46, %46 : vector<64x1xf32>
    %53 = arith.subf %51, %52 : vector<64x1xf32>
    %cst_29 = arith.constant 0.000000e+00 : f32
    %54 = vector.broadcast %cst_29 : f32 to vector<64x1xf32>
    %55 = arith.maximumf %53, %54 : vector<64x1xf32>
    %cst_30 = arith.constant 9.99999974E-6 : f32
    %56 = vector.broadcast %cst_30 : f32 to vector<64x1xf32>
    %57 = arith.addf %55, %56 : vector<64x1xf32>
    %58 = math.rsqrt %57 : vector<64x1xf32>
    %59 = vector.broadcast %46 : vector<64x1xf32> to vector<64x32xf32>
    %60 = arith.subf %40, %59 : vector<64x32xf32>
    %61 = vector.broadcast %58 : vector<64x1xf32> to vector<64x32xf32>
    %62 = arith.mulf %60, %61 : vector<64x32xf32>
    %63 = vector.broadcast %41 : vector<1x32xf32> to vector<64x32xf32>
    %64 = arith.mulf %62, %63 : vector<64x32xf32>
    %65 = vector.broadcast %42 : vector<1x32xf32> to vector<64x32xf32>
    %66 = arith.addf %64, %65 : vector<64x32xf32>
    %cst_31 = arith.constant 0.000000e+00 : f32
    %67 = vector.broadcast %cst_31 : f32 to vector<64x32xf32>
    %68 = arith.maximumf %66, %67 : vector<64x32xf32>
    %c0_32 = arith.constant 0 : index
    %c0_33 = arith.constant 0 : index
    %69 = vector.load %arg10[%c0_32, %c0_33] : memref<32x32xbf16, #tpu.memory_space<vmem>>, vector<32x32xbf16>
    %c0_34 = arith.constant 0 : index
    %c0_35 = arith.constant 0 : index
    %70 = vector.load %arg11[%c0_34, %c0_35] : memref<1x32xf32, #tpu.memory_space<vmem>>, vector<1x32xf32>
    %71 = arith.truncf %68 : vector<64x32xf32> to vector<64x32xbf16>
    %cst_36 = arith.constant dense<0.000000e+00> : vector<64x32xf32>
    %72 = tpu.matmul %71, %69, %cst_36 {dimension_numbers = #tpu.dot_dimension_numbers<[1], [0], [0], [1], [0, 0, 1, 1], [], []>} : vector<64x32xbf16>, vector<32x32xbf16>, vector<64x32xf32> -> vector<64x32xf32>
    %73 = vector.broadcast %70 : vector<1x32xf32> to vector<64x32xf32>
    %74 = arith.addf %72, %73 : vector<64x32xf32>
    %c0_37 = arith.constant 0 : index
    %c0_38 = arith.constant 0 : index
    %75 = vector.load %arg12[%c0_37, %c0_38] : memref<1x32xf32, #tpu.memory_space<vmem>>, vector<1x32xf32>
    %c0_39 = arith.constant 0 : index
    %c0_40 = arith.constant 0 : index
    %76 = vector.load %arg13[%c0_39, %c0_40] : memref<1x32xf32, #tpu.memory_space<vmem>>, vector<1x32xf32>
    %cst_41 = arith.constant dense<0.000000e+00> : vector<64xf32>
    %77 = vector.multi_reduction <add>, %74, %cst_41 [1] : vector<64x32xf32> to vector<64xf32>
    %78 = vector.shape_cast %77 : vector<64xf32> to vector<64x1xf32>
    %cst_42 = arith.constant 3.200000e+01 : f32
    %79 = vector.broadcast %cst_42 : f32 to vector<64x1xf32>
    %80 = arith.divf %78, %79 : vector<64x1xf32>
    %81 = arith.mulf %74, %74 : vector<64x32xf32>
    %cst_43 = arith.constant dense<0.000000e+00> : vector<64xf32>
    %82 = vector.multi_reduction <add>, %81, %cst_43 [1] : vector<64x32xf32> to vector<64xf32>
    %83 = vector.shape_cast %82 : vector<64xf32> to vector<64x1xf32>
    %cst_44 = arith.constant 3.200000e+01 : f32
    %84 = vector.broadcast %cst_44 : f32 to vector<64x1xf32>
    %85 = arith.divf %83, %84 : vector<64x1xf32>
    %86 = arith.mulf %80, %80 : vector<64x1xf32>
    %87 = arith.subf %85, %86 : vector<64x1xf32>
    %cst_45 = arith.constant 0.000000e+00 : f32
    %88 = vector.broadcast %cst_45 : f32 to vector<64x1xf32>
    %89 = arith.maximumf %87, %88 : vector<64x1xf32>
    %cst_46 = arith.constant 9.99999974E-6 : f32
    %90 = vector.broadcast %cst_46 : f32 to vector<64x1xf32>
    %91 = arith.addf %89, %90 : vector<64x1xf32>
    %92 = math.rsqrt %91 : vector<64x1xf32>
    %93 = vector.broadcast %80 : vector<64x1xf32> to vector<64x32xf32>
    %94 = arith.subf %74, %93 : vector<64x32xf32>
    %95 = vector.broadcast %92 : vector<64x1xf32> to vector<64x32xf32>
    %96 = arith.mulf %94, %95 : vector<64x32xf32>
    %97 = vector.broadcast %75 : vector<1x32xf32> to vector<64x32xf32>
    %98 = arith.mulf %96, %97 : vector<64x32xf32>
    %99 = vector.broadcast %76 : vector<1x32xf32> to vector<64x32xf32>
    %100 = arith.addf %98, %99 : vector<64x32xf32>
    %101 = math.tanh %100 : vector<64x32xf32>
    %102 = tpu.concatenate %101, %0 in 1 : vector<64x32xf32>, vector<64x3xf32> -> vector<64x35xf32>
    %103 = arith.truncf %102 : vector<64x35xf32> to vector<64x35xbf16>
    %c0_47 = arith.constant 0 : index
    %c0_48 = arith.constant 0 : index
    %104 = vector.load %arg14[%c0_47, %c0_48] : memref<64x35xbf16, #tpu.memory_space<vmem>>, vector<64x35xbf16>
    tpu.vector_store %arg14[%c0_47, %c0_48], %103 {strides = array<i32>} : memref<64x35xbf16, #tpu.memory_space<vmem>>, vector<64x35xbf16>,
    return
  }
  func.func @transform_0(%arg0: i32) -> (i32, i32) {
    %c0_i32 = arith.constant 0 : i32
    %c0_i32_0 = arith.constant 0 : i32
    return %arg0, %c0_i32 : i32, i32
  }
  func.func @transform_1(%arg0: i32) -> (i32, i32) {
    %c0_i32 = arith.constant 0 : i32
    %c0_i32_0 = arith.constant 0 : i32
    %c0_i32_1 = arith.constant 0 : i32
    return %c0_i32, %c0_i32_0 : i32, i32
  }
  func.func @transform_2(%arg0: i32) -> (i32, i32) {
    %c0_i32 = arith.constant 0 : i32
    %c0_i32_0 = arith.constant 0 : i32
    %c0_i32_1 = arith.constant 0 : i32
    return %c0_i32, %c0_i32_0 : i32, i32
  }
  func.func @transform_3(%arg0: i32) -> (i32, i32) {
    %c0_i32 = arith.constant 0 : i32
    %c0_i32_0 = arith.constant 0 : i32
    %c0_i32_1 = arith.constant 0 : i32
    return %c0_i32, %c0_i32_0 : i32, i32
  }
  func.func @transform_4(%arg0: i32) -> (i32, i32) {
    %c0_i32 = arith.constant 0 : i32
    %c0_i32_0 = arith.constant 0 : i32
    %c0_i32_1 = arith.constant 0 : i32
    return %c0_i32, %c0_i32_0 : i32, i32
  }
  func.func @transform_5(%arg0: i32) -> (i32, i32) {
    %c0_i32 = arith.constant 0 : i32
    %c0_i32_0 = arith.constant 0 : i32
    %c0_i32_1 = arith.constant 0 : i32
    return %c0_i32, %c0_i32_0 : i32, i32
  }
  func.func @transform_6(%arg0: i32) -> (i32, i32) {
    %c0_i32 = arith.constant 0 : i32
    %c0_i32_0 = arith.constant 0 : i32
    %c0_i32_1 = arith.constant 0 : i32
    return %c0_i32, %c0_i32_0 : i32, i32
  }
  func.func @transform_7(%arg0: i32) -> (i32, i32) {
    %c0_i32 = arith.constant 0 : i32
    %c0_i32_0 = arith.constant 0 : i32
    %c0_i32_1 = arith.constant 0 : i32
    return %c0_i32, %c0_i32_0 : i32, i32
  }
  func.func @transform_8(%arg0: i32) -> (i32, i32) {
    %c0_i32 = arith.constant 0 : i32
    %c0_i32_0 = arith.constant 0 : i32
    %c0_i32_1 = arith.constant 0 : i32
    return %c0_i32, %c0_i32_0 : i32, i32
  }
  func.func @transform_9(%arg0: i32) -> (i32, i32) {
    %c0_i32 = arith.constant 0 : i32
    %c0_i32_0 = arith.constant 0 : i32
    %c0_i32_1 = arith.constant 0 : i32
    return %c0_i32, %c0_i32_0 : i32, i32
  }
  func.func @transform_10(%arg0: i32) -> (i32, i32) {
    %c0_i32 = arith.constant 0 : i32
    %c0_i32_0 = arith.constant 0 : i32
    %c0_i32_1 = arith.constant 0 : i32
    return %c0_i32, %c0_i32_0 : i32, i32
  }
  func.func @transform_11(%arg0: i32) -> (i32, i32) {
    %c0_i32 = arith.constant 0 : i32
    %c0_i32_0 = arith.constant 0 : i32
    %c0_i32_1 = arith.constant 0 : i32
    return %c0_i32, %c0_i32_0 : i32, i32
  }
  func.func @transform_12(%arg0: i32) -> (i32, i32) {
    %c0_i32 = arith.constant 0 : i32
    %c0_i32_0 = arith.constant 0 : i32
    %c0_i32_1 = arith.constant 0 : i32
    return %c0_i32, %c0_i32_0 : i32, i32
  }
  func.func @transform_13(%arg0: i32) -> (i32, i32) {
    %c0_i32 = arith.constant 0 : i32
    %c0_i32_0 = arith.constant 0 : i32
    return %arg0, %c0_i32 : i32, i32
  }
}

module attributes {stable_mosaic.version = 11 : i64} {
  func.func @kernel(%arg0: i32, %arg1: memref<64x35xf32, #tpu.memory_space<vmem>>, %arg2: memref<64x35xbf16, #tpu.memory_space<vmem>>, %arg3: memref<64x3xf32, #tpu.memory_space<vmem>>, %arg4: memref<35x32xbf16, #tpu.memory_space<vmem>>, %arg5: memref<35x32xbf16, #tpu.memory_space<vmem>>, %arg6: memref<1x32xf32, #tpu.memory_space<vmem>>, %arg7: memref<1x32xf32, #tpu.memory_space<vmem>>, %arg8: memref<1x32xf32, #tpu.memory_space<vmem>>, %arg9: memref<32x32xbf16, #tpu.memory_space<vmem>>, %arg10: memref<1x32xf32, #tpu.memory_space<vmem>>, %arg11: memref<1x32xf32, #tpu.memory_space<vmem>>, %arg12: memref<1x32xf32, #tpu.memory_space<vmem>>, %arg13: memref<32x32xbf16, #tpu.memory_space<vmem>>, %arg14: memref<1x32xf32, #tpu.memory_space<vmem>>, %arg15: memref<64x35xbf16, #tpu.memory_space<vmem>>) attributes {dimension_semantics = [#tpu.dimension_semantics<parallel>], iteration_bounds = array<i64: 1>, scalar_prefetch = 0 : i64, scratch_operands = 0 : i64, tpu.core_type = #tpu.core_type<tc>, window_params = [{transform_indices = @transform_0, window_bounds = array<i64: 64, 35>}, {transform_indices = @transform_1, window_bounds = array<i64: 64, 35>}, {transform_indices = @transform_2, window_bounds = array<i64: 64, 3>}, {pipeline_mode = #tpu.pipeline_mode<synchronous>, transform_indices = @transform_3, window_bounds = array<i64: 35, 32>}, {pipeline_mode = #tpu.pipeline_mode<synchronous>, transform_indices = @transform_4, window_bounds = array<i64: 35, 32>}, {pipeline_mode = #tpu.pipeline_mode<synchronous>, transform_indices = @transform_5, window_bounds = array<i64: 1, 32>}, {pipeline_mode = #tpu.pipeline_mode<synchronous>, transform_indices = @transform_6, window_bounds = array<i64: 1, 32>}, {pipeline_mode = #tpu.pipeline_mode<synchronous>, transform_indices = @transform_7, window_bounds = array<i64: 1, 32>}, {pipeline_mode = #tpu.pipeline_mode<synchronous>, transform_indices = @transform_8, window_bounds = array<i64: 32, 32>}, {pipeline_mode = #tpu.pipeline_mode<synchronous>, transform_indices = @transform_9, window_bounds = array<i64: 1, 32>}, {pipeline_mode = #tpu.pipeline_mode<synchronous>, transform_indices = @transform_10, window_bounds = array<i64: 1, 32>}, {pipeline_mode = #tpu.pipeline_mode<synchronous>, transform_indices = @transform_11, window_bounds = array<i64: 1, 32>}, {pipeline_mode = #tpu.pipeline_mode<synchronous>, transform_indices = @transform_12, window_bounds = array<i64: 32, 32>}, {pipeline_mode = #tpu.pipeline_mode<synchronous>, transform_indices = @transform_13, window_bounds = array<i64: 1, 32>}, {transform_indices = @transform_14, window_bounds = array<i64: 64, 35>}]} {
    %c0 = arith.constant 0 : index
    %c0_0 = arith.constant 0 : index
    %0 = vector.load %arg1[%c0, %c0_0] : memref<64x35xf32, #tpu.memory_space<vmem>>, vector<64x35xf32>
    %c0_1 = arith.constant 0 : index
    %c0_2 = arith.constant 0 : index
    %1 = vector.load %arg2[%c0_1, %c0_2] : memref<64x35xbf16, #tpu.memory_space<vmem>>, vector<64x35xbf16>
    %c0_3 = arith.constant 0 : index
    %c0_4 = arith.constant 0 : index
    %2 = vector.load %arg3[%c0_3, %c0_4] : memref<64x3xf32, #tpu.memory_space<vmem>>, vector<64x3xf32>
    %c0_5 = arith.constant 0 : index
    %c0_6 = arith.constant 0 : index
    %3 = vector.load %arg4[%c0_5, %c0_6] : memref<35x32xbf16, #tpu.memory_space<vmem>>, vector<35x32xbf16>
    %4 = arith.truncf %0 : vector<64x35xf32> to vector<64x35xbf16>
    %cst = arith.constant dense<0.000000e+00> : vector<64x32xf32>
    %5 = tpu.matmul %4, %3, %cst {dimension_numbers = #tpu.dot_dimension_numbers<[1], [0], [0], [1], [0, 0, 1, 1], [], []>} : vector<64x35xbf16>, vector<35x32xbf16>, vector<64x32xf32> -> vector<64x32xf32>
    %c0_7 = arith.constant 0 : index
    %c0_8 = arith.constant 0 : index
    %6 = vector.load %arg5[%c0_7, %c0_8] : memref<35x32xbf16, #tpu.memory_space<vmem>>, vector<35x32xbf16>
    %cst_9 = arith.constant dense<0.000000e+00> : vector<64x32xf32>
    %7 = tpu.matmul %1, %6, %cst_9 {dimension_numbers = #tpu.dot_dimension_numbers<[1], [0], [0], [1], [0, 0, 1, 1], [], []>} : vector<64x35xbf16>, vector<35x32xbf16>, vector<64x32xf32> -> vector<64x32xf32>
    %8 = arith.addf %5, %7 : vector<64x32xf32>
    %c0_10 = arith.constant 0 : index
    %c0_11 = arith.constant 0 : index
    %9 = vector.load %arg6[%c0_10, %c0_11] : memref<1x32xf32, #tpu.memory_space<vmem>>, vector<1x32xf32>
    %10 = vector.broadcast %9 : vector<1x32xf32> to vector<64x32xf32>
    %11 = arith.addf %8, %10 : vector<64x32xf32>
    %c0_12 = arith.constant 0 : index
    %c0_13 = arith.constant 0 : index
    %12 = vector.load %arg7[%c0_12, %c0_13] : memref<1x32xf32, #tpu.memory_space<vmem>>, vector<1x32xf32>
    %c0_14 = arith.constant 0 : index
    %c0_15 = arith.constant 0 : index
    %13 = vector.load %arg8[%c0_14, %c0_15] : memref<1x32xf32, #tpu.memory_space<vmem>>, vector<1x32xf32>
    %cst_16 = arith.constant dense<0.000000e+00> : vector<64xf32>
    %14 = vector.multi_reduction <add>, %11, %cst_16 [1] : vector<64x32xf32> to vector<64xf32>
    %15 = vector.shape_cast %14 : vector<64xf32> to vector<64x1xf32>
    %cst_17 = arith.constant 3.200000e+01 : f32
    %16 = vector.broadcast %cst_17 : f32 to vector<64x1xf32>
    %17 = arith.divf %15, %16 : vector<64x1xf32>
    %18 = arith.mulf %11, %11 : vector<64x32xf32>
    %cst_18 = arith.constant dense<0.000000e+00> : vector<64xf32>
    %19 = vector.multi_reduction <add>, %18, %cst_18 [1] : vector<64x32xf32> to vector<64xf32>
    %20 = vector.shape_cast %19 : vector<64xf32> to vector<64x1xf32>
    %cst_19 = arith.constant 3.200000e+01 : f32
    %21 = vector.broadcast %cst_19 : f32 to vector<64x1xf32>
    %22 = arith.divf %20, %21 : vector<64x1xf32>
    %23 = arith.mulf %17, %17 : vector<64x1xf32>
    %24 = arith.subf %22, %23 : vector<64x1xf32>
    %cst_20 = arith.constant 0.000000e+00 : f32
    %25 = vector.broadcast %cst_20 : f32 to vector<64x1xf32>
    %26 = arith.maximumf %24, %25 : vector<64x1xf32>
    %cst_21 = arith.constant 9.99999974E-6 : f32
    %27 = vector.broadcast %cst_21 : f32 to vector<64x1xf32>
    %28 = arith.addf %26, %27 : vector<64x1xf32>
    %29 = math.rsqrt %28 : vector<64x1xf32>
    %30 = vector.broadcast %17 : vector<64x1xf32> to vector<64x32xf32>
    %31 = arith.subf %11, %30 : vector<64x32xf32>
    %32 = vector.broadcast %29 : vector<64x1xf32> to vector<64x32xf32>
    %33 = arith.mulf %31, %32 : vector<64x32xf32>
    %34 = vector.broadcast %12 : vector<1x32xf32> to vector<64x32xf32>
    %35 = arith.mulf %33, %34 : vector<64x32xf32>
    %36 = vector.broadcast %13 : vector<1x32xf32> to vector<64x32xf32>
    %37 = arith.addf %35, %36 : vector<64x32xf32>
    %38 = math.tanh %37 : vector<64x32xf32>
    %c0_22 = arith.constant 0 : index
    %c0_23 = arith.constant 0 : index
    %39 = vector.load %arg9[%c0_22, %c0_23] : memref<32x32xbf16, #tpu.memory_space<vmem>>, vector<32x32xbf16>
    %c0_24 = arith.constant 0 : index
    %c0_25 = arith.constant 0 : index
    %40 = vector.load %arg10[%c0_24, %c0_25] : memref<1x32xf32, #tpu.memory_space<vmem>>, vector<1x32xf32>
    %41 = arith.truncf %38 : vector<64x32xf32> to vector<64x32xbf16>
    %cst_26 = arith.constant dense<0.000000e+00> : vector<64x32xf32>
    %42 = tpu.matmul %41, %39, %cst_26 {dimension_numbers = #tpu.dot_dimension_numbers<[1], [0], [0], [1], [0, 0, 1, 1], [], []>} : vector<64x32xbf16>, vector<32x32xbf16>, vector<64x32xf32> -> vector<64x32xf32>
    %43 = vector.broadcast %40 : vector<1x32xf32> to vector<64x32xf32>
    %44 = arith.addf %42, %43 : vector<64x32xf32>
    %c0_27 = arith.constant 0 : index
    %c0_28 = arith.constant 0 : index
    %45 = vector.load %arg11[%c0_27, %c0_28] : memref<1x32xf32, #tpu.memory_space<vmem>>, vector<1x32xf32>
    %c0_29 = arith.constant 0 : index
    %c0_30 = arith.constant 0 : index
    %46 = vector.load %arg12[%c0_29, %c0_30] : memref<1x32xf32, #tpu.memory_space<vmem>>, vector<1x32xf32>
    %cst_31 = arith.constant dense<0.000000e+00> : vector<64xf32>
    %47 = vector.multi_reduction <add>, %44, %cst_31 [1] : vector<64x32xf32> to vector<64xf32>
    %48 = vector.shape_cast %47 : vector<64xf32> to vector<64x1xf32>
    %cst_32 = arith.constant 3.200000e+01 : f32
    %49 = vector.broadcast %cst_32 : f32 to vector<64x1xf32>
    %50 = arith.divf %48, %49 : vector<64x1xf32>
    %51 = arith.mulf %44, %44 : vector<64x32xf32>
    %cst_33 = arith.constant dense<0.000000e+00> : vector<64xf32>
    %52 = vector.multi_reduction <add>, %51, %cst_33 [1] : vector<64x32xf32> to vector<64xf32>
    %53 = vector.shape_cast %52 : vector<64xf32> to vector<64x1xf32>
    %cst_34 = arith.constant 3.200000e+01 : f32
    %54 = vector.broadcast %cst_34 : f32 to vector<64x1xf32>
    %55 = arith.divf %53, %54 : vector<64x1xf32>
    %56 = arith.mulf %50, %50 : vector<64x1xf32>
    %57 = arith.subf %55, %56 : vector<64x1xf32>
    %cst_35 = arith.constant 0.000000e+00 : f32
    %58 = vector.broadcast %cst_35 : f32 to vector<64x1xf32>
    %59 = arith.maximumf %57, %58 : vector<64x1xf32>
    %cst_36 = arith.constant 9.99999974E-6 : f32
    %60 = vector.broadcast %cst_36 : f32 to vector<64x1xf32>
    %61 = arith.addf %59, %60 : vector<64x1xf32>
    %62 = math.rsqrt %61 : vector<64x1xf32>
    %63 = vector.broadcast %50 : vector<64x1xf32> to vector<64x32xf32>
    %64 = arith.subf %44, %63 : vector<64x32xf32>
    %65 = vector.broadcast %62 : vector<64x1xf32> to vector<64x32xf32>
    %66 = arith.mulf %64, %65 : vector<64x32xf32>
    %67 = vector.broadcast %45 : vector<1x32xf32> to vector<64x32xf32>
    %68 = arith.mulf %66, %67 : vector<64x32xf32>
    %69 = vector.broadcast %46 : vector<1x32xf32> to vector<64x32xf32>
    %70 = arith.addf %68, %69 : vector<64x32xf32>
    %71 = math.tanh %70 : vector<64x32xf32>
    %c0_37 = arith.constant 0 : index
    %c0_38 = arith.constant 0 : index
    %72 = vector.load %arg13[%c0_37, %c0_38] : memref<32x32xbf16, #tpu.memory_space<vmem>>, vector<32x32xbf16>
    %c0_39 = arith.constant 0 : index
    %c0_40 = arith.constant 0 : index
    %73 = vector.load %arg14[%c0_39, %c0_40] : memref<1x32xf32, #tpu.memory_space<vmem>>, vector<1x32xf32>
    %74 = arith.truncf %71 : vector<64x32xf32> to vector<64x32xbf16>
    %cst_41 = arith.constant dense<0.000000e+00> : vector<64x32xf32>
    %75 = tpu.matmul %74, %72, %cst_41 {dimension_numbers = #tpu.dot_dimension_numbers<[1], [0], [0], [1], [0, 0, 1, 1], [], []>} : vector<64x32xbf16>, vector<32x32xbf16>, vector<64x32xf32> -> vector<64x32xf32>
    %76 = vector.broadcast %73 : vector<1x32xf32> to vector<64x32xf32>
    %77 = arith.addf %75, %76 : vector<64x32xf32>
    %78 = arith.extf %1 : vector<64x35xbf16> to vector<64x35xf32>
    %79 = tpu.concatenate %77, %2 in 1 : vector<64x32xf32>, vector<64x3xf32> -> vector<64x35xf32>
    %80 = arith.addf %78, %79 : vector<64x35xf32>
    %81 = arith.truncf %80 : vector<64x35xf32> to vector<64x35xbf16>
    %c0_42 = arith.constant 0 : index
    %c0_43 = arith.constant 0 : index
    %82 = vector.load %arg15[%c0_42, %c0_43] : memref<64x35xbf16, #tpu.memory_space<vmem>>, vector<64x35xbf16>
    tpu.vector_store %arg15[%c0_42, %c0_43], %81 {strides = array<i32>} : memref<64x35xbf16, #tpu.memory_space<vmem>>, vector<64x35xbf16>,
    return
  }
  func.func @transform_0(%arg0: i32) -> (i32, i32) {
    %c0_i32 = arith.constant 0 : i32
    %c0_i32_0 = arith.constant 0 : i32
    return %arg0, %c0_i32 : i32, i32
  }
  func.func @transform_1(%arg0: i32) -> (i32, i32) {
    %c0_i32 = arith.constant 0 : i32
    %c0_i32_0 = arith.constant 0 : i32
    return %arg0, %c0_i32 : i32, i32
  }
  func.func @transform_2(%arg0: i32) -> (i32, i32) {
    %c0_i32 = arith.constant 0 : i32
    %c0_i32_0 = arith.constant 0 : i32
    return %arg0, %c0_i32 : i32, i32
  }
  func.func @transform_3(%arg0: i32) -> (i32, i32) {
    %c0_i32 = arith.constant 0 : i32
    %c0_i32_0 = arith.constant 0 : i32
    %c0_i32_1 = arith.constant 0 : i32
    return %c0_i32, %c0_i32_0 : i32, i32
  }
  func.func @transform_4(%arg0: i32) -> (i32, i32) {
    %c0_i32 = arith.constant 0 : i32
    %c0_i32_0 = arith.constant 0 : i32
    %c0_i32_1 = arith.constant 0 : i32
    return %c0_i32, %c0_i32_0 : i32, i32
  }
  func.func @transform_5(%arg0: i32) -> (i32, i32) {
    %c0_i32 = arith.constant 0 : i32
    %c0_i32_0 = arith.constant 0 : i32
    %c0_i32_1 = arith.constant 0 : i32
    return %c0_i32, %c0_i32_0 : i32, i32
  }
  func.func @transform_6(%arg0: i32) -> (i32, i32) {
    %c0_i32 = arith.constant 0 : i32
    %c0_i32_0 = arith.constant 0 : i32
    %c0_i32_1 = arith.constant 0 : i32
    return %c0_i32, %c0_i32_0 : i32, i32
  }
  func.func @transform_7(%arg0: i32) -> (i32, i32) {
    %c0_i32 = arith.constant 0 : i32
    %c0_i32_0 = arith.constant 0 : i32
    %c0_i32_1 = arith.constant 0 : i32
    return %c0_i32, %c0_i32_0 : i32, i32
  }
  func.func @transform_8(%arg0: i32) -> (i32, i32) {
    %c0_i32 = arith.constant 0 : i32
    %c0_i32_0 = arith.constant 0 : i32
    %c0_i32_1 = arith.constant 0 : i32
    return %c0_i32, %c0_i32_0 : i32, i32
  }
  func.func @transform_9(%arg0: i32) -> (i32, i32) {
    %c0_i32 = arith.constant 0 : i32
    %c0_i32_0 = arith.constant 0 : i32
    %c0_i32_1 = arith.constant 0 : i32
    return %c0_i32, %c0_i32_0 : i32, i32
  }
  func.func @transform_10(%arg0: i32) -> (i32, i32) {
    %c0_i32 = arith.constant 0 : i32
    %c0_i32_0 = arith.constant 0 : i32
    %c0_i32_1 = arith.constant 0 : i32
    return %c0_i32, %c0_i32_0 : i32, i32
  }
  func.func @transform_11(%arg0: i32) -> (i32, i32) {
    %c0_i32 = arith.constant 0 : i32
    %c0_i32_0 = arith.constant 0 : i32
    %c0_i32_1 = arith.constant 0 : i32
    return %c0_i32, %c0_i32_0 : i32, i32
  }
  func.func @transform_12(%arg0: i32) -> (i32, i32) {
    %c0_i32 = arith.constant 0 : i32
    %c0_i32_0 = arith.constant 0 : i32
    %c0_i32_1 = arith.constant 0 : i32
    return %c0_i32, %c0_i32_0 : i32, i32
  }
  func.func @transform_13(%arg0: i32) -> (i32, i32) {
    %c0_i32 = arith.constant 0 : i32
    %c0_i32_0 = arith.constant 0 : i32
    %c0_i32_1 = arith.constant 0 : i32
    return %c0_i32, %c0_i32_0 : i32, i32
  }
  func.func @transform_14(%arg0: i32) -> (i32, i32) {
    %c0_i32 = arith.constant 0 : i32
    %c0_i32_0 = arith.constant 0 : i32
    return %arg0, %c0_i32 : i32, i32
  }
}

module attributes {stable_mosaic.version = 11 : i64} {
  func.func @kernel(%arg0: i32, %arg1: memref<112x35xbf16, #tpu.memory_space<vmem>>, %arg2: memref<112x35xbf16, #tpu.memory_space<vmem>>, %arg3: memref<35x35xbf16, #tpu.memory_space<vmem>>, %arg4: memref<35x35xbf16, #tpu.memory_space<vmem>>, %arg5: memref<1x35xf32, #tpu.memory_space<vmem>>, %arg6: memref<1x35xf32, #tpu.memory_space<vmem>>, %arg7: memref<1x35xf32, #tpu.memory_space<vmem>>, %arg8: memref<35x35xbf16, #tpu.memory_space<vmem>>, %arg9: memref<1x35xf32, #tpu.memory_space<vmem>>, %arg10: memref<1x35xf32, #tpu.memory_space<vmem>>, %arg11: memref<1x35xf32, #tpu.memory_space<vmem>>, %arg12: memref<35x35xbf16, #tpu.memory_space<vmem>>, %arg13: memref<1x35xf32, #tpu.memory_space<vmem>>, %arg14: memref<1x35xf32, #tpu.memory_space<vmem>>, %arg15: memref<1x35xf32, #tpu.memory_space<vmem>>, %arg16: memref<35x1xbf16, #tpu.memory_space<vmem>>, %arg17: memref<1x1xf32, #tpu.memory_space<vmem>>, %arg18: memref<112x1xf32, #tpu.memory_space<vmem>>) attributes {dimension_semantics = [#tpu.dimension_semantics<parallel>], iteration_bounds = array<i64: 1>, scalar_prefetch = 0 : i64, scratch_operands = 0 : i64, tpu.core_type = #tpu.core_type<tc>, window_params = [{transform_indices = @transform_0, window_bounds = array<i64: 112, 35>}, {transform_indices = @transform_1, window_bounds = array<i64: 112, 35>}, {pipeline_mode = #tpu.pipeline_mode<synchronous>, transform_indices = @transform_2, window_bounds = array<i64: 35, 35>}, {pipeline_mode = #tpu.pipeline_mode<synchronous>, transform_indices = @transform_3, window_bounds = array<i64: 35, 35>}, {pipeline_mode = #tpu.pipeline_mode<synchronous>, transform_indices = @transform_4, window_bounds = array<i64: 1, 35>}, {pipeline_mode = #tpu.pipeline_mode<synchronous>, transform_indices = @transform_5, window_bounds = array<i64: 1, 35>}, {pipeline_mode = #tpu.pipeline_mode<synchronous>, transform_indices = @transform_6, window_bounds = array<i64: 1, 35>}, {pipeline_mode = #tpu.pipeline_mode<synchronous>, transform_indices = @transform_7, window_bounds = array<i64: 35, 35>}, {pipeline_mode = #tpu.pipeline_mode<synchronous>, transform_indices = @transform_8, window_bounds = array<i64: 1, 35>}, {pipeline_mode = #tpu.pipeline_mode<synchronous>, transform_indices = @transform_9, window_bounds = array<i64: 1, 35>}, {pipeline_mode = #tpu.pipeline_mode<synchronous>, transform_indices = @transform_10, window_bounds = array<i64: 1, 35>}, {pipeline_mode = #tpu.pipeline_mode<synchronous>, transform_indices = @transform_11, window_bounds = array<i64: 35, 35>}, {pipeline_mode = #tpu.pipeline_mode<synchronous>, transform_indices = @transform_12, window_bounds = array<i64: 1, 35>}, {pipeline_mode = #tpu.pipeline_mode<synchronous>, transform_indices = @transform_13, window_bounds = array<i64: 1, 35>}, {pipeline_mode = #tpu.pipeline_mode<synchronous>, transform_indices = @transform_14, window_bounds = array<i64: 1, 35>}, {pipeline_mode = #tpu.pipeline_mode<synchronous>, transform_indices = @transform_15, window_bounds = array<i64: 35, 1>}, {pipeline_mode = #tpu.pipeline_mode<synchronous>, transform_indices = @transform_16, window_bounds = array<i64: 1, 1>}, {transform_indices = @transform_17, window_bounds = array<i64: 112, 1>}]} {
    %c0 = arith.constant 0 : index
    %c0_0 = arith.constant 0 : index
    %0 = vector.load %arg1[%c0, %c0_0] : memref<112x35xbf16, #tpu.memory_space<vmem>>, vector<112x35xbf16>
    %c0_1 = arith.constant 0 : index
    %c0_2 = arith.constant 0 : index
    %1 = vector.load %arg2[%c0_1, %c0_2] : memref<112x35xbf16, #tpu.memory_space<vmem>>, vector<112x35xbf16>
    %c0_3 = arith.constant 0 : index
    %c0_4 = arith.constant 0 : index
    %2 = vector.load %arg3[%c0_3, %c0_4] : memref<35x35xbf16, #tpu.memory_space<vmem>>, vector<35x35xbf16>
    %cst = arith.constant dense<0.000000e+00> : vector<112x35xf32>
    %3 = tpu.matmul %0, %2, %cst {dimension_numbers = #tpu.dot_dimension_numbers<[1], [0], [0], [1], [0, 0, 1, 1], [], []>} : vector<112x35xbf16>, vector<35x35xbf16>, vector<112x35xf32> -> vector<112x35xf32>
    %c0_5 = arith.constant 0 : index
    %c0_6 = arith.constant 0 : index
    %4 = vector.load %arg4[%c0_5, %c0_6] : memref<35x35xbf16, #tpu.memory_space<vmem>>, vector<35x35xbf16>
    %cst_7 = arith.constant dense<0.000000e+00> : vector<112x35xf32>
    %5 = tpu.matmul %1, %4, %cst_7 {dimension_numbers = #tpu.dot_dimension_numbers<[1], [0], [0], [1], [0, 0, 1, 1], [], []>} : vector<112x35xbf16>, vector<35x35xbf16>, vector<112x35xf32> -> vector<112x35xf32>
    %6 = arith.addf %3, %5 : vector<112x35xf32>
    %c0_8 = arith.constant 0 : index
    %c0_9 = arith.constant 0 : index
    %7 = vector.load %arg5[%c0_8, %c0_9] : memref<1x35xf32, #tpu.memory_space<vmem>>, vector<1x35xf32>
    %8 = vector.broadcast %7 : vector<1x35xf32> to vector<112x35xf32>
    %9 = arith.addf %6, %8 : vector<112x35xf32>
    %c0_10 = arith.constant 0 : index
    %c0_11 = arith.constant 0 : index
    %10 = vector.load %arg6[%c0_10, %c0_11] : memref<1x35xf32, #tpu.memory_space<vmem>>, vector<1x35xf32>
    %c0_12 = arith.constant 0 : index
    %c0_13 = arith.constant 0 : index
    %11 = vector.load %arg7[%c0_12, %c0_13] : memref<1x35xf32, #tpu.memory_space<vmem>>, vector<1x35xf32>
    %cst_14 = arith.constant dense<0.000000e+00> : vector<112xf32>
    %12 = vector.multi_reduction <add>, %9, %cst_14 [1] : vector<112x35xf32> to vector<112xf32>
    %13 = vector.shape_cast %12 : vector<112xf32> to vector<112x1xf32>
    %cst_15 = arith.constant 3.500000e+01 : f32
    %14 = vector.broadcast %cst_15 : f32 to vector<112x1xf32>
    %15 = arith.divf %13, %14 : vector<112x1xf32>
    %16 = arith.mulf %9, %9 : vector<112x35xf32>
    %cst_16 = arith.constant dense<0.000000e+00> : vector<112xf32>
    %17 = vector.multi_reduction <add>, %16, %cst_16 [1] : vector<112x35xf32> to vector<112xf32>
    %18 = vector.shape_cast %17 : vector<112xf32> to vector<112x1xf32>
    %cst_17 = arith.constant 3.500000e+01 : f32
    %19 = vector.broadcast %cst_17 : f32 to vector<112x1xf32>
    %20 = arith.divf %18, %19 : vector<112x1xf32>
    %21 = arith.mulf %15, %15 : vector<112x1xf32>
    %22 = arith.subf %20, %21 : vector<112x1xf32>
    %cst_18 = arith.constant 0.000000e+00 : f32
    %23 = vector.broadcast %cst_18 : f32 to vector<112x1xf32>
    %24 = arith.maximumf %22, %23 : vector<112x1xf32>
    %cst_19 = arith.constant 9.99999974E-6 : f32
    %25 = vector.broadcast %cst_19 : f32 to vector<112x1xf32>
    %26 = arith.addf %24, %25 : vector<112x1xf32>
    %27 = math.rsqrt %26 : vector<112x1xf32>
    %28 = vector.broadcast %15 : vector<112x1xf32> to vector<112x35xf32>
    %29 = arith.subf %9, %28 : vector<112x35xf32>
    %30 = vector.broadcast %27 : vector<112x1xf32> to vector<112x35xf32>
    %31 = arith.mulf %29, %30 : vector<112x35xf32>
    %32 = vector.broadcast %10 : vector<1x35xf32> to vector<112x35xf32>
    %33 = arith.mulf %31, %32 : vector<112x35xf32>
    %34 = vector.broadcast %11 : vector<1x35xf32> to vector<112x35xf32>
    %35 = arith.addf %33, %34 : vector<112x35xf32>
    %36 = math.tanh %35 : vector<112x35xf32>
    %c0_20 = arith.constant 0 : index
    %c0_21 = arith.constant 0 : index
    %37 = vector.load %arg8[%c0_20, %c0_21] : memref<35x35xbf16, #tpu.memory_space<vmem>>, vector<35x35xbf16>
    %c0_22 = arith.constant 0 : index
    %c0_23 = arith.constant 0 : index
    %38 = vector.load %arg9[%c0_22, %c0_23] : memref<1x35xf32, #tpu.memory_space<vmem>>, vector<1x35xf32>
    %39 = arith.truncf %36 : vector<112x35xf32> to vector<112x35xbf16>
    %cst_24 = arith.constant dense<0.000000e+00> : vector<112x35xf32>
    %40 = tpu.matmul %39, %37, %cst_24 {dimension_numbers = #tpu.dot_dimension_numbers<[1], [0], [0], [1], [0, 0, 1, 1], [], []>} : vector<112x35xbf16>, vector<35x35xbf16>, vector<112x35xf32> -> vector<112x35xf32>
    %41 = vector.broadcast %38 : vector<1x35xf32> to vector<112x35xf32>
    %42 = arith.addf %40, %41 : vector<112x35xf32>
    %c0_25 = arith.constant 0 : index
    %c0_26 = arith.constant 0 : index
    %43 = vector.load %arg10[%c0_25, %c0_26] : memref<1x35xf32, #tpu.memory_space<vmem>>, vector<1x35xf32>
    %c0_27 = arith.constant 0 : index
    %c0_28 = arith.constant 0 : index
    %44 = vector.load %arg11[%c0_27, %c0_28] : memref<1x35xf32, #tpu.memory_space<vmem>>, vector<1x35xf32>
    %cst_29 = arith.constant dense<0.000000e+00> : vector<112xf32>
    %45 = vector.multi_reduction <add>, %42, %cst_29 [1] : vector<112x35xf32> to vector<112xf32>
    %46 = vector.shape_cast %45 : vector<112xf32> to vector<112x1xf32>
    %cst_30 = arith.constant 3.500000e+01 : f32
    %47 = vector.broadcast %cst_30 : f32 to vector<112x1xf32>
    %48 = arith.divf %46, %47 : vector<112x1xf32>
    %49 = arith.mulf %42, %42 : vector<112x35xf32>
    %cst_31 = arith.constant dense<0.000000e+00> : vector<112xf32>
    %50 = vector.multi_reduction <add>, %49, %cst_31 [1] : vector<112x35xf32> to vector<112xf32>
    %51 = vector.shape_cast %50 : vector<112xf32> to vector<112x1xf32>
    %cst_32 = arith.constant 3.500000e+01 : f32
    %52 = vector.broadcast %cst_32 : f32 to vector<112x1xf32>
    %53 = arith.divf %51, %52 : vector<112x1xf32>
    %54 = arith.mulf %48, %48 : vector<112x1xf32>
    %55 = arith.subf %53, %54 : vector<112x1xf32>
    %cst_33 = arith.constant 0.000000e+00 : f32
    %56 = vector.broadcast %cst_33 : f32 to vector<112x1xf32>
    %57 = arith.maximumf %55, %56 : vector<112x1xf32>
    %cst_34 = arith.constant 9.99999974E-6 : f32
    %58 = vector.broadcast %cst_34 : f32 to vector<112x1xf32>
    %59 = arith.addf %57, %58 : vector<112x1xf32>
    %60 = math.rsqrt %59 : vector<112x1xf32>
    %61 = vector.broadcast %48 : vector<112x1xf32> to vector<112x35xf32>
    %62 = arith.subf %42, %61 : vector<112x35xf32>
    %63 = vector.broadcast %60 : vector<112x1xf32> to vector<112x35xf32>
    %64 = arith.mulf %62, %63 : vector<112x35xf32>
    %65 = vector.broadcast %43 : vector<1x35xf32> to vector<112x35xf32>
    %66 = arith.mulf %64, %65 : vector<112x35xf32>
    %67 = vector.broadcast %44 : vector<1x35xf32> to vector<112x35xf32>
    %68 = arith.addf %66, %67 : vector<112x35xf32>
    %69 = math.tanh %68 : vector<112x35xf32>
    %c0_35 = arith.constant 0 : index
    %c0_36 = arith.constant 0 : index
    %70 = vector.load %arg12[%c0_35, %c0_36] : memref<35x35xbf16, #tpu.memory_space<vmem>>, vector<35x35xbf16>
    %c0_37 = arith.constant 0 : index
    %c0_38 = arith.constant 0 : index
    %71 = vector.load %arg13[%c0_37, %c0_38] : memref<1x35xf32, #tpu.memory_space<vmem>>, vector<1x35xf32>
    %72 = arith.truncf %69 : vector<112x35xf32> to vector<112x35xbf16>
    %cst_39 = arith.constant dense<0.000000e+00> : vector<112x35xf32>
    %73 = tpu.matmul %72, %70, %cst_39 {dimension_numbers = #tpu.dot_dimension_numbers<[1], [0], [0], [1], [0, 0, 1, 1], [], []>} : vector<112x35xbf16>, vector<35x35xbf16>, vector<112x35xf32> -> vector<112x35xf32>
    %74 = vector.broadcast %71 : vector<1x35xf32> to vector<112x35xf32>
    %75 = arith.addf %73, %74 : vector<112x35xf32>
    %c0_40 = arith.constant 0 : index
    %c0_41 = arith.constant 0 : index
    %76 = vector.load %arg14[%c0_40, %c0_41] : memref<1x35xf32, #tpu.memory_space<vmem>>, vector<1x35xf32>
    %c0_42 = arith.constant 0 : index
    %c0_43 = arith.constant 0 : index
    %77 = vector.load %arg15[%c0_42, %c0_43] : memref<1x35xf32, #tpu.memory_space<vmem>>, vector<1x35xf32>
    %cst_44 = arith.constant dense<0.000000e+00> : vector<112xf32>
    %78 = vector.multi_reduction <add>, %75, %cst_44 [1] : vector<112x35xf32> to vector<112xf32>
    %79 = vector.shape_cast %78 : vector<112xf32> to vector<112x1xf32>
    %cst_45 = arith.constant 3.500000e+01 : f32
    %80 = vector.broadcast %cst_45 : f32 to vector<112x1xf32>
    %81 = arith.divf %79, %80 : vector<112x1xf32>
    %82 = arith.mulf %75, %75 : vector<112x35xf32>
    %cst_46 = arith.constant dense<0.000000e+00> : vector<112xf32>
    %83 = vector.multi_reduction <add>, %82, %cst_46 [1] : vector<112x35xf32> to vector<112xf32>
    %84 = vector.shape_cast %83 : vector<112xf32> to vector<112x1xf32>
    %cst_47 = arith.constant 3.500000e+01 : f32
    %85 = vector.broadcast %cst_47 : f32 to vector<112x1xf32>
    %86 = arith.divf %84, %85 : vector<112x1xf32>
    %87 = arith.mulf %81, %81 : vector<112x1xf32>
    %88 = arith.subf %86, %87 : vector<112x1xf32>
    %cst_48 = arith.constant 0.000000e+00 : f32
    %89 = vector.broadcast %cst_48 : f32 to vector<112x1xf32>
    %90 = arith.maximumf %88, %89 : vector<112x1xf32>
    %cst_49 = arith.constant 9.99999974E-6 : f32
    %91 = vector.broadcast %cst_49 : f32 to vector<112x1xf32>
    %92 = arith.addf %90, %91 : vector<112x1xf32>
    %93 = math.rsqrt %92 : vector<112x1xf32>
    %94 = vector.broadcast %81 : vector<112x1xf32> to vector<112x35xf32>
    %95 = arith.subf %75, %94 : vector<112x35xf32>
    %96 = vector.broadcast %93 : vector<112x1xf32> to vector<112x35xf32>
    %97 = arith.mulf %95, %96 : vector<112x35xf32>
    %98 = vector.broadcast %76 : vector<1x35xf32> to vector<112x35xf32>
    %99 = arith.mulf %97, %98 : vector<112x35xf32>
    %100 = vector.broadcast %77 : vector<1x35xf32> to vector<112x35xf32>
    %101 = arith.addf %99, %100 : vector<112x35xf32>
    %102 = math.tanh %101 : vector<112x35xf32>
    %c0_50 = arith.constant 0 : index
    %c0_51 = arith.constant 0 : index
    %103 = vector.load %arg16[%c0_50, %c0_51] : memref<35x1xbf16, #tpu.memory_space<vmem>>, vector<35x1xbf16>
    %c0_52 = arith.constant 0 : index
    %c0_53 = arith.constant 0 : index
    %104 = vector.load %arg17[%c0_52, %c0_53] : memref<1x1xf32, #tpu.memory_space<vmem>>, vector<1x1xf32>
    %105 = arith.truncf %102 : vector<112x35xf32> to vector<112x35xbf16>
    %cst_54 = arith.constant dense<0.000000e+00> : vector<112x1xf32>
    %106 = tpu.matmul %105, %103, %cst_54 {dimension_numbers = #tpu.dot_dimension_numbers<[1], [0], [0], [1], [0, 0, 1, 1], [], []>} : vector<112x35xbf16>, vector<35x1xbf16>, vector<112x1xf32> -> vector<112x1xf32>
    %107 = vector.broadcast %104 : vector<1x1xf32> to vector<112x1xf32>
    %108 = arith.addf %106, %107 : vector<112x1xf32>
    %c0_55 = arith.constant 0 : index
    %c0_56 = arith.constant 0 : index
    %109 = vector.load %arg18[%c0_55, %c0_56] : memref<112x1xf32, #tpu.memory_space<vmem>>, vector<112x1xf32>
    tpu.vector_store %arg18[%c0_55, %c0_56], %108 {strides = array<i32>} : memref<112x1xf32, #tpu.memory_space<vmem>>, vector<112x1xf32>,
    return
  }
  func.func @transform_0(%arg0: i32) -> (i32, i32) {
    %c0_i32 = arith.constant 0 : i32
    %c0_i32_0 = arith.constant 0 : i32
    return %arg0, %c0_i32 : i32, i32
  }
  func.func @transform_1(%arg0: i32) -> (i32, i32) {
    %c0_i32 = arith.constant 0 : i32
    %c0_i32_0 = arith.constant 0 : i32
    return %arg0, %c0_i32 : i32, i32
  }
  func.func @transform_2(%arg0: i32) -> (i32, i32) {
    %c0_i32 = arith.constant 0 : i32
    %c0_i32_0 = arith.constant 0 : i32
    %c0_i32_1 = arith.constant 0 : i32
    return %c0_i32, %c0_i32_0 : i32, i32
  }
  func.func @transform_3(%arg0: i32) -> (i32, i32) {
    %c0_i32 = arith.constant 0 : i32
    %c0_i32_0 = arith.constant 0 : i32
    %c0_i32_1 = arith.constant 0 : i32
    return %c0_i32, %c0_i32_0 : i32, i32
  }
  func.func @transform_4(%arg0: i32) -> (i32, i32) {
    %c0_i32 = arith.constant 0 : i32
    %c0_i32_0 = arith.constant 0 : i32
    %c0_i32_1 = arith.constant 0 : i32
    return %c0_i32, %c0_i32_0 : i32, i32
  }
  func.func @transform_5(%arg0: i32) -> (i32, i32) {
    %c0_i32 = arith.constant 0 : i32
    %c0_i32_0 = arith.constant 0 : i32
    %c0_i32_1 = arith.constant 0 : i32
    return %c0_i32, %c0_i32_0 : i32, i32
  }
  func.func @transform_6(%arg0: i32) -> (i32, i32) {
    %c0_i32 = arith.constant 0 : i32
    %c0_i32_0 = arith.constant 0 : i32
    %c0_i32_1 = arith.constant 0 : i32
    return %c0_i32, %c0_i32_0 : i32, i32
  }
  func.func @transform_7(%arg0: i32) -> (i32, i32) {
    %c0_i32 = arith.constant 0 : i32
    %c0_i32_0 = arith.constant 0 : i32
    %c0_i32_1 = arith.constant 0 : i32
    return %c0_i32, %c0_i32_0 : i32, i32
  }
  func.func @transform_8(%arg0: i32) -> (i32, i32) {
    %c0_i32 = arith.constant 0 : i32
    %c0_i32_0 = arith.constant 0 : i32
    %c0_i32_1 = arith.constant 0 : i32
    return %c0_i32, %c0_i32_0 : i32, i32
  }
  func.func @transform_9(%arg0: i32) -> (i32, i32) {
    %c0_i32 = arith.constant 0 : i32
    %c0_i32_0 = arith.constant 0 : i32
    %c0_i32_1 = arith.constant 0 : i32
    return %c0_i32, %c0_i32_0 : i32, i32
  }
  func.func @transform_10(%arg0: i32) -> (i32, i32) {
    %c0_i32 = arith.constant 0 : i32
    %c0_i32_0 = arith.constant 0 : i32
    %c0_i32_1 = arith.constant 0 : i32
    return %c0_i32, %c0_i32_0 : i32, i32
  }
  func.func @transform_11(%arg0: i32) -> (i32, i32) {
    %c0_i32 = arith.constant 0 : i32
    %c0_i32_0 = arith.constant 0 : i32
    %c0_i32_1 = arith.constant 0 : i32
    return %c0_i32, %c0_i32_0 : i32, i32
  }
  func.func @transform_12(%arg0: i32) -> (i32, i32) {
    %c0_i32 = arith.constant 0 : i32
    %c0_i32_0 = arith.constant 0 : i32
    %c0_i32_1 = arith.constant 0 : i32
    return %c0_i32, %c0_i32_0 : i32, i32
  }
  func.func @transform_13(%arg0: i32) -> (i32, i32) {
    %c0_i32 = arith.constant 0 : i32
    %c0_i32_0 = arith.constant 0 : i32
    %c0_i32_1 = arith.constant 0 : i32
    return %c0_i32, %c0_i32_0 : i32, i32
  }
  func.func @transform_14(%arg0: i32) -> (i32, i32) {
    %c0_i32 = arith.constant 0 : i32
    %c0_i32_0 = arith.constant 0 : i32
    %c0_i32_1 = arith.constant 0 : i32
    return %c0_i32, %c0_i32_0 : i32, i32
  }
  func.func @transform_15(%arg0: i32) -> (i32, i32) {
    %c0_i32 = arith.constant 0 : i32
    %c0_i32_0 = arith.constant 0 : i32
    %c0_i32_1 = arith.constant 0 : i32
    return %c0_i32, %c0_i32_0 : i32, i32
  }
  func.func @transform_16(%arg0: i32) -> (i32, i32) {
    %c0_i32 = arith.constant 0 : i32
    %c0_i32_0 = arith.constant 0 : i32
    %c0_i32_1 = arith.constant 0 : i32
    return %c0_i32, %c0_i32_0 : i32, i32
  }
  func.func @transform_17(%arg0: i32) -> (i32, i32) {
    %c0_i32 = arith.constant 0 : i32
    %c0_i32_0 = arith.constant 0 : i32
    return %arg0, %c0_i32 : i32, i32
  }
}

</mosaic_0001>

<bundles_post_ra>
// kernel: a_call__.6
= control target key start
LH: loop header
LB: loop body
LE: loop exit
PB: predicated region body
PF: predicated region fallthrough
CT: control target
= control target key end

     0   :  { %vm78_vm0 = vcmask 1040384   ;;  %vm79_vm1 = vcmask 1041408   ;;  %v1127_v1 = vmov 65535   ;;  %vm65_vm2 = vcmask 23552   ;;  %s1682_s1 = inlined_call_operand.vmem [shape: bf16[3,32], index: 1, kind: input, shape index: {}]   ;;  %s1683_s0 = inlined_call_operand.vmem [shape: f32[64,3], index: 0, kind: input, shape index: {}]   ;;  %s1684_s2 = inlined_call_operand.vmem [shape: f32[1,32], index: 2, kind: input, shape index: {}]   ;;  %s1685_s5 = inlined_call_operand.vmem [shape: bf16[32,32], index: 5, kind: input, shape index: {}]   ;;  %s1686_s3 = inlined_call_operand.vmem [shape: f32[1,32], index: 3, kind: input, shape index: {}, may-alias: {3,7,11}]   ;;  %s1687_s4 = inlined_call_operand.vmem [shape: f32[1,32], index: 4, kind: input, shape index: {}, may-alias: {4,8,12}]   ;;  %s1688_s6 = inlined_call_operand.vmem [shape: f32[1,32], index: 6, kind: input, shape index: {}]   ;;  %s1689_s9 = inlined_call_operand.vmem [shape: bf16[32,32], index: 9, kind: input, shape index: {}]   ;;  %s1690_s7 = inlined_call_operand.vmem [shape: f32[1,32], index: 7, kind: input, shape index: {}, may-alias: {3,7,11}]   ;;  %s1691_s8 = inlined_call_operand.vmem [shape: f32[1,32], index: 8, kind: input, shape index: {}, may-alias: {4,8,12}]   ;;  %s1692_s10 = inlined_call_operand.vmem [shape: f32[1,32], index: 10, kind: input, shape index: {}]   ;;  %s1693_s11 = inlined_call_operand.vmem [shape: f32[1,32], index: 11, kind: input, shape index: {}, may-alias: {3,7,11}]   ;;  %s1694_s12 = inlined_call_operand.vmem [shape: f32[1,32], index: 12, kind: input, shape index: {}, may-alias: {4,8,12}]   ;;  %s1695_s13 = inlined_call_operand.vmem [shape: bf16[64,35], index: 13, kind: output, shape index: {}]  }
   0x1   :  { %v53_v0 = vld [vmem:[%s1682_s1] sm:$0x3]  ;;  %v80_v2 = vsel %vm78_vm0, 4294967295, %v1127_v1  ;;  %v1210_v4 = vld [vmem:[%s1683_s0 + $0x8] sm:$0xff]  ;;  %v1219_v8 = vld [vmem:[%s1683_s0 + $0x10] sm:$0xff]  ;;  %vm152_vm3 = vcmask 261120  }
   0x2   :  { %v1205_v3 = vld [vmem:[%s1683_s0] sm:$0xff]  ;;  %v81_v5 = vsel %vm79_vm1, %v80_v2, 0  ;;  %v1224_v9 = vld [vmem:[%s1683_s0 + $0x18] sm:$0xff]  ;;  %v1234_v12 = vld [vmem:[%s1683_s0 + $0x28] sm:$0xff]  ;;  %vm930_vm4 = vcmask 281600  }
   0x3   :  { %v1039_v6 = vpack.i.bf16 %v1210_v4, %v1205_v3  ;;  %v54_v7 = vpack.c.bf16 %v1210_v4, %v1205_v3  ;;  %v1229_v10 = vld [vmem:[%s1683_s0 + $0x20] sm:$0xff]  ;;  %v83_v11 = vand.u32 %v81_v5, %v53_v0  ;;  %v1239_v13 = vld [vmem:[%s1683_s0 + $0x30] sm:$0xff]  ;;  %v1244_v14 = vld [vmem:[%s1683_s0 + $0x38] sm:$0xff]  ;;  %v55_v17 = vpack.c.bf16 %v1224_v9, %v1219_v8 }
   0x4   :  { %v1049_v15 = vpack.i.bf16 %v1234_v12, %v1229_v10  ;;  %v56_v16 = vpack.c.bf16 %v1234_v12, %v1229_v10  ;;  %v57_v18 = vpack.c.bf16 %v1244_v14, %v1239_v13  ;;  %v943_v19 = vld [vmem:[%s1684_s2] ss:$0 sm:$0xff]  ;;  %v1059_v60 = vld [vmem:[%s1685_s5 + $0x8] sm:$0xff]  }
   0x5   :  { %1003 = vmatprep.mubr.msk.bf16.mxu0 %vm65_vm2, %v54_v7  ;;  %1001 = vmatprep.subr.bf16.mxu0 %v83_v11  ;;  %v1060_v61 = vld [vmem:[%s1685_s5] sm:$0xff]  }
   0x6   :  { %1035 = vmatprep.subr.bf16.mxu1 %v83_v11  ;;  %1002 = vmatpush3.bf16.msra.mxu0 %v83_v11 }
   0x7   :  { %1036 = vmatpush3.bf16.msra.mxu1 %v83_v11  ;;  %1007 = vmatprep.mubr.msk.bf16.mxu1 %vm65_vm2, %v56_v16 }
   0x8   :  { %1011 = vmatprep.subr.bf16.mxu1 %v1059_v60 }
   0x9   :  { %1004 = vmatmul.mubr.msk.bf16.vlgmr.msra.gmra.mxu0 %vm65_vm2, %v55_v17 }
   0xa   :  { %1008 = vmatmul.mubr.msk.bf16.vlgmr.msra.gmra.mxu1 %vm65_vm2, %v57_v18 }
   0xb   :  { %1012 = vmatpush3.bf16.msra.mxu1 %v1059_v60 }
   0xc   :  { %1013 = vmatprep.subr.bf16.mxu1 %v1060_v61 }
   0xf   :  { %1014 = vmatpush3.bf16.msra.mxu1 %v1060_v61 }
  0xc9   :  { %v1005_v20 = vpop.f32.mrf.mxu0 }
  0xca   :  { %v1009_v21 = vpop.f32.mrf.mxu1  ;;  %v1261_v22 = vadd.f32 %v1005_v20, %v943_v19 }
  0xcb   :  { %v119_v23 = vpop.f32.mrf.mxu0  ;;  %v1297_v48 = vadd.f32 %v1009_v21, %v943_v19 }
  0xcc   :  { %v135_v24 = vpop.f32.mrf.mxu1  ;;  %v1263_v25 = vadd.f32 %v943_v19, %v119_v23  ;;  %v159_v26 = vsel %vm152_vm3, %v1261_v22, 0.0  ;;  %v188_v31 = vmul.f32 %v1261_v22, %v1261_v22 }
  0xcd   :  { %160 = vadd.xlane.f32.xlu1 %v159_v26  ;;  %v1006_v27 = vpop.f32.mrf.mxu0  ;;  %v1277_v36 = vadd.f32 %v943_v19, %v135_v24  ;;  %v171_v52 = vsel %vm152_vm3, %v1297_v48, 0.0  ;;  %v192_v57 = vmul.f32 %v1297_v48, %v1297_v48 }
  0xce   :  { %v1010_v28 = vpop.f32.mrf.mxu1  ;;  %v1267_v29 = vadd.f32 %v1006_v27, %v943_v19  ;;  %v153_v30 = vsel %vm152_vm3, %v1263_v25, 0.0  ;;  %v200_v37 = vsel %vm152_vm3, %v188_v31, 0.0  ;;  %v186_v42 = vmul.f32 %v1263_v25, %v1263_v25 }
  0xcf   :  { %154 = vadd.xlane.f32.xlu0 %v153_v30  ;;  %v122_v34 = vpop.f32.mrf.mxu0  ;;  %v165_v41 = vsel %vm152_vm3, %v1277_v36, 0.0  ;;  %v1294_v46 = vadd.f32 %v1010_v28, %v943_v19  ;;  %v190_v53 = vmul.f32 %v1277_v36, %v1277_v36  ;;  %v212_v59 = vsel %vm152_vm3, %v192_v57, 0.0 }
  0xd0   :  { %v162_v32 = vsel %vm152_vm3, %v1267_v29, 0.0  ;;  %v189_v33 = vmul.f32 %v1267_v29, %v1267_v29  ;;  %v138_v35 = vpop.f32.mrf.mxu1  ;;  %v1280_v38 = vadd.f32 %v943_v19, %v122_v34  ;;  %v194_v45 = vsel %vm152_vm3, %v186_v42, 0.0 }
  0xd1   :  { %163 = vadd.xlane.f32.xlu1 %v162_v32  ;;  %v1282_v39 = vadd.f32 %v943_v19, %v138_v35  ;;  %v174_v50 = vsel %vm152_vm3, %v1294_v46, 0.0  ;;  %v193_v55 = vmul.f32 %v1294_v46, %v1294_v46  ;;  %v206_v56 = vsel %vm152_vm3, %v190_v53, 0.0 }
  0xd2   :  { %v203_v40 = vsel %vm152_vm3, %v189_v33, 0.0  ;;  %v187_v44 = vmul.f32 %v1280_v38, %v1280_v38  ;;  %v156_v49 = vsel %vm152_vm3, %v1280_v38, 0.0 }
  0xd3   :  { %201 = vadd.xlane.f32.xlu0 %v200_v37  ;;  %v168_v43 = vsel %vm152_vm3, %v1282_v39, 0.0  ;;  %v191_v51 = vmul.f32 %v1282_v39, %v1282_v39  ;;  %v215_v58 = vsel %vm152_vm3, %v193_v55, 0.0 }
  0xd4   :  { %v197_v47 = vsel %vm152_vm3, %v187_v44, 0.0 }
  0xd5   :  { %204 = vadd.xlane.f32.xlu1 %v203_v40  ;;  %v209_v54 = vsel %vm152_vm3, %v191_v51, 0.0 }
  0xd7   :  { %166 = vadd.xlane.f32.xlu0 %v165_v41 }
  0xd9   :  { %169 = vadd.xlane.f32.xlu1 %v168_v43 }
  0xdb   :  { %195 = vadd.xlane.f32.xlu0 %v194_v45 }
  0xdd   :  { %198 = vadd.xlane.f32.xlu1 %v197_v47 }
  0xdf   :  { %157 = vadd.xlane.f32.xlu0 %v156_v49 }
  0xe1   :  { %175 = vadd.xlane.f32.xlu1 %v174_v50 }
  0xe3   :  { %172 = vadd.xlane.f32.xlu0 %v171_v52 }
  0xe5   :  { %210 = vadd.xlane.f32.xlu1 %v209_v54 }
  0xe7   :  { %207 = vadd.xlane.f32.xlu0 %v206_v56 }
  0xe9   :  { %216 = vadd.xlane.f32.xlu1 %v215_v58 }
  0xeb   :  { %213 = vadd.xlane.f32.xlu0 %v212_v59 }
 0x156   :  { %v161_v62 = vpop.xlane.xlu1 %160 }
 0x157   :  { %v1323_v0 = vmul.f32 0.03125, %v161_v62 }
 0x158   :  { %v155_v63 = vpop.xlane.xlu0 %154 }
 0x159   :  { %v228_v11 = vmul.f32 %v1323_v0, %v1323_v0  ;;  %v1331_v21 = vmul.f32 0.03125, %v155_v63 }
 0x15a   :  { %v164_v1 = vpop.xlane.xlu1 %163 }
 0x15b   :  { %v1325_v2 = vmul.f32 0.03125, %v164_v1  ;;  %v226_v30 = vmul.f32 %v1331_v21, %v1331_v21 }
 0x15c   :  { %v202_v5 = vpop.xlane.xlu0 %201 }
 0x15d   :  { %v220_v7 = vmul.f32 0.03125, %v202_v5  ;;  %v229_v17 = vmul.f32 %v1325_v2, %v1325_v2 }
 0x15e   :  { %v205_v16 = vpop.xlane.xlu1 %204 }
 0x15f   :  { %v221_v18 = vmul.f32 0.03125, %v205_v16  ;;  %v236_v19 = vsub.f32 %v220_v7, %v228_v11 }
 0x160   :  { %v167_v20 = vpop.xlane.xlu0 %166 }
 0x161   :  { %v237_v23 = vsub.f32 %v221_v18, %v229_v17  ;;  %v244_v27 = vmax.f32 %v236_v19, 0.0  ;;  %v1341_v49 = vmul.f32 0.03125, %v167_v20 }
 0x162   :  { %v170_v24 = vpop.xlane.xlu1 %169 }
 0x163   :  { %v245_v26 = vmax.f32 %v237_v23, 0.0  ;;  %v252_v35 = vadd.f32 1e-05, %v244_v27  ;;  %v1337_v43 = vmul.f32 0.03125, %v170_v24  ;;  %v230_v56 = vmul.f32 %v1341_v49, %v1341_v49 }
 0x164   :  { %v196_v28 = vpop.xlane.xlu0 %195 }
 0x165   :  { %v218_v31 = vmul.f32 0.03125, %v196_v28  ;;  %v253_v32 = vadd.f32 1e-05, %v245_v26  ;;  %v231_v53 = vmul.f32 %v1337_v43, %v1337_v43  ;;  %v269_v28 = vsub.f32 %v1267_v29, %v1325_v2  ;;  %v948_v29 = vld [vmem:[%s1686_s3] ss:$0 sm:$0xff] }
 0x166   :  { %v199_v33 = vpop.xlane.xlu1 %198 }
 0x167   :  { %v234_v34 = vsub.f32 %v218_v31, %v226_v30  ;;  %1063 = vrsqrt.f32 %v253_v32  ;;  %v219_v45 = vmul.f32 0.03125, %v199_v33  ;;  %v266_v32 = vsub.f32 %v1263_v25, %v1331_v21 }
 0x168   :  { %v158_v37 = vpop.xlane.xlu0 %157  ;;  %1065 = vrsqrt.f32 %v252_v35  ;;  %v268_v35 = vsub.f32 %v1261_v22, %v1323_v0  ;;  %v949_v22 = vld [vmem:[%s1687_s4] ss:$0 sm:$0xff] }
 0x169   :  { %v242_v40 = vmax.f32 %v234_v34, 0.0  ;;  %v1335_v41 = vmul.f32 0.03125, %v158_v37 }
 0x16a   :  { %v176_v42 = vpop.xlane.xlu1 %175 }
 0x16b   :  { %v250_v44 = vadd.f32 1e-05, %v242_v40  ;;  %v227_v47 = vmul.f32 %v1335_v41, %v1335_v41  ;;  %v1347_v57 = vmul.f32 0.03125, %v176_v42  ;;  %v267_v25 = vsub.f32 %v1280_v38, %v1335_v41 }
 0x16c   :  { %v173_v50 = vpop.xlane.xlu0 %172 }
 0x16d   :  { %1067 = vrsqrt.f32 %v250_v44  ;;  %v235_v51 = vsub.f32 %v219_v45, %v227_v47  ;;  %v1349_v60 = vmul.f32 0.03125, %v173_v50  ;;  %v233_v7 = vmul.f32 %v1347_v57, %v1347_v57 }
 0x16e   :  { %v211_v52 = vpop.xlane.xlu1 %210 }
 0x16f   :  { %v243_v54 = vmax.f32 %v235_v51, 0.0  ;;  %v223_v55 = vmul.f32 0.03125, %v211_v52  ;;  %v232_v17 = vmul.f32 %v1349_v60, %v1349_v60  ;;  %v271_v52 = vsub.f32 %v1282_v39, %v1337_v43 }
 0x170   :  { %v208_v58 = vpop.xlane.xlu0 %207  ;;  %v272_v43 = vsub.f32 %v1297_v48, %v1349_v60 }
 0x171   :  { %v251_v59 = vadd.f32 1e-05, %v243_v54  ;;  %v239_v61 = vsub.f32 %v223_v55, %v231_v53  ;;  %v222_v62 = vmul.f32 0.03125, %v208_v58  ;;  %v270_v58 = vsub.f32 %v1277_v36, %v1341_v49 }
 0x172   :  { %v217_v63 = vpop.xlane.xlu1 %216 }
 0x173   :  { %1069 = vrsqrt.f32 %v251_v59  ;;  %v247_v1 = vmax.f32 %v239_v61, 0.0  ;;  %v238_v5 = vsub.f32 %v222_v62, %v230_v56  ;;  %v225_v11 = vmul.f32 0.03125, %v217_v63 }
 0x174   :  { %v214_v16 = vpop.xlane.xlu0 %213  ;;  %v1064_v24 = vpop.eup %1063 }
 0x175   :  { %v255_v18 = vadd.f32 1e-05, %v247_v1  ;;  %v246_v19 = vmax.f32 %v238_v5, 0.0  ;;  %v224_v20 = vmul.f32 0.03125, %v214_v16  ;;  %v241_v23 = vsub.f32 %v225_v11, %v233_v7  ;;  %v1066_v31 = vpop.eup %1065 }
 0x176   :  { %v277_v37 = vmul.f32 %v1064_v24, %v269_v28  ;;  %v276_v45 = vmul.f32 %v1066_v31, %v268_v35  ;;  %v273_v7 = vsub.f32 %v1294_v46, %v1347_v57 }
 0x177   :  { %1071 = vrsqrt.f32 %v255_v18  ;;  %v254_v26 = vadd.f32 1e-05, %v246_v19  ;;  %v240_v27 = vsub.f32 %v224_v20, %v232_v17  ;;  %v249_v30 = vmax.f32 %v241_v23, 0.0 }
 0x178   :  { %v291_v2 = vmul.f32 %v948_v29, %v277_v37  ;;  %v290_v50 = vmul.f32 %v948_v29, %v276_v45 }
 0x179   :  { %1073 = vrsqrt.f32 %v254_v26  ;;  %v248_v33 = vmax.f32 %v240_v27, 0.0  ;;  %v257_v40 = vadd.f32 1e-05, %v249_v30 }
 0x17a   :  { %v1068_v34 = vpop.eup %1067  ;;  %v305_v51 = vadd.f32 %v949_v22, %v291_v2  ;;  %v304_v56 = vadd.f32 %v949_v22, %v290_v50 }
 0x17b   :  { %v256_v42 = vadd.f32 1e-05, %v248_v33  ;;  %v274_v44 = vmul.f32 %v1068_v34, %v266_v32  ;;  %1075 = vrsqrt.f32 %v257_v40  ;;  %v950_v32 = vld [vmem:[%s1688_s6] ss:$0 sm:$0xff] }
 0x17c   :  { %v313_v61 = vmax.f32 %v305_v51, 0.0  ;;  %v312_v11 = vmax.f32 %v304_v56, 0.0 }
 0x17d   :  { %1077 = vrsqrt.f32 %v256_v42  ;;  %v288_v21 = vmul.f32 %v948_v29, %v274_v44 }
 0x17e   :  { %v324_v49 = vpack.c.bf16 %v313_v61, %v312_v11 }
 0x17f   :  { %v302_v54 = vadd.f32 %v949_v22, %v288_v21 }
 0x180   :  { %v1070_v47 = vpop.eup %1069 }
 0x181   :  { %v275_v0 = vmul.f32 %v1070_v47, %v267_v25  ;;  %v310_v63 = vmax.f32 %v302_v54, 0.0 }
 0x183   :  { %v289_v53 = vmul.f32 %v948_v29, %v275_v0 }
 0x184   :  { %v1072_v55 = vpop.eup %1071 }
 0x185   :  { %v303_v38 = vadd.f32 %v949_v22, %v289_v53  ;;  %v279_v41 = vmul.f32 %v1072_v55, %v271_v52 }
 0x186   :  { %v1074_v59 = vpop.eup %1073 }
 0x187   :  { %v311_v62 = vmax.f32 %v303_v38, 0.0  ;;  %v278_v1 = vmul.f32 %v1074_v59, %v270_v58  ;;  %v293_v5 = vmul.f32 %v948_v29, %v279_v41 }
 0x188   :  { %v1076_v39 = vpop.eup %1075 }
 0x189   :  { %v323_v16 = vpack.c.bf16 %v311_v62, %v310_v63  ;;  %v292_v17 = vmul.f32 %v948_v29, %v278_v1  ;;  %v307_v18 = vadd.f32 %v949_v22, %v293_v5  ;;  %v281_v19 = vmul.f32 %v1076_v39, %v273_v7 }
 0x18a   :  { %v1078_v36 = vpop.eup %1077 }
 0x18b   :  { %1015 = vmatprep.mubr.msk.bf16.mxu1 %vm152_vm3, %v323_v16  ;;  %v306_v20 = vadd.f32 %v949_v22, %v292_v17  ;;  %v280_v23 = vmul.f32 %v1078_v36, %v272_v43  ;;  %v295_v24 = vmul.f32 %v948_v29, %v281_v19  ;;  %v315_v46 = vmax.f32 %v307_v18, 0.0  ;;  %v1061_v19 = vld [vmem:[%s1689_s9 + $0x8] sm:$0xff]  }
 0x18c   :  { %1016 = vmatmul.mubr.msk.bf16.vlgmr.msra.gmra.mxu1 %vm152_vm3, %v324_v49  ;;  %1023 = vmatprep.subr.bf16.mxu0 %v1061_v19 }
 0x18d   :  { %v314_v26 = vmax.f32 %v306_v20, 0.0  ;;  %v294_v57 = vmul.f32 %v948_v29, %v280_v23  ;;  %v309_v27 = vadd.f32 %v949_v22, %v295_v24  ;;  %v1062_v20 = vld [vmem:[%s1689_s9] sm:$0xff]   ;;  %1024 = vmatpush3.bf16.msra.mxu0 %v1061_v19 }
 0x18e   :  { %1025 = vmatprep.subr.bf16.mxu0 %v1062_v20 }
 0x18f   :  { %v325_v28 = vpack.c.bf16 %v315_v46, %v314_v26  ;;  %v308_v30 = vadd.f32 %v949_v22, %v294_v57  ;;  %v317_v60 = vmax.f32 %v309_v27, 0.0 }
 0x191   :  { %1019 = vmatprep.mubr.msk.bf16.mxu1 %vm152_vm3, %v325_v28  ;;  %v316_v48 = vmax.f32 %v308_v30, 0.0  ;;  %1026 = vmatpush3.bf16.msra.mxu0 %v1062_v20 }
 0x193   :  { %v326_v31 = vpack.c.bf16 %v317_v60, %v316_v48 }
 0x195   :  { %1020 = vmatmul.mubr.msk.bf16.gmra.mxu1 %vm152_vm3, %v326_v31 }
 0x24c   :  { %v1017_v33 = vpop.f32.mrf.mxu1 }
 0x24d   :  { %v1384_v34 = vadd.f32 %v1017_v33, %v950_v32 }
 0x24e   :  { %v391_v35 = vpop.f32.mrf.mxu1 }
 0x24f   :  { %v1386_v37 = vadd.f32 %v950_v32, %v391_v35  ;;  %v430_v40 = vsel %vm152_vm3, %v1384_v34, 0.0  ;;  %v458_v21 = vmul.f32 %v1384_v34, %v1384_v34 }
 0x250   :  { %431 = vadd.xlane.f32.xlu0 %v430_v40  ;;  %v1018_v42 = vpop.f32.mrf.mxu1 }
 0x251   :  { %v1390_v44 = vadd.f32 %v1018_v42, %v950_v32  ;;  %v424_v25 = vsel %vm152_vm3, %v1386_v37, 0.0  ;;  %v470_v22 = vsel %vm152_vm3, %v458_v21, 0.0  ;;  %v456_v51 = vmul.f32 %v1386_v37, %v1386_v37 }
 0x252   :  { %v394_v45 = vpop.f32.mrf.mxu1 }
 0x253   :  { %v1392_v29 = vadd.f32 %v950_v32, %v394_v45  ;;  %v433_v2 = vsel %vm152_vm3, %v1390_v44, 0.0  ;;  %v459_v0 = vmul.f32 %v1390_v44, %v1390_v44  ;;  %v464_v55 = vsel %vm152_vm3, %v456_v51, 0.0 }
 0x254   :  { %434 = vadd.xlane.f32.xlu1 %v433_v2  ;;  %425 = vadd.xlane.f32.xlu0 %v424_v25 }
 0x255   :  { %v1021_v47 = vpop.f32.mrf.mxu1  ;;  %v427_v50 = vsel %vm152_vm3, %v1392_v29, 0.0  ;;  %v473_v54 = vsel %vm152_vm3, %v459_v0, 0.0  ;;  %v457_v56 = vmul.f32 %v1392_v29, %v1392_v29 }
 0x256   :  { %v1407_v53 = vadd.f32 %v1021_v47, %v950_v32 }
 0x257   :  { %v407_v52 = vpop.f32.mrf.mxu1  ;;  %v467_v59 = vsel %vm152_vm3, %v457_v56, 0.0 }
 0x258   :  { %428 = vadd.xlane.f32.xlu1 %v427_v50  ;;  %471 = vadd.xlane.f32.xlu0 %v470_v22  ;;  %v1413_v38 = vadd.f32 %v950_v32, %v407_v52  ;;  %v442_v61 = vsel %vm152_vm3, %v1407_v53, 0.0  ;;  %v462_v16 = vmul.f32 %v1407_v53, %v1407_v53 }
 0x259   :  { %v1022_v58 = vpop.f32.mrf.mxu1 }
 0x25a   :  { %v1415_v41 = vadd.f32 %v1022_v58, %v950_v32  ;;  %v436_v5 = vsel %vm152_vm3, %v1413_v38, 0.0  ;;  %v460_v7 = vmul.f32 %v1413_v38, %v1413_v38  ;;  %v482_v18 = vsel %vm152_vm3, %v462_v16, 0.0 }
 0x25b   :  { %v410_v62 = vpop.f32.mrf.mxu1 }
 0x25c   :  { %474 = vadd.xlane.f32.xlu1 %v473_v54  ;;  %465 = vadd.xlane.f32.xlu0 %v464_v55  ;;  %v1420_v63 = vadd.f32 %v950_v32, %v410_v62  ;;  %v445_v1 = vsel %vm152_vm3, %v1415_v41, 0.0  ;;  %v476_v39 = vsel %vm152_vm3, %v460_v7, 0.0  ;;  %v463_v36 = vmul.f32 %v1415_v41, %v1415_v41 }
 0x25e   :  { %v439_v11 = vsel %vm152_vm3, %v1420_v63, 0.0  ;;  %v461_v43 = vmul.f32 %v1420_v63, %v1420_v63  ;;  %v485_v49 = vsel %vm152_vm3, %v463_v36, 0.0 }
 0x260   :  { %468 = vadd.xlane.f32.xlu1 %v467_v59  ;;  %443 = vadd.xlane.f32.xlu0 %v442_v61  ;;  %v479_v17 = vsel %vm152_vm3, %v461_v43, 0.0 }
 0x264   :  { %446 = vadd.xlane.f32.xlu1 %v445_v1  ;;  %437 = vadd.xlane.f32.xlu0 %v436_v5 }
 0x268   :  { %440 = vadd.xlane.f32.xlu1 %v439_v11  ;;  %477 = vadd.xlane.f32.xlu0 %v476_v39 }
 0x26c   :  { %480 = vadd.xlane.f32.xlu1 %v479_v17  ;;  %483 = vadd.xlane.f32.xlu0 %v482_v18 }
 0x270   :  { %486 = vadd.xlane.f32.xlu1 %v485_v49 }
 0x2d9   :  { %v432_v23 = vpop.xlane.xlu0 %431 }
 0x2da   :  { %v1446_v46 = vmul.f32 0.03125, %v432_v23 }
 0x2dc   :  { %v498_v48 = vmul.f32 %v1446_v46, %v1446_v46 }
 0x2dd   :  { %v435_v24 = vpop.xlane.xlu1 %434  ;;  %v426_v26 = vpop.xlane.xlu0 %425 }
 0x2de   :  { %v1448_v57 = vmul.f32 0.03125, %v435_v24  ;;  %v1450_v27 = vmul.f32 0.03125, %v426_v26 }
 0x2e0   :  { %v499_v32 = vmul.f32 %v1448_v57, %v1448_v57  ;;  %v496_v33 = vmul.f32 %v1450_v27, %v1450_v27 }
 0x2e1   :  { %v429_v28 = vpop.xlane.xlu1 %428  ;;  %v472_v30 = vpop.xlane.xlu0 %471 }
 0x2e2   :  { %v490_v60 = vmul.f32 0.03125, %v472_v30  ;;  %v1458_v42 = vmul.f32 0.03125, %v429_v28 }
 0x2e4   :  { %v506_v31 = vsub.f32 %v490_v60, %v498_v48  ;;  %v497_v51 = vmul.f32 %v1458_v42, %v1458_v42 }
 0x2e5   :  { %v475_v35 = vpop.xlane.xlu1 %474  ;;  %v466_v40 = vpop.xlane.xlu0 %465 }
 0x2e6   :  { %v514_v45 = vmax.f32 %v506_v31, 0.0  ;;  %v491_v2 = vmul.f32 0.03125, %v475_v35  ;;  %v488_v25 = vmul.f32 0.03125, %v466_v40  ;;  %v539_v35 = vsub.f32 %v1390_v44, %v1448_v57  ;;  %v957_v44 = vld [vmem:[%s1690_s7] ss:$0 sm:$0xff] }
 0x2e8   :  { %v522_v21 = vadd.f32 1e-05, %v514_v45  ;;  %v507_v47 = vsub.f32 %v491_v2, %v499_v32  ;;  %v504_v50 = vsub.f32 %v488_v25, %v496_v33  ;;  %v538_v33 = vsub.f32 %v1384_v34, %v1446_v46 }
 0x2e9   :  { %v469_v22 = vpop.xlane.xlu1 %468  ;;  %v444_v0 = vpop.xlane.xlu0 %443 }
 0x2ea   :  { %v515_v52 = vmax.f32 %v507_v47, 0.0  ;;  %v512_v54 = vmax.f32 %v504_v50, 0.0  ;;  %v489_v55 = vmul.f32 0.03125, %v469_v22  ;;  %1079 = vrsqrt.f32 %v522_v21 }
 0x2eb   :  { %v1464_v11 = vmul.f32 0.03125, %v444_v0  ;;  %v536_v50 = vsub.f32 %v1386_v37, %v1450_v27 }
 0x2ec   :  { %v523_v56 = vadd.f32 1e-05, %v515_v52  ;;  %v520_v58 = vadd.f32 1e-05, %v512_v54  ;;  %v505_v59 = vsub.f32 %v489_v55, %v497_v51  ;;  %v537_v54 = vsub.f32 %v1392_v29, %v1458_v42 }
 0x2ed   :  { %v447_v61 = vpop.xlane.xlu1 %446  ;;  %v438_v62 = vpop.xlane.xlu0 %437  ;;  %v502_v49 = vmul.f32 %v1464_v11, %v1464_v11 }
 0x2ee   :  { %1081 = vrsqrt.f32 %v523_v56  ;;  %v513_v1 = vmax.f32 %v505_v59, 0.0  ;;  %v1462_v5 = vmul.f32 0.03125, %v438_v62  ;;  %v1472_v19 = vmul.f32 0.03125, %v447_v61  ;;  %v958_v61 = vld [vmem:[%s1691_s8] ss:$0 sm:$0xff] }
 0x2ef   :  { %1083 = vrsqrt.f32 %v520_v58 }
 0x2f0   :  { %v521_v7 = vadd.f32 1e-05, %v513_v1  ;;  %v500_v16 = vmul.f32 %v1462_v5, %v1462_v5  ;;  %v503_v40 = vmul.f32 %v1472_v19, %v1472_v19  ;;  %v540_v42 = vsub.f32 %v1413_v38, %v1462_v5 }
 0x2f1   :  { %v441_v39 = vpop.xlane.xlu1 %440  ;;  %v478_v43 = vpop.xlane.xlu0 %477 }
 0x2f2   :  { %1085 = vrsqrt.f32 %v521_v7  ;;  %v1468_v17 = vmul.f32 0.03125, %v441_v39  ;;  %v492_v18 = vmul.f32 0.03125, %v478_v43 }
 0x2f4   :  { %v508_v36 = vsub.f32 %v492_v18, %v500_v16  ;;  %v501_v24 = vmul.f32 %v1468_v17, %v1468_v17 }
 0x2f5   :  { %v481_v20 = vpop.xlane.xlu1 %480  ;;  %v484_v23 = vpop.xlane.xlu0 %483 }
 0x2f6   :  { %v516_v26 = vmax.f32 %v508_v36, 0.0  ;;  %v493_v28 = vmul.f32 0.03125, %v481_v20  ;;  %v494_v30 = vmul.f32 0.03125, %v484_v23 }
 0x2f7   :  { %v1080_v48 = vpop.eup %1079 }
 0x2f8   :  { %v524_v60 = vadd.f32 1e-05, %v516_v26  ;;  %v509_v31 = vsub.f32 %v493_v28, %v501_v24  ;;  %v510_v32 = vsub.f32 %v494_v30, %v502_v49  ;;  %v546_v22 = vmul.f32 %v1080_v48, %v538_v33 }
 0x2f9   :  { %v487_v45 = vpop.xlane.xlu1 %486  ;;  %v541_v28 = vsub.f32 %v1420_v63, %v1468_v17 }
 0x2fa   :  { %1087 = vrsqrt.f32 %v524_v60  ;;  %v517_v2 = vmax.f32 %v509_v31, 0.0  ;;  %v518_v25 = vmax.f32 %v510_v32, 0.0  ;;  %v495_v21 = vmul.f32 0.03125, %v487_v45 }
 0x2fb   :  { %v1082_v47 = vpop.eup %1081  ;;  %v560_v27 = vmul.f32 %v957_v44, %v546_v22  ;;  %v542_v60 = vsub.f32 %v1407_v53, %v1464_v11  ;;  %v543_v32 = vsub.f32 %v1415_v41, %v1472_v19  ;;  %v959_v41 = vld [vmem:[%s1692_s10] ss:$0 sm:$0xff]  ;;  %s1128_s10 = smov 32  }
 0x2fc   :  { %v1084_v0 = vpop.eup %1083  ;;  %v547_v51 = vmul.f32 %v1082_v47, %v539_v35  ;;  %v525_v52 = vadd.f32 1e-05, %v517_v2  ;;  %v526_v34 = vadd.f32 1e-05, %v518_v25  ;;  %v511_v46 = vsub.f32 %v495_v21, %v503_v40 }
 0x2fd   :  { %v544_v57 = vmul.f32 %v1084_v0, %v536_v50  ;;  %v574_v43 = vadd.f32 %v958_v61, %v560_v27 }
 0x2fe   :  { %1089 = vrsqrt.f32 %v525_v52  ;;  %v519_v55 = vmax.f32 %v511_v46, 0.0  ;;  %v561_v56 = vmul.f32 %v957_v44, %v547_v51 }
 0x2ff   :  { %v1086_v58 = vpop.eup %1085  ;;  %1091 = vrsqrt.f32 %v526_v34  ;;  %v558_v37 = vmul.f32 %v957_v44, %v544_v57  ;;  %v582_v20 = vmax.f32 %v574_v43, 0.0 }
 0x300   :  { %v527_v59 = vadd.f32 1e-05, %v519_v55  ;;  %v545_v62 = vmul.f32 %v1086_v58, %v537_v54  ;;  %v575_v1 = vadd.f32 %v958_v61, %v561_v56 }
 0x301   :  { %v572_v39 = vadd.f32 %v958_v61, %v558_v37 }
 0x302   :  { %1093 = vrsqrt.f32 %v527_v59  ;;  %v559_v7 = vmul.f32 %v957_v44, %v545_v62  ;;  %v583_v29 = vmax.f32 %v575_v1, 0.0 }
 0x303   :  { %v580_v18 = vmax.f32 %v572_v39, 0.0 }
 0x304   :  { %v573_v16 = vadd.f32 %v958_v61, %v559_v7  ;;  %v594_v26 = vpack.c.bf16 %v583_v29, %v582_v20 }
 0x306   :  { %v581_v36 = vmax.f32 %v573_v16, 0.0 }
 0x307   :  { %v1088_v49 = vpop.eup %1087 }
 0x308   :  { %v593_v23 = vpack.c.bf16 %v581_v36, %v580_v18  ;;  %v548_v24 = vmul.f32 %v1088_v49, %v540_v42 }
 0x30a   :  { %1027 = vmatprep.mubr.msk.bf16.mxu0 %vm152_vm3, %v593_v23  ;;  %v562_v30 = vmul.f32 %v957_v44, %v548_v24 }
 0x30b   :  { %v1090_v48 = vpop.eup %1089  ;;  %1028 = vmatmul.mubr.msk.bf16.vlgmr.msra.gmra.mxu0 %vm152_vm3, %v594_v26 }
 0x30c   :  { %v1092_v38 = vpop.eup %1091  ;;  %v549_v5 = vmul.f32 %v1090_v48, %v541_v28  ;;  %v576_v35 = vadd.f32 %v958_v61, %v562_v30 }
 0x30d   :  { %v550_v31 = vmul.f32 %v1092_v38, %v542_v60 }
 0x30e   :  { %v563_v33 = vmul.f32 %v957_v44, %v549_v5  ;;  %v584_v2 = vmax.f32 %v576_v35, 0.0 }
 0x30f   :  { %v1094_v40 = vpop.eup %1093  ;;  %v564_v45 = vmul.f32 %v957_v44, %v550_v31 }
 0x310   :  { %v577_v63 = vadd.f32 %v958_v61, %v563_v33  ;;  %v551_v17 = vmul.f32 %v1094_v40, %v543_v32  ;;  %v1044_v40 = vpack.i.bf16 %v1224_v9, %v1219_v8 }
 0x311   :  { %v578_v47 = vadd.f32 %v958_v61, %v564_v45  ;;  %v1054_v45 = vpack.i.bf16 %v1244_v14, %v1239_v13 }
 0x312   :  { %v585_v25 = vmax.f32 %v577_v63, 0.0  ;;  %v565_v21 = vmul.f32 %v957_v44, %v551_v17 }
 0x313   :  { %v586_v11 = vmax.f32 %v578_v47, 0.0 }
 0x314   :  { %v595_v50 = vpack.c.bf16 %v585_v25, %v584_v2  ;;  %v579_v53 = vadd.f32 %v958_v61, %v565_v21 }
 0x316   :  { %1031 = vmatprep.mubr.msk.bf16.mxu0 %vm152_vm3, %v595_v50  ;;  %v587_v22 = vmax.f32 %v579_v53, 0.0 }
 0x318   :  { %v596_v0 = vpack.c.bf16 %v587_v22, %v586_v11 }
 0x31a   :  { %1032 = vmatmul.mubr.msk.bf16.gmra.mxu0 %vm152_vm3, %v596_v0 }
 0x3cb   :  { %v1029_v19 = vpop.f32.mrf.mxu0 }
 0x3cc   :  { %v1507_v51 = vadd.f32 %v1029_v19, %v959_v41 }
 0x3cd   :  { %v661_v52 = vpop.f32.mrf.mxu0 }
 0x3ce   :  { %v1509_v34 = vadd.f32 %v959_v41, %v661_v52  ;;  %v700_v46 = vsel %vm152_vm3, %v1507_v51, 0.0  ;;  %v728_v37 = vmul.f32 %v1507_v51, %v1507_v51 }
 0x3cf   :  { %701 = vadd.xlane.f32.xlu0 %v700_v46  ;;  %v1030_v44 = vpop.f32.mrf.mxu0 }
 0x3d0   :  { %v1513_v57 = vadd.f32 %v1030_v44, %v959_v41  ;;  %v694_v58 = vsel %vm152_vm3, %v1509_v34, 0.0  ;;  %v740_v59 = vsel %vm152_vm3, %v728_v37, 0.0  ;;  %v726_v62 = vmul.f32 %v1509_v34, %v1509_v34 }
 0x3d1   :  { %v664_v54 = vpop.f32.mrf.mxu0 }
 0x3d2   :  { %v1515_v55 = vadd.f32 %v959_v41, %v664_v54  ;;  %v703_v56 = vsel %vm152_vm3, %v1513_v57, 0.0  ;;  %v729_v61 = vmul.f32 %v1513_v57, %v1513_v57  ;;  %v734_v39 = vsel %vm152_vm3, %v726_v62, 0.0 }
 0x3d3   :  { %704 = vadd.xlane.f32.xlu1 %v703_v56  ;;  %695 = vadd.xlane.f32.xlu0 %v694_v58 }
 0x3d4   :  { %v697_v27 = vsel %vm152_vm3, %v1515_v55, 0.0  ;;  %v743_v7 = vsel %vm152_vm3, %v729_v61, 0.0  ;;  %v727_v43 = vmul.f32 %v1515_v55, %v1515_v55 }
 0x3d6   :  { %v737_v49 = vsel %vm152_vm3, %v727_v43, 0.0 }
 0x3d7   :  { %698 = vadd.xlane.f32.xlu1 %v697_v27  ;;  %741 = vadd.xlane.f32.xlu0 %v740_v59 }
 0x3da   :  { %v1033_v1 = vpop.f32.mrf.mxu0 }
 0x3db   :  { %v1534_v16 = vadd.f32 %v1033_v1, %v959_v41  ;;  %744 = vadd.xlane.f32.xlu1 %v743_v7  ;;  %735 = vadd.xlane.f32.xlu0 %v734_v39 }
 0x3dc   :  { %v677_v29 = vpop.f32.mrf.mxu0 }
 0x3dd   :  { %v712_v42 = vsel %vm152_vm3, %v1534_v16, 0.0  ;;  %v1538_v18 = vadd.f32 %v959_v41, %v677_v29  ;;  %v732_v5 = vmul.f32 %v1534_v16, %v1534_v16 }
 0x3de   :  { %v1034_v36 = vpop.f32.mrf.mxu0 }
 0x3df   :  { %v1541_v20 = vadd.f32 %v1034_v36, %v959_v41  ;;  %738 = vadd.xlane.f32.xlu1 %v737_v49  ;;  %713 = vadd.xlane.f32.xlu0 %v712_v42  ;;  %v706_v28 = vsel %vm152_vm3, %v1538_v18, 0.0  ;;  %v730_v30 = vmul.f32 %v1538_v18, %v1538_v18  ;;  %v752_v32 = vsel %vm152_vm3, %v732_v5, 0.0 }
 0x3e0   :  { %v680_v23 = vpop.f32.mrf.mxu0 }
 0x3e1   :  { %v715_v24 = vsel %vm152_vm3, %v1541_v20, 0.0  ;;  %v1545_v26 = vadd.f32 %v959_v41, %v680_v23  ;;  %v746_v60 = vsel %vm152_vm3, %v730_v30, 0.0  ;;  %v733_v33 = vmul.f32 %v1541_v20, %v1541_v20 }
 0x3e3   :  { %716 = vadd.xlane.f32.xlu1 %v715_v24  ;;  %707 = vadd.xlane.f32.xlu0 %v706_v28  ;;  %v709_v48 = vsel %vm152_vm3, %v1545_v26, 0.0  ;;  %v731_v38 = vmul.f32 %v1545_v26, %v1545_v26  ;;  %v755_v35 = vsel %vm152_vm3, %v733_v33, 0.0  ;;  %v1601_v33 = vld [vmem:[%s1693_s11] ss:$0 sm:$0xff] }
 0x3e5   :  { %v749_v31 = vsel %vm152_vm3, %v731_v38, 0.0 }
 0x3e7   :  { %710 = vadd.xlane.f32.xlu1 %v709_v48  ;;  %747 = vadd.xlane.f32.xlu0 %v746_v60 }
 0x3eb   :  { %750 = vadd.xlane.f32.xlu1 %v749_v31  ;;  %753 = vadd.xlane.f32.xlu0 %v752_v32 }
 0x3ef   :  { %756 = vadd.xlane.f32.xlu1 %v755_v35 }
 0x400   :  { %1045 = vrot.lane.b32.xlu1 %v1044_v40, %s1128_s10 }
 0x401   :  { %1040 = vrot.lane.b32.xlu0 %v1039_v6, %s1128_s10 }
 0x404   :  { %1050 = vrot.lane.b32.xlu1 %v1049_v15, %s1128_s10 }
 0x408   :  { %1055 = vrot.lane.b32.xlu1 %v1054_v45, %s1128_s10 }
 0x458   :  { %v702_v63 = vpop.xlane.xlu0 %701 }
 0x459   :  { %v720_v25 = vmul.f32 0.03125, %v702_v63 }
 0x45b   :  { %v768_v47 = vmul.f32 %v720_v25, %v720_v25  ;;  %v808_v24 = vsub.f32 %v1507_v51, %v720_v25 }
 0x45c   :  { %v705_v17 = vpop.xlane.xlu1 %704  ;;  %v696_v2 = vpop.xlane.xlu0 %695 }
 0x45d   :  { %v1573_v21 = vmul.f32 0.03125, %v705_v17  ;;  %v1575_v50 = vmul.f32 0.03125, %v696_v2  ;;  %v1610_v2 = vld [vmem:[%s1694_s12] ss:$0 sm:$0xff] }
 0x45f   :  { %v769_v6 = vmul.f32 %v1573_v21, %v1573_v21  ;;  %v766_v14 = vmul.f32 %v1575_v50, %v1575_v50  ;;  %v809_v17 = vsub.f32 %v1513_v57, %v1573_v21 }
 0x460   :  { %v699_v8 = vpop.xlane.xlu1 %698  ;;  %v742_v9 = vpop.xlane.xlu0 %741 }
 0x461   :  { %v760_v3 = vmul.f32 0.03125, %v742_v9  ;;  %v1579_v10 = vmul.f32 0.03125, %v699_v8 }
 0x463   :  { %v776_v4 = vsub.f32 %v760_v3, %v768_v47  ;;  %v767_v19 = vmul.f32 %v1579_v10, %v1579_v10 }
 0x464   :  { %v745_v12 = vpop.xlane.xlu1 %744  ;;  %v736_v13 = vpop.xlane.xlu0 %735 }
 0x465   :  { %v784_v15 = vmax.f32 %v776_v4, 0.0  ;;  %v761_v53 = vmul.f32 0.03125, %v745_v12  ;;  %v758_v11 = vmul.f32 0.03125, %v736_v13  ;;  %v806_v4 = vsub.f32 %v1509_v34, %v1575_v50 }
 0x467   :  { %v792_v22 = vadd.f32 1e-05, %v784_v15  ;;  %v777_v0 = vsub.f32 %v761_v53, %v769_v6  ;;  %v774_v41 = vsub.f32 %v758_v11, %v766_v14 }
 0x468   :  { %v739_v52 = vpop.xlane.xlu1 %738  ;;  %v714_v46 = vpop.xlane.xlu0 %713 }
 0x469   :  { %1095 = vrsqrt.f32 %v792_v22  ;;  %v785_v44 = vmax.f32 %v777_v0, 0.0  ;;  %v782_v54 = vmax.f32 %v774_v41, 0.0  ;;  %v759_v56 = vmul.f32 0.03125, %v739_v52 }
 0x46a   :  { %v1587_v39 = vmul.f32 0.03125, %v714_v46  ;;  %v807_v22 = vsub.f32 %v1515_v55, %v1579_v10 }
 0x46b   :  { %v793_v58 = vadd.f32 1e-05, %v785_v44  ;;  %v790_v37 = vadd.f32 1e-05, %v782_v54  ;;  %v775_v27 = vsub.f32 %v759_v56, %v767_v19 }
 0x46c   :  { %v717_v59 = vpop.xlane.xlu1 %716  ;;  %v708_v61 = vpop.xlane.xlu0 %707  ;;  %v772_v28 = vmul.f32 %v1587_v39, %v1587_v39 }
 0x46d   :  { %1097 = vrsqrt.f32 %v793_v58  ;;  %v783_v62 = vmax.f32 %v775_v27, 0.0  ;;  %v1585_v1 = vmul.f32 0.03125, %v708_v61  ;;  %v1603_v35 = vmul.f32 0.03125, %v717_v59 }
 0x46e   :  { %1099 = vrsqrt.f32 %v790_v37 }
 0x46f   :  { %v791_v7 = vadd.f32 1e-05, %v783_v62  ;;  %v770_v42 = vmul.f32 %v1585_v1, %v1585_v1  ;;  %v773_v6 = vmul.f32 %v1603_v35, %v1603_v35  ;;  %v810_v56 = vsub.f32 %v1538_v18, %v1585_v1 }
 0x470   :  { %v711_v43 = vpop.xlane.xlu1 %710  ;;  %v748_v29 = vpop.xlane.xlu0 %747 }
 0x471   :  { %1101 = vrsqrt.f32 %v791_v7  ;;  %v1591_v36 = vmul.f32 0.03125, %v711_v43  ;;  %v762_v49 = vmul.f32 0.03125, %v748_v29  ;;  %v812_v29 = vsub.f32 %v1534_v16, %v1587_v39 }
 0x473   :  { %v778_v23 = vsub.f32 %v762_v49, %v770_v42  ;;  %v771_v60 = vmul.f32 %v1591_v36, %v1591_v36  ;;  %v811_v7 = vsub.f32 %v1545_v26, %v1591_v36  ;;  %v813_v26 = vsub.f32 %v1541_v20, %v1603_v35 }
 0x474   :  { %v751_v30 = vpop.xlane.xlu1 %750  ;;  %v754_v48 = vpop.xlane.xlu0 %753 }
 0x475   :  { %v786_v38 = vmax.f32 %v778_v23, 0.0  ;;  %v763_v5 = vmul.f32 0.03125, %v751_v30  ;;  %v764_v31 = vmul.f32 0.03125, %v754_v48 }
 0x476   :  { %v1096_v32 = vpop.eup %1095 }
 0x477   :  { %v816_v51 = vmul.f32 %v1096_v32, %v808_v24  ;;  %v794_v40 = vadd.f32 1e-05, %v786_v38  ;;  %v779_v45 = vsub.f32 %v763_v5, %v771_v60  ;;  %v780_v63 = vsub.f32 %v764_v31, %v772_v28 }
 0x478   :  { %v757_v25 = vpop.xlane.xlu1 %756  ;;  %v1041_v61 = vpop.permute.xlu0 %1040 }
 0x479   :  { %v830_v8 = vmul.f32 %v1601_v33, %v816_v51  ;;  %1103 = vrsqrt.f32 %v794_v40  ;;  %v787_v9 = vmax.f32 %v779_v45, 0.0  ;;  %v788_v47 = vmax.f32 %v780_v63, 0.0 }
 0x47a   :  { %v1098_v3 = vpop.eup %1097  ;;  %v765_v12 = vmul.f32 0.03125, %v757_v25  ;;  %v1042_v28 = vunpack.i.l.bf16 %v1041_v61  ;;  %v1043_v38 = vunpack.i.h.bf16 %v1041_v61 }
 0x47b   :  { %v1100_v57 = vpop.eup %1099  ;;  %v844_v21 = vadd.f32 %v1610_v2, %v830_v8  ;;  %v817_v13 = vmul.f32 %v1098_v3, %v809_v17  ;;  %v795_v14 = vadd.f32 1e-05, %v787_v9  ;;  %v796_v15 = vadd.f32 1e-05, %v788_v47 }
 0x47c   :  { %v814_v53 = vmul.f32 %v1100_v57, %v806_v4  ;;  %v781_v11 = vsub.f32 %v765_v12, %v773_v6  ;;  %v1046_v10 = vpop.permute.xlu1 %1045 }
 0x47d   :  { %1105 = vtanh.f32 %v844_v21  ;;  %v831_v0 = vmul.f32 %v1601_v33, %v817_v13  ;;  %v1047_v27 = vunpack.i.l.bf16 %v1046_v10  ;;  %v1048_v49 = vunpack.i.h.bf16 %v1046_v10 }
 0x47e   :  { %v1102_v41 = vpop.eup %1101  ;;  %v828_v34 = vmul.f32 %v1601_v33, %v814_v53  ;;  %1107 = vrsqrt.f32 %v795_v14  ;;  %v789_v50 = vmax.f32 %v781_v11, 0.0 }
 0x47f   :  { %v845_v19 = vadd.f32 %v1610_v2, %v831_v0  ;;  %v815_v52 = vmul.f32 %v1102_v41, %v807_v22  ;;  %1109 = vrsqrt.f32 %v796_v15 }
 0x480   :  { %v842_v46 = vadd.f32 %v1610_v2, %v828_v34  ;;  %v797_v44 = vadd.f32 1e-05, %v789_v50  ;;  %v1051_v8 = vpop.permute.xlu1 %1050 }
 0x481   :  { %1111 = vtanh.f32 %v845_v19  ;;  %v829_v54 = vmul.f32 %v1601_v33, %v815_v52  ;;  %v1052_v47 = vunpack.i.l.bf16 %v1051_v8  ;;  %v1053_v6 = vunpack.i.h.bf16 %v1051_v8 }
 0x482   :  { %1113 = vtanh.f32 %v842_v46 }
 0x483   :  { %v843_v55 = vadd.f32 %v1610_v2, %v829_v54  ;;  %1115 = vrsqrt.f32 %v797_v44 }
 0x485   :  { %1117 = vtanh.f32 %v843_v55 }
 0x486   :  { %v1104_v58 = vpop.eup %1103 }
 0x487   :  { %v818_v37 = vmul.f32 %v1104_v58, %v810_v56 }
 0x489   :  { %v832_v59 = vmul.f32 %v1601_v33, %v818_v37 }
 0x48a   :  { %v1106_v62 = vpop.eup %1105 }
 0x48b   :  { %v1108_v43 = vpop.eup %1107  ;;  %v846_v42 = vadd.f32 %v1610_v2, %v832_v59  ;;  %v892_v18 = vsel %vm152_vm3, %v1106_v62, %v1047_v27 }
 0x48c   :  { %v1110_v1 = vpop.eup %1109  ;;  %v819_v23 = vmul.f32 %v1108_v43, %v811_v7  ;;  %v978_v24 = vpack.c.bf16 %v892_v18, %v892_v18 }
 0x48d   :  { %1119 = vtanh.f32 %v846_v42  ;;  %v820_v30 = vmul.f32 %v1110_v1, %v812_v29 }
 0x48e   :  { %v1112_v48 = vpop.eup %1111  ;;  %v833_v60 = vmul.f32 %v1601_v33, %v819_v23  ;;  %933 = vst.msk [vmem:[%s1695_s13 + $0x8] sm:$0xf] %vm930_vm4, %v978_v24 }
 0x48f   :  { %v1114_v16 = vpop.eup %1113  ;;  %v834_v39 = vmul.f32 %v1601_v33, %v820_v30  ;;  %v893_v36 = vsel %vm152_vm3, %v1112_v48, %v1048_v49 }
 0x490   :  { %v1116_v5 = vpop.eup %1115  ;;  %v847_v31 = vadd.f32 %v1610_v2, %v833_v60  ;;  %v979_v32 = vpack.c.bf16 %v893_v36, %v893_v36  ;;  %v890_v51 = vsel %vm152_vm3, %v1114_v16, %v1042_v28 }
 0x491   :  { %v848_v40 = vadd.f32 %v1610_v2, %v834_v39  ;;  %v821_v45 = vmul.f32 %v1116_v5, %v813_v26  ;;  %v976_v63 = vpack.c.bf16 %v890_v51, %v890_v51 }
 0x492   :  { %v1118_v17 = vpop.eup %1117  ;;  %1121 = vtanh.f32 %v847_v31  ;;  %934 = vst.msk [vmem:[%s1695_s13 + $0xc] sm:$0xf] %vm930_vm4, %v979_v32 }
 0x493   :  { %1123 = vtanh.f32 %v848_v40  ;;  %v835_v20 = vmul.f32 %v1601_v33, %v821_v45  ;;  %v891_v35 = vsel %vm152_vm3, %v1118_v17, %v1043_v38  ;;  %931 = vst.msk [vmem:[%s1695_s13] sm:$0xf] %vm930_vm4, %v976_v63  ;;  %v1056_v33 = vpop.permute.xlu1 %1055 }
 0x494   :  { %v977_v25 = vpack.c.bf16 %v891_v35, %v891_v35  ;;  %v1057_v57 = vunpack.i.l.bf16 %v1056_v33  ;;  %v1058_v15 = vunpack.i.h.bf16 %v1056_v33 }
 0x495   :  { %v849_v9 = vadd.f32 %v1610_v2, %v835_v20 }
 0x496   :  { %932 = vst.msk [vmem:[%s1695_s13 + $0x4] sm:$0xf] %vm930_vm4, %v977_v25 }
 0x497   :  { %1125 = vtanh.f32 %v849_v9 }
 0x49a   :  { %v1120_v3 = vpop.eup %1119 }
 0x49b   :  { %v894_v4 = vsel %vm152_vm3, %v1120_v3, %v1052_v47 }
 0x49c   :  { %v980_v12 = vpack.c.bf16 %v894_v4, %v894_v4 }
 0x49e   :  { %935 = vst.msk [vmem:[%s1695_s13 + $0x10] sm:$0xf] %vm930_vm4, %v980_v12 }
 0x49f   :  { %v1122_v2 = vpop.eup %1121 }
 0x4a0   :  { %v1124_v21 = vpop.eup %1123  ;;  %v895_v13 = vsel %vm152_vm3, %v1122_v2, %v1053_v6 }
 0x4a1   :  { %v981_v14 = vpack.c.bf16 %v895_v13, %v895_v13  ;;  %v896_v53 = vsel %vm152_vm3, %v1124_v21, %v1057_v57 }
 0x4a2   :  { %v982_v11 = vpack.c.bf16 %v896_v53, %v896_v53 }
 0x4a3   :  { %936 = vst.msk [vmem:[%s1695_s13 + $0x14] sm:$0xf] %vm930_vm4, %v981_v14 }
 0x4a4   :  { %v1126_v22 = vpop.eup %1125  ;;  %937 = vst.msk [vmem:[%s1695_s13 + $0x18] sm:$0xf] %vm930_vm4, %v982_v11 }
 0x4a5   :  { %v897_v0 = vsel %vm152_vm3, %v1126_v22, %v1058_v15 }
 0x4a6   :  { %v983_v41 = vpack.c.bf16 %v897_v0, %v897_v0 }
 0x4a8   :  { %938 = vst.msk [vmem:[%s1695_s13 + $0x1c] sm:$0xf] %vm930_vm4, %v983_v41 }

// kernel: a_call__.7
= control target key start
LH: loop header
LB: loop body
LE: loop exit
PB: predicated region body
PF: predicated region fallthrough
CT: control target
= control target key end

     0   :  { %vm169_vm0 = vcmask 1040384   ;;  %vm170_vm1 = vcmask 1041408   ;;  %v2751_v0 = vmov 0.0   ;;  %v2752_v2 = vmov 65535   ;;  %s3962_s3 = inlined_call_operand.vmem [shape: bf16[35,35], index: 3, kind: input, shape index: {}]   ;;  %s3963_s2 = inlined_call_operand.vmem [shape: bf16[35,35], index: 2, kind: input, shape index: {}]   ;;  %s3964_s1 = inlined_call_operand.vmem [shape: bf16[112,35], index: 1, kind: input, shape index: {}]   ;;  %s3965_s0 = inlined_call_operand.vmem [shape: bf16[112,35], index: 0, kind: input, shape index: {}]   ;;  %s3966_s4 = inlined_call_operand.vmem [shape: f32[1,35], index: 4, kind: input, shape index: {}]   ;;  %s3967_s7 = inlined_call_operand.vmem [shape: bf16[35,35], index: 7, kind: input, shape index: {}]   ;;  %s3968_s5 = inlined_call_operand.vmem [shape: f32[1,35], index: 5, kind: input, shape index: {}, may-alias: {5,9,13}]   ;;  %s3969_s6 = inlined_call_operand.vmem [shape: f32[1,35], index: 6, kind: input, shape index: {}, may-alias: {6,10,14}]   ;;  %s3970_s11 = inlined_call_operand.vmem [shape: bf16[35,35], index: 11, kind: input, shape index: {}]   ;;  %s3971_s8 = inlined_call_operand.vmem [shape: f32[1,35], index: 8, kind: input, shape index: {}]   ;;  %s3972_s9 = inlined_call_operand.vmem [shape: f32[1,35], index: 9, kind: input, shape index: {}, may-alias: {5,9,13}]   ;;  %s3973_s10 = inlined_call_operand.vmem [shape: f32[1,35], index: 10, kind: input, shape index: {}, may-alias: {6,10,14}]   ;;  %s3974_s15 = inlined_call_operand.vmem [shape: bf16[35,1], index: 15, kind: input, shape index: {}]   ;;  %s3975_s12 = inlined_call_operand.vmem [shape: f32[1,35], index: 12, kind: input, shape index: {}]   ;;  %s3976_s16 = inlined_call_operand.<no memory space> [shape: f32[1,1], index: 16, kind: input, shape index: {}]   ;;  %s3977_s13 = inlined_call_operand.vmem [shape: f32[1,35], index: 13, kind: input, shape index: {}, may-alias: {5,9,13}]   ;;  %s3978_s14 = inlined_call_operand.vmem [shape: f32[1,35], index: 14, kind: input, shape index: {}, may-alias: {6,10,14}]   ;;  %s3979_s17 = inlined_call_operand.vmem [shape: bf16[112,70], index: 17, kind: output, shape index: {}]  }
   0x1   :  { %3982 = sst [smem:[#allocation3_spill]] %s3962_s3  ;;  %2422 = vmatprep.subr.bf16.mxu1 %v2751_v0  ;;  %v171_v3 = vsel %vm169_vm0, 4294967295, %v2752_v2  ;;  %2252 = vmatprep.subr.bf16.mxu0 %v2751_v0  ;;  %vm2753_vm2 = vmmov 0   ;;  %v81_v8 = vld [vmem:[%s3964_s1 + $0x20] sm:$0xff]   ;;  %vm147_vm3 = vcmask 285696   ;;  %v83_v12 = vld [vmem:[%s3964_s1 + $0x28] sm:$0xff]  }
   0x2   :  { %3983 = sst [smem:[#allocation4_spill]] %s3963_s2  ;;  %v2851_v4 = vsel %vm170_vm1, %v171_v3, 0  ;;  %2274 = vmatprep.mubr.msk.bf16.mxu1 %vm2753_vm2, %v2751_v0  ;;  %2258 = vmatprep.mubr.msk.bf16.mxu0 %vm2753_vm2, %v2751_v0  ;;  %v73_v10 = vld [vmem:[%s3964_s1] sm:$0xff]   ;;  %v75_v14 = vld [vmem:[%s3964_s1 + $0x8] sm:$0xff]   ;;  %v85_v16 = vld [vmem:[%s3964_s1 + $0x30] sm:$0xff]   ;;  %vm2067_vm4 = vcmask 568320  }
   0x3   :  { %s3984_s26 = sld [smem:[#allocation3_spill]]  ;;  %v77_v17 = vld [vmem:[%s3964_s1 + $0x10] sm:$0xff]   ;;  %v59_v18 = vld [vmem:[%s3965_s0] sm:$0xff]   ;;  %v79_v19 = vld [vmem:[%s3964_s1 + $0x18] sm:$0xff]  }
   0x4   :  { %s3985_s20 = sld [smem:[#allocation4_spill]]  ;;  %v61_v20 = vld [vmem:[%s3965_s0 + $0x8] sm:$0xff]   ;;  %v63_v21 = vld [vmem:[%s3965_s0 + $0x10] sm:$0xff]   ;;  %v65_v22 = vld [vmem:[%s3965_s0 + $0x18] sm:$0xff]  }
   0x5   :  { %v67_v23 = vld [vmem:[%s3965_s0 + $0x20] sm:$0xff]   ;;  %v69_v24 = vld [vmem:[%s3965_s0 + $0x28] sm:$0xff]   ;;  %v71_v25 = vld [vmem:[%s3965_s0 + $0x30] sm:$0xff]  }
   0x6   :  { %v2982_v51 = vld [vmem:[%s3966_s4] ss:$0 sm:$0xff] }
   0x9   :  { %v2470_v1 = vld [vmem:[%s3984_s26 + $0x10] ss:$0 sps:$4 sm:$0x33]   ;;  %v2471_v6 = vld [vmem:[%s3984_s26 + $0x8] sm:$0xff]   ;;  %v2472_v7 = vld [vmem:[%s3984_s26] sm:$0xff]  }
   0xa   :  { %v174_v5 = vand.u32 %v2470_v1, %v2851_v4  ;;  %v2474_v9 = vld [vmem:[%s3985_s20 + $0x10] ss:$0 sps:$4 sm:$0x33]   ;;  %v2476_v13 = vld [vmem:[%s3985_s20 + $0x8] sm:$0xff]   ;;  %v2478_v15 = vld [vmem:[%s3985_s20] sm:$0xff]  }
   0xb   :  { %v337_v11 = vand.u32 %v2474_v9, %v2851_v4 }
   0xc   :  { %2425 = vmatpush3.bf16.msra.mxu1 %v174_v5  ;;  %2253 = vmatpush3.bf16.msra.mxu0 %v174_v5 }
   0xd   :  { %2423 = vmatprep.subr.bf16.mxu1 %v2751_v0  ;;  %2254 = vmatprep.subr.bf16.mxu0 %v2751_v0 }
  0x10   :  { %2426 = vmatpush3.bf16.msra.mxu1 %v2471_v6  ;;  %2255 = vmatpush3.bf16.msra.mxu0 %v2471_v6 }
  0x11   :  { %2424 = vmatprep.subr.bf16.mxu1 %v2751_v0  ;;  %2256 = vmatprep.subr.bf16.mxu0 %v2751_v0 }
  0x14   :  { %2427 = vmatpush3.bf16.msra.mxu1 %v2472_v7  ;;  %2257 = vmatpush3.bf16.msra.mxu0 %v2472_v7 }
  0x15   :  { %2286 = vmatprep.subr.bf16.mxu1 %v2751_v0  ;;  %2320 = vmatprep.subr.bf16.mxu0 %v2751_v0 }
  0x17   :  { %2275 = vmatmul.mubr.msk.bf16.vlgmr.msra.gmra.mxu1 %vm147_vm3, %v81_v8  ;;  %2259 = vmatmul.mubr.msk.bf16.vlgmr.msra.gmra.mxu0 %vm147_vm3, %v73_v10 }
  0x18   :  { %2287 = vmatpush3.bf16.msra.mxu1 %v337_v11  ;;  %2278 = vmatprep.mubr.msk.bf16.mxu1 %vm2753_vm2, %v2751_v0 }
  0x19   :  { %2288 = vmatprep.subr.bf16.mxu1 %v2751_v0  ;;  %2262 = vmatprep.mubr.msk.bf16.mxu0 %vm2753_vm2, %v2751_v0 }
  0x1c   :  { %2289 = vmatpush3.bf16.msra.mxu1 %v2476_v13 }
  0x1d   :  { %2290 = vmatprep.subr.bf16.mxu1 %v2751_v0 }
  0x1f   :  { %2279 = vmatmul.mubr.msk.bf16.gmra.mxu1 %vm147_vm3, %v83_v12  ;;  %2263 = vmatmul.mubr.msk.bf16.gmra.mxu0 %vm147_vm3, %v75_v14 }
  0x20   :  { %2282 = vmatprep.mubr.msk.bf16.mxu1 %vm2753_vm2, %v2751_v0  ;;  %2291 = vmatpush3.bf16.msra.mxu1 %v2478_v15 }
  0x21   :  { %2266 = vmatprep.mubr.msk.bf16.mxu0 %vm2753_vm2, %v2751_v0  ;;  %2354 = vmatprep.subr.bf16.mxu1 %v2751_v0 }
  0x27   :  { %2283 = vmatmul.mubr.msk.bf16.gmra.mxu1 %vm147_vm3, %v85_v16  ;;  %2267 = vmatmul.mubr.msk.bf16.gmra.mxu0 %vm147_vm3, %v77_v17 }
  0x28   :  { %2292 = vmatprep.mubr.msk.bf16.mxu1 %vm2753_vm2, %v2751_v0  ;;  %2270 = vmatprep.mubr.msk.bf16.mxu0 %vm2753_vm2, %v2751_v0 }
  0x2f   :  { %2293 = vmatmul.mubr.msk.bf16.vlgmr.msra.gmra.mxu1 %vm147_vm3, %v59_v18  ;;  %2271 = vmatmul.mubr.msk.bf16.gmra.mxu0 %vm147_vm3, %v79_v19 }
  0x30   :  { %2296 = vmatprep.mubr.msk.bf16.mxu1 %vm2753_vm2, %v2751_v0  ;;  %2326 = vmatprep.mubr.msk.bf16.mxu0 %vm2753_vm2, %v2751_v0 }
  0x37   :  { %2297 = vmatmul.mubr.msk.bf16.gmra.mxu1 %vm147_vm3, %v61_v20 }
  0x38   :  { %2300 = vmatprep.mubr.msk.bf16.mxu1 %vm2753_vm2, %v2751_v0 }
  0x3f   :  { %2301 = vmatmul.mubr.msk.bf16.gmra.mxu1 %vm147_vm3, %v63_v21 }
  0x40   :  { %2304 = vmatprep.mubr.msk.bf16.mxu1 %vm2753_vm2, %v2751_v0 }
  0x47   :  { %2305 = vmatmul.mubr.msk.bf16.gmra.mxu1 %vm147_vm3, %v65_v22 }
  0x48   :  { %2308 = vmatprep.mubr.msk.bf16.mxu1 %vm2753_vm2, %v2751_v0 }
  0x4f   :  { %2309 = vmatmul.mubr.msk.bf16.gmra.mxu1 %vm147_vm3, %v67_v23 }
  0x50   :  { %2312 = vmatprep.mubr.msk.bf16.mxu1 %vm2753_vm2, %v2751_v0 }
  0x57   :  { %2313 = vmatmul.mubr.msk.bf16.gmra.mxu1 %vm147_vm3, %v69_v24 }
  0x58   :  { %2316 = vmatprep.mubr.msk.bf16.mxu1 %vm2753_vm2, %v2751_v0 }
  0x5f   :  { %2317 = vmatmul.mubr.msk.bf16.gmra.mxu1 %vm147_vm3, %v71_v25 }
  0x60   :  { %2360 = vmatprep.mubr.msk.bf16.mxu1 %vm2753_vm2, %v2751_v0 }
  0xd7   :  { %v2967_v26 = vpop.f32.mrf.mxu1  ;;  %v210_v27 = vpop.f32.mrf.mxu0 }
  0xd9   :  { %v2276_v28 = vpop.f32.mrf.mxu1  ;;  %v2260_v29 = vpop.f32.mrf.mxu0 }
  0xdb   :  { %v2969_v30 = vpop.f32.mrf.mxu1  ;;  %v213_v31 = vpop.f32.mrf.mxu0 }
  0xdd   :  { %v2277_v32 = vpop.f32.mrf.mxu1  ;;  %v2261_v33 = vpop.f32.mrf.mxu0 }
  0xdf   :  { %v2971_v34 = vpop.f32.mrf.mxu1  ;;  %v218_v35 = vpop.f32.mrf.mxu0 }
  0xe1   :  { %v2280_v36 = vpop.f32.mrf.mxu1  ;;  %v2264_v37 = vpop.f32.mrf.mxu0 }
  0xe3   :  { %v2973_v38 = vpop.f32.mrf.mxu1  ;;  %v221_v39 = vpop.f32.mrf.mxu0 }
  0xe5   :  { %v2281_v40 = vpop.f32.mrf.mxu1  ;;  %v2265_v41 = vpop.f32.mrf.mxu0 }
  0xe7   :  { %v2975_v42 = vpop.f32.mrf.mxu1  ;;  %v226_v43 = vpop.f32.mrf.mxu0 }
  0xe9   :  { %v2284_v44 = vpop.f32.mrf.mxu1  ;;  %v2268_v45 = vpop.f32.mrf.mxu0 }
  0xeb   :  { %v2977_v46 = vpop.f32.mrf.mxu1  ;;  %v229_v47 = vpop.f32.mrf.mxu0 }
  0xed   :  { %v2285_v48 = vpop.f32.mrf.mxu1  ;;  %v2269_v49 = vpop.f32.mrf.mxu0 }
  0xef   :  { %v373_v50 = vpop.f32.mrf.mxu1  ;;  %v234_v52 = vpop.f32.mrf.mxu0 }
  0xf0   :  { %v374_v53 = vadd.f32 %v373_v50, %v210_v27 }
  0xf1   :  { %v2294_v54 = vpop.f32.mrf.mxu1  ;;  %v2272_v55 = vpop.f32.mrf.mxu0 }
  0xf2   :  { %v2985_v56 = vadd.f32 %v2982_v51, %v374_v53 }
  0xf3   :  { %v376_v57 = vpop.f32.mrf.mxu1  ;;  %v237_v58 = vpop.f32.mrf.mxu0 }
  0xf4   :  { %v377_v59 = vadd.f32 %v376_v57, %v213_v31  ;;  %v451_v60 = vsel %vm147_vm3, %v2985_v56, 0.0  ;;  %v508_v61 = vmul.f32 %v2985_v56, %v2985_v56 }
  0xf5   :  { %452 = vadd.xlane.f32.xlu0 %v451_v60  ;;  %v2295_v62 = vpop.f32.mrf.mxu1  ;;  %v2273_v63 = vpop.f32.mrf.mxu0 }
  0xf6   :  { %v2992_v1 = vadd.f32 %v2982_v51, %v377_v59  ;;  %v522_v2 = vsel %vm147_vm3, %v508_v61, 0.0 }
  0xf7   :  { %523 = vadd.xlane.f32.xlu1 %v522_v2  ;;  %v381_v3 = vpop.f32.mrf.mxu1 }
  0xf8   :  { %v382_v5 = vadd.f32 %v381_v3, %v218_v35  ;;  %v454_v6 = vsel %vm147_vm3, %v2992_v1, 0.0  ;;  %v509_v7 = vmul.f32 %v2992_v1, %v2992_v1 }
  0xf9   :  { %455 = vadd.xlane.f32.xlu0 %v454_v6  ;;  %v2298_v8 = vpop.f32.mrf.mxu1 }
  0xfa   :  { %v3000_v9 = vadd.f32 %v2982_v51, %v382_v5  ;;  %v525_v10 = vsel %vm147_vm3, %v509_v7, 0.0 }
  0xfb   :  { %526 = vadd.xlane.f32.xlu1 %v525_v10  ;;  %v384_v11 = vpop.f32.mrf.mxu1 }
  0xfc   :  { %v385_v12 = vadd.f32 %v384_v11, %v221_v39  ;;  %v457_v13 = vsel %vm147_vm3, %v3000_v9, 0.0  ;;  %v510_v14 = vmul.f32 %v3000_v9, %v3000_v9 }
  0xfd   :  { %458 = vadd.xlane.f32.xlu0 %v457_v13  ;;  %v2299_v15 = vpop.f32.mrf.mxu1 }
  0xfe   :  { %v3008_v16 = vadd.f32 %v2982_v51, %v385_v12  ;;  %v528_v19 = vsel %vm147_vm3, %v510_v14, 0.0 }
  0xff   :  { %v389_v17 = vpop.f32.mrf.mxu1 }
 0x100   :  { %v390_v18 = vadd.f32 %v389_v17, %v226_v43  ;;  %v460_v20 = vsel %vm147_vm3, %v3008_v16, 0.0  ;;  %v511_v21 = vmul.f32 %v3008_v16, %v3008_v16 }
 0x101   :  { %529 = vadd.xlane.f32.xlu0 %v528_v19  ;;  %461 = vadd.xlane.f32.xlu1 %v460_v20  ;;  %v2302_v22 = vpop.f32.mrf.mxu1 }
 0x102   :  { %v3016_v23 = vadd.f32 %v2982_v51, %v390_v18  ;;  %v531_v27 = vsel %vm147_vm3, %v511_v21, 0.0 }
 0x103   :  { %v392_v24 = vpop.f32.mrf.mxu1 }
 0x104   :  { %v393_v25 = vadd.f32 %v392_v24, %v229_v47  ;;  %v463_v28 = vsel %vm147_vm3, %v3016_v23, 0.0  ;;  %v512_v29 = vmul.f32 %v3016_v23, %v3016_v23 }
 0x105   :  { %532 = vadd.xlane.f32.xlu1 %v531_v27  ;;  %464 = vadd.xlane.f32.xlu0 %v463_v28  ;;  %v2303_v31 = vpop.f32.mrf.mxu1 }
 0x106   :  { %v3024_v32 = vadd.f32 %v2982_v51, %v393_v25  ;;  %v534_v36 = vsel %vm147_vm3, %v512_v29, 0.0 }
 0x107   :  { %v397_v33 = vpop.f32.mrf.mxu1 }
 0x108   :  { %v398_v35 = vadd.f32 %v397_v33, %v234_v52  ;;  %v466_v37 = vsel %vm147_vm3, %v3024_v32, 0.0  ;;  %v513_v39 = vmul.f32 %v3024_v32, %v3024_v32 }
 0x109   :  { %535 = vadd.xlane.f32.xlu0 %v534_v36  ;;  %467 = vadd.xlane.f32.xlu1 %v466_v37  ;;  %v2306_v40 = vpop.f32.mrf.mxu1 }
 0x10a   :  { %v3032_v41 = vadd.f32 %v2982_v51, %v398_v35  ;;  %v537_v45 = vsel %vm147_vm3, %v513_v39, 0.0 }
 0x10b   :  { %v400_v43 = vpop.f32.mrf.mxu1 }
 0x10c   :  { %v401_v44 = vadd.f32 %v400_v43, %v237_v58  ;;  %v469_v47 = vsel %vm147_vm3, %v3032_v41, 0.0  ;;  %v514_v48 = vmul.f32 %v3032_v41, %v3032_v41  ;;  %v2491_v43 = vld [vmem:[%s3967_s7 + $0x8] sm:$0xff]  }
 0x10d   :  { %538 = vadd.xlane.f32.xlu1 %v537_v45  ;;  %470 = vadd.xlane.f32.xlu0 %v469_v47  ;;  %v2307_v49 = vpop.f32.mrf.mxu1 }
 0x10e   :  { %v3040_v50 = vadd.f32 %v2982_v51, %v401_v44  ;;  %v540_v54 = vsel %vm147_vm3, %v514_v48, 0.0  ;;  %v2492_v44 = vld [vmem:[%s3967_s7] sm:$0xff]  }
 0x10f   :  { %v405_v52 = vpop.f32.mrf.mxu1 }
 0x110   :  { %v406_v53 = vadd.f32 %v405_v52, %v2967_v26  ;;  %v472_v55 = vsel %vm147_vm3, %v3040_v50, 0.0  ;;  %v515_v57 = vmul.f32 %v3040_v50, %v3040_v50 }
 0x111   :  { %541 = vadd.xlane.f32.xlu0 %v540_v54  ;;  %473 = vadd.xlane.f32.xlu1 %v472_v55  ;;  %v2310_v58 = vpop.f32.mrf.mxu1 }
 0x112   :  { %v3049_v59 = vadd.f32 %v2982_v51, %v406_v53  ;;  %v543_v62 = vsel %vm147_vm3, %v515_v57, 0.0 }
 0x113   :  { %v408_v60 = vpop.f32.mrf.mxu1 }
 0x114   :  { %v409_v61 = vadd.f32 %v408_v60, %v2969_v30  ;;  %v475_v26 = vsel %vm147_vm3, %v3049_v59, 0.0  ;;  %v516_v63 = vmul.f32 %v3049_v59, %v3049_v59 }
 0x115   :  { %544 = vadd.xlane.f32.xlu1 %v543_v62  ;;  %476 = vadd.xlane.f32.xlu0 %v475_v26  ;;  %v2311_v2 = vpop.f32.mrf.mxu1 }
 0x116   :  { %v3058_v3 = vadd.f32 %v2982_v51, %v409_v61  ;;  %v546_v7 = vsel %vm147_vm3, %v516_v63, 0.0 }
 0x117   :  { %v413_v5 = vpop.f32.mrf.mxu1 }
 0x118   :  { %v414_v6 = vadd.f32 %v413_v5, %v2971_v34  ;;  %v478_v30 = vsel %vm147_vm3, %v3058_v3, 0.0  ;;  %v517_v8 = vmul.f32 %v3058_v3, %v3058_v3 }
 0x119   :  { %547 = vadd.xlane.f32.xlu0 %v546_v7  ;;  %479 = vadd.xlane.f32.xlu1 %v478_v30  ;;  %v2314_v10 = vpop.f32.mrf.mxu1 }
 0x11a   :  { %v3067_v11 = vadd.f32 %v2982_v51, %v414_v6  ;;  %v549_v14 = vsel %vm147_vm3, %v517_v8, 0.0 }
 0x11b   :  { %v416_v12 = vpop.f32.mrf.mxu1 }
 0x11c   :  { %v417_v13 = vadd.f32 %v416_v12, %v2973_v38  ;;  %v481_v34 = vsel %vm147_vm3, %v3067_v11, 0.0  ;;  %v518_v15 = vmul.f32 %v3067_v11, %v3067_v11 }
 0x11d   :  { %550 = vadd.xlane.f32.xlu1 %v549_v14  ;;  %482 = vadd.xlane.f32.xlu0 %v481_v34  ;;  %v2315_v17 = vpop.f32.mrf.mxu1 }
 0x11e   :  { %v3076_v18 = vadd.f32 %v2982_v51, %v417_v13  ;;  %v552_v21 = vsel %vm147_vm3, %v518_v15, 0.0 }
 0x11f   :  { %v421_v19 = vpop.f32.mrf.mxu1 }
 0x120   :  { %v422_v20 = vadd.f32 %v421_v19, %v2975_v42  ;;  %v484_v38 = vsel %vm147_vm3, %v3076_v18, 0.0  ;;  %v519_v22 = vmul.f32 %v3076_v18, %v3076_v18  ;;  %v2490_v42 = vld [vmem:[%s3967_s7 + $0x10] ss:$0 sps:$4 sm:$0x33]  }
 0x121   :  { %553 = vadd.xlane.f32.xlu0 %v552_v21  ;;  %485 = vadd.xlane.f32.xlu1 %v484_v38  ;;  %v2318_v24 = vpop.f32.mrf.mxu1  ;;  %v786_v35 = vand.u32 %v2490_v42, %v2851_v4 }
 0x122   :  { %v3085_v25 = vadd.f32 %v2982_v51, %v422_v20  ;;  %v555_v27 = vsel %vm147_vm3, %v519_v22, 0.0 }
 0x123   :  { %v424_v28 = vpop.f32.mrf.mxu1  ;;  %2321 = vmatpush3.bf16.msra.mxu0 %v786_v35 }
 0x124   :  { %v425_v29 = vadd.f32 %v424_v28, %v2977_v46  ;;  %v487_v31 = vsel %vm147_vm3, %v3085_v25, 0.0  ;;  %v520_v33 = vmul.f32 %v3085_v25, %v3085_v25  ;;  %2322 = vmatprep.subr.bf16.mxu0 %v2751_v0 }
 0x125   :  { %556 = vadd.xlane.f32.xlu1 %v555_v27  ;;  %488 = vadd.xlane.f32.xlu0 %v487_v31  ;;  %v2319_v36 = vpop.f32.mrf.mxu1 }
 0x126   :  { %v3098_v37 = vadd.f32 %v2982_v51, %v425_v29  ;;  %v558_v39 = vsel %vm147_vm3, %v520_v33, 0.0 }
 0x127   :  { %2323 = vmatpush3.bf16.msra.mxu0 %v2491_v43  ;;  %v3135_v43 = vld [vmem:[%s3968_s5] ss:$0 sm:$0xff]  ;;  %s2755_s5 = smov 35  }
 0x128   :  { %v490_v46 = vsel %vm147_vm3, %v3098_v37, 0.0  ;;  %v521_v40 = vmul.f32 %v3098_v37, %v3098_v37  ;;  %2324 = vmatprep.subr.bf16.mxu0 %v2751_v0 }
 0x129   :  { %559 = vadd.xlane.f32.xlu0 %v558_v39  ;;  %491 = vadd.xlane.f32.xlu1 %v490_v46 }
 0x12a   :  { %v561_v51 = vsel %vm147_vm3, %v521_v40, 0.0 }
 0x12b   :  { %2325 = vmatpush3.bf16.msra.mxu0 %v2492_v44 }
 0x12c   :  { %2388 = vmatprep.subr.bf16.mxu0 %v2751_v0 }
 0x12d   :  { %562 = vadd.xlane.f32.xlu1 %v561_v51 }
 0x17e   :  { %v453_v45 = vpop.xlane.xlu0 %452 }
 0x17f   :  { %v494_v47 = vmul.f32 0.028571429, %v453_v45 }
 0x180   :  { %v524_v48 = vpop.xlane.xlu1 %523 }
 0x181   :  { %v578_v49 = vmul.f32 %v494_v47, %v494_v47  ;;  %v564_v52 = vmul.f32 0.028571429, %v524_v48  ;;  %v648_v31 = vsub.f32 %v2985_v56, %v494_v47 }
 0x182   :  { %v456_v53 = vpop.xlane.xlu0 %455 }
 0x183   :  { %v592_v54 = vsub.f32 %v564_v52, %v578_v49  ;;  %v495_v55 = vmul.f32 0.028571429, %v456_v53 }
 0x184   :  { %v527_v57 = vpop.xlane.xlu1 %526 }
 0x185   :  { %v606_v58 = vmax.f32 %v592_v54, 0.0  ;;  %v579_v60 = vmul.f32 %v495_v55, %v495_v55  ;;  %v565_v61 = vmul.f32 0.028571429, %v527_v57  ;;  %v649_v56 = vsub.f32 %v2992_v1, %v495_v55 }
 0x186   :  { %v459_v62 = vpop.xlane.xlu0 %458 }
 0x187   :  { %v620_v26 = vadd.f32 1e-05, %v606_v58  ;;  %v593_v63 = vsub.f32 %v565_v61, %v579_v60  ;;  %v3115_v2 = vmul.f32 0.028571429, %v459_v62  ;;  %v3144_v58 = vld [vmem:[%s3969_s6] ss:$0 sm:$0xff] }
 0x189   :  { %2513 = vrsqrt.f32 %v620_v26  ;;  %v607_v5 = vmax.f32 %v593_v63, 0.0  ;;  %v580_v8 = vmul.f32 %v3115_v2, %v3115_v2 }
 0x18a   :  { %v530_v6 = vpop.xlane.xlu0 %529  ;;  %v462_v7 = vpop.xlane.xlu1 %461 }
 0x18b   :  { %v621_v30 = vadd.f32 1e-05, %v607_v5  ;;  %v566_v10 = vmul.f32 0.028571429, %v530_v6  ;;  %v3119_v12 = vmul.f32 0.028571429, %v462_v7  ;;  %v650_v6 = vsub.f32 %v3000_v9, %v3115_v2 }
 0x18d   :  { %2515 = vrsqrt.f32 %v621_v30  ;;  %v594_v13 = vsub.f32 %v566_v10, %v580_v8  ;;  %v581_v17 = vmul.f32 %v3119_v12, %v3119_v12  ;;  %v651_v9 = vsub.f32 %v3008_v16, %v3119_v12 }
 0x18e   :  { %v533_v14 = vpop.xlane.xlu1 %532  ;;  %v465_v34 = vpop.xlane.xlu0 %464 }
 0x18f   :  { %v608_v15 = vmax.f32 %v594_v13, 0.0  ;;  %v567_v19 = vmul.f32 0.028571429, %v533_v14  ;;  %v3123_v20 = vmul.f32 0.028571429, %v465_v34 }
 0x191   :  { %v622_v21 = vadd.f32 1e-05, %v608_v15  ;;  %v595_v38 = vsub.f32 %v567_v19, %v581_v17  ;;  %v582_v22 = vmul.f32 %v3123_v20, %v3123_v20  ;;  %v652_v16 = vsub.f32 %v3016_v23, %v3123_v20 }
 0x192   :  { %v536_v24 = vpop.xlane.xlu0 %535  ;;  %v468_v27 = vpop.xlane.xlu1 %467 }
 0x193   :  { %2517 = vrsqrt.f32 %v622_v21  ;;  %v609_v42 = vmax.f32 %v595_v38, 0.0  ;;  %v568_v28 = vmul.f32 0.028571429, %v536_v24  ;;  %v3127_v29 = vmul.f32 0.028571429, %v468_v27 }
 0x195   :  { %v623_v33 = vadd.f32 1e-05, %v609_v42  ;;  %v596_v35 = vsub.f32 %v568_v28, %v582_v22  ;;  %v583_v39 = vmul.f32 %v3127_v29, %v3127_v29  ;;  %v653_v20 = vsub.f32 %v3024_v32, %v3127_v29 }
 0x196   :  { %v2514_v36 = vpop.eup %2513  ;;  %v539_v46 = vpop.xlane.xlu1 %538 }
 0x197   :  { %v471_v40 = vpop.xlane.xlu0 %470  ;;  %v662_v51 = vmul.f32 %v2514_v36, %v648_v31  ;;  %2519 = vrsqrt.f32 %v623_v33  ;;  %v610_v44 = vmax.f32 %v596_v35, 0.0  ;;  %v569_v45 = vmul.f32 0.028571429, %v539_v46 }
 0x198   :  { %v3137_v48 = vmul.f32 0.028571429, %v471_v40 }
 0x199   :  { %v624_v47 = vadd.f32 1e-05, %v610_v44  ;;  %v597_v49 = vsub.f32 %v569_v45, %v583_v39  ;;  %v682_v53 = vmul.f32 %v3135_v43, %v662_v51 }
 0x19a   :  { %v2516_v52 = vpop.eup %2515  ;;  %v474_v57 = vpop.xlane.xlu1 %473  ;;  %v584_v62 = vmul.f32 %v3137_v48, %v3137_v48 }
 0x19b   :  { %v542_v54 = vpop.xlane.xlu0 %541  ;;  %v663_v60 = vmul.f32 %v2516_v52, %v649_v56  ;;  %2521 = vrsqrt.f32 %v624_v47  ;;  %v611_v61 = vmax.f32 %v597_v49, 0.0  ;;  %v3148_v1 = vmul.f32 0.028571429, %v474_v57 }
 0x19c   :  { %v570_v26 = vmul.f32 0.028571429, %v542_v54  ;;  %v702_v5 = vadd.f32 %v3144_v58, %v682_v53 }
 0x19d   :  { %v683_v55 = vmul.f32 %v3135_v43, %v663_v60  ;;  %v625_v63 = vadd.f32 1e-05, %v611_v61  ;;  %v585_v30 = vmul.f32 %v3148_v1, %v3148_v1 }
 0x19e   :  { %v598_v7 = vsub.f32 %v570_v26, %v584_v62  ;;  %v545_v8 = vpop.xlane.xlu1 %544 }
 0x19f   :  { %v477_v10 = vpop.xlane.xlu0 %476  ;;  %v703_v13 = vadd.f32 %v3144_v58, %v683_v55  ;;  %2523 = vrsqrt.f32 %v625_v63  ;;  %v571_v14 = vmul.f32 0.028571429, %v545_v8 }
 0x1a0   :  { %v3157_v34 = vmul.f32 0.028571429, %v477_v10  ;;  %v2518_v15 = vpop.eup %2517  ;;  %v612_v17 = vmax.f32 %v598_v7, 0.0 }
 0x1a1   :  { %2525 = vtanh.f32 %v703_v13  ;;  %v664_v19 = vmul.f32 %v2518_v15, %v650_v6  ;;  %v599_v21 = vsub.f32 %v571_v14, %v585_v30 }
 0x1a2   :  { %2527 = vtanh.f32 %v702_v5  ;;  %v626_v2 = vadd.f32 1e-05, %v612_v17  ;;  %v586_v38 = vmul.f32 %v3157_v34, %v3157_v34  ;;  %v480_v24 = vpop.xlane.xlu1 %479 }
 0x1a3   :  { %v548_v22 = vpop.xlane.xlu0 %547  ;;  %v684_v27 = vmul.f32 %v3135_v43, %v664_v19  ;;  %v613_v42 = vmax.f32 %v599_v21, 0.0  ;;  %v3164_v31 = vmul.f32 0.028571429, %v480_v24  ;;  %v654_v21 = vsub.f32 %v3032_v41, %v3137_v48 }
 0x1a4   :  { %v572_v28 = vmul.f32 0.028571429, %v548_v22  ;;  %v2520_v33 = vpop.eup %2519  ;;  %2529 = vrsqrt.f32 %v626_v2 }
 0x1a5   :  { %v665_v35 = vmul.f32 %v2520_v33, %v651_v9  ;;  %v627_v36 = vadd.f32 1e-05, %v613_v42  ;;  %v587_v12 = vmul.f32 %v3164_v31, %v3164_v31  ;;  %v704_v51 = vadd.f32 %v3144_v58, %v684_v27 }
 0x1a6   :  { %v600_v39 = vsub.f32 %v572_v28, %v586_v38  ;;  %v551_v46 = vpop.xlane.xlu1 %550  ;;  %v655_v28 = vsub.f32 %v3040_v50, %v3148_v1 }
 0x1a7   :  { %v483_v40 = vpop.xlane.xlu0 %482  ;;  %v685_v44 = vmul.f32 %v3135_v43, %v665_v35  ;;  %2531 = vrsqrt.f32 %v627_v36  ;;  %v573_v56 = vmul.f32 0.028571429, %v551_v46 }
 0x1a8   :  { %v614_v45 = vmax.f32 %v600_v39, 0.0  ;;  %v2522_v47 = vpop.eup %2521  ;;  %v3172_v49 = vmul.f32 0.028571429, %v483_v40  ;;  %2533 = vtanh.f32 %v704_v51  ;;  %v656_v40 = vsub.f32 %v3049_v59, %v3157_v34 }
 0x1a9   :  { %v666_v52 = vmul.f32 %v2522_v47, %v652_v16  ;;  %v601_v54 = vsub.f32 %v573_v56, %v587_v12  ;;  %v705_v23 = vadd.f32 %v3144_v58, %v685_v44 }
 0x1aa   :  { %v628_v53 = vadd.f32 1e-05, %v614_v45  ;;  %v588_v57 = vmul.f32 %v3172_v49, %v3172_v49  ;;  %v486_v61 = vpop.xlane.xlu1 %485 }
 0x1ab   :  { %v554_v60 = vpop.xlane.xlu0 %553  ;;  %v686_v62 = vmul.f32 %v3135_v43, %v666_v52  ;;  %v615_v26 = vmax.f32 %v601_v54, 0.0  ;;  %v3180_v5 = vmul.f32 0.028571429, %v486_v61 }
 0x1ac   :  { %2535 = vrsqrt.f32 %v628_v53  ;;  %v574_v55 = vmul.f32 0.028571429, %v554_v60  ;;  %v2524_v63 = vpop.eup %2523 }
 0x1ad   :  { %2537 = vtanh.f32 %v705_v23  ;;  %v667_v6 = vmul.f32 %v2524_v63, %v653_v20  ;;  %v629_v7 = vadd.f32 1e-05, %v615_v26  ;;  %v589_v32 = vmul.f32 %v3180_v5, %v3180_v5 }
 0x1ae   :  { %v602_v30 = vsub.f32 %v574_v55, %v588_v57  ;;  %v2526_v8 = vpop.eup %2525  ;;  %v557_v29 = vpop.xlane.xlu1 %556  ;;  %v706_v13 = vadd.f32 %v3144_v58, %v686_v62  ;;  %v657_v62 = vsub.f32 %v3058_v3, %v3164_v31 }
 0x1af   :  { %v489_v10 = vpop.xlane.xlu0 %488  ;;  %v2528_v14 = vpop.eup %2527  ;;  %v687_v15 = vmul.f32 %v3135_v43, %v667_v6  ;;  %2539 = vrsqrt.f32 %v629_v7  ;;  %v575_v19 = vmul.f32 0.028571429, %v557_v29 }
 0x1b0   :  { %v616_v17 = vmax.f32 %v602_v30, 0.0  ;;  %v3188_v9 = vmul.f32 0.028571429, %v489_v10  ;;  %v736_v2 = vpack.c.bf16 %v2526_v8, %v2528_v14  ;;  %2541 = vtanh.f32 %v706_v13 }
 0x1b1   :  { %v2530_v38 = vpop.eup %2529  ;;  %v603_v24 = vsub.f32 %v575_v19, %v589_v32  ;;  %v707_v27 = vadd.f32 %v3144_v58, %v687_v15  ;;  %v658_v32 = vsub.f32 %v3067_v11, %v3172_v49  ;;  %v659_v15 = vsub.f32 %v3076_v18, %v3180_v5 }
 0x1b2   :  { %v630_v22 = vadd.f32 1e-05, %v616_v17  ;;  %v668_v42 = vmul.f32 %v2530_v38, %v654_v21  ;;  %v590_v33 = vmul.f32 %v3188_v9, %v3188_v9  ;;  %2327 = vmatmul.mubr.msk.bf16.vlgmr.msra.gmra.mxu0 %vm147_vm3, %v736_v2  ;;  %v492_v36 = vpop.xlane.xlu1 %491  ;;  %v660_v2 = vsub.f32 %v3085_v25, %v3188_v9 }
 0x1b3   :  { %v560_v35 = vpop.xlane.xlu0 %559  ;;  %v617_v41 = vmax.f32 %v603_v24, 0.0  ;;  %v3196_v39 = vmul.f32 0.028571429, %v492_v36  ;;  %2330 = vmatprep.mubr.msk.bf16.mxu0 %vm2753_vm2, %v2751_v0 }
 0x1b4   :  { %2543 = vrsqrt.f32 %v630_v22  ;;  %v576_v48 = vmul.f32 0.028571429, %v560_v35  ;;  %v2532_v16 = vpop.eup %2531  ;;  %v688_v12 = vmul.f32 %v3135_v43, %v668_v42 }
 0x1b5   :  { %2545 = vtanh.f32 %v707_v27  ;;  %v669_v50 = vmul.f32 %v2532_v16, %v655_v28  ;;  %v631_v1 = vadd.f32 1e-05, %v617_v41  ;;  %v591_v51 = vmul.f32 %v3196_v39, %v3196_v39  ;;  %v2534_v56 = vpop.eup %2533 }
 0x1b6   :  { %v604_v46 = vsub.f32 %v576_v48, %v590_v33  ;;  %v563_v44 = vpop.xlane.xlu1 %562  ;;  %v708_v45 = vadd.f32 %v3144_v58, %v688_v12  ;;  %v661_v42 = vsub.f32 %v3098_v37, %v3196_v39 }
 0x1b7   :  { %v689_v47 = vmul.f32 %v3135_v43, %v669_v50  ;;  %2547 = vrsqrt.f32 %v631_v1  ;;  %v577_v53 = vmul.f32 0.028571429, %v563_v44 }
 0x1b8   :  { %v618_v52 = vmax.f32 %v604_v46, 0.0  ;;  %2549 = vtanh.f32 %v708_v45  ;;  %v3256_v46 = vld [vmem:[%s3971_s8] ss:$0 sm:$0xff] }
 0x1b9   :  { %v2536_v54 = vpop.eup %2535  ;;  %v605_v60 = vsub.f32 %v577_v53, %v591_v51  ;;  %v709_v61 = vadd.f32 %v3144_v58, %v689_v47 }
 0x1ba   :  { %v2538_v23 = vpop.eup %2537  ;;  %v670_v20 = vmul.f32 %v2536_v54, %v656_v40  ;;  %v632_v57 = vadd.f32 1e-05, %v618_v52 }
 0x1bb   :  { %v737_v59 = vpack.c.bf16 %v2538_v23, %v2534_v56  ;;  %v619_v26 = vmax.f32 %v605_v60, 0.0 }
 0x1bc   :  { %v690_v34 = vmul.f32 %v3135_v43, %v670_v20  ;;  %2551 = vrsqrt.f32 %v632_v57  ;;  %v2540_v55 = vpop.eup %2539 }
 0x1bd   :  { %2331 = vmatmul.mubr.msk.bf16.gmra.mxu0 %vm147_vm3, %v737_v59  ;;  %2553 = vtanh.f32 %v709_v61  ;;  %v671_v63 = vmul.f32 %v2540_v55, %v657_v62  ;;  %v633_v6 = vadd.f32 1e-05, %v619_v26  ;;  %v2542_v30 = vpop.eup %2541 }
 0x1be   :  { %2334 = vmatprep.mubr.msk.bf16.mxu0 %vm2753_vm2, %v2751_v0  ;;  %v710_v7 = vadd.f32 %v3144_v58, %v690_v34 }
 0x1bf   :  { %v691_v8 = vmul.f32 %v3135_v43, %v671_v63  ;;  %2555 = vrsqrt.f32 %v633_v6 }
 0x1c0   :  { %2557 = vtanh.f32 %v710_v7 }
 0x1c1   :  { %v2544_v3 = vpop.eup %2543  ;;  %v711_v10 = vadd.f32 %v3144_v58, %v691_v8 }
 0x1c2   :  { %v2546_v31 = vpop.eup %2545  ;;  %v672_v29 = vmul.f32 %v2544_v3, %v658_v32 }
 0x1c3   :  { %v738_v13 = vpack.c.bf16 %v2546_v31, %v2542_v30  ;;  %2559 = vtanh.f32 %v711_v10 }
 0x1c4   :  { %v692_v14 = vmul.f32 %v3135_v43, %v672_v29  ;;  %v2548_v17 = vpop.eup %2547 }
 0x1c5   :  { %2335 = vmatmul.mubr.msk.bf16.gmra.mxu0 %vm147_vm3, %v738_v13  ;;  %v673_v19 = vmul.f32 %v2548_v17, %v659_v15  ;;  %v2550_v49 = vpop.eup %2549 }
 0x1c6   :  { %2338 = vmatprep.mubr.msk.bf16.mxu0 %vm2753_vm2, %v2751_v0  ;;  %v712_v11 = vadd.f32 %v3144_v58, %v692_v14 }
 0x1c7   :  { %v693_v21 = vmul.f32 %v3135_v43, %v673_v19 }
 0x1c8   :  { %2561 = vtanh.f32 %v712_v11 }
 0x1c9   :  { %v2552_v38 = vpop.eup %2551  ;;  %v713_v18 = vadd.f32 %v3144_v58, %v693_v21 }
 0x1ca   :  { %v2554_v22 = vpop.eup %2553  ;;  %v674_v24 = vmul.f32 %v2552_v38, %v660_v2 }
 0x1cb   :  { %v739_v5 = vpack.c.bf16 %v2554_v22, %v2550_v49  ;;  %2563 = vtanh.f32 %v713_v18 }
 0x1cc   :  { %v694_v27 = vmul.f32 %v3135_v43, %v674_v24  ;;  %v2556_v28 = vpop.eup %2555 }
 0x1cd   :  { %2339 = vmatmul.mubr.msk.bf16.gmra.mxu0 %vm147_vm3, %v739_v5  ;;  %v675_v33 = vmul.f32 %v2556_v28, %v661_v42  ;;  %v2558_v9 = vpop.eup %2557 }
 0x1ce   :  { %2342 = vmatprep.mubr.msk.bf16.mxu0 %vm2753_vm2, %v2751_v0  ;;  %v714_v25 = vadd.f32 %v3144_v58, %v694_v27 }
 0x1cf   :  { %v695_v35 = vmul.f32 %v3135_v43, %v675_v33 }
 0x1d0   :  { %v2560_v36 = vpop.eup %2559  ;;  %2565 = vtanh.f32 %v714_v25 }
 0x1d1   :  { %v740_v41 = vpack.c.bf16 %v2560_v36, %v2558_v9  ;;  %v715_v48 = vadd.f32 %v3144_v58, %v695_v35  ;;  %v2493_v58 = vld [vmem:[%s3970_s11 + $0x10] ss:$0 sps:$4 sm:$0x33]  }
 0x1d2   :  { %v1213_v1 = vand.u32 %v2493_v58, %v2851_v4 }
 0x1d3   :  { %2567 = vtanh.f32 %v715_v48 }
 0x1d4   :  { %2355 = vmatpush3.bf16.msra.mxu1 %v1213_v1 }
 0x1d5   :  { %2343 = vmatmul.mubr.msk.bf16.gmra.mxu0 %vm147_vm3, %v740_v41  ;;  %v2562_v37 = vpop.eup %2561  ;;  %2356 = vmatprep.subr.bf16.mxu1 %v2751_v0 }
 0x1d6   :  { %2346 = vmatprep.mubr.msk.bf16.mxu0 %vm2753_vm2, %v2751_v0 }
 0x1d8   :  { %v2564_v39 = vpop.eup %2563 }
 0x1d9   :  { %v741_v16 = vpack.c.bf16 %v2564_v39, %v2562_v37 }
 0x1dd   :  { %2347 = vmatmul.mubr.msk.bf16.gmra.mxu0 %vm147_vm3, %v741_v16  ;;  %v2566_v43 = vpop.eup %2565 }
 0x1de   :  { %2350 = vmatprep.mubr.msk.bf16.mxu0 %vm2753_vm2, %v2751_v0 }
 0x1e0   :  { %v2568_v12 = vpop.eup %2567 }
 0x1e1   :  { %v742_v50 = vpack.c.bf16 %v2568_v12, %v2566_v43 }
 0x1e5   :  { %2351 = vmatmul.mubr.msk.bf16.gmra.mxu0 %vm147_vm3, %v742_v50 }
 0x1e6   :  { %2394 = vmatprep.mubr.msk.bf16.mxu0 %vm2753_vm2, %v2751_v0 }
 0x272   :  { %v822_v40 = vpop.f32.mrf.mxu0 }
 0x273   :  { %v3259_v51 = vadd.f32 %v3256_v46, %v822_v40 }
 0x274   :  { %v2328_v44 = vpop.f32.mrf.mxu0 }
 0x275   :  { %v879_v45 = vsel %vm147_vm3, %v3259_v51, 0.0  ;;  %v935_v56 = vmul.f32 %v3259_v51, %v3259_v51 }
 0x276   :  { %v825_v47 = vpop.f32.mrf.mxu0  ;;  %880 = vadd.xlane.f32.xlu0 %v879_v45 }
 0x277   :  { %v3266_v52 = vadd.f32 %v3256_v46, %v825_v47  ;;  %v949_v54 = vsel %vm147_vm3, %v935_v56, 0.0 }
 0x278   :  { %v2329_v53 = vpop.f32.mrf.mxu0 }
 0x279   :  { %v882_v23 = vsel %vm147_vm3, %v3266_v52, 0.0  ;;  %v936_v20 = vmul.f32 %v3266_v52, %v3266_v52 }
 0x27a   :  { %950 = vadd.xlane.f32.xlu0 %v949_v54  ;;  %883 = vadd.xlane.f32.xlu1 %v882_v23 }
 0x27b   :  { %v952_v61 = vsel %vm147_vm3, %v936_v20, 0.0 }
 0x27d   :  { %v830_v57 = vpop.f32.mrf.mxu0 }
 0x27e   :  { %v3274_v60 = vadd.f32 %v3256_v46, %v830_v57  ;;  %953 = vadd.xlane.f32.xlu1 %v952_v61 }
 0x27f   :  { %v2332_v59 = vpop.f32.mrf.mxu0 }
 0x280   :  { %v885_v34 = vsel %vm147_vm3, %v3274_v60, 0.0  ;;  %v937_v62 = vmul.f32 %v3274_v60, %v3274_v60 }
 0x281   :  { %v833_v26 = vpop.f32.mrf.mxu0  ;;  %886 = vadd.xlane.f32.xlu0 %v885_v34 }
 0x282   :  { %v3282_v55 = vadd.f32 %v3256_v46, %v833_v26  ;;  %v955_v6 = vsel %vm147_vm3, %v937_v62, 0.0 }
 0x283   :  { %v2333_v63 = vpop.f32.mrf.mxu0 }
 0x284   :  { %v888_v7 = vsel %vm147_vm3, %v3282_v55, 0.0  ;;  %v938_v30 = vmul.f32 %v3282_v55, %v3282_v55 }
 0x285   :  { %v838_v8 = vpop.f32.mrf.mxu0  ;;  %956 = vadd.xlane.f32.xlu0 %v955_v6  ;;  %889 = vadd.xlane.f32.xlu1 %v888_v7 }
 0x286   :  { %v3290_v32 = vadd.f32 %v3256_v46, %v838_v8  ;;  %v958_v29 = vsel %vm147_vm3, %v938_v30, 0.0  ;;  %v2494_v8 = vld [vmem:[%s3970_s11 + $0x8] sm:$0xff]  }
 0x287   :  { %v2336_v3 = vpop.f32.mrf.mxu0  ;;  %2357 = vmatpush3.bf16.msra.mxu1 %v2494_v8  ;;  %v3395_v8 = vld [vmem:[%s3972_s9] ss:$0 sm:$0xff] }
 0x288   :  { %v891_v31 = vsel %vm147_vm3, %v3290_v32, 0.0  ;;  %v939_v10 = vmul.f32 %v3290_v32, %v3290_v32  ;;  %2358 = vmatprep.subr.bf16.mxu1 %v2751_v0 }
 0x289   :  { %v841_v13 = vpop.f32.mrf.mxu0  ;;  %892 = vadd.xlane.f32.xlu0 %v891_v31  ;;  %959 = vadd.xlane.f32.xlu1 %v958_v29 }
 0x28a   :  { %v3298_v14 = vadd.f32 %v3256_v46, %v841_v13  ;;  %v961_v17 = vsel %vm147_vm3, %v939_v10, 0.0  ;;  %v2495_v10 = vld [vmem:[%s3970_s11] sm:$0xff]  }
 0x28b   :  { %v2337_v15 = vpop.f32.mrf.mxu0  ;;  %2359 = vmatpush3.bf16.msra.mxu1 %v2495_v10 }
 0x28c   :  { %v894_v19 = vsel %vm147_vm3, %v3298_v14, 0.0  ;;  %v940_v11 = vmul.f32 %v3298_v14, %v3298_v14 }
 0x28d   :  { %v846_v49 = vpop.f32.mrf.mxu0  ;;  %962 = vadd.xlane.f32.xlu0 %v961_v17  ;;  %895 = vadd.xlane.f32.xlu1 %v894_v19 }
 0x28e   :  { %v3306_v21 = vadd.f32 %v3256_v46, %v846_v49  ;;  %v964_v22 = vsel %vm147_vm3, %v940_v11, 0.0 }
 0x28f   :  { %v2340_v2 = vpop.f32.mrf.mxu0 }
 0x290   :  { %v897_v38 = vsel %vm147_vm3, %v3306_v21, 0.0  ;;  %v941_v24 = vmul.f32 %v3306_v21, %v3306_v21 }
 0x291   :  { %v849_v18 = vpop.f32.mrf.mxu0  ;;  %898 = vadd.xlane.f32.xlu0 %v897_v38  ;;  %965 = vadd.xlane.f32.xlu1 %v964_v22 }
 0x292   :  { %v3314_v5 = vadd.f32 %v3256_v46, %v849_v18  ;;  %v967_v42 = vsel %vm147_vm3, %v941_v24, 0.0 }
 0x293   :  { %v2341_v27 = vpop.f32.mrf.mxu0 }
 0x294   :  { %v900_v28 = vsel %vm147_vm3, %v3314_v5, 0.0  ;;  %v942_v33 = vmul.f32 %v3314_v5, %v3314_v5 }
 0x295   :  { %v854_v25 = vpop.f32.mrf.mxu0  ;;  %968 = vadd.xlane.f32.xlu0 %v967_v42  ;;  %901 = vadd.xlane.f32.xlu1 %v900_v28 }
 0x296   :  { %v3322_v9 = vadd.f32 %v3256_v46, %v854_v25  ;;  %v970_v41 = vsel %vm147_vm3, %v942_v33, 0.0 }
 0x297   :  { %v2344_v35 = vpop.f32.mrf.mxu0 }
 0x298   :  { %v903_v36 = vsel %vm147_vm3, %v3322_v9, 0.0  ;;  %v943_v48 = vmul.f32 %v3322_v9, %v3322_v9 }
 0x299   :  { %v857_v37 = vpop.f32.mrf.mxu0  ;;  %904 = vadd.xlane.f32.xlu0 %v903_v36  ;;  %971 = vadd.xlane.f32.xlu1 %v970_v41 }
 0x29a   :  { %v3330_v39 = vadd.f32 %v3256_v46, %v857_v37  ;;  %v973_v43 = vsel %vm147_vm3, %v943_v48, 0.0 }
 0x29b   :  { %v2345_v16 = vpop.f32.mrf.mxu0 }
 0x29c   :  { %v906_v12 = vsel %vm147_vm3, %v3330_v39, 0.0  ;;  %v944_v50 = vmul.f32 %v3330_v39, %v3330_v39 }
 0x29d   :  { %v862_v58 = vpop.f32.mrf.mxu0  ;;  %974 = vadd.xlane.f32.xlu0 %v973_v43  ;;  %907 = vadd.xlane.f32.xlu1 %v906_v12 }
 0x29e   :  { %v3338_v1 = vadd.f32 %v3256_v46, %v862_v58  ;;  %v976_v45 = vsel %vm147_vm3, %v944_v50, 0.0 }
 0x29f   :  { %v2348_v40 = vpop.f32.mrf.mxu0 }
 0x2a0   :  { %v909_v44 = vsel %vm147_vm3, %v3338_v1, 0.0  ;;  %v945_v56 = vmul.f32 %v3338_v1, %v3338_v1 }
 0x2a1   :  { %v865_v47 = vpop.f32.mrf.mxu0  ;;  %910 = vadd.xlane.f32.xlu0 %v909_v44  ;;  %977 = vadd.xlane.f32.xlu1 %v976_v45 }
 0x2a2   :  { %v3346_v53 = vadd.f32 %v3256_v46, %v865_v47  ;;  %v979_v23 = vsel %vm147_vm3, %v945_v56, 0.0 }
 0x2a3   :  { %v2349_v54 = vpop.f32.mrf.mxu0 }
 0x2a4   :  { %v912_v20 = vsel %vm147_vm3, %v3346_v53, 0.0  ;;  %v946_v57 = vmul.f32 %v3346_v53, %v3346_v53 }
 0x2a5   :  { %980 = vadd.xlane.f32.xlu0 %v979_v23  ;;  %913 = vadd.xlane.f32.xlu1 %v912_v20  ;;  %v870_v61 = vpop.f32.mrf.mxu0 }
 0x2a6   :  { %v3354_v59 = vadd.f32 %v3256_v46, %v870_v61  ;;  %v982_v62 = vsel %vm147_vm3, %v946_v57, 0.0 }
 0x2a7   :  { %v2352_v34 = vpop.f32.mrf.mxu0 }
 0x2a8   :  { %v915_v26 = vsel %vm147_vm3, %v3354_v59, 0.0  ;;  %v947_v63 = vmul.f32 %v3354_v59, %v3354_v59 }
 0x2a9   :  { %983 = vadd.xlane.f32.xlu1 %v982_v62  ;;  %916 = vadd.xlane.f32.xlu0 %v915_v26  ;;  %v873_v6 = vpop.f32.mrf.mxu0 }
 0x2aa   :  { %v3362_v7 = vadd.f32 %v3256_v46, %v873_v6  ;;  %v985_v3 = vsel %vm147_vm3, %v947_v63, 0.0 }
 0x2ab   :  { %v2353_v30 = vpop.f32.mrf.mxu0 }
 0x2ac   :  { %v918_v31 = vsel %vm147_vm3, %v3362_v7, 0.0  ;;  %v948_v29 = vmul.f32 %v3362_v7, %v3362_v7 }
 0x2ad   :  { %986 = vadd.xlane.f32.xlu0 %v985_v3  ;;  %919 = vadd.xlane.f32.xlu1 %v918_v31 }
 0x2ae   :  { %v988_v46 = vsel %vm147_vm3, %v948_v29, 0.0 }
 0x2b1   :  { %989 = vadd.xlane.f32.xlu1 %v988_v46 }
 0x2ff   :  { %v881_v13 = vpop.xlane.xlu0 %880 }
 0x300   :  { %v921_v15 = vmul.f32 0.028571429, %v881_v13  ;;  %v3402_v13 = vld [vmem:[%s3973_s10] ss:$0 sm:$0xff] }
 0x302   :  { %v1005_v11 = vmul.f32 %v921_v15, %v921_v15  ;;  %v1075_v26 = vsub.f32 %v3259_v51, %v921_v15 }
 0x303   :  { %v951_v17 = vpop.xlane.xlu0 %950  ;;  %v884_v19 = vpop.xlane.xlu1 %883 }
 0x304   :  { %v991_v49 = vmul.f32 0.028571429, %v951_v17  ;;  %v922_v2 = vmul.f32 0.028571429, %v884_v19 }
 0x306   :  { %v1019_v38 = vsub.f32 %v991_v49, %v1005_v11  ;;  %v1006_v18 = vmul.f32 %v922_v2, %v922_v2  ;;  %v1076_v19 = vsub.f32 %v3266_v52, %v922_v2 }
 0x307   :  { %v954_v22 = vpop.xlane.xlu1 %953 }
 0x308   :  { %v1033_v24 = vmax.f32 %v1019_v38, 0.0  ;;  %v992_v27 = vmul.f32 0.028571429, %v954_v22 }
 0x30a   :  { %v887_v42 = vpop.xlane.xlu0 %886  ;;  %v1047_v28 = vadd.f32 1e-05, %v1033_v24  ;;  %v1020_v33 = vsub.f32 %v992_v27, %v1006_v18 }
 0x30b   :  { %v3377_v25 = vmul.f32 0.028571429, %v887_v42 }
 0x30c   :  { %2569 = vrsqrt.f32 %v1047_v28  ;;  %v1034_v35 = vmax.f32 %v1020_v33, 0.0 }
 0x30d   :  { %v1007_v37 = vmul.f32 %v3377_v25, %v3377_v25  ;;  %v1077_v52 = vsub.f32 %v3274_v60, %v3377_v25 }
 0x30e   :  { %v957_v36 = vpop.xlane.xlu0 %956  ;;  %v890_v41 = vpop.xlane.xlu1 %889  ;;  %v1048_v48 = vadd.f32 1e-05, %v1034_v35 }
 0x30f   :  { %v993_v16 = vmul.f32 0.028571429, %v957_v36  ;;  %v3381_v43 = vmul.f32 0.028571429, %v890_v41 }
 0x310   :  { %2571 = vrsqrt.f32 %v1048_v48 }
 0x311   :  { %v1021_v12 = vsub.f32 %v993_v16, %v1007_v37  ;;  %v1008_v44 = vmul.f32 %v3381_v43, %v3381_v43  ;;  %v1078_v60 = vsub.f32 %v3282_v55, %v3381_v43 }
 0x312   :  { %v893_v50 = vpop.xlane.xlu0 %892  ;;  %v960_v58 = vpop.xlane.xlu1 %959 }
 0x313   :  { %v1035_v40 = vmax.f32 %v1021_v12, 0.0  ;;  %v3385_v45 = vmul.f32 0.028571429, %v893_v50  ;;  %v994_v56 = vmul.f32 0.028571429, %v960_v58 }
 0x315   :  { %v1049_v47 = vadd.f32 1e-05, %v1035_v40  ;;  %v1022_v54 = vsub.f32 %v994_v56, %v1008_v44  ;;  %v1009_v57 = vmul.f32 %v3385_v45, %v3385_v45 }
 0x316   :  { %v963_v23 = vpop.xlane.xlu0 %962  ;;  %v896_v20 = vpop.xlane.xlu1 %895 }
 0x317   :  { %2573 = vrsqrt.f32 %v1049_v47  ;;  %v1036_v61 = vmax.f32 %v1022_v54, 0.0  ;;  %v995_v34 = vmul.f32 0.028571429, %v963_v23  ;;  %v3389_v62 = vmul.f32 0.028571429, %v896_v20 }
 0x319   :  { %v1050_v63 = vadd.f32 1e-05, %v1036_v61  ;;  %v1023_v6 = vsub.f32 %v995_v34, %v1009_v57  ;;  %v2570_v30 = vpop.eup %2569  ;;  %v1010_v51 = vmul.f32 %v3389_v62, %v3389_v62 }
 0x31a   :  { %v899_v3 = vpop.xlane.xlu0 %898  ;;  %v966_v31 = vpop.xlane.xlu1 %965  ;;  %v1089_v29 = vmul.f32 %v2570_v30, %v1075_v26 }
 0x31b   :  { %2575 = vrsqrt.f32 %v1050_v63  ;;  %v1037_v46 = vmax.f32 %v1023_v6, 0.0  ;;  %v3397_v10 = vmul.f32 0.028571429, %v899_v3  ;;  %v996_v15 = vmul.f32 0.028571429, %v966_v31 }
 0x31c   :  { %v1109_v17 = vmul.f32 %v3395_v8, %v1089_v29  ;;  %v1079_v3 = vsub.f32 %v3290_v32, %v3385_v45 }
 0x31d   :  { %v1051_v11 = vadd.f32 1e-05, %v1037_v46  ;;  %v2572_v49 = vpop.eup %2571  ;;  %v1011_v38 = vmul.f32 %v3397_v10, %v3397_v10  ;;  %v1024_v22 = vsub.f32 %v996_v15, %v1010_v51 }
 0x31e   :  { %v969_v24 = vpop.xlane.xlu0 %968  ;;  %v902_v18 = vpop.xlane.xlu1 %901  ;;  %v1129_v27 = vadd.f32 %v3402_v13, %v1109_v17  ;;  %v1090_v42 = vmul.f32 %v2572_v49, %v1076_v19 }
 0x31f   :  { %2577 = vrsqrt.f32 %v1051_v11  ;;  %v997_v28 = vmul.f32 0.028571429, %v969_v24  ;;  %v1038_v33 = vmax.f32 %v1024_v22, 0.0  ;;  %v3411_v35 = vmul.f32 0.028571429, %v902_v18 }
 0x320   :  { %v1110_v36 = vmul.f32 %v3395_v8, %v1090_v42  ;;  %2579 = vtanh.f32 %v1129_v27 }
 0x321   :  { %v1025_v41 = vsub.f32 %v997_v28, %v1011_v38  ;;  %v1052_v2 = vadd.f32 1e-05, %v1038_v33  ;;  %v1012_v44 = vmul.f32 %v3411_v35, %v3411_v35  ;;  %v1080_v33 = vsub.f32 %v3298_v14, %v3389_v62 }
 0x322   :  { %v905_v48 = vpop.xlane.xlu0 %904  ;;  %v972_v37 = vpop.xlane.xlu1 %971  ;;  %v1130_v16 = vadd.f32 %v3402_v13, %v1110_v36 }
 0x323   :  { %v1039_v12 = vmax.f32 %v1025_v41, 0.0  ;;  %v3417_v50 = vmul.f32 0.028571429, %v905_v48  ;;  %v998_v58 = vmul.f32 0.028571429, %v972_v37  ;;  %2581 = vrsqrt.f32 %v1052_v2 }
 0x324   :  { %v2574_v40 = vpop.eup %2573  ;;  %2583 = vtanh.f32 %v1130_v16  ;;  %v1081_v37 = vsub.f32 %v3306_v21, %v3397_v10 }
 0x325   :  { %v1091_v56 = vmul.f32 %v2574_v40, %v1077_v52  ;;  %v1053_v47 = vadd.f32 1e-05, %v1039_v12  ;;  %v1026_v25 = vsub.f32 %v998_v58, %v1012_v44  ;;  %v1013_v57 = vmul.f32 %v3417_v50, %v3417_v50 }
 0x326   :  { %v975_v54 = vpop.xlane.xlu0 %974  ;;  %v908_v23 = vpop.xlane.xlu1 %907 }
 0x327   :  { %v1111_v20 = vmul.f32 %v3395_v8, %v1091_v56  ;;  %2585 = vrsqrt.f32 %v1053_v47  ;;  %v999_v61 = vmul.f32 0.028571429, %v975_v54  ;;  %v1040_v26 = vmax.f32 %v1026_v25, 0.0 }
 0x328   :  { %v2576_v34 = vpop.eup %2575  ;;  %v3426_v63 = vmul.f32 0.028571429, %v908_v23 }
 0x329   :  { %v1092_v6 = vmul.f32 %v2576_v34, %v1078_v60  ;;  %v1027_v30 = vsub.f32 %v999_v61, %v1013_v57  ;;  %v1054_v55 = vadd.f32 1e-05, %v1040_v26  ;;  %v1131_v29 = vadd.f32 %v3402_v13, %v1111_v20 }
 0x32a   :  { %v911_v43 = vpop.xlane.xlu0 %910  ;;  %v978_v31 = vpop.xlane.xlu1 %977  ;;  %v1014_v11 = vmul.f32 %v3426_v63, %v3426_v63 }
 0x32b   :  { %v1112_v46 = vmul.f32 %v3395_v8, %v1092_v6  ;;  %v1041_v51 = vmax.f32 %v1027_v30, 0.0  ;;  %v3432_v15 = vmul.f32 0.028571429, %v911_v43  ;;  %v1000_v17 = vmul.f32 0.028571429, %v978_v31 }
 0x32c   :  { %v2578_v19 = vpop.eup %2577  ;;  %2587 = vrsqrt.f32 %v1054_v55 }
 0x32d   :  { %v1093_v49 = vmul.f32 %v2578_v19, %v1079_v3  ;;  %v1055_v38 = vadd.f32 1e-05, %v1041_v51  ;;  %v1028_v22 = vsub.f32 %v1000_v17, %v1014_v11  ;;  %v1132_v24 = vadd.f32 %v3402_v13, %v1112_v46  ;;  %v2580_v18 = vpop.eup %2579 }
 0x32e   :  { %v981_v32 = vpop.xlane.xlu0 %980  ;;  %v914_v45 = vpop.xlane.xlu1 %913  ;;  %2589 = vtanh.f32 %v1131_v29  ;;  %v1015_v42 = vmul.f32 %v3432_v15, %v3432_v15  ;;  %v1082_v3 = vsub.f32 %v3314_v5, %v3411_v35  ;;  %v1083_v11 = vsub.f32 %v3322_v9, %v3417_v50 }
 0x32f   :  { %v1113_v27 = vmul.f32 %v3395_v8, %v1093_v49  ;;  %2591 = vrsqrt.f32 %v1055_v38  ;;  %v1001_v28 = vmul.f32 0.028571429, %v981_v32  ;;  %v1042_v36 = vmax.f32 %v1028_v22, 0.0 }
 0x330   :  { %v3442_v41 = vmul.f32 0.028571429, %v914_v45  ;;  %2593 = vtanh.f32 %v1132_v24  ;;  %v2582_v52 = vpop.eup %2581  ;;  %v1084_v50 = vsub.f32 %v3330_v39, %v3426_v63 }
 0x331   :  { %v1029_v2 = vsub.f32 %v1001_v28, %v1015_v42  ;;  %v2584_v48 = vpop.eup %2583  ;;  %v1094_v16 = vmul.f32 %v2582_v52, %v1080_v33  ;;  %v1056_v12 = vadd.f32 1e-05, %v1042_v36  ;;  %v1133_v44 = vadd.f32 %v3402_v13, %v1113_v27 }
 0x332   :  { %v917_v58 = vpop.xlane.xlu0 %916  ;;  %v984_v40 = vpop.xlane.xlu1 %983  ;;  %v1163_v62 = vpack.c.bf16 %v2584_v48, %v2580_v18  ;;  %v1016_v54 = vmul.f32 %v3442_v41, %v3442_v41  ;;  %v1085_v48 = vsub.f32 %v3338_v1, %v3432_v15 }
 0x333   :  { %v1043_v56 = vmax.f32 %v1029_v2, 0.0  ;;  %v3447_v47 = vmul.f32 0.028571429, %v917_v58  ;;  %v1002_v14 = vmul.f32 0.028571429, %v984_v40  ;;  %v1114_v25 = vmul.f32 %v3395_v8, %v1094_v16 }
 0x334   :  { %v2586_v60 = vpop.eup %2585  ;;  %2595 = vrsqrt.f32 %v1056_v12  ;;  %2361 = vmatmul.mubr.msk.bf16.vlgmr.msra.gmra.mxu1 %vm147_vm3, %v1163_v62 }
 0x335   :  { %v1095_v23 = vmul.f32 %v2586_v60, %v1081_v37  ;;  %v1057_v21 = vadd.f32 1e-05, %v1043_v56  ;;  %v1017_v10 = vmul.f32 %v3447_v47, %v3447_v47  ;;  %v1030_v20 = vsub.f32 %v1002_v14, %v1016_v54  ;;  %2364 = vmatprep.mubr.msk.bf16.mxu1 %vm2753_vm2, %v2751_v0 }
 0x336   :  { %v987_v57 = vpop.xlane.xlu0 %986  ;;  %v920_v61 = vpop.xlane.xlu1 %919  ;;  %v1134_v34 = vadd.f32 %v3402_v13, %v1114_v25  ;;  %2597 = vtanh.f32 %v1133_v44  ;;  %v1086_v56 = vsub.f32 %v3346_v53, %v3442_v41  ;;  %v1087_v62 = vsub.f32 %v3354_v59, %v3447_v47 }
 0x337   :  { %v1115_v26 = vmul.f32 %v3395_v8, %v1095_v23  ;;  %2599 = vrsqrt.f32 %v1057_v21  ;;  %v1003_v6 = vmul.f32 0.028571429, %v987_v57  ;;  %v3459_v30 = vmul.f32 0.028571429, %v920_v61 }
 0x338   :  { %v1044_v55 = vmax.f32 %v1030_v20, 0.0  ;;  %2601 = vtanh.f32 %v1134_v34 }
 0x339   :  { %v2588_v43 = vpop.eup %2587  ;;  %v1031_v31 = vsub.f32 %v1003_v6, %v1017_v10  ;;  %v1135_v17 = vadd.f32 %v3402_v13, %v1115_v26  ;;  %v1018_v38 = vmul.f32 %v3459_v30, %v3459_v30  ;;  %v1088_v20 = vsub.f32 %v3362_v7, %v3459_v30 }
 0x33a   :  { %v1096_v29 = vmul.f32 %v2588_v43, %v1082_v3  ;;  %v1058_v46 = vadd.f32 1e-05, %v1044_v55  ;;  %v990_v51 = vpop.xlane.xlu1 %989 }
 0x33b   :  { %v2590_v19 = vpop.eup %2589  ;;  %v1045_v49 = vmax.f32 %v1031_v31, 0.0  ;;  %v1004_v22 = vmul.f32 0.028571429, %v990_v51 }
 0x33c   :  { %v2592_v32 = vpop.eup %2591  ;;  %v1116_v5 = vmul.f32 %v3395_v8, %v1096_v29  ;;  %2603 = vrsqrt.f32 %v1058_v46  ;;  %v3516_v46 = vld [vmem:[%s3975_s12] ss:$0 sm:$0xff] }
 0x33d   :  { %v2594_v35 = vpop.eup %2593  ;;  %v1097_v45 = vmul.f32 %v2592_v32, %v1083_v11  ;;  %v1059_v24 = vadd.f32 1e-05, %v1045_v49  ;;  %v1032_v18 = vsub.f32 %v1004_v22, %v1018_v38  ;;  %2605 = vtanh.f32 %v1135_v17 }
 0x33e   :  { %v1164_v27 = vpack.c.bf16 %v2594_v35, %v2590_v19  ;;  %v1136_v42 = vadd.f32 %v3402_v13, %v1116_v5 }
 0x33f   :  { %v1117_v28 = vmul.f32 %v3395_v8, %v1097_v45  ;;  %2607 = vrsqrt.f32 %v1059_v24  ;;  %v1046_v9 = vmax.f32 %v1032_v18, 0.0 }
 0x340   :  { %2365 = vmatmul.mubr.msk.bf16.gmra.mxu1 %vm147_vm3, %v1164_v27  ;;  %2609 = vtanh.f32 %v1136_v42 }
 0x341   :  { %v2596_v33 = vpop.eup %2595  ;;  %v1060_v36 = vadd.f32 1e-05, %v1046_v9  ;;  %2368 = vmatprep.mubr.msk.bf16.mxu1 %vm2753_vm2, %v2751_v0  ;;  %v1137_v37 = vadd.f32 %v3402_v13, %v1117_v28 }
 0x342   :  { %v1098_v52 = vmul.f32 %v2596_v33, %v1084_v50 }
 0x343   :  { %v2598_v2 = vpop.eup %2597  ;;  %2611 = vrsqrt.f32 %v1060_v36 }
 0x344   :  { %v2600_v16 = vpop.eup %2599  ;;  %v1118_v12 = vmul.f32 %v3395_v8, %v1098_v52  ;;  %2613 = vtanh.f32 %v1137_v37 }
 0x345   :  { %v2602_v39 = vpop.eup %2601  ;;  %v1099_v63 = vmul.f32 %v2600_v16, %v1085_v48 }
 0x346   :  { %v1165_v58 = vpack.c.bf16 %v2602_v39, %v2598_v2  ;;  %v1138_v40 = vadd.f32 %v3402_v13, %v1118_v12 }
 0x347   :  { %v1119_v44 = vmul.f32 %v3395_v8, %v1099_v63 }
 0x348   :  { %2369 = vmatmul.mubr.msk.bf16.gmra.mxu1 %vm147_vm3, %v1165_v58  ;;  %2615 = vtanh.f32 %v1138_v40 }
 0x349   :  { %v2604_v1 = vpop.eup %2603  ;;  %2372 = vmatprep.mubr.msk.bf16.mxu1 %vm2753_vm2, %v2751_v0  ;;  %v1139_v60 = vadd.f32 %v3402_v13, %v1119_v44 }
 0x34a   :  { %v1100_v15 = vmul.f32 %v2604_v1, %v1086_v56  ;;  %v2606_v14 = vpop.eup %2605 }
 0x34b   :  { %2617 = vtanh.f32 %v1139_v60 }
 0x34c   :  { %v2608_v25 = vpop.eup %2607  ;;  %v1120_v54 = vmul.f32 %v3395_v8, %v1100_v15 }
 0x34d   :  { %v2610_v23 = vpop.eup %2609  ;;  %v1101_v21 = vmul.f32 %v2608_v25, %v1087_v62 }
 0x34e   :  { %v1166_v53 = vpack.c.bf16 %v2610_v23, %v2606_v14  ;;  %v1140_v41 = vadd.f32 %v3402_v13, %v1120_v54 }
 0x34f   :  { %v1121_v10 = vmul.f32 %v3395_v8, %v1101_v21 }
 0x350   :  { %v2612_v57 = vpop.eup %2611  ;;  %2373 = vmatmul.mubr.msk.bf16.gmra.mxu1 %vm147_vm3, %v1166_v53  ;;  %2619 = vtanh.f32 %v1140_v41 }
 0x351   :  { %v1102_v59 = vmul.f32 %v2612_v57, %v1088_v20  ;;  %2376 = vmatprep.mubr.msk.bf16.mxu1 %vm2753_vm2, %v2751_v0  ;;  %v1141_v47 = vadd.f32 %v3402_v13, %v1121_v10  ;;  %v2614_v34 = vpop.eup %2613 }
 0x353   :  { %v1122_v61 = vmul.f32 %v3395_v8, %v1102_v59  ;;  %2621 = vtanh.f32 %v1141_v47 }
 0x355   :  { %v2616_v26 = vpop.eup %2615  ;;  %v1142_v6 = vadd.f32 %v3402_v13, %v1122_v61  ;;  %v2496_v13 = vld [vmem:[%s3974_s15 + $0x10] ss:$0 sps:$4 sm:$0x33]  }
 0x356   :  { %v1167_v3 = vpack.c.bf16 %v2616_v26, %v2614_v34  ;;  %v1640_v29 = vand.u32 %v2496_v13, %v2851_v4 }
 0x357   :  { %2623 = vtanh.f32 %v1142_v6 }
 0x358   :  { %2377 = vmatmul.mubr.msk.bf16.gmra.mxu1 %vm147_vm3, %v1167_v3  ;;  %v2618_v7 = vpop.eup %2617  ;;  %2389 = vmatpush3.bf16.msra.mxu0 %v1640_v29 }
 0x359   :  { %2380 = vmatprep.mubr.msk.bf16.mxu1 %vm2753_vm2, %v2751_v0  ;;  %2390 = vmatprep.subr.bf16.mxu0 %v2751_v0 }
 0x35d   :  { %v2620_v30 = vpop.eup %2619 }
 0x35e   :  { %v1168_v55 = vpack.c.bf16 %v2620_v30, %v2618_v7 }
 0x360   :  { %2381 = vmatmul.mubr.msk.bf16.gmra.mxu1 %vm147_vm3, %v1168_v55  ;;  %v2622_v8 = vpop.eup %2621 }
 0x361   :  { %2384 = vmatprep.mubr.msk.bf16.mxu1 %vm2753_vm2, %v2751_v0 }
 0x364   :  { %v2624_v43 = vpop.eup %2623 }
 0x365   :  { %v1169_v31 = vpack.c.bf16 %v2624_v43, %v2622_v8 }
 0x368   :  { %2385 = vmatmul.mubr.msk.bf16.gmra.mxu1 %vm147_vm3, %v1169_v31 }
 0x3f4   :  { %v1249_v51 = vpop.f32.mrf.mxu1 }
 0x3f5   :  { %v3519_v17 = vadd.f32 %v3516_v46, %v1249_v51 }
 0x3f6   :  { %v2362_v19 = vpop.f32.mrf.mxu1 }
 0x3f7   :  { %v1306_v11 = vsel %vm147_vm3, %v3519_v17, 0.0  ;;  %v1362_v49 = vmul.f32 %v3519_v17, %v3519_v17 }
 0x3f8   :  { %1307 = vadd.xlane.f32.xlu0 %v1306_v11  ;;  %v1252_v4 = vpop.f32.mrf.mxu1 }
 0x3f9   :  { %v3526_v38 = vadd.f32 %v3516_v46, %v1252_v4  ;;  %v1376_v32 = vsel %vm147_vm3, %v1362_v49, 0.0 }
 0x3fa   :  { %v2363_v22 = vpop.f32.mrf.mxu1 }
 0x3fb   :  { %v1309_v5 = vsel %vm147_vm3, %v3526_v38, 0.0  ;;  %v1363_v35 = vmul.f32 %v3526_v38, %v3526_v38 }
 0x3fc   :  { %1377 = vadd.xlane.f32.xlu0 %v1376_v32  ;;  %1310 = vadd.xlane.f32.xlu1 %v1309_v5 }
 0x3fd   :  { %v1379_v24 = vsel %vm147_vm3, %v1363_v35, 0.0 }
 0x400   :  { %v1257_v45 = vpop.f32.mrf.mxu1  ;;  %1380 = vadd.xlane.f32.xlu1 %v1379_v24 }
 0x401   :  { %v3535_v18 = vadd.f32 %v3516_v46, %v1257_v45 }
 0x402   :  { %v2366_v27 = vpop.f32.mrf.mxu1 }
 0x403   :  { %v1312_v42 = vsel %vm147_vm3, %v3535_v18, 0.0  ;;  %v1364_v28 = vmul.f32 %v3535_v18, %v3535_v18 }
 0x404   :  { %1313 = vadd.xlane.f32.xlu0 %v1312_v42  ;;  %v1260_v9 = vpop.f32.mrf.mxu1 }
 0x405   :  { %v3542_v50 = vadd.f32 %v3516_v46, %v1260_v9  ;;  %v1382_v36 = vsel %vm147_vm3, %v1364_v28, 0.0 }
 0x406   :  { %v2367_v33 = vpop.f32.mrf.mxu1 }
 0x407   :  { %v1315_v52 = vsel %vm147_vm3, %v3542_v50, 0.0  ;;  %v1365_v2 = vmul.f32 %v3542_v50, %v3542_v50 }
 0x408   :  { %1383 = vadd.xlane.f32.xlu0 %v1382_v36  ;;  %1316 = vadd.xlane.f32.xlu1 %v1315_v52  ;;  %v1265_v48 = vpop.f32.mrf.mxu1 }
 0x409   :  { %v3550_v37 = vadd.f32 %v3516_v46, %v1265_v48  ;;  %v1385_v12 = vsel %vm147_vm3, %v1365_v2, 0.0  ;;  %v2497_v2 = vld [vmem:[%s3974_s15 + $0x8] sm:$0xff]  }
 0x40a   :  { %v2370_v16 = vpop.f32.mrf.mxu1  ;;  %2391 = vmatpush3.bf16.msra.mxu0 %v2497_v2 }
 0x40b   :  { %v1318_v39 = vsel %vm147_vm3, %v3550_v37, 0.0  ;;  %v1366_v63 = vmul.f32 %v3550_v37, %v3550_v37  ;;  %2392 = vmatprep.subr.bf16.mxu0 %v2751_v0 }
 0x40c   :  { %1386 = vadd.xlane.f32.xlu1 %v1385_v12  ;;  %1319 = vadd.xlane.f32.xlu0 %v1318_v39  ;;  %v1268_v58 = vpop.f32.mrf.mxu1  ;;  %v2498_v39 = vld [vmem:[%s3974_s15] sm:$0xff]  }
 0x40d   :  { %v3558_v40 = vadd.f32 %v3516_v46, %v1268_v58  ;;  %v1388_v56 = vsel %vm147_vm3, %v1366_v63, 0.0  ;;  %v22_v63 = vstv %s3976_s16 }
 0x40e   :  { %v2371_v44 = vpop.f32.mrf.mxu1  ;;  %2393 = vmatpush3.bf16.msra.mxu0 %v2498_v39  ;;  %23 = vst [vmem:[#allocation2] sm:$0x1] %v22_v63 }
 0x40f   :  { %v1321_v1 = vsel %vm147_vm3, %v3558_v40, 0.0  ;;  %v1367_v15 = vmul.f32 %v3558_v40, %v3558_v40 }
 0x410   :  { %1389 = vadd.xlane.f32.xlu0 %v1388_v56  ;;  %1322 = vadd.xlane.f32.xlu1 %v1321_v1  ;;  %v1273_v14 = vpop.f32.mrf.mxu1 }
 0x411   :  { %v3566_v62 = vadd.f32 %v3516_v46, %v1273_v14  ;;  %v1391_v25 = vsel %vm147_vm3, %v1367_v15, 0.0 }
 0x412   :  { %v2374_v60 = vpop.f32.mrf.mxu1 }
 0x413   :  { %v1324_v54 = vsel %vm147_vm3, %v3566_v62, 0.0  ;;  %v1368_v23 = vmul.f32 %v3566_v62, %v3566_v62 }
 0x414   :  { %1392 = vadd.xlane.f32.xlu1 %v1391_v25  ;;  %1325 = vadd.xlane.f32.xlu0 %v1324_v54  ;;  %v1276_v21 = vpop.f32.mrf.mxu1 }
 0x415   :  { %v3574_v53 = vadd.f32 %v3516_v46, %v1276_v21  ;;  %v1394_v10 = vsel %vm147_vm3, %v1368_v23, 0.0 }
 0x416   :  { %v2375_v41 = vpop.f32.mrf.mxu1 }
 0x417   :  { %v1327_v20 = vsel %vm147_vm3, %v3574_v53, 0.0  ;;  %v1369_v57 = vmul.f32 %v3574_v53, %v3574_v53 }
 0x418   :  { %1395 = vadd.xlane.f32.xlu0 %v1394_v10  ;;  %1328 = vadd.xlane.f32.xlu1 %v1327_v20  ;;  %v1281_v59 = vpop.f32.mrf.mxu1 }
 0x419   :  { %v3582_v47 = vadd.f32 %v3516_v46, %v1281_v59  ;;  %v1397_v34 = vsel %vm147_vm3, %v1369_v57, 0.0 }
 0x41a   :  { %v2378_v61 = vpop.f32.mrf.mxu1 }
 0x41b   :  { %v1330_v26 = vsel %vm147_vm3, %v3582_v47, 0.0  ;;  %v1370_v6 = vmul.f32 %v3582_v47, %v3582_v47 }
 0x41c   :  { %1398 = vadd.xlane.f32.xlu1 %v1397_v34  ;;  %1331 = vadd.xlane.f32.xlu0 %v1330_v26  ;;  %v1284_v3 = vpop.f32.mrf.mxu1 }
 0x41d   :  { %v3590_v7 = vadd.f32 %v3516_v46, %v1284_v3  ;;  %v1400_v55 = vsel %vm147_vm3, %v1370_v6, 0.0 }
 0x41e   :  { %v2379_v30 = vpop.f32.mrf.mxu1 }
 0x41f   :  { %v1333_v8 = vsel %vm147_vm3, %v3590_v7, 0.0  ;;  %v1371_v43 = vmul.f32 %v3590_v7, %v3590_v7 }
 0x420   :  { %1401 = vadd.xlane.f32.xlu0 %v1400_v55  ;;  %1334 = vadd.xlane.f32.xlu1 %v1333_v8  ;;  %v1289_v31 = vpop.f32.mrf.mxu1 }
 0x421   :  { %v3598_v13 = vadd.f32 %v3516_v46, %v1289_v31  ;;  %v1403_v51 = vsel %vm147_vm3, %v1371_v43, 0.0 }
 0x422   :  { %v2382_v29 = vpop.f32.mrf.mxu1 }
 0x423   :  { %v1336_v19 = vsel %vm147_vm3, %v3598_v13, 0.0  ;;  %v1372_v11 = vmul.f32 %v3598_v13, %v3598_v13 }
 0x424   :  { %1404 = vadd.xlane.f32.xlu1 %v1403_v51  ;;  %1337 = vadd.xlane.f32.xlu0 %v1336_v19  ;;  %v1292_v49 = vpop.f32.mrf.mxu1 }
 0x425   :  { %v3606_v4 = vadd.f32 %v3516_v46, %v1292_v49  ;;  %v1406_v32 = vsel %vm147_vm3, %v1372_v11, 0.0 }
 0x426   :  { %v2383_v22 = vpop.f32.mrf.mxu1 }
 0x427   :  { %v1339_v5 = vsel %vm147_vm3, %v3606_v4, 0.0  ;;  %v1373_v35 = vmul.f32 %v3606_v4, %v3606_v4 }
 0x428   :  { %1407 = vadd.xlane.f32.xlu0 %v1406_v32  ;;  %1340 = vadd.xlane.f32.xlu1 %v1339_v5  ;;  %v1297_v45 = vpop.f32.mrf.mxu1 }
 0x429   :  { %v3614_v24 = vadd.f32 %v3516_v46, %v1297_v45  ;;  %v1409_v42 = vsel %vm147_vm3, %v1373_v35, 0.0 }
 0x42a   :  { %v2386_v27 = vpop.f32.mrf.mxu1 }
 0x42b   :  { %v1342_v28 = vsel %vm147_vm3, %v3614_v24, 0.0  ;;  %v1374_v9 = vmul.f32 %v3614_v24, %v3614_v24 }
 0x42c   :  { %1410 = vadd.xlane.f32.xlu1 %v1409_v42  ;;  %1343 = vadd.xlane.f32.xlu0 %v1342_v28  ;;  %v1300_v33 = vpop.f32.mrf.mxu1 }
 0x42d   :  { %v3622_v36 = vadd.f32 %v3516_v46, %v1300_v33  ;;  %v1412_v48 = vsel %vm147_vm3, %v1374_v9, 0.0  ;;  %v3658_v33 = vld [vmem:[%s3977_s13] ss:$0 sm:$0xff] }
 0x42e   :  { %v2387_v52 = vpop.f32.mrf.mxu1 }
 0x42f   :  { %v1345_v16 = vsel %vm147_vm3, %v3622_v36, 0.0  ;;  %v1375_v12 = vmul.f32 %v3622_v36, %v3622_v36 }
 0x430   :  { %1413 = vadd.xlane.f32.xlu0 %v1412_v48  ;;  %1346 = vadd.xlane.f32.xlu1 %v1345_v16  ;;  %v3663_v48 = vld [vmem:[%s3978_s14] ss:$0 sm:$0xff] }
 0x431   :  { %v1415_v46 = vsel %vm147_vm3, %v1375_v12, 0.0 }
 0x434   :  { %1416 = vadd.xlane.f32.xlu1 %v1415_v46 }
 0x481   :  { %v1308_v58 = vpop.xlane.xlu0 %1307 }
 0x482   :  { %v1348_v44 = vmul.f32 0.028571429, %v1308_v58 }
 0x484   :  { %v1432_v15 = vmul.f32 %v1348_v44, %v1348_v44  ;;  %v1502_v28 = vsub.f32 %v3519_v17, %v1348_v44 }
 0x485   :  { %v1378_v56 = vpop.xlane.xlu0 %1377  ;;  %v1311_v1 = vpop.xlane.xlu1 %1310 }
 0x486   :  { %v1418_v14 = vmul.f32 0.028571429, %v1378_v56  ;;  %v1349_v60 = vmul.f32 0.028571429, %v1311_v1 }
 0x488   :  { %v1446_v25 = vsub.f32 %v1418_v14, %v1432_v15  ;;  %v1433_v21 = vmul.f32 %v1349_v60, %v1349_v60  ;;  %v1503_v56 = vsub.f32 %v3526_v38, %v1349_v60 }
 0x489   :  { %v1381_v54 = vpop.xlane.xlu1 %1380 }
 0x48a   :  { %v1460_v23 = vmax.f32 %v1446_v25, 0.0  ;;  %v1419_v41 = vmul.f32 0.028571429, %v1381_v54 }
 0x48c   :  { %v1474_v10 = vadd.f32 1e-05, %v1460_v23  ;;  %v1447_v20 = vsub.f32 %v1419_v41, %v1433_v21 }
 0x48d   :  { %v1314_v57 = vpop.xlane.xlu0 %1313 }
 0x48e   :  { %v3640_v59 = vmul.f32 0.028571429, %v1314_v57  ;;  %2625 = vrsqrt.f32 %v1474_v10  ;;  %v1461_v61 = vmax.f32 %v1447_v20, 0.0 }
 0x490   :  { %v1475_v34 = vadd.f32 1e-05, %v1461_v61  ;;  %v1434_v3 = vmul.f32 %v3640_v59, %v3640_v59 }
 0x491   :  { %v1384_v26 = vpop.xlane.xlu0 %1383  ;;  %v1317_v6 = vpop.xlane.xlu1 %1316 }
 0x492   :  { %v1420_v30 = vmul.f32 0.028571429, %v1384_v26  ;;  %v3644_v55 = vmul.f32 0.028571429, %v1317_v6  ;;  %2627 = vrsqrt.f32 %v1475_v34  ;;  %v1504_v26 = vsub.f32 %v3535_v18, %v3640_v59 }
 0x494   :  { %v1448_v8 = vsub.f32 %v1420_v30, %v1434_v3  ;;  %v1435_v51 = vmul.f32 %v3644_v55, %v3644_v55 }
 0x495   :  { %v1387_v43 = vpop.xlane.xlu1 %1386  ;;  %v1320_v31 = vpop.xlane.xlu0 %1319 }
 0x496   :  { %v1462_v29 = vmax.f32 %v1448_v8, 0.0  ;;  %v1421_v19 = vmul.f32 0.028571429, %v1387_v43  ;;  %v3648_v11 = vmul.f32 0.028571429, %v1320_v31 }
 0x498   :  { %v1476_v49 = vadd.f32 1e-05, %v1462_v29  ;;  %v1449_v22 = vsub.f32 %v1421_v19, %v1435_v51  ;;  %v1436_v32 = vmul.f32 %v3648_v11, %v3648_v11 }
 0x499   :  { %v1390_v5 = vpop.xlane.xlu0 %1389  ;;  %v1323_v35 = vpop.xlane.xlu1 %1322 }
 0x49a   :  { %2629 = vrsqrt.f32 %v1476_v49  ;;  %v1463_v45 = vmax.f32 %v1449_v22, 0.0  ;;  %v1422_v27 = vmul.f32 0.028571429, %v1390_v5  ;;  %v3652_v42 = vmul.f32 0.028571429, %v1323_v35 }
 0x49b   :  { %v2626_v9 = vpop.eup %2625  ;;  %v1505_v22 = vsub.f32 %v3542_v50, %v3644_v55 }
 0x49c   :  { %v1477_v52 = vadd.f32 1e-05, %v1463_v45  ;;  %v1450_v2 = vsub.f32 %v1422_v27, %v1436_v32  ;;  %v1516_v16 = vmul.f32 %v2626_v9, %v1502_v28  ;;  %v1437_v12 = vmul.f32 %v3652_v42, %v3652_v42 }
 0x49d   :  { %v1393_v46 = vpop.xlane.xlu1 %1392  ;;  %v1326_v39 = vpop.xlane.xlu0 %1325 }
 0x49e   :  { %2631 = vrsqrt.f32 %v1477_v52  ;;  %v1464_v17 = vmax.f32 %v1450_v2, 0.0  ;;  %v1423_v63 = vmul.f32 0.028571429, %v1393_v46  ;;  %v3667_v58 = vmul.f32 0.028571429, %v1326_v39 }
 0x49f   :  { %v1536_v44 = vmul.f32 %v3658_v33, %v1516_v16  ;;  %v2628_v1 = vpop.eup %2627  ;;  %v1506_v16 = vsub.f32 %v3550_v37, %v3648_v11  ;;  %v1507_v11 = vsub.f32 %v3558_v40, %v3652_v42 }
 0x4a0   :  { %v1478_v15 = vadd.f32 1e-05, %v1464_v17  ;;  %v1451_v14 = vsub.f32 %v1423_v63, %v1437_v12  ;;  %v1517_v54 = vmul.f32 %v2628_v1, %v1503_v56  ;;  %v1438_v23 = vmul.f32 %v3667_v58, %v3667_v58 }
 0x4a1   :  { %v1556_v25 = vadd.f32 %v3663_v48, %v1536_v44  ;;  %v1396_v21 = vpop.xlane.xlu0 %1395  ;;  %v1329_v41 = vpop.xlane.xlu1 %1328  ;;  %v1508_v42 = vsub.f32 %v3566_v62, %v3667_v58 }
 0x4a2   :  { %2633 = vrsqrt.f32 %v1478_v15  ;;  %v1465_v10 = vmax.f32 %v1451_v14, 0.0  ;;  %v1424_v20 = vmul.f32 0.028571429, %v1396_v21  ;;  %v3674_v57 = vmul.f32 0.028571429, %v1329_v41 }
 0x4a3   :  { %v1537_v61 = vmul.f32 %v3658_v33, %v1517_v54  ;;  %2635 = vtanh.f32 %v1556_v25 }
 0x4a4   :  { %v1479_v34 = vadd.f32 1e-05, %v1465_v10  ;;  %v1452_v38 = vsub.f32 %v1424_v20, %v1438_v23  ;;  %v1439_v6 = vmul.f32 %v3674_v57, %v3674_v57 }
 0x4a5   :  { %v1557_v60 = vadd.f32 %v3663_v48, %v1537_v61  ;;  %v1399_v3 = vpop.xlane.xlu1 %1398  ;;  %v1332_v30 = vpop.xlane.xlu0 %1331 }
 0x4a6   :  { %2637 = vrsqrt.f32 %v1479_v34  ;;  %v1466_v8 = vmax.f32 %v1452_v38, 0.0  ;;  %v1425_v43 = vmul.f32 0.028571429, %v1399_v3  ;;  %v3682_v31 = vmul.f32 0.028571429, %v1332_v30 }
 0x4a7   :  { %v2630_v29 = vpop.eup %2629  ;;  %2639 = vtanh.f32 %v1557_v60 }
 0x4a8   :  { %v1518_v51 = vmul.f32 %v2630_v29, %v1504_v26  ;;  %v1480_v19 = vadd.f32 1e-05, %v1466_v8  ;;  %v1453_v49 = vsub.f32 %v1425_v43, %v1439_v6  ;;  %v1440_v18 = vmul.f32 %v3682_v31, %v3682_v31 }
 0x4a9   :  { %v1402_v59 = vpop.xlane.xlu0 %1401  ;;  %v1335_v32 = vpop.xlane.xlu1 %1334 }
 0x4aa   :  { %v1538_v5 = vmul.f32 %v3658_v33, %v1518_v51  ;;  %2641 = vrsqrt.f32 %v1480_v19  ;;  %v1467_v35 = vmax.f32 %v1453_v49, 0.0  ;;  %v1426_v45 = vmul.f32 0.028571429, %v1402_v59 }
 0x4ab   :  { %v2632_v27 = vpop.eup %2631  ;;  %v3689_v28 = vmul.f32 0.028571429, %v1335_v32  ;;  %v1509_v32 = vsub.f32 %v3574_v53, %v3674_v57  ;;  %v1510_v53 = vsub.f32 %v3582_v47, %v3682_v31 }
 0x4ac   :  { %v1519_v9 = vmul.f32 %v2632_v27, %v1505_v22  ;;  %v1481_v52 = vadd.f32 1e-05, %v1467_v35  ;;  %v1454_v2 = vsub.f32 %v1426_v45, %v1440_v18  ;;  %v1558_v46 = vadd.f32 %v3663_v48, %v1538_v5 }
 0x4ad   :  { %v1441_v50 = vmul.f32 %v3689_v28, %v3689_v28  ;;  %v1405_v55 = vpop.xlane.xlu1 %1404  ;;  %v1338_v12 = vpop.xlane.xlu0 %1337 }
 0x4ae   :  { %v1539_v39 = vmul.f32 %v3658_v33, %v1519_v9  ;;  %2643 = vrsqrt.f32 %v1481_v52  ;;  %v1468_v17 = vmax.f32 %v1454_v2, 0.0  ;;  %v1427_v63 = vmul.f32 0.028571429, %v1405_v55 }
 0x4af   :  { %v2634_v44 = vpop.eup %2633  ;;  %v3697_v56 = vmul.f32 0.028571429, %v1338_v12  ;;  %2645 = vtanh.f32 %v1558_v46 }
 0x4b0   :  { %v1520_v1 = vmul.f32 %v2634_v44, %v1506_v16  ;;  %v1482_v15 = vadd.f32 1e-05, %v1468_v17  ;;  %v1455_v14 = vsub.f32 %v1427_v63, %v1441_v50  ;;  %v1559_v37 = vadd.f32 %v3663_v48, %v1539_v39  ;;  %v2636_v21 = vpop.eup %2635 }
 0x4b1   :  { %v1442_v25 = vmul.f32 %v3697_v56, %v3697_v56  ;;  %v1408_v54 = vpop.xlane.xlu0 %1407  ;;  %v1341_v23 = vpop.xlane.xlu1 %1340 }
 0x4b2   :  { %v1540_v41 = vmul.f32 %v3658_v33, %v1520_v1  ;;  %2647 = vrsqrt.f32 %v1482_v15  ;;  %v1469_v10 = vmax.f32 %v1455_v14, 0.0  ;;  %v1428_v20 = vmul.f32 0.028571429, %v1408_v54 }
 0x4b3   :  { %v2638_v61 = vpop.eup %2637  ;;  %v3705_v34 = vmul.f32 0.028571429, %v1341_v23  ;;  %2649 = vtanh.f32 %v1559_v37  ;;  %v1511_v23 = vsub.f32 %v3590_v7, %v3689_v28 }
 0x4b4   :  { %v2640_v38 = vpop.eup %2639  ;;  %v1521_v60 = vmul.f32 %v2638_v61, %v1507_v11  ;;  %v1483_v26 = vadd.f32 1e-05, %v1469_v10  ;;  %v1456_v40 = vsub.f32 %v1428_v20, %v1442_v25  ;;  %v1560_v43 = vadd.f32 %v3663_v48, %v1540_v41 }
 0x4b5   :  { %v1443_v6 = vmul.f32 %v3705_v34, %v3705_v34  ;;  %v1411_v3 = vpop.xlane.xlu1 %1410  ;;  %v1344_v30 = vpop.xlane.xlu0 %1343  ;;  %v1590_v8 = vpack.c.bf16 %v2640_v38, %v2636_v21 }
 0x4b6   :  { %v1541_v29 = vmul.f32 %v3658_v33, %v1521_v60  ;;  %2651 = vrsqrt.f32 %v1483_v26  ;;  %v1470_v51 = vmax.f32 %v1456_v40, 0.0  ;;  %v1429_v19 = vmul.f32 0.028571429, %v1411_v3 }
 0x4b7   :  { %v2642_v49 = vpop.eup %2641  ;;  %v3713_v22 = vmul.f32 0.028571429, %v1344_v30  ;;  %2395 = vmatmul.mubr.msk.bf16.vlgmr.msra.gmra.mxu0 %vm147_vm3, %v1590_v8  ;;  %2653 = vtanh.f32 %v1560_v43  ;;  %v1512_v26 = vsub.f32 %v3598_v13, %v3697_v56  ;;  %v1513_v30 = vsub.f32 %v3606_v4, %v3705_v34 }
 0x4b8   :  { %v1522_v18 = vmul.f32 %v2642_v49, %v1508_v42  ;;  %v1484_v62 = vadd.f32 1e-05, %v1470_v51  ;;  %v1457_v58 = vsub.f32 %v1429_v19, %v1443_v6  ;;  %2398 = vmatprep.mubr.msk.bf16.mxu0 %vm2753_vm2, %v2751_v0  ;;  %v1561_v59 = vadd.f32 %v3663_v48, %v1541_v29 }
 0x4b9   :  { %v1444_v5 = vmul.f32 %v3713_v22, %v3713_v22  ;;  %v1414_v35 = vpop.xlane.xlu0 %1413  ;;  %v1347_v45 = vpop.xlane.xlu1 %1346  ;;  %v1514_v51 = vsub.f32 %v3614_v24, %v3713_v22 }
 0x4ba   :  { %v1542_v27 = vmul.f32 %v3658_v33, %v1522_v18  ;;  %2655 = vrsqrt.f32 %v1484_v62  ;;  %v1471_v9 = vmax.f32 %v1457_v58, 0.0  ;;  %v1430_v52 = vmul.f32 0.028571429, %v1414_v35 }
 0x4bb   :  { %v2644_v2 = vpop.eup %2643  ;;  %v3724_v16 = vmul.f32 0.028571429, %v1347_v45  ;;  %2657 = vtanh.f32 %v1561_v59 }
 0x4bc   :  { %v1523_v50 = vmul.f32 %v2644_v2, %v1509_v32  ;;  %v1485_v55 = vadd.f32 1e-05, %v1471_v9  ;;  %v1458_v12 = vsub.f32 %v1430_v52, %v1444_v5  ;;  %v1562_v39 = vadd.f32 %v3663_v48, %v1542_v27  ;;  %v2646_v17 = vpop.eup %2645 }
 0x4bd   :  { %v1445_v57 = vmul.f32 %v3724_v16, %v3724_v16  ;;  %v1417_v46 = vpop.xlane.xlu1 %1416  ;;  %v1515_v58 = vsub.f32 %v3622_v36, %v3724_v16 }
 0x4be   :  { %v1543_v63 = vmul.f32 %v3658_v33, %v1523_v50  ;;  %2659 = vrsqrt.f32 %v1485_v55  ;;  %v1472_v44 = vmax.f32 %v1458_v12, 0.0  ;;  %v1431_v1 = vmul.f32 0.028571429, %v1417_v46  ;;  %v3771_v50 = vld [vmem:[#allocation2] ss:$0 sm:$0xff] }
 0x4bf   :  { %v2648_v15 = vpop.eup %2647  ;;  %2661 = vtanh.f32 %v1562_v39 }
 0x4c0   :  { %v2650_v14 = vpop.eup %2649  ;;  %v1524_v37 = vmul.f32 %v2648_v15, %v1510_v53  ;;  %v1486_v11 = vadd.f32 1e-05, %v1472_v44  ;;  %v1459_v25 = vsub.f32 %v1431_v1, %v1445_v57  ;;  %v1563_v54 = vadd.f32 %v3663_v48, %v1543_v63 }
 0x4c1   :  { %v1591_v47 = vpack.c.bf16 %v2650_v14, %v2646_v17 }
 0x4c2   :  { %v1544_v31 = vmul.f32 %v3658_v33, %v1524_v37  ;;  %2663 = vrsqrt.f32 %v1486_v11  ;;  %v1473_v21 = vmax.f32 %v1459_v25, 0.0 }
 0x4c3   :  { %v2652_v41 = vpop.eup %2651  ;;  %2399 = vmatmul.mubr.msk.bf16.gmra.mxu0 %vm147_vm3, %v1591_v47  ;;  %2665 = vtanh.f32 %v1563_v54 }
 0x4c4   :  { %v1525_v10 = vmul.f32 %v2652_v41, %v1511_v23  ;;  %v1487_v20 = vadd.f32 1e-05, %v1473_v21  ;;  %2402 = vmatprep.mubr.msk.bf16.mxu0 %vm2753_vm2, %v2751_v0  ;;  %v1564_v61 = vadd.f32 %v3663_v48, %v1544_v31  ;;  %v2654_v38 = vpop.eup %2653 }
 0x4c6   :  { %v1545_v60 = vmul.f32 %v3658_v33, %v1525_v10  ;;  %2667 = vrsqrt.f32 %v1487_v20 }
 0x4c7   :  { %v2656_v7 = vpop.eup %2655  ;;  %2669 = vtanh.f32 %v1564_v61 }
 0x4c8   :  { %v2658_v28 = vpop.eup %2657  ;;  %v1526_v40 = vmul.f32 %v2656_v7, %v1512_v26  ;;  %v1565_v42 = vadd.f32 %v3663_v48, %v1545_v60 }
 0x4c9   :  { %v1592_v6 = vpack.c.bf16 %v2658_v28, %v2654_v38 }
 0x4ca   :  { %v1546_v3 = vmul.f32 %v3658_v33, %v1526_v40  ;;  %2671 = vtanh.f32 %v1565_v42 }
 0x4cb   :  { %v2660_v8 = vpop.eup %2659  ;;  %2403 = vmatmul.mubr.msk.bf16.gmra.mxu0 %vm147_vm3, %v1592_v6 }
 0x4cc   :  { %v1527_v43 = vmul.f32 %v2660_v8, %v1513_v30  ;;  %2406 = vmatprep.mubr.msk.bf16.mxu0 %vm2753_vm2, %v2751_v0  ;;  %v1566_v13 = vadd.f32 %v3663_v48, %v1546_v3  ;;  %v2662_v56 = vpop.eup %2661 }
 0x4ce   :  { %v1547_v29 = vmul.f32 %v3658_v33, %v1527_v43  ;;  %2673 = vtanh.f32 %v1566_v13 }
 0x4cf   :  { %v2664_v19 = vpop.eup %2663 }
 0x4d0   :  { %v2666_v49 = vpop.eup %2665  ;;  %v1528_v18 = vmul.f32 %v2664_v19, %v1514_v51  ;;  %v1567_v4 = vadd.f32 %v3663_v48, %v1547_v29 }
 0x4d1   :  { %v1593_v34 = vpack.c.bf16 %v2666_v49, %v2662_v56 }
 0x4d2   :  { %v1548_v62 = vmul.f32 %v3658_v33, %v1528_v18  ;;  %2675 = vtanh.f32 %v1567_v4 }
 0x4d3   :  { %v2668_v59 = vpop.eup %2667  ;;  %2407 = vmatmul.mubr.msk.bf16.gmra.mxu0 %vm147_vm3, %v1593_v34 }
 0x4d4   :  { %v1529_v32 = vmul.f32 %v2668_v59, %v1515_v58  ;;  %2410 = vmatprep.mubr.msk.bf16.mxu0 %vm2753_vm2, %v2751_v0  ;;  %v1568_v24 = vadd.f32 %v3663_v48, %v1548_v62  ;;  %v2670_v22 = vpop.eup %2669 }
 0x4d6   :  { %v1549_v5 = vmul.f32 %v3658_v33, %v1529_v32  ;;  %2677 = vtanh.f32 %v1568_v24 }
 0x4d7   :  { %v2672_v35 = vpop.eup %2671 }
 0x4d8   :  { %v1594_v45 = vpack.c.bf16 %v2672_v35, %v2670_v22  ;;  %v1569_v27 = vadd.f32 %v3663_v48, %v1549_v5  ;;  %v2754_v48 = vmov 0  }
 0x4d9   :  { %2433 = vset.pattern.permute.xlu0 %v2754_v48  ;;  %2434 = vset.pattern.permute.xlu1 %v2754_v48 }
 0x4da   :  { %2679 = vtanh.f32 %v1569_v27 }
 0x4db   :  { %2411 = vmatmul.mubr.msk.bf16.gmra.mxu0 %vm147_vm3, %v1594_v45  ;;  %v2674_v36 = vpop.eup %2673 }
 0x4dc   :  { %2414 = vmatprep.mubr.msk.bf16.mxu0 %vm2753_vm2, %v2751_v0 }
 0x4df   :  { %v2676_v9 = vpop.eup %2675 }
 0x4e0   :  { %v1595_v52 = vpack.c.bf16 %v2676_v9, %v2674_v36 }
 0x4e3   :  { %2415 = vmatmul.mubr.msk.bf16.gmra.mxu0 %vm147_vm3, %v1595_v52  ;;  %v2678_v33 = vpop.eup %2677 }
 0x4e4   :  { %2418 = vmatprep.mubr.msk.bf16.mxu0 %vm2753_vm2, %v2751_v0 }
 0x4e7   :  { %v2680_v2 = vpop.eup %2679 }
 0x4e8   :  { %v1596_v16 = vpack.c.bf16 %v2680_v2, %v2678_v33 }
 0x4eb   :  { %2419 = vmatmul.mubr.msk.bf16.gmra.mxu0 %vm147_vm3, %v1596_v16 }
 0x577   :  { %v1676_v55 = vpop.f32.mrf.mxu0 }
 0x578   :  { %v1677_v12 = vadd.f32 %v3771_v50, %v1676_v55 }
 0x579   :  { %v2396_v53 = vpop.f32.mrf.mxu0 }
 0x57a   :  { %v2160_v57 = vmul.f32 -1.442695, %v1677_v12 }
 0x57b   :  { %v1679_v46 = vpop.f32.mrf.mxu0 }
 0x57c   :  { %2681 = vpow2.f32 %v2160_v57  ;;  %v1680_v39 = vadd.f32 %v3771_v50, %v1679_v46 }
 0x57d   :  { %v2397_v0 = vpop.f32.mrf.mxu0 }
 0x57e   :  { %v2161_v17 = vmul.f32 -1.442695, %v1680_v39 }
 0x580   :  { %2683 = vpow2.f32 %v2161_v17 }
 0x583   :  { %v1684_v63 = vpop.f32.mrf.mxu0 }
 0x584   :  { %v1685_v44 = vadd.f32 %v3771_v50, %v1684_v63 }
 0x585   :  { %v2400_v1 = vpop.f32.mrf.mxu0 }
 0x586   :  { %v2162_v15 = vmul.f32 -1.442695, %v1685_v44 }
 0x587   :  { %v1687_v14 = vpop.f32.mrf.mxu0 }
 0x588   :  { %2685 = vpow2.f32 %v2162_v15  ;;  %v1688_v37 = vadd.f32 %v3771_v50, %v1687_v14 }
 0x589   :  { %v2682_v11 = vpop.eup %2681  ;;  %v2401_v25 = vpop.f32.mrf.mxu0 }
 0x58a   :  { %v1773_v54 = vadd.f32 1.0, %v2682_v11  ;;  %v2163_v47 = vmul.f32 -1.442695, %v1688_v37 }
 0x58b   :  { %v1692_v31 = vpop.f32.mrf.mxu0 }
 0x58c   :  { %2687 = vrcp.f32 %v1773_v54  ;;  %v1693_v23 = vadd.f32 %v3771_v50, %v1692_v31 }
 0x58d   :  { %v2684_v21 = vpop.eup %2683  ;;  %2689 = vpow2.f32 %v2163_v47  ;;  %v2404_v41 = vpop.f32.mrf.mxu0 }
 0x58e   :  { %v1774_v10 = vadd.f32 1.0, %v2684_v21  ;;  %v2164_v20 = vmul.f32 -1.442695, %v1693_v23 }
 0x58f   :  { %v1695_v61 = vpop.f32.mrf.mxu0 }
 0x590   :  { %2691 = vrcp.f32 %v1774_v10  ;;  %v1696_v38 = vadd.f32 %v3771_v50, %v1695_v61 }
 0x591   :  { %2693 = vpow2.f32 %v2164_v20  ;;  %v2405_v60 = vpop.f32.mrf.mxu0 }
 0x592   :  { %v2165_v26 = vmul.f32 -1.442695, %v1696_v38 }
 0x593   :  { %v1700_v7 = vpop.f32.mrf.mxu0 }
 0x594   :  { %2695 = vpow2.f32 %v2165_v26  ;;  %v1701_v28 = vadd.f32 %v3771_v50, %v1700_v7 }
 0x595   :  { %v2686_v40 = vpop.eup %2685  ;;  %v2408_v42 = vpop.f32.mrf.mxu0 }
 0x596   :  { %v1775_v6 = vadd.f32 1.0, %v2686_v40  ;;  %v2166_v3 = vmul.f32 -1.442695, %v1701_v28 }
 0x597   :  { %v1703_v30 = vpop.f32.mrf.mxu0 }
 0x598   :  { %2697 = vrcp.f32 %v1775_v6  ;;  %v1704_v8 = vadd.f32 %v3771_v50, %v1703_v30  ;;  %v2737_v30 = vld [vmem:[%s3964_s1] sm:$0xff]  }
 0x599   :  { %v2688_v43 = vpop.eup %2687  ;;  %2699 = vpow2.f32 %v2166_v3  ;;  %v2409_v13 = vpop.f32.mrf.mxu0 }
 0x59a   :  { %v2690_v56 = vpop.eup %2689  ;;  %v2167_v29 = vmul.f32 -1.442695, %v1704_v8  ;;  %1831 = vperm.xlu0 %2433, %v2688_v43   ;;  %v1913_v8 = vunpack.c.l.bf16 %v2737_v30  ;;  %v1914_v43 = vunpack.c.h.bf16 %v2737_v30 }
 0x59b   :  { %v1776_v51 = vadd.f32 1.0, %v2690_v56  ;;  %v1708_v19 = vpop.f32.mrf.mxu0 }
 0x59c   :  { %2701 = vpow2.f32 %v2167_v29  ;;  %v1709_v49 = vadd.f32 %v3771_v50, %v1708_v19 }
 0x59d   :  { %v2692_v18 = vpop.eup %2691  ;;  %2703 = vrcp.f32 %v1776_v51  ;;  %v2412_v4 = vpop.f32.mrf.mxu0 }
 0x59e   :  { %v2694_v34 = vpop.eup %2693  ;;  %v2168_v62 = vmul.f32 -1.442695, %v1709_v49  ;;  %1836 = vperm.xlu1 %2434, %v2692_v18   ;;  %v2738_v18 = vld [vmem:[%s3964_s1 + $0x8] sm:$0xff]  }
 0x59f   :  { %v1777_v58 = vadd.f32 1.0, %v2694_v34  ;;  %v1711_v59 = vpop.f32.mrf.mxu0  ;;  %v1915_v4 = vunpack.c.l.bf16 %v2738_v18  ;;  %v1916_v34 = vunpack.c.h.bf16 %v2738_v18 }
 0x5a0   :  { %2705 = vpow2.f32 %v2168_v62  ;;  %v1712_v32 = vadd.f32 %v3771_v50, %v1711_v59 }
 0x5a1   :  { %v2696_v24 = vpop.eup %2695  ;;  %2707 = vrcp.f32 %v1777_v58  ;;  %v2413_v22 = vpop.f32.mrf.mxu0 }
 0x5a2   :  { %v1778_v5 = vadd.f32 1.0, %v2696_v24  ;;  %v2169_v35 = vmul.f32 -1.442695, %v1712_v32  ;;  %v2739_v22 = vld [vmem:[%s3964_s1 + $0x10] sm:$0xff]  }
 0x5a3   :  { %v1716_v45 = vpop.f32.mrf.mxu0 }
 0x5a4   :  { %2709 = vrcp.f32 %v1778_v5  ;;  %v1717_v27 = vadd.f32 %v3771_v50, %v1716_v45  ;;  %v1917_v5 = vunpack.c.l.bf16 %v2739_v22 }
 0x5a5   :  { %v2698_v36 = vpop.eup %2697  ;;  %2711 = vpow2.f32 %v2169_v35  ;;  %v2416_v9 = vpop.f32.mrf.mxu0  ;;  %v1918_v35 = vunpack.c.h.bf16 %v2739_v22 }
 0x5a6   :  { %v2700_v52 = vpop.eup %2699  ;;  %v2170_v33 = vmul.f32 -1.442695, %v1717_v27  ;;  %1841 = vperm.xlu1 %2434, %v2698_v36  }
 0x5a7   :  { %v1779_v2 = vadd.f32 1.0, %v2700_v52  ;;  %v1719_v16 = vpop.f32.mrf.mxu0 }
 0x5a8   :  { %2713 = vpow2.f32 %v2170_v33  ;;  %v1720_v48 = vadd.f32 %v3771_v50, %v1719_v16  ;;  %v2740_v33 = vld [vmem:[%s3964_s1 + $0x18] sm:$0xff]  }
 0x5a9   :  { %v2702_v55 = vpop.eup %2701  ;;  %2715 = vrcp.f32 %v1779_v2  ;;  %v2417_v12 = vpop.f32.mrf.mxu0  ;;  %v1919_v2 = vunpack.c.l.bf16 %v2740_v33  ;;  %v1920_v16 = vunpack.c.h.bf16 %v2740_v33 }
 0x5aa   :  { %v2704_v53 = vpop.eup %2703  ;;  %v1780_v57 = vadd.f32 1.0, %v2702_v55  ;;  %v2171_v46 = vmul.f32 -1.442695, %v1720_v48 }
 0x5ab   :  { %1846 = vperm.xlu1 %2434, %v2704_v53   ;;  %v1724_v39 = vpop.f32.mrf.mxu0 }
 0x5ac   :  { %2717 = vrcp.f32 %v1780_v57  ;;  %v1725_v0 = vadd.f32 %v3771_v50, %v1724_v39  ;;  %v2741_v57 = vld [vmem:[%s3964_s1 + $0x20] sm:$0xff]  }
 0x5ad   :  { %v2706_v17 = vpop.eup %2705  ;;  %2719 = vpow2.f32 %v2171_v46  ;;  %v2420_v63 = vpop.f32.mrf.mxu0  ;;  %v1921_v46 = vunpack.c.l.bf16 %v2741_v57  ;;  %v1922_v39 = vunpack.c.h.bf16 %v2741_v57  ;;  %v2747_v57 = vld [vmem:[%s3965_s0 + $0x18] sm:$0xff]  }
 0x5ae   :  { %v2708_v44 = vpop.eup %2707  ;;  %v1781_v1 = vadd.f32 1.0, %v2706_v17  ;;  %v2172_v15 = vmul.f32 -1.442695, %v1725_v0 }
 0x5af   :  { %1851 = vperm.xlu1 %2434, %v2708_v44   ;;  %v1727_v14 = vpop.f32.mrf.mxu0 }
 0x5b0   :  { %2721 = vrcp.f32 %v1781_v1  ;;  %v1728_v37 = vadd.f32 %v3771_v50, %v1727_v14 }
 0x5b1   :  { %v2710_v11 = vpop.eup %2709  ;;  %2723 = vpow2.f32 %v2172_v15  ;;  %v2421_v25 = vpop.f32.mrf.mxu0  ;;  %v2742_v15 = vld [vmem:[%s3964_s1 + $0x28] sm:$0xff]  }
 0x5b2   :  { %v2712_v54 = vpop.eup %2711  ;;  %v2173_v47 = vmul.f32 -1.442695, %v1728_v37  ;;  %v1923_v14 = vunpack.c.l.bf16 %v2742_v15  ;;  %v1924_v37 = vunpack.c.h.bf16 %v2742_v15 }
 0x5b3   :  { %v1782_v31 = vadd.f32 1.0, %v2712_v54  ;;  %1856 = vperm.xlu1 %2434, %v2710_v11  }
 0x5b4   :  { %2725 = vpow2.f32 %v2173_v47 }
 0x5b5   :  { %v2714_v23 = vpop.eup %2713  ;;  %2727 = vrcp.f32 %v1782_v31 }
 0x5b6   :  { %v2716_v21 = vpop.eup %2715  ;;  %v1783_v41 = vadd.f32 1.0, %v2714_v23  ;;  %v2743_v23 = vld [vmem:[%s3964_s1 + $0x30] sm:$0xff]  }
 0x5b7   :  { %1861 = vperm.xlu1 %2434, %v2716_v21   ;;  %v1925_v21 = vunpack.c.l.bf16 %v2743_v23 }
 0x5b8   :  { %2729 = vrcp.f32 %v1783_v41  ;;  %v1926_v41 = vunpack.c.h.bf16 %v2743_v23 }
 0x5b9   :  { %v2718_v10 = vpop.eup %2717 }
 0x5ba   :  { %v2720_v20 = vpop.eup %2719 }
 0x5bb   :  { %v1784_v61 = vadd.f32 1.0, %v2720_v20  ;;  %1866 = vperm.xlu1 %2434, %v2718_v10  }
 0x5bd   :  { %v2722_v38 = vpop.eup %2721  ;;  %2731 = vrcp.f32 %v1784_v61 }
 0x5be   :  { %v2724_v50 = vpop.eup %2723 }
 0x5bf   :  { %v1785_v60 = vadd.f32 1.0, %v2724_v50  ;;  %1871 = vperm.xlu1 %2434, %v2722_v38  }
 0x5c1   :  { %v2726_v26 = vpop.eup %2725  ;;  %2733 = vrcp.f32 %v1785_v60  ;;  %v2744_v60 = vld [vmem:[%s3965_s0] sm:$0xff]  }
 0x5c2   :  { %v2728_v7 = vpop.eup %2727  ;;  %v1786_v28 = vadd.f32 1.0, %v2726_v26  ;;  %v1815_v26 = vunpack.c.l.bf16 %v2744_v60 }
 0x5c3   :  { %1876 = vperm.xlu0 %2433, %v2728_v7   ;;  %v1816_v7 = vunpack.c.h.bf16 %v2744_v60 }
 0x5c4   :  { %2735 = vrcp.f32 %v1786_v28 }
 0x5c5   :  { %v2730_v40 = vpop.eup %2729 }
 0x5c6   :  { %1881 = vperm.xlu1 %2434, %v2730_v40  }
 0x5ca   :  { %v2732_v42 = vpop.eup %2731 }
 0x5cb   :  { %1886 = vperm.xlu0 %2433, %v2732_v42  }
 0x5ce   :  { %v2734_v6 = vpop.eup %2733 }
 0x5cf   :  { %1891 = vperm.xlu1 %2434, %v2734_v6  }
 0x5d1   :  { %v2736_v3 = vpop.eup %2735 }
 0x5d2   :  { %1896 = vperm.xlu0 %2433, %v2736_v3  }
 0x615   :  { %v3790_v13 = vpop.permute.xlu0 %1831 }
 0x616   :  { %v1927_v29 = vmul.f32 %v1913_v8, %v3790_v13  ;;  %v1899_v40 = vmul.f32 %v3790_v13, %v1815_v26  ;;  %v2745_v13 = vld [vmem:[%s3965_s0 + $0x8] sm:$0xff]  }
 0x619   :  { %v3792_v56 = vpop.permute.xlu1 %1836 }
 0x61a   :  { %v1928_v51 = vmul.f32 %v1914_v43, %v3792_v56  ;;  %v1900_v42 = vmul.f32 %v3792_v56, %v1816_v7  ;;  %v1817_v56 = vunpack.c.l.bf16 %v2745_v13  ;;  %v2749_v7 = vld [vmem:[%s3965_s0 + $0x28] sm:$0xff]  }
 0x61c   :  { %v2435_v19 = vpack.i.bf16 %v1928_v51, %v1927_v29  ;;  %v1818_v51 = vunpack.c.h.bf16 %v2745_v13 }
 0x61e   :  { %2436 = vrot.lane.b32.xlu1 %v2435_v19, %s2755_s5 }
 0x621   :  { %v3797_v49 = vpop.permute.xlu1 %1841 }
 0x622   :  { %v1929_v58 = vmul.f32 %v1915_v4, %v3797_v49  ;;  %v1901_v18 = vmul.f32 %v3797_v49, %v1817_v56 }
 0x626   :  { %v3802_v62 = vpop.permute.xlu1 %1846 }
 0x627   :  { %v1930_v59 = vmul.f32 %v1916_v34, %v3802_v62  ;;  %v1902_v4 = vmul.f32 %v3802_v62, %v1818_v51 }
 0x629   :  { %v2440_v32 = vpack.i.bf16 %v1930_v59, %v1929_v58 }
 0x62a   :  { %v3806_v24 = vpop.permute.xlu1 %1851 }
 0x62b   :  { %2441 = vrot.lane.b32.xlu0 %v2440_v32, %s2755_s5  ;;  %v1931_v27 = vmul.f32 %v1917_v5, %v3806_v24 }
 0x62e   :  { %v3812_v45 = vpop.permute.xlu1 %1856 }
 0x62f   :  { %v1932_v36 = vmul.f32 %v1918_v35, %v3812_v45  ;;  %v2746_v35 = vld [vmem:[%s3965_s0 + $0x10] sm:$0xff]  }
 0x631   :  { %v2445_v9 = vpack.i.bf16 %v1932_v36, %v1931_v27  ;;  %v1819_v27 = vunpack.c.l.bf16 %v2746_v35  ;;  %v1820_v36 = vunpack.c.h.bf16 %v2746_v35 }
 0x632   :  { %v3816_v52 = vpop.permute.xlu1 %1861 }
 0x633   :  { %2446 = vrot.lane.b32.xlu1 %v2445_v9, %s2755_s5  ;;  %v1933_v55 = vmul.f32 %v1919_v2, %v3816_v52  ;;  %v1903_v62 = vmul.f32 %v3806_v24, %v1819_v27  ;;  %v1904_v9 = vmul.f32 %v3812_v45, %v1820_v36 }
 0x636   :  { %v3822_v48 = vpop.permute.xlu1 %1866 }
 0x637   :  { %v1934_v12 = vmul.f32 %v1920_v16, %v3822_v48 }
 0x639   :  { %v2450_v53 = vpack.i.bf16 %v1934_v12, %v1933_v55 }
 0x63a   :  { %v3830_v0 = vpop.permute.xlu1 %1871 }
 0x63b   :  { %2451 = vrot.lane.b32.xlu0 %v2450_v53, %s2755_s5  ;;  %v1935_v63 = vmul.f32 %v1921_v46, %v3830_v0  ;;  %v1821_v46 = vunpack.c.l.bf16 %v2747_v57 }
 0x63d   :  { %v1905_v45 = vmul.f32 %v3816_v52, %v1821_v46 }
 0x63e   :  { %v3832_v17 = vpop.permute.xlu0 %1876 }
 0x63f   :  { %v1936_v44 = vmul.f32 %v1922_v39, %v3832_v17  ;;  %v1822_v39 = vunpack.c.h.bf16 %v2747_v57 }
 0x641   :  { %v2455_v1 = vpack.i.bf16 %v1936_v44, %v1935_v63  ;;  %v3840_v11 = vpop.permute.xlu1 %1881  ;;  %v1906_v63 = vmul.f32 %v3822_v48, %v1822_v39 }
 0x642   :  { %v1937_v54 = vmul.f32 %v1923_v14, %v3840_v11 }
 0x643   :  { %2456 = vrot.lane.b32.xlu1 %v2455_v1, %s2755_s5 }
 0x646   :  { %v3842_v25 = vpop.permute.xlu0 %1886 }
 0x647   :  { %v1938_v47 = vmul.f32 %v1924_v37, %v3842_v25 }
 0x649   :  { %v2460_v31 = vpack.i.bf16 %v1938_v47, %v1937_v54  ;;  %v2748_v47 = vld [vmem:[%s3965_s0 + $0x20] sm:$0xff]  }
 0x64a   :  { %v3849_v10 = vpop.permute.xlu1 %1891  ;;  %v1824_v23 = vunpack.c.h.bf16 %v2748_v47 }
 0x64b   :  { %2461 = vrot.lane.b32.xlu0 %v2460_v31, %s2755_s5  ;;  %v1939_v61 = vmul.f32 %v1925_v21, %v3849_v10  ;;  %v1823_v31 = vunpack.c.l.bf16 %v2748_v47 }
 0x64c   :  { %v1908_v21 = vmul.f32 %v3832_v17, %v1824_v23 }
 0x64d   :  { %v3852_v20 = vpop.permute.xlu0 %1896  ;;  %v1907_v48 = vmul.f32 %v3830_v0, %v1823_v31 }
 0x64e   :  { %v1940_v38 = vmul.f32 %v1926_v41, %v3852_v20 }
 0x650   :  { %v2465_v50 = vpack.i.bf16 %v1940_v38, %v1939_v61 }
 0x652   :  { %2466 = vrot.lane.b32.xlu1 %v2465_v50, %s2755_s5 }
 0x690   :  { %v2437_v28 = vpop.permute.xlu1 %2436 }
 0x691   :  { %v2439_v6 = vunpack.i.h.bf16 %v2437_v28  ;;  %v2438_v3 = vunpack.i.l.bf16 %v2437_v28  ;;  %v1825_v28 = vunpack.c.l.bf16 %v2749_v7 }
 0x693   :  { %v1998_v30 = vsel %vm147_vm3, %v1900_v42, %v2439_v6  ;;  %v1997_v8 = vsel %vm147_vm3, %v1899_v40, %v2438_v3  ;;  %v1826_v40 = vunpack.c.h.bf16 %v2749_v7  ;;  %v1909_v17 = vmul.f32 %v3840_v11, %v1825_v28 }
 0x694   :  { %v2189_v43 = vpack.c.bf16 %v1998_v30, %v1998_v30  ;;  %v2188_v29 = vpack.c.bf16 %v1997_v8, %v1997_v8 }
 0x695   :  { %v1910_v42 = vmul.f32 %v3842_v25, %v1826_v40 }
 0x696   :  { %2069 = vst.msk [vmem:[%s3979_s17 + $0x4] sm:$0xf] %vm2067_vm4, %v2189_v43  ;;  %2068 = vst.msk [vmem:[%s3979_s17] sm:$0xf] %vm2067_vm4, %v2188_v29  ;;  %v2750_v43 = vld [vmem:[%s3965_s0 + $0x30] sm:$0xff]  }
 0x697   :  { %v1827_v29 = vunpack.c.l.bf16 %v2750_v43  ;;  %v1828_v13 = vunpack.c.h.bf16 %v2750_v43 }
 0x699   :  { %v1911_v25 = vmul.f32 %v3849_v10, %v1827_v29 }
 0x69d   :  { %v2442_v19 = vpop.permute.xlu0 %2441 }
 0x69e   :  { %v2444_v34 = vunpack.i.h.bf16 %v2442_v19  ;;  %v2443_v58 = vunpack.i.l.bf16 %v2442_v19  ;;  %v1912_v19 = vmul.f32 %v3852_v20, %v1828_v13 }
 0x6a0   :  { %v1999_v59 = vsel %vm147_vm3, %v1901_v18, %v2443_v58  ;;  %v2000_v32 = vsel %vm147_vm3, %v1902_v4, %v2444_v34 }
 0x6a1   :  { %v2190_v22 = vpack.c.bf16 %v1999_v59, %v1999_v59  ;;  %v2191_v5 = vpack.c.bf16 %v2000_v32, %v2000_v32 }
 0x6a3   :  { %2070 = vst.msk [vmem:[%s3979_s17 + $0x8] sm:$0xf] %vm2067_vm4, %v2190_v22  ;;  %2071 = vst.msk [vmem:[%s3979_s17 + $0xc] sm:$0xf] %vm2067_vm4, %v2191_v5 }
 0x6a5   :  { %v2447_v49 = vpop.permute.xlu1 %2446 }
 0x6a6   :  { %v2449_v33 = vunpack.i.h.bf16 %v2447_v49  ;;  %v2448_v2 = vunpack.i.l.bf16 %v2447_v49 }
 0x6a8   :  { %v2002_v16 = vsel %vm147_vm3, %v1904_v9, %v2449_v33  ;;  %v2001_v55 = vsel %vm147_vm3, %v1903_v62, %v2448_v2 }
 0x6a9   :  { %v2193_v12 = vpack.c.bf16 %v2002_v16, %v2002_v16  ;;  %v2192_v53 = vpack.c.bf16 %v2001_v55, %v2001_v55 }
 0x6ab   :  { %2073 = vst.msk [vmem:[%s3979_s17 + $0x14] sm:$0xf] %vm2067_vm4, %v2193_v12  ;;  %2072 = vst.msk [vmem:[%s3979_s17 + $0x10] sm:$0xf] %vm2067_vm4, %v2192_v53 }
 0x6ad   :  { %v2452_v24 = vpop.permute.xlu0 %2451 }
 0x6ae   :  { %v2454_v44 = vunpack.i.h.bf16 %v2452_v24  ;;  %v2453_v1 = vunpack.i.l.bf16 %v2452_v24 }
 0x6b0   :  { %v2003_v15 = vsel %vm147_vm3, %v1905_v45, %v2453_v1  ;;  %v2004_v14 = vsel %vm147_vm3, %v1906_v63, %v2454_v44 }
 0x6b1   :  { %v2194_v37 = vpack.c.bf16 %v2003_v15, %v2003_v15  ;;  %v2195_v54 = vpack.c.bf16 %v2004_v14, %v2004_v14 }
 0x6b3   :  { %2074 = vst.msk [vmem:[%s3979_s17 + $0x18] sm:$0xf] %vm2067_vm4, %v2194_v37  ;;  %2075 = vst.msk [vmem:[%s3979_s17 + $0x1c] sm:$0xf] %vm2067_vm4, %v2195_v54 }
 0x6b5   :  { %v2457_v52 = vpop.permute.xlu1 %2456 }
 0x6b6   :  { %v2459_v41 = vunpack.i.h.bf16 %v2457_v52  ;;  %v2458_v61 = vunpack.i.l.bf16 %v2457_v52 }
 0x6b8   :  { %v2006_v38 = vsel %vm147_vm3, %v1908_v21, %v2459_v41  ;;  %v2005_v50 = vsel %vm147_vm3, %v1907_v48, %v2458_v61 }
 0x6b9   :  { %v2197_v60 = vpack.c.bf16 %v2006_v38, %v2006_v38  ;;  %v2196_v26 = vpack.c.bf16 %v2005_v50, %v2005_v50 }
 0x6bb   :  { %2077 = vst.msk [vmem:[%s3979_s17 + $0x24] sm:$0xf] %vm2067_vm4, %v2197_v60  ;;  %2076 = vst.msk [vmem:[%s3979_s17 + $0x20] sm:$0xf] %vm2067_vm4, %v2196_v26 }
 0x6bd   :  { %v2462_v0 = vpop.permute.xlu0 %2461 }
 0x6be   :  { %v2464_v6 = vunpack.i.h.bf16 %v2462_v0  ;;  %v2463_v3 = vunpack.i.l.bf16 %v2462_v0 }
 0x6c0   :  { %v2008_v30 = vsel %vm147_vm3, %v1910_v42, %v2464_v6  ;;  %v2007_v8 = vsel %vm147_vm3, %v1909_v17, %v2463_v3 }
 0x6c1   :  { %v2199_v56 = vpack.c.bf16 %v2008_v30, %v2008_v30  ;;  %v2198_v51 = vpack.c.bf16 %v2007_v8, %v2007_v8 }
 0x6c3   :  { %2079 = vst.msk [vmem:[%s3979_s17 + $0x2c] sm:$0xf] %vm2067_vm4, %v2199_v56  ;;  %2078 = vst.msk [vmem:[%s3979_s17 + $0x28] sm:$0xf] %vm2067_vm4, %v2198_v51 }
 0x6c4   :  { %v2467_v11 = vpop.permute.xlu1 %2466 }
 0x6c5   :  { %v2469_v18 = vunpack.i.h.bf16 %v2467_v11  ;;  %v2468_v4 = vunpack.i.l.bf16 %v2467_v11 }
 0x6c7   :  { %v2010_v34 = vsel %vm147_vm3, %v1912_v19, %v2469_v18  ;;  %v2009_v58 = vsel %vm147_vm3, %v1911_v25, %v2468_v4 }
 0x6c8   :  { %v2201_v59 = vpack.c.bf16 %v2010_v34, %v2010_v34  ;;  %v2200_v32 = vpack.c.bf16 %v2009_v58, %v2009_v58 }
 0x6ca   :  { %2081 = vst.msk [vmem:[%s3979_s17 + $0x34] sm:$0xf] %vm2067_vm4, %v2201_v59  ;;  %2080 = vst.msk [vmem:[%s3979_s17 + $0x30] sm:$0xf] %vm2067_vm4, %v2200_v32 }

// kernel: a_call__.8
= control target key start
LH: loop header
LB: loop body
LE: loop exit
PB: predicated region body
PF: predicated region fallthrough
CT: control target
= control target key end

     0   :  { %vm134_vm0 = vcmask 1040384   ;;  %vm135_vm1 = vcmask 1041408   ;;  %v1175_v1 = vmov 65535   ;;  %vm121_vm2 = vcmask 285696   ;;  %s1176_s27 = smov 32   ;;  %s1640_s4 = inlined_call_operand.vmem [shape: bf16[35,32], index: 4, kind: input, shape index: {}]   ;;  %s1641_s3 = inlined_call_operand.vmem [shape: bf16[35,32], index: 3, kind: input, shape index: {}]   ;;  %s1642_s1 = inlined_call_operand.vmem [shape: bf16[64,35], index: 1, kind: input, shape index: {}]   ;;  %s1643_s0 = inlined_call_operand.vmem [shape: f32[64,35], index: 0, kind: input, shape index: {}]   ;;  %s1644_s5 = inlined_call_operand.vmem [shape: f32[1,32], index: 5, kind: input, shape index: {}]   ;;  %s1645_s8 = inlined_call_operand.vmem [shape: bf16[32,32], index: 8, kind: input, shape index: {}]   ;;  %s1646_s6 = inlined_call_operand.vmem [shape: f32[1,32], index: 6, kind: input, shape index: {}, may-alias: {6,10}]   ;;  %s1647_s7 = inlined_call_operand.vmem [shape: f32[1,32], index: 7, kind: input, shape index: {}, may-alias: {7,11}]   ;;  %s1648_s9 = inlined_call_operand.vmem [shape: f32[1,32], index: 9, kind: input, shape index: {}]   ;;  %s1649_s12 = inlined_call_operand.vmem [shape: bf16[32,32], index: 12, kind: input, shape index: {}]   ;;  %s1650_s2 = inlined_call_operand.vmem [shape: f32[64,3], index: 2, kind: input, shape index: {}]   ;;  %s1651_s10 = inlined_call_operand.vmem [shape: f32[1,32], index: 10, kind: input, shape index: {}, may-alias: {6,10}]   ;;  %s1652_s11 = inlined_call_operand.vmem [shape: f32[1,32], index: 11, kind: input, shape index: {}, may-alias: {7,11}]   ;;  %s1653_s13 = inlined_call_operand.vmem [shape: f32[1,32], index: 13, kind: input, shape index: {}]   ;;  %s1654_s14 = inlined_call_operand.vmem [shape: bf16[64,35], index: 14, kind: output, shape index: {}]  }
   0x1   :  { %v1092_v0 = vld [vmem:[%s1640_s4 + $0x10] ss:$0 sps:$4 sm:$0x33]   ;;  %v136_v2 = vsel %vm134_vm0, 4294967295, %v1175_v1  ;;  %v1094_v6 = vld [vmem:[%s1640_s4 + $0x8] sm:$0xff]   ;;  %v1096_v9 = vld [vmem:[%s1640_s4] sm:$0xff]  }
   0x2   :  { %v137_v3 = vsel %vm135_vm1, %v136_v2, 0  ;;  %v1093_v4 = vld [vmem:[%s1641_s3 + $0x10] ss:$0 sps:$4 sm:$0x33]   ;;  %v1095_v8 = vld [vmem:[%s1641_s3 + $0x8] sm:$0xff]   ;;  %v1270_v10 = vld [vmem:[%s1642_s1] sm:$0xff]  }
   0x3   :  { %v139_v5 = vand.u32 %v1092_v0, %v137_v3  ;;  %v234_v7 = vand.u32 %v1093_v4, %v137_v3  ;;  %v48_v11 = vld [vmem:[%s1643_s0] sm:$0xff]  ;;  %v49_v12 = vld [vmem:[%s1643_s0 + $0x8] sm:$0xff]  ;;  %1044 = vmatprep.mubr.msk.bf16.mxu0 %vm121_vm2, %v1270_v10  ;;  %v50_v16 = vld [vmem:[%s1643_s0 + $0x10] sm:$0xff]  ;;  %vm318_vm3 = vcmask 261120   ;;  %vm946_vm4 = vcmask 281600  }
   0x4   :  { %v1097_v13 = vld [vmem:[%s1641_s3] sm:$0xff]   ;;  %v77_v14 = vpack.c.bf16 %v49_v12, %v48_v11  ;;  %v1286_v15 = vld [vmem:[%s1642_s1 + $0x8] sm:$0xff]   ;;  %v51_v17 = vld [vmem:[%s1643_s0 + $0x18] sm:$0xff] }
   0x5   :  { %1038 = vmatprep.subr.bf16.mxu0 %v139_v5  ;;  %1052 = vmatprep.subr.bf16.mxu1 %v234_v7  ;;  %v60_v18 = vld [vmem:[%s1642_s1 + $0x10] sm:$0xff]   ;;  %v52_v19 = vld [vmem:[%s1643_s0 + $0x20] sm:$0xff]  ;;  %v53_v20 = vld [vmem:[%s1643_s0 + $0x28] sm:$0xff]  ;;  %v78_v21 = vpack.c.bf16 %v51_v17, %v50_v16 }
   0x6   :  { %1039 = vmatpush3.bf16.msra.mxu0 %v139_v5  ;;  %1053 = vmatpush3.bf16.msra.mxu1 %v234_v7  ;;  %v79_v22 = vpack.c.bf16 %v53_v20, %v52_v19  ;;  %v1311_v23 = vld [vmem:[%s1642_s1 + $0x18] sm:$0xff]   ;;  %v54_v24 = vld [vmem:[%s1643_s0 + $0x30] sm:$0xff]  ;;  %v977_v29 = vld [vmem:[%s1644_s5] ss:$0 sm:$0xff] }
   0x7   :  { %1040 = vmatprep.subr.bf16.mxu0 %v1094_v6  ;;  %1054 = vmatprep.subr.bf16.mxu1 %v1095_v8  ;;  %v55_v25 = vld [vmem:[%s1643_s0 + $0x38] sm:$0xff] }
   0x8   :  { %1058 = vmatprep.mubr.msk.bf16.mxu1 %vm121_vm2, %v77_v14  ;;  %v80_v26 = vpack.c.bf16 %v55_v25, %v54_v24  ;;  %v1103_v24 = vld [vmem:[%s1645_s8] sm:$0xff]  }
   0xa   :  { %1041 = vmatpush3.bf16.msra.mxu0 %v1094_v6  ;;  %1055 = vmatpush3.bf16.msra.mxu1 %v1095_v8 }
   0xb   :  { %1042 = vmatprep.subr.bf16.mxu0 %v1096_v9  ;;  %1056 = vmatprep.subr.bf16.mxu1 %v1097_v13 }
   0xe   :  { %1043 = vmatpush3.bf16.msra.mxu0 %v1096_v9  ;;  %1057 = vmatpush3.bf16.msra.mxu1 %v1097_v13 }
  0x11   :  { %1045 = vmatmul.mubr.msk.bf16.vlgmr.msra.gmra.mxu0 %vm121_vm2, %v1286_v15  ;;  %1059 = vmatmul.mubr.msk.bf16.vlgmr.msra.gmra.mxu1 %vm121_vm2, %v78_v21 }
  0x12   :  { %1048 = vmatprep.mubr.msk.bf16.mxu0 %vm121_vm2, %v60_v18  ;;  %1062 = vmatprep.mubr.msk.bf16.mxu1 %vm121_vm2, %v79_v22  ;;  %v1102_v22 = vld [vmem:[%s1645_s8 + $0x8] sm:$0xff]  }
  0x13   :  { %1066 = vmatprep.subr.bf16.mxu0 %v1102_v22 }
  0x14   :  { %1067 = vmatpush3.bf16.msra.mxu0 %v1102_v22 }
  0x15   :  { %1068 = vmatprep.subr.bf16.mxu0 %v1103_v24 }
  0x18   :  { %1069 = vmatpush3.bf16.msra.mxu0 %v1103_v24 }
  0x19   :  { %1049 = vmatmul.mubr.msk.bf16.gmra.mxu0 %vm121_vm2, %v1311_v23  ;;  %1063 = vmatmul.mubr.msk.bf16.gmra.mxu1 %vm121_vm2, %v80_v26 }
  0xd1   :  { %v1046_v27 = vpop.f32.mrf.mxu0  ;;  %v1060_v28 = vpop.f32.mrf.mxu1 }
  0xd2   :  { %v279_v30 = vadd.f32 %v1060_v28, %v1046_v27 }
  0xd3   :  { %v175_v31 = vpop.f32.mrf.mxu0  ;;  %v270_v32 = vpop.f32.mrf.mxu1 }
  0xd4   :  { %v1326_v33 = vadd.f32 %v977_v29, %v279_v30  ;;  %v271_v34 = vadd.f32 %v270_v32, %v175_v31 }
  0xd5   :  { %v1047_v35 = vpop.f32.mrf.mxu0  ;;  %v1061_v36 = vpop.f32.mrf.mxu1 }
  0xd6   :  { %v1328_v37 = vadd.f32 %v977_v29, %v271_v34  ;;  %v282_v38 = vadd.f32 %v1061_v36, %v1047_v35  ;;  %v325_v40 = vsel %vm318_vm3, %v1326_v33, 0.0  ;;  %v354_v46 = vmul.f32 %v1326_v33, %v1326_v33 }
  0xd7   :  { %v178_v39 = vpop.f32.mrf.mxu0  ;;  %326 = vadd.xlane.f32.xlu1 %v325_v40  ;;  %v273_v41 = vpop.f32.mrf.mxu1 }
  0xd8   :  { %v1332_v42 = vadd.f32 %v977_v29, %v282_v38  ;;  %v274_v43 = vadd.f32 %v273_v41, %v178_v39  ;;  %v319_v44 = vsel %vm318_vm3, %v1328_v37, 0.0  ;;  %v366_v53 = vsel %vm318_vm3, %v354_v46, 0.0 }
  0xd9   :  { %v1050_v45 = vpop.f32.mrf.mxu0  ;;  %320 = vadd.xlane.f32.xlu0 %v319_v44  ;;  %v1064_v47 = vpop.f32.mrf.mxu1  ;;  %v352_v55 = vmul.f32 %v1328_v37, %v1328_v37 }
  0xda   :  { %v1338_v48 = vadd.f32 %v977_v29, %v274_v43  ;;  %v328_v49 = vsel %vm318_vm3, %v1332_v42, 0.0  ;;  %v355_v51 = vmul.f32 %v1332_v42, %v1332_v42  ;;  %v295_v57 = vadd.f32 %v1064_v47, %v1050_v45 }
  0xdb   :  { %v191_v50 = vpop.f32.mrf.mxu0  ;;  %329 = vadd.xlane.f32.xlu1 %v328_v49  ;;  %v286_v52 = vpop.f32.mrf.mxu1  ;;  %v360_v0 = vsel %vm318_vm3, %v352_v55, 0.0 }
  0xdc   :  { %v369_v58 = vsel %vm318_vm3, %v355_v51, 0.0  ;;  %v353_v60 = vmul.f32 %v1338_v48, %v1338_v48  ;;  %v1353_v1 = vadd.f32 %v977_v29, %v295_v57  ;;  %v287_v4 = vadd.f32 %v286_v52, %v191_v50 }
  0xdd   :  { %v1051_v54 = vpop.f32.mrf.mxu0  ;;  %367 = vadd.xlane.f32.xlu0 %v366_v53  ;;  %v1065_v56 = vpop.f32.mrf.mxu1  ;;  %v322_v5 = vsel %vm318_vm3, %v1338_v48, 0.0 }
  0xde   :  { %v298_v59 = vadd.f32 %v1065_v56, %v1051_v54  ;;  %v363_v3 = vsel %vm318_vm3, %v353_v60, 0.0  ;;  %v337_v8 = vsel %vm318_vm3, %v1353_v1, 0.0  ;;  %v1364_v9 = vadd.f32 %v977_v29, %v287_v4 }
  0xdf   :  { %370 = vadd.xlane.f32.xlu1 %v369_v58  ;;  %v194_v61 = vpop.f32.mrf.mxu0  ;;  %v289_v62 = vpop.f32.mrf.mxu1  ;;  %v358_v19 = vmul.f32 %v1353_v1, %v1353_v1 }
  0xe0   :  { %v1350_v63 = vadd.f32 %v977_v29, %v298_v59  ;;  %v290_v2 = vadd.f32 %v289_v62, %v194_v61  ;;  %v331_v13 = vsel %vm318_vm3, %v1364_v9, 0.0  ;;  %v356_v14 = vmul.f32 %v1364_v9, %v1364_v9 }
  0xe1   :  { %361 = vadd.xlane.f32.xlu0 %v360_v0  ;;  %v378_v21 = vsel %vm318_vm3, %v358_v19, 0.0 }
  0xe2   :  { %v340_v6 = vsel %vm318_vm3, %v1350_v63, 0.0  ;;  %v1360_v7 = vadd.f32 %v977_v29, %v290_v2  ;;  %v359_v17 = vmul.f32 %v1350_v63, %v1350_v63  ;;  %v372_v18 = vsel %vm318_vm3, %v356_v14, 0.0 }
  0xe3   :  { %364 = vadd.xlane.f32.xlu1 %v363_v3 }
  0xe4   :  { %v334_v11 = vsel %vm318_vm3, %v1360_v7, 0.0  ;;  %v357_v12 = vmul.f32 %v1360_v7, %v1360_v7  ;;  %v381_v20 = vsel %vm318_vm3, %v359_v17, 0.0 }
  0xe5   :  { %323 = vadd.xlane.f32.xlu0 %v322_v5 }
  0xe6   :  { %v375_v16 = vsel %vm318_vm3, %v357_v12, 0.0 }
  0xe7   :  { %341 = vadd.xlane.f32.xlu1 %v340_v6 }
  0xe9   :  { %338 = vadd.xlane.f32.xlu0 %v337_v8 }
  0xeb   :  { %335 = vadd.xlane.f32.xlu1 %v334_v11 }
  0xed   :  { %332 = vadd.xlane.f32.xlu0 %v331_v13 }
  0xef   :  { %376 = vadd.xlane.f32.xlu1 %v375_v16 }
  0xf1   :  { %373 = vadd.xlane.f32.xlu0 %v372_v18 }
  0xf3   :  { %382 = vadd.xlane.f32.xlu1 %v381_v20 }
  0xf5   :  { %379 = vadd.xlane.f32.xlu0 %v378_v21 }
 0x160   :  { %v327_v25 = vpop.xlane.xlu1 %326 }
 0x161   :  { %v1388_v27 = vmul.f32 0.03125, %v327_v25 }
 0x162   :  { %v321_v26 = vpop.xlane.xlu0 %320 }
 0x163   :  { %v394_v31 = vmul.f32 %v1388_v27, %v1388_v27  ;;  %v1392_v32 = vmul.f32 0.03125, %v321_v26 }
 0x164   :  { %v330_v28 = vpop.xlane.xlu1 %329 }
 0x165   :  { %v347_v29 = vmul.f32 0.03125, %v330_v28  ;;  %v392_v41 = vmul.f32 %v1392_v32, %v1392_v32 }
 0x166   :  { %v368_v30 = vpop.xlane.xlu0 %367 }
 0x167   :  { %v386_v34 = vmul.f32 0.03125, %v368_v30  ;;  %v395_v36 = vmul.f32 %v347_v29, %v347_v29  ;;  %v435_v19 = vsub.f32 %v1332_v42, %v347_v29  ;;  %v432_v30 = vsub.f32 %v1328_v37, %v1392_v32 }
 0x168   :  { %v371_v35 = vpop.xlane.xlu1 %370 }
 0x169   :  { %v402_v38 = vsub.f32 %v386_v34, %v394_v31  ;;  %v387_v39 = vmul.f32 0.03125, %v371_v35 }
 0x16a   :  { %v362_v40 = vpop.xlane.xlu0 %361 }
 0x16b   :  { %v410_v43 = vmax.f32 %v402_v38, 0.0  ;;  %v403_v44 = vsub.f32 %v387_v39, %v395_v36  ;;  %v384_v45 = vmul.f32 0.03125, %v362_v40  ;;  %v434_v38 = vsub.f32 %v1326_v33, %v1388_v27 }
 0x16c   :  { %v365_v46 = vpop.xlane.xlu1 %364 }
 0x16d   :  { %v411_v47 = vmax.f32 %v403_v44, 0.0  ;;  %v400_v49 = vsub.f32 %v384_v45, %v392_v41  ;;  %v418_v50 = vadd.f32 1e-05, %v410_v43  ;;  %v385_v57 = vmul.f32 0.03125, %v365_v46  ;;  %v978_v41 = vld [vmem:[%s1646_s6] ss:$0 sm:$0xff] }
 0x16e   :  { %v324_v51 = vpop.xlane.xlu0 %323 }
 0x16f   :  { %v419_v52 = vadd.f32 1e-05, %v411_v47  ;;  %v408_v53 = vmax.f32 %v400_v49, 0.0  ;;  %v1396_v54 = vmul.f32 0.03125, %v324_v51 }
 0x170   :  { %v342_v55 = vpop.xlane.xlu1 %341 }
 0x171   :  { %1110 = vrsqrt.f32 %v419_v52  ;;  %v416_v56 = vadd.f32 1e-05, %v408_v53  ;;  %v393_v58 = vmul.f32 %v1396_v54, %v1396_v54  ;;  %v1406_v11 = vmul.f32 0.03125, %v342_v55 }
 0x172   :  { %1112 = vrsqrt.f32 %v418_v50  ;;  %v339_v59 = vpop.xlane.xlu0 %338  ;;  %v433_v27 = vsub.f32 %v1338_v48, %v1396_v54  ;;  %v979_v50 = vld [vmem:[%s1647_s7] ss:$0 sm:$0xff] }
 0x173   :  { %1114 = vrsqrt.f32 %v416_v56  ;;  %v401_v60 = vsub.f32 %v385_v57, %v393_v58  ;;  %v1410_v17 = vmul.f32 0.03125, %v339_v59  ;;  %v399_v25 = vmul.f32 %v1406_v11, %v1406_v11 }
 0x174   :  { %v336_v61 = vpop.xlane.xlu1 %335 }
 0x175   :  { %v409_v62 = vmax.f32 %v401_v60, 0.0  ;;  %v1400_v0 = vmul.f32 0.03125, %v336_v61  ;;  %v398_v42 = vmul.f32 %v1410_v17, %v1410_v17 }
 0x176   :  { %v333_v2 = vpop.xlane.xlu0 %332 }
 0x177   :  { %v417_v3 = vadd.f32 1e-05, %v409_v62  ;;  %v1402_v4 = vmul.f32 0.03125, %v333_v2  ;;  %v397_v6 = vmul.f32 %v1400_v0, %v1400_v0  ;;  %v437_v48 = vsub.f32 %v1360_v7, %v1400_v0 }
 0x178   :  { %v377_v5 = vpop.xlane.xlu1 %376 }
 0x179   :  { %1116 = vrsqrt.f32 %v417_v3  ;;  %v389_v8 = vmul.f32 0.03125, %v377_v5  ;;  %v396_v13 = vmul.f32 %v1402_v4, %v1402_v4  ;;  %v436_v61 = vsub.f32 %v1364_v9, %v1402_v4 }
 0x17a   :  { %v374_v12 = vpop.xlane.xlu0 %373  ;;  %v439_v3 = vsub.f32 %v1350_v63, %v1406_v11 }
 0x17b   :  { %v405_v14 = vsub.f32 %v389_v8, %v397_v6  ;;  %v388_v16 = vmul.f32 0.03125, %v374_v12  ;;  %v438_v12 = vsub.f32 %v1353_v1, %v1410_v17 }
 0x17c   :  { %v383_v18 = vpop.xlane.xlu1 %382 }
 0x17d   :  { %v413_v20 = vmax.f32 %v405_v14, 0.0  ;;  %v404_v21 = vsub.f32 %v388_v16, %v396_v13  ;;  %v391_v22 = vmul.f32 0.03125, %v383_v18 }
 0x17e   :  { %v1111_v24 = vpop.eup %1110  ;;  %v380_v26 = vpop.xlane.xlu0 %379 }
 0x17f   :  { %v1113_v28 = vpop.eup %1112  ;;  %v443_v31 = vmul.f32 %v1111_v24, %v435_v19  ;;  %v421_v34 = vadd.f32 1e-05, %v413_v20  ;;  %v412_v35 = vmax.f32 %v404_v21, 0.0  ;;  %v407_v29 = vsub.f32 %v391_v22, %v399_v25 }
 0x180   :  { %v1115_v36 = vpop.eup %1114  ;;  %v390_v39 = vmul.f32 0.03125, %v380_v26  ;;  %v442_v43 = vmul.f32 %v1113_v28, %v434_v38 }
 0x181   :  { %v440_v40 = vmul.f32 %v1115_v36, %v432_v30  ;;  %1118 = vrsqrt.f32 %v421_v34  ;;  %v420_v37 = vadd.f32 1e-05, %v412_v35  ;;  %v415_v32 = vmax.f32 %v407_v29, 0.0 }
 0x182   :  { %v406_v44 = vsub.f32 %v390_v39, %v398_v42  ;;  %v457_v45 = vmul.f32 %v978_v41, %v443_v31  ;;  %v456_v51 = vmul.f32 %v978_v41, %v442_v43  ;;  %v980_v31 = vld [vmem:[%s1648_s9] ss:$0 sm:$0xff] }
 0x183   :  { %v454_v46 = vmul.f32 %v978_v41, %v440_v40  ;;  %1120 = vrsqrt.f32 %v420_v37  ;;  %v423_v47 = vadd.f32 1e-05, %v415_v32 }
 0x184   :  { %v414_v33 = vmax.f32 %v406_v44, 0.0  ;;  %v471_v53 = vadd.f32 %v979_v50, %v457_v45  ;;  %v470_v58 = vadd.f32 %v979_v50, %v456_v51 }
 0x185   :  { %1122 = vrsqrt.f32 %v423_v47  ;;  %v468_v56 = vadd.f32 %v979_v50, %v454_v46 }
 0x186   :  { %v1117_v49 = vpop.eup %1116  ;;  %v422_v52 = vadd.f32 1e-05, %v414_v33 }
 0x187   :  { %v441_v55 = vmul.f32 %v1117_v49, %v433_v27 }
 0x188   :  { %1124 = vrsqrt.f32 %v422_v52 }
 0x189   :  { %v455_v57 = vmul.f32 %v978_v41, %v441_v55  ;;  %1126 = vtanh.f32 %v471_v53 }
 0x18a   :  { %1128 = vtanh.f32 %v468_v56 }
 0x18b   :  { %v469_v59 = vadd.f32 %v979_v50, %v455_v57 }
 0x18d   :  { %1130 = vtanh.f32 %v469_v59 }
 0x18e   :  { %v1119_v54 = vpop.eup %1118  ;;  %1132 = vtanh.f32 %v470_v58 }
 0x18f   :  { %v445_v60 = vmul.f32 %v1119_v54, %v437_v48 }
 0x190   :  { %v1121_v62 = vpop.eup %1120 }
 0x191   :  { %v459_v2 = vmul.f32 %v978_v41, %v445_v60  ;;  %v444_v5 = vmul.f32 %v1121_v62, %v436_v61 }
 0x192   :  { %v1123_v6 = vpop.eup %1122 }
 0x193   :  { %v473_v8 = vadd.f32 %v979_v50, %v459_v2  ;;  %v458_v13 = vmul.f32 %v978_v41, %v444_v5  ;;  %v447_v14 = vmul.f32 %v1123_v6, %v439_v3 }
 0x195   :  { %v1125_v7 = vpop.eup %1124  ;;  %v461_v0 = vmul.f32 %v978_v41, %v447_v14  ;;  %v472_v18 = vadd.f32 %v979_v50, %v458_v13  ;;  %1134 = vtanh.f32 %v473_v8  ;;  %v1104_v14 = vld [vmem:[%s1649_s12 + $0x8] sm:$0xff]  }
 0x196   :  { %v446_v16 = vmul.f32 %v1125_v7, %v438_v12  ;;  %v1127_v19 = vpop.eup %1126  ;;  %1078 = vmatprep.subr.bf16.mxu1 %v1104_v14  ;;  %v1105_v7 = vld [vmem:[%s1649_s12] sm:$0xff]  }
 0x197   :  { %1136 = vtanh.f32 %v472_v18  ;;  %v475_v4 = vadd.f32 %v979_v50, %v461_v0  ;;  %v1129_v20 = vpop.eup %1128  ;;  %1079 = vmatpush3.bf16.msra.mxu1 %v1104_v14  ;;  %v65_v0 = vld [vmem:[%s1650_s2 + $0x8] sm:$0xff]  ;;  %v66_v18 = vld [vmem:[%s1650_s2 + $0x10] sm:$0xff] }
 0x198   :  { %v460_v9 = vmul.f32 %v978_v41, %v446_v16  ;;  %1080 = vmatprep.subr.bf16.mxu1 %v1105_v7  ;;  %v64_v16 = vld [vmem:[%s1650_s2] sm:$0xff] }
 0x199   :  { %1138 = vtanh.f32 %v475_v4  ;;  %v70_v4 = vld [vmem:[%s1650_s2 + $0x30] sm:$0xff] }
 0x19a   :  { %v1131_v21 = vpop.eup %1130  ;;  %v474_v63 = vadd.f32 %v979_v50, %v460_v9  ;;  %v67_v9 = vld [vmem:[%s1650_s2 + $0x18] sm:$0xff] }
 0x19b   :  { %v1133_v11 = vpop.eup %1132  ;;  %v489_v22 = vpack.c.bf16 %v1131_v21, %v1129_v20  ;;  %1081 = vmatpush3.bf16.msra.mxu1 %v1105_v7  ;;  %v69_v20 = vld [vmem:[%s1650_s2 + $0x28] sm:$0xff]  ;;  %v71_v21 = vld [vmem:[%s1650_s2 + $0x38] sm:$0xff] }
 0x19c   :  { %v490_v24 = vpack.c.bf16 %v1127_v19, %v1133_v11  ;;  %1140 = vtanh.f32 %v474_v63  ;;  %v68_v19 = vld [vmem:[%s1650_s2 + $0x20] sm:$0xff] }
 0x19d   :  { %1070 = vmatprep.mubr.msk.bf16.mxu0 %vm318_vm3, %v489_v22 }
 0x19e   :  { %1071 = vmatmul.mubr.msk.bf16.vlgmr.msra.gmra.mxu0 %vm318_vm3, %v490_v24 }
 0x1a2   :  { %v1135_v1 = vpop.eup %1134 }
 0x1a4   :  { %v1137_v17 = vpop.eup %1136 }
 0x1a5   :  { %v491_v25 = vpack.c.bf16 %v1135_v1, %v1137_v17 }
 0x1a6   :  { %v1139_v26 = vpop.eup %1138 }
 0x1a7   :  { %1074 = vmatprep.mubr.msk.bf16.mxu0 %vm318_vm3, %v491_v25 }
 0x1a9   :  { %v1141_v28 = vpop.eup %1140 }
 0x1aa   :  { %v492_v30 = vpack.c.bf16 %v1139_v26, %v1141_v28 }
 0x1ac   :  { %1075 = vmatmul.mubr.msk.bf16.gmra.mxu0 %vm318_vm3, %v492_v30 }
 0x25e   :  { %v1072_v34 = vpop.f32.mrf.mxu0 }
 0x25f   :  { %v1444_v35 = vadd.f32 %v1072_v34, %v980_v31 }
 0x260   :  { %v557_v36 = vpop.f32.mrf.mxu0 }
 0x261   :  { %v1446_v38 = vadd.f32 %v980_v31, %v557_v36  ;;  %v596_v42 = vsel %vm318_vm3, %v1444_v35, 0.0  ;;  %v624_v32 = vmul.f32 %v1444_v35, %v1444_v35 }
 0x262   :  { %597 = vadd.xlane.f32.xlu0 %v596_v42  ;;  %v1073_v29 = vpop.f32.mrf.mxu0 }
 0x263   :  { %v1450_v39 = vadd.f32 %v1073_v29, %v980_v31  ;;  %v590_v37 = vsel %vm318_vm3, %v1446_v38, 0.0  ;;  %v636_v45 = vsel %vm318_vm3, %v624_v32, 0.0  ;;  %v622_v47 = vmul.f32 %v1446_v38, %v1446_v38 }
 0x264   :  { %v560_v40 = vpop.f32.mrf.mxu0 }
 0x265   :  { %v1452_v41 = vadd.f32 %v980_v31, %v560_v40  ;;  %v599_v43 = vsel %vm318_vm3, %v1450_v39, 0.0  ;;  %v625_v46 = vmul.f32 %v1450_v39, %v1450_v39  ;;  %v630_v50 = vsel %vm318_vm3, %v622_v47, 0.0 }
 0x266   :  { %600 = vadd.xlane.f32.xlu1 %v599_v43  ;;  %591 = vadd.xlane.f32.xlu0 %v590_v37 }
 0x267   :  { %v593_v44 = vsel %vm318_vm3, %v1452_v41, 0.0  ;;  %v639_v49 = vsel %vm318_vm3, %v625_v46, 0.0  ;;  %v623_v51 = vmul.f32 %v1452_v41, %v1452_v41 }
 0x269   :  { %v633_v57 = vsel %vm318_vm3, %v623_v51, 0.0 }
 0x26a   :  { %594 = vadd.xlane.f32.xlu1 %v593_v44  ;;  %637 = vadd.xlane.f32.xlu0 %v636_v45 }
 0x26c   :  { %v1076_v33 = vpop.f32.mrf.mxu0 }
 0x26d   :  { %v1467_v27 = vadd.f32 %v1076_v33, %v980_v31 }
 0x26e   :  { %v573_v52 = vpop.f32.mrf.mxu0  ;;  %640 = vadd.xlane.f32.xlu1 %v639_v49  ;;  %631 = vadd.xlane.f32.xlu0 %v630_v50 }
 0x26f   :  { %v1473_v55 = vadd.f32 %v980_v31, %v573_v52  ;;  %v608_v58 = vsel %vm318_vm3, %v1467_v27, 0.0  ;;  %v628_v5 = vmul.f32 %v1467_v27, %v1467_v27 }
 0x270   :  { %v1077_v53 = vpop.f32.mrf.mxu0 }
 0x271   :  { %v1475_v56 = vadd.f32 %v1077_v53, %v980_v31  ;;  %v602_v60 = vsel %vm318_vm3, %v1473_v55, 0.0  ;;  %v626_v61 = vmul.f32 %v1473_v55, %v1473_v55  ;;  %v648_v8 = vsel %vm318_vm3, %v628_v5, 0.0 }
 0x272   :  { %v576_v59 = vpop.f32.mrf.mxu0  ;;  %634 = vadd.xlane.f32.xlu1 %v633_v57  ;;  %609 = vadd.xlane.f32.xlu0 %v608_v58 }
 0x273   :  { %v1480_v48 = vadd.f32 %v980_v31, %v576_v59  ;;  %v611_v54 = vsel %vm318_vm3, %v1475_v56, 0.0  ;;  %v642_v2 = vsel %vm318_vm3, %v626_v61, 0.0  ;;  %v629_v12 = vmul.f32 %v1475_v56, %v1475_v56 }
 0x275   :  { %v605_v62 = vsel %vm318_vm3, %v1480_v48, 0.0  ;;  %v627_v3 = vmul.f32 %v1480_v48, %v1480_v48  ;;  %v651_v13 = vsel %vm318_vm3, %v629_v12, 0.0 }
 0x276   :  { %612 = vadd.xlane.f32.xlu1 %v611_v54  ;;  %603 = vadd.xlane.f32.xlu0 %v602_v60 }
 0x277   :  { %v645_v6 = vsel %vm318_vm3, %v627_v3, 0.0 }
 0x27a   :  { %606 = vadd.xlane.f32.xlu1 %v605_v62  ;;  %643 = vadd.xlane.f32.xlu0 %v642_v2 }
 0x27e   :  { %646 = vadd.xlane.f32.xlu1 %v645_v6  ;;  %649 = vadd.xlane.f32.xlu0 %v648_v8 }
 0x282   :  { %652 = vadd.xlane.f32.xlu1 %v651_v13 }
 0x293   :  { %876 = vrot.lane.b32.xlu1 %v65_v0, %s1176_s27 }
 0x294   :  { %874 = vrot.lane.b32.xlu0 %v64_v16, %s1176_s27 }
 0x297   :  { %878 = vrot.lane.b32.xlu1 %v66_v18, %s1176_s27 }
 0x298   :  { %882 = vrot.lane.b32.xlu0 %v68_v19, %s1176_s27 }
 0x29b   :  { %880 = vrot.lane.b32.xlu1 %v67_v9, %s1176_s27 }
 0x29c   :  { %886 = vrot.lane.b32.xlu0 %v70_v4, %s1176_s27 }
 0x29f   :  { %884 = vrot.lane.b32.xlu1 %v69_v20, %s1176_s27 }
 0x2a3   :  { %888 = vrot.lane.b32.xlu1 %v71_v21, %s1176_s27 }
 0x2eb   :  { %v598_v63 = vpop.xlane.xlu0 %597 }
 0x2ec   :  { %v1530_v24 = vmul.f32 0.03125, %v598_v63 }
 0x2ee   :  { %v664_v28 = vmul.f32 %v1530_v24, %v1530_v24 }
 0x2ef   :  { %v601_v11 = vpop.xlane.xlu1 %600  ;;  %v592_v22 = vpop.xlane.xlu0 %591 }
 0x2f0   :  { %v1532_v1 = vmul.f32 0.03125, %v601_v11  ;;  %v1534_v17 = vmul.f32 0.03125, %v592_v22  ;;  %v704_v22 = vsub.f32 %v1444_v35, %v1530_v24  ;;  %v987_v35 = vld [vmem:[%s1651_s10] ss:$0 sm:$0xff] }
 0x2f2   :  { %v665_v34 = vmul.f32 %v1532_v1, %v1532_v1  ;;  %v662_v36 = vmul.f32 %v1534_v17, %v1534_v17 }
 0x2f3   :  { %v595_v25 = vpop.xlane.xlu1 %594  ;;  %v638_v26 = vpop.xlane.xlu0 %637 }
 0x2f4   :  { %v656_v30 = vmul.f32 0.03125, %v638_v26  ;;  %v1542_v40 = vmul.f32 0.03125, %v595_v25  ;;  %v705_v26 = vsub.f32 %v1450_v39, %v1532_v1 }
 0x2f6   :  { %v672_v31 = vsub.f32 %v656_v30, %v664_v28  ;;  %v663_v49 = vmul.f32 %v1542_v40, %v1542_v40 }
 0x2f7   :  { %v641_v42 = vpop.xlane.xlu1 %640  ;;  %v632_v29 = vpop.xlane.xlu0 %631 }
 0x2f8   :  { %v680_v43 = vmax.f32 %v672_v31, 0.0  ;;  %v657_v37 = vmul.f32 0.03125, %v641_v42  ;;  %v654_v32 = vmul.f32 0.03125, %v632_v29 }
 0x2fa   :  { %v688_v44 = vadd.f32 1e-05, %v680_v43  ;;  %v673_v45 = vsub.f32 %v657_v37, %v665_v34  ;;  %v670_v46 = vsub.f32 %v654_v32, %v662_v36  ;;  %v702_v34 = vsub.f32 %v1446_v38, %v1534_v17  ;;  %v988_v17 = vld [vmem:[%s1652_s11] ss:$0 sm:$0xff] }
 0x2fb   :  { %v635_v47 = vpop.xlane.xlu1 %634  ;;  %v610_v33 = vpop.xlane.xlu0 %609 }
 0x2fc   :  { %v681_v50 = vmax.f32 %v673_v45, 0.0  ;;  %v678_v51 = vmax.f32 %v670_v46, 0.0  ;;  %v655_v52 = vmul.f32 0.03125, %v635_v47  ;;  %1142 = vrsqrt.f32 %v688_v44 }
 0x2fd   :  { %v1548_v2 = vmul.f32 0.03125, %v610_v33  ;;  %v703_v44 = vsub.f32 %v1452_v41, %v1542_v40 }
 0x2fe   :  { %v689_v53 = vadd.f32 1e-05, %v681_v50  ;;  %v686_v57 = vadd.f32 1e-05, %v678_v51  ;;  %v671_v58 = vsub.f32 %v655_v52, %v663_v49 }
 0x2ff   :  { %v613_v59 = vpop.xlane.xlu1 %612  ;;  %v604_v54 = vpop.xlane.xlu0 %603  ;;  %v668_v14 = vmul.f32 %v1548_v2, %v1548_v2 }
 0x300   :  { %1144 = vrsqrt.f32 %v689_v53  ;;  %v679_v60 = vmax.f32 %v671_v58, 0.0  ;;  %v1546_v61 = vmul.f32 0.03125, %v604_v54  ;;  %v1558_v4 = vmul.f32 0.03125, %v613_v59 }
 0x301   :  { %1146 = vrsqrt.f32 %v686_v57 }
 0x302   :  { %v687_v62 = vadd.f32 1e-05, %v679_v60  ;;  %v666_v6 = vmul.f32 %v1546_v61, %v1546_v61  ;;  %v669_v42 = vmul.f32 %v1558_v4, %v1558_v4  ;;  %v706_v40 = vsub.f32 %v1473_v55, %v1546_v61 }
 0x303   :  { %v607_v3 = vpop.xlane.xlu1 %606  ;;  %v644_v5 = vpop.xlane.xlu0 %643 }
 0x304   :  { %1148 = vrsqrt.f32 %v687_v62  ;;  %v1552_v8 = vmul.f32 0.03125, %v607_v3  ;;  %v658_v12 = vmul.f32 0.03125, %v644_v5  ;;  %v708_v3 = vsub.f32 %v1467_v27, %v1548_v2 }
 0x306   :  { %v674_v13 = vsub.f32 %v658_v12, %v666_v6  ;;  %v667_v16 = vmul.f32 %v1552_v8, %v1552_v8  ;;  %v707_v60 = vsub.f32 %v1480_v48, %v1552_v8 }
 0x307   :  { %v647_v7 = vpop.xlane.xlu1 %646  ;;  %v650_v0 = vpop.xlane.xlu0 %649 }
 0x308   :  { %v682_v18 = vmax.f32 %v674_v13, 0.0  ;;  %v659_v19 = vmul.f32 0.03125, %v647_v7  ;;  %v660_v9 = vmul.f32 0.03125, %v650_v0 }
 0x309   :  { %v1143_v20 = vpop.eup %1142 }
 0x30a   :  { %v690_v21 = vadd.f32 1e-05, %v682_v18  ;;  %v675_v63 = vsub.f32 %v659_v19, %v667_v16  ;;  %v676_v11 = vsub.f32 %v660_v9, %v668_v14  ;;  %v712_v36 = vmul.f32 %v1143_v20, %v704_v22 }
 0x30b   :  { %v653_v25 = vpop.xlane.xlu1 %652  ;;  %v709_v14 = vsub.f32 %v1475_v56, %v1558_v4 }
 0x30c   :  { %1150 = vrsqrt.f32 %v690_v21  ;;  %v683_v28 = vmax.f32 %v675_v63, 0.0  ;;  %v684_v30 = vmax.f32 %v676_v11, 0.0  ;;  %v661_v29 = vmul.f32 0.03125, %v653_v25 }
 0x30d   :  { %v1145_v31 = vpop.eup %1144  ;;  %v726_v46 = vmul.f32 %v987_v35, %v712_v36 }
 0x30e   :  { %v1147_v43 = vpop.eup %1146  ;;  %v713_v24 = vmul.f32 %v1145_v31, %v705_v26  ;;  %v691_v37 = vadd.f32 1e-05, %v683_v28  ;;  %v692_v39 = vadd.f32 1e-05, %v684_v30  ;;  %v677_v32 = vsub.f32 %v661_v29, %v669_v42  ;;  %v989_v28 = vld [vmem:[%s1653_s13] ss:$0 sm:$0xff] }
 0x30f   :  { %v710_v1 = vmul.f32 %v1147_v43, %v702_v34  ;;  %v740_v57 = vadd.f32 %v988_v17, %v726_v46  ;;  %v877_v26 = vpop.permute.xlu1 %876  ;;  %v860_v34 = vunpack.c.l.bf16 %v1286_v15  ;;  %v858_v42 = vunpack.c.l.bf16 %v1270_v10  ;;  %v875_v43 = vpop.permute.xlu0 %874 }
 0x310   :  { %v727_v45 = vmul.f32 %v987_v35, %v713_v24  ;;  %1152 = vrsqrt.f32 %v691_v37  ;;  %v685_v33 = vmax.f32 %v677_v32, 0.0 }
 0x311   :  { %v1149_v38 = vpop.eup %1148  ;;  %v724_v47 = vmul.f32 %v987_v35, %v710_v1  ;;  %1154 = vrsqrt.f32 %v692_v39  ;;  %v861_v1 = vunpack.c.h.bf16 %v1286_v15 }
 0x312   :  { %v741_v49 = vadd.f32 %v988_v17, %v727_v45  ;;  %v711_v50 = vmul.f32 %v1149_v38, %v703_v44  ;;  %v693_v51 = vadd.f32 1e-05, %v685_v33  ;;  %v859_v38 = vunpack.c.h.bf16 %v1270_v10 }
 0x313   :  { %v738_v52 = vadd.f32 %v988_v17, %v724_v47  ;;  %v879_v30 = vpop.permute.xlu1 %878 }
 0x314   :  { %v725_v53 = vmul.f32 %v987_v35, %v711_v50  ;;  %1156 = vrsqrt.f32 %v693_v51 }
 0x315   :  { %1158 = vtanh.f32 %v741_v49 }
 0x316   :  { %v739_v41 = vadd.f32 %v988_v17, %v725_v53  ;;  %1160 = vtanh.f32 %v738_v52  ;;  %v883_v53 = vpop.permute.xlu0 %882 }
 0x317   :  { %v881_v32 = vpop.permute.xlu1 %880 }
 0x318   :  { %1162 = vtanh.f32 %v739_v41 }
 0x319   :  { %v1151_v58 = vpop.eup %1150  ;;  %1164 = vtanh.f32 %v740_v57 }
 0x31a   :  { %v714_v59 = vmul.f32 %v1151_v58, %v706_v40  ;;  %v864_v58 = vunpack.c.l.bf16 %v1311_v23 }
 0x31b   :  { %v885_v41 = vpop.permute.xlu1 %884 }
 0x31c   :  { %v728_v54 = vmul.f32 %v987_v35, %v714_v59  ;;  %v887_v59 = vpop.permute.xlu0 %886 }
 0x31d   :  { %v1153_v62 = vpop.eup %1152 }
 0x31e   :  { %v1155_v5 = vpop.eup %1154  ;;  %v715_v6 = vmul.f32 %v1153_v62, %v707_v60  ;;  %v742_v13 = vadd.f32 %v988_v17, %v728_v54  ;;  %v1174_v62 = vld [vmem:[%s1642_s1 + $0x10] sm:$0xff]  }
 0x31f   :  { %v716_v12 = vmul.f32 %v1155_v5, %v708_v3  ;;  %v862_v3 = vunpack.c.l.bf16 %v1174_v62 }
 0x320   :  { %v729_v55 = vmul.f32 %v987_v35, %v715_v6  ;;  %1166 = vtanh.f32 %v742_v13 }
 0x321   :  { %v1157_v61 = vpop.eup %1156  ;;  %v730_v7 = vmul.f32 %v987_v35, %v716_v12 }
 0x322   :  { %v1159_v0 = vpop.eup %1158  ;;  %v717_v16 = vmul.f32 %v1157_v61, %v709_v14  ;;  %v743_v18 = vadd.f32 %v988_v17, %v729_v55  ;;  %v865_v14 = vunpack.c.h.bf16 %v1311_v23  ;;  %v889_v55 = vpop.permute.xlu1 %888 }
 0x323   :  { %v1161_v19 = vpop.eup %1160  ;;  %v744_v48 = vadd.f32 %v988_v17, %v730_v7 }
 0x324   :  { %v731_v9 = vmul.f32 %v987_v35, %v717_v16  ;;  %1168 = vtanh.f32 %v743_v18 }
 0x325   :  { %v1163_v8 = vpop.eup %1162  ;;  %1170 = vtanh.f32 %v744_v48 }
 0x326   :  { %v1165_v27 = vpop.eup %1164  ;;  %v759_v2 = vpack.c.bf16 %v1163_v8, %v1161_v19  ;;  %v745_v21 = vadd.f32 %v988_v17, %v731_v9  ;;  %v863_v19 = vunpack.c.h.bf16 %v1174_v62 }
 0x327   :  { %v760_v20 = vpack.c.bf16 %v1159_v0, %v1165_v27 }
 0x328   :  { %1082 = vmatprep.mubr.msk.bf16.mxu1 %vm318_vm3, %v759_v2  ;;  %1172 = vtanh.f32 %v745_v21 }
 0x329   :  { %1083 = vmatmul.mubr.msk.bf16.vlgmr.msra.gmra.mxu1 %vm318_vm3, %v760_v20 }
 0x32d   :  { %v1167_v56 = vpop.eup %1166 }
 0x331   :  { %v1169_v4 = vpop.eup %1168 }
 0x332   :  { %v761_v63 = vpack.c.bf16 %v1169_v4, %v1167_v56  ;;  %v1171_v11 = vpop.eup %1170 }
 0x334   :  { %1086 = vmatprep.mubr.msk.bf16.mxu1 %vm318_vm3, %v761_v63 }
 0x335   :  { %v1173_v22 = vpop.eup %1172 }
 0x336   :  { %v762_v25 = vpack.c.bf16 %v1173_v22, %v1171_v11 }
 0x338   :  { %1087 = vmatmul.mubr.msk.bf16.gmra.mxu1 %vm318_vm3, %v762_v25 }
 0x3e9   :  { %v1084_v31 = vpop.f32.mrf.mxu1 }
 0x3ea   :  { %v836_v36 = vadd.f32 %v1084_v31, %v989_v28 }
 0x3eb   :  { %v827_v29 = vpop.f32.mrf.mxu1 }
 0x3ec   :  { %v900_v35 = vsel %vm318_vm3, %v836_v36, %v879_v30  ;;  %v828_v24 = vadd.f32 %v989_v28, %v827_v29 }
 0x3ed   :  { %v908_v37 = vadd.f32 %v900_v35, %v860_v34  ;;  %v1085_v39 = vpop.f32.mrf.mxu1 }
 0x3ee   :  { %v839_v44 = vadd.f32 %v1085_v39, %v989_v28  ;;  %v898_v45 = vsel %vm318_vm3, %v828_v24, %v875_v43 }
 0x3ef   :  { %v1006_v17 = vpack.c.bf16 %v908_v37, %v908_v37  ;;  %v906_v46 = vadd.f32 %v898_v45, %v858_v42  ;;  %v830_v47 = vpop.f32.mrf.mxu1 }
 0x3f0   :  { %v901_v33 = vsel %vm318_vm3, %v839_v44, %v881_v32  ;;  %v831_v49 = vadd.f32 %v989_v28, %v830_v47 }
 0x3f1   :  { %949 = vst.msk [vmem:[%s1654_s14 + $0x8] sm:$0xf] %vm946_vm4, %v1006_v17  ;;  %v1004_v50 = vpack.c.bf16 %v906_v46, %v906_v46  ;;  %v909_v15 = vadd.f32 %v901_v33, %v861_v1 }
 0x3f2   :  { %v899_v51 = vsel %vm318_vm3, %v831_v49, %v877_v26 }
 0x3f3   :  { %947 = vst.msk [vmem:[%s1654_s14] sm:$0xf] %vm946_vm4, %v1004_v50  ;;  %v1007_v10 = vpack.c.bf16 %v909_v15, %v909_v15  ;;  %v907_v52 = vadd.f32 %v899_v51, %v859_v38 }
 0x3f5   :  { %950 = vst.msk [vmem:[%s1654_s14 + $0xc] sm:$0xf] %vm946_vm4, %v1007_v10  ;;  %v1005_v57 = vpack.c.bf16 %v907_v52, %v907_v52 }
 0x3f7   :  { %948 = vst.msk [vmem:[%s1654_s14 + $0x4] sm:$0xf] %vm946_vm4, %v1005_v57 }
 0x3f8   :  { %v1088_v40 = vpop.f32.mrf.mxu1 }
 0x3f9   :  { %v852_v54 = vadd.f32 %v1088_v40, %v989_v28 }
 0x3fa   :  { %v843_v60 = vpop.f32.mrf.mxu1 }
 0x3fb   :  { %v844_v5 = vadd.f32 %v989_v28, %v843_v60  ;;  %v904_v6 = vsel %vm318_vm3, %v852_v54, %v887_v59 }
 0x3fc   :  { %v912_v12 = vadd.f32 %v904_v6, %v864_v58  ;;  %v1089_v13 = vpop.f32.mrf.mxu1 }
 0x3fd   :  { %v902_v61 = vsel %vm318_vm3, %v844_v5, %v883_v53  ;;  %v855_v7 = vadd.f32 %v1089_v13, %v989_v28 }
 0x3fe   :  { %v910_v0 = vadd.f32 %v902_v61, %v862_v3  ;;  %v1010_v16 = vpack.c.bf16 %v912_v12, %v912_v12  ;;  %v846_v18 = vpop.f32.mrf.mxu1 }
 0x3ff   :  { %v905_v48 = vsel %vm318_vm3, %v855_v7, %v889_v55  ;;  %v847_v8 = vadd.f32 %v989_v28, %v846_v18 }
 0x400   :  { %v1008_v9 = vpack.c.bf16 %v910_v0, %v910_v0  ;;  %953 = vst.msk [vmem:[%s1654_s14 + $0x18] sm:$0xf] %vm946_vm4, %v1010_v16  ;;  %v913_v27 = vadd.f32 %v905_v48, %v865_v14 }
 0x401   :  { %v903_v23 = vsel %vm318_vm3, %v847_v8, %v885_v41 }
 0x402   :  { %951 = vst.msk [vmem:[%s1654_s14 + $0x10] sm:$0xf] %vm946_vm4, %v1008_v9  ;;  %v1011_v2 = vpack.c.bf16 %v913_v27, %v913_v27  ;;  %v911_v20 = vadd.f32 %v903_v23, %v863_v19 }
 0x404   :  { %954 = vst.msk [vmem:[%s1654_s14 + $0x1c] sm:$0xf] %vm946_vm4, %v1011_v2  ;;  %v1009_v21 = vpack.c.bf16 %v911_v20, %v911_v20 }
 0x406   :  { %952 = vst.msk [vmem:[%s1654_s14 + $0x14] sm:$0xf] %vm946_vm4, %v1009_v21 }

// kernel: a_call__.11
= control target key start
LH: loop header
LB: loop body
LE: loop exit
PB: predicated region body
PF: predicated region fallthrough
CT: control target
= control target key end

     0   :  { %vm169_vm0 = vcmask 1040384   ;;  %vm170_vm1 = vcmask 1041408   ;;  %v2250_v0 = vmov 0.0   ;;  %v2251_v2 = vmov 65535   ;;  %s3324_s3 = inlined_call_operand.vmem [shape: bf16[35,35], index: 3, kind: input, shape index: {}]   ;;  %s3325_s1 = inlined_call_operand.vmem [shape: bf16[112,35], index: 1, kind: input, shape index: {}]   ;;  %s3326_s2 = inlined_call_operand.vmem [shape: bf16[35,35], index: 2, kind: input, shape index: {}]   ;;  %s3327_s0 = inlined_call_operand.vmem [shape: bf16[112,35], index: 0, kind: input, shape index: {}]   ;;  %s3328_s4 = inlined_call_operand.vmem [shape: f32[1,35], index: 4, kind: input, shape index: {}]   ;;  %s3329_s7 = inlined_call_operand.vmem [shape: bf16[35,35], index: 7, kind: input, shape index: {}]   ;;  %s3330_s5 = inlined_call_operand.vmem [shape: f32[1,35], index: 5, kind: input, shape index: {}, may-alias: {5,9,13}]   ;;  %s3331_s6 = inlined_call_operand.vmem [shape: f32[1,35], index: 6, kind: input, shape index: {}, may-alias: {6,10,14}]   ;;  %s3332_s11 = inlined_call_operand.vmem [shape: bf16[35,35], index: 11, kind: input, shape index: {}]   ;;  %s3333_s8 = inlined_call_operand.vmem [shape: f32[1,35], index: 8, kind: input, shape index: {}]   ;;  %s3334_s9 = inlined_call_operand.vmem [shape: f32[1,35], index: 9, kind: input, shape index: {}, may-alias: {5,9,13}]   ;;  %s3335_s10 = inlined_call_operand.vmem [shape: f32[1,35], index: 10, kind: input, shape index: {}, may-alias: {6,10,14}]   ;;  %s3336_s15 = inlined_call_operand.vmem [shape: bf16[35,1], index: 15, kind: input, shape index: {}]   ;;  %s3337_s12 = inlined_call_operand.vmem [shape: f32[1,35], index: 12, kind: input, shape index: {}]   ;;  %s3338_s16 = inlined_call_operand.<no memory space> [shape: f32[1,1], index: 16, kind: input, shape index: {}]   ;;  %s3339_s13 = inlined_call_operand.vmem [shape: f32[1,35], index: 13, kind: input, shape index: {}, may-alias: {5,9,13}]   ;;  %s3340_s14 = inlined_call_operand.vmem [shape: f32[1,35], index: 14, kind: input, shape index: {}, may-alias: {6,10,14}]   ;;  %s3341_s17 = inlined_call_operand.vmem [shape: f32[112,1], index: 17, kind: output, shape index: {}]  }
   0x1   :  { %3344 = sst [smem:[#allocation3_spill]] %s3324_s3  ;;  %2044 = vmatprep.subr.bf16.mxu1 %v2250_v0  ;;  %v171_v3 = vsel %vm169_vm0, 4294967295, %v2251_v2  ;;  %1874 = vmatprep.subr.bf16.mxu0 %v2250_v0  ;;  %vm2252_vm2 = vmmov 0   ;;  %v2057_v7 = vld [vmem:[%s3326_s2 + $0x10] ss:$0 sps:$4 sm:$0x33]  }
   0x2   :  { %3345 = sst [smem:[#allocation4_spill]] %s3325_s1  ;;  %v2348_v4 = vsel %vm170_vm1, %v171_v3, 0  ;;  %1896 = vmatprep.mubr.msk.bf16.mxu1 %vm2252_vm2, %v2250_v0  ;;  %1880 = vmatprep.mubr.msk.bf16.mxu0 %vm2252_vm2, %v2250_v0  ;;  %vm147_vm3 = vcmask 285696   ;;  %v2059_v12 = vld [vmem:[%s3326_s2 + $0x8] sm:$0xff]   ;;  %v2061_v15 = vld [vmem:[%s3326_s2] sm:$0xff]   ;;  %v2067_v21 = vld [vmem:[%s3327_s0 + $0x10] sm:$0xff]  }
   0x3   :  { %s3346_s26 = sld [smem:[#allocation3_spill]]  ;;  %v337_v11 = vand.u32 %v2057_v7, %v2348_v4  ;;  %v2063_v18 = vld [vmem:[%s3327_s0] sm:$0xff]   ;;  %v2065_v20 = vld [vmem:[%s3327_s0 + $0x8] sm:$0xff]   ;;  %v2069_v22 = vld [vmem:[%s3327_s0 + $0x18] sm:$0xff]   ;;  %vm1731_vm4 = vcmask 7168  }
   0x4   :  { %s3347_s20 = sld [smem:[#allocation4_spill]]  ;;  %v2070_v23 = vld [vmem:[%s3327_s0 + $0x20] sm:$0xff]   ;;  %v2071_v24 = vld [vmem:[%s3327_s0 + $0x28] sm:$0xff]   ;;  %v2072_v25 = vld [vmem:[%s3327_s0 + $0x30] sm:$0xff]  }
   0x5   :  { %v2479_v51 = vld [vmem:[%s3328_s4] ss:$0 sm:$0xff] }
   0x9   :  { %v2053_v1 = vld [vmem:[%s3346_s26 + $0x10] ss:$0 sps:$4 sm:$0x33]   ;;  %v2054_v6 = vld [vmem:[%s3346_s26 + $0x8] sm:$0xff]   ;;  %v2055_v8 = vld [vmem:[%s3346_s26] sm:$0xff]  }
   0xa   :  { %v174_v5 = vand.u32 %v2053_v1, %v2348_v4  ;;  %v2056_v9 = vld [vmem:[%s3347_s20 + $0x20] sm:$0xff]   ;;  %v2058_v13 = vld [vmem:[%s3347_s20 + $0x28] sm:$0xff]   ;;  %v2060_v16 = vld [vmem:[%s3347_s20 + $0x30] sm:$0xff]  }
   0xb   :  { %v2062_v10 = vld [vmem:[%s3347_s20] sm:$0xff]   ;;  %v2064_v14 = vld [vmem:[%s3347_s20 + $0x8] sm:$0xff]   ;;  %v2066_v17 = vld [vmem:[%s3347_s20 + $0x10] sm:$0xff]  }
   0xc   :  { %2047 = vmatpush3.bf16.msra.mxu1 %v174_v5  ;;  %1875 = vmatpush3.bf16.msra.mxu0 %v174_v5  ;;  %v2068_v19 = vld [vmem:[%s3347_s20 + $0x18] sm:$0xff]  }
   0xd   :  { %2045 = vmatprep.subr.bf16.mxu1 %v2250_v0  ;;  %1876 = vmatprep.subr.bf16.mxu0 %v2250_v0 }
  0x10   :  { %2048 = vmatpush3.bf16.msra.mxu1 %v2054_v6  ;;  %1877 = vmatpush3.bf16.msra.mxu0 %v2054_v6 }
  0x11   :  { %2046 = vmatprep.subr.bf16.mxu1 %v2250_v0  ;;  %1878 = vmatprep.subr.bf16.mxu0 %v2250_v0 }
  0x14   :  { %2049 = vmatpush3.bf16.msra.mxu1 %v2055_v8  ;;  %1879 = vmatpush3.bf16.msra.mxu0 %v2055_v8 }
  0x15   :  { %1908 = vmatprep.subr.bf16.mxu1 %v2250_v0  ;;  %1942 = vmatprep.subr.bf16.mxu0 %v2250_v0 }
  0x17   :  { %1897 = vmatmul.mubr.msk.bf16.vlgmr.msra.gmra.mxu1 %vm147_vm3, %v2056_v9  ;;  %1881 = vmatmul.mubr.msk.bf16.vlgmr.msra.gmra.mxu0 %vm147_vm3, %v2062_v10 }
  0x18   :  { %1909 = vmatpush3.bf16.msra.mxu1 %v337_v11  ;;  %1900 = vmatprep.mubr.msk.bf16.mxu1 %vm2252_vm2, %v2250_v0 }
  0x19   :  { %1910 = vmatprep.subr.bf16.mxu1 %v2250_v0  ;;  %1884 = vmatprep.mubr.msk.bf16.mxu0 %vm2252_vm2, %v2250_v0 }
  0x1c   :  { %1911 = vmatpush3.bf16.msra.mxu1 %v2059_v12 }
  0x1d   :  { %1912 = vmatprep.subr.bf16.mxu1 %v2250_v0 }
  0x1f   :  { %1901 = vmatmul.mubr.msk.bf16.gmra.mxu1 %vm147_vm3, %v2058_v13  ;;  %1885 = vmatmul.mubr.msk.bf16.gmra.mxu0 %vm147_vm3, %v2064_v14 }
  0x20   :  { %1904 = vmatprep.mubr.msk.bf16.mxu1 %vm2252_vm2, %v2250_v0  ;;  %1913 = vmatpush3.bf16.msra.mxu1 %v2061_v15 }
  0x21   :  { %1888 = vmatprep.mubr.msk.bf16.mxu0 %vm2252_vm2, %v2250_v0  ;;  %1976 = vmatprep.subr.bf16.mxu1 %v2250_v0 }
  0x27   :  { %1905 = vmatmul.mubr.msk.bf16.gmra.mxu1 %vm147_vm3, %v2060_v16  ;;  %1889 = vmatmul.mubr.msk.bf16.gmra.mxu0 %vm147_vm3, %v2066_v17 }
  0x28   :  { %1914 = vmatprep.mubr.msk.bf16.mxu1 %vm2252_vm2, %v2250_v0  ;;  %1892 = vmatprep.mubr.msk.bf16.mxu0 %vm2252_vm2, %v2250_v0 }
  0x2f   :  { %1915 = vmatmul.mubr.msk.bf16.vlgmr.msra.gmra.mxu1 %vm147_vm3, %v2063_v18  ;;  %1893 = vmatmul.mubr.msk.bf16.gmra.mxu0 %vm147_vm3, %v2068_v19 }
  0x30   :  { %1918 = vmatprep.mubr.msk.bf16.mxu1 %vm2252_vm2, %v2250_v0  ;;  %1948 = vmatprep.mubr.msk.bf16.mxu0 %vm2252_vm2, %v2250_v0 }
  0x37   :  { %1919 = vmatmul.mubr.msk.bf16.gmra.mxu1 %vm147_vm3, %v2065_v20 }
  0x38   :  { %1922 = vmatprep.mubr.msk.bf16.mxu1 %vm2252_vm2, %v2250_v0 }
  0x3f   :  { %1923 = vmatmul.mubr.msk.bf16.gmra.mxu1 %vm147_vm3, %v2067_v21 }
  0x40   :  { %1926 = vmatprep.mubr.msk.bf16.mxu1 %vm2252_vm2, %v2250_v0 }
  0x47   :  { %1927 = vmatmul.mubr.msk.bf16.gmra.mxu1 %vm147_vm3, %v2069_v22 }
  0x48   :  { %1930 = vmatprep.mubr.msk.bf16.mxu1 %vm2252_vm2, %v2250_v0 }
  0x4f   :  { %1931 = vmatmul.mubr.msk.bf16.gmra.mxu1 %vm147_vm3, %v2070_v23 }
  0x50   :  { %1934 = vmatprep.mubr.msk.bf16.mxu1 %vm2252_vm2, %v2250_v0 }
  0x57   :  { %1935 = vmatmul.mubr.msk.bf16.gmra.mxu1 %vm147_vm3, %v2071_v24 }
  0x58   :  { %1938 = vmatprep.mubr.msk.bf16.mxu1 %vm2252_vm2, %v2250_v0 }
  0x5f   :  { %1939 = vmatmul.mubr.msk.bf16.gmra.mxu1 %vm147_vm3, %v2072_v25 }
  0x60   :  { %1982 = vmatprep.mubr.msk.bf16.mxu1 %vm2252_vm2, %v2250_v0 }
  0xd7   :  { %v2464_v26 = vpop.f32.mrf.mxu1  ;;  %v210_v27 = vpop.f32.mrf.mxu0 }
  0xd9   :  { %v1898_v28 = vpop.f32.mrf.mxu1  ;;  %v1882_v29 = vpop.f32.mrf.mxu0 }
  0xdb   :  { %v2466_v30 = vpop.f32.mrf.mxu1  ;;  %v213_v31 = vpop.f32.mrf.mxu0 }
  0xdd   :  { %v1899_v32 = vpop.f32.mrf.mxu1  ;;  %v1883_v33 = vpop.f32.mrf.mxu0 }
  0xdf   :  { %v2468_v34 = vpop.f32.mrf.mxu1  ;;  %v218_v35 = vpop.f32.mrf.mxu0 }
  0xe1   :  { %v1902_v36 = vpop.f32.mrf.mxu1  ;;  %v1886_v37 = vpop.f32.mrf.mxu0 }
  0xe3   :  { %v2470_v38 = vpop.f32.mrf.mxu1  ;;  %v221_v39 = vpop.f32.mrf.mxu0 }
  0xe5   :  { %v1903_v40 = vpop.f32.mrf.mxu1  ;;  %v1887_v41 = vpop.f32.mrf.mxu0 }
  0xe7   :  { %v2472_v42 = vpop.f32.mrf.mxu1  ;;  %v226_v43 = vpop.f32.mrf.mxu0 }
  0xe9   :  { %v1906_v44 = vpop.f32.mrf.mxu1  ;;  %v1890_v45 = vpop.f32.mrf.mxu0 }
  0xeb   :  { %v2474_v46 = vpop.f32.mrf.mxu1  ;;  %v229_v47 = vpop.f32.mrf.mxu0 }
  0xed   :  { %v1907_v48 = vpop.f32.mrf.mxu1  ;;  %v1891_v49 = vpop.f32.mrf.mxu0 }
  0xef   :  { %v373_v50 = vpop.f32.mrf.mxu1  ;;  %v234_v52 = vpop.f32.mrf.mxu0 }
  0xf0   :  { %v374_v53 = vadd.f32 %v373_v50, %v210_v27 }
  0xf1   :  { %v1916_v54 = vpop.f32.mrf.mxu1  ;;  %v1894_v55 = vpop.f32.mrf.mxu0 }
  0xf2   :  { %v2482_v56 = vadd.f32 %v2479_v51, %v374_v53 }
  0xf3   :  { %v376_v57 = vpop.f32.mrf.mxu1  ;;  %v237_v58 = vpop.f32.mrf.mxu0 }
  0xf4   :  { %v377_v59 = vadd.f32 %v376_v57, %v213_v31  ;;  %v451_v60 = vsel %vm147_vm3, %v2482_v56, 0.0  ;;  %v508_v61 = vmul.f32 %v2482_v56, %v2482_v56 }
  0xf5   :  { %452 = vadd.xlane.f32.xlu0 %v451_v60  ;;  %v1917_v62 = vpop.f32.mrf.mxu1  ;;  %v1895_v63 = vpop.f32.mrf.mxu0 }
  0xf6   :  { %v2489_v1 = vadd.f32 %v2479_v51, %v377_v59  ;;  %v522_v2 = vsel %vm147_vm3, %v508_v61, 0.0 }
  0xf7   :  { %523 = vadd.xlane.f32.xlu1 %v522_v2  ;;  %v381_v3 = vpop.f32.mrf.mxu1 }
  0xf8   :  { %v382_v5 = vadd.f32 %v381_v3, %v218_v35  ;;  %v454_v6 = vsel %vm147_vm3, %v2489_v1, 0.0  ;;  %v509_v7 = vmul.f32 %v2489_v1, %v2489_v1 }
  0xf9   :  { %455 = vadd.xlane.f32.xlu0 %v454_v6  ;;  %v1920_v8 = vpop.f32.mrf.mxu1 }
  0xfa   :  { %v2497_v9 = vadd.f32 %v2479_v51, %v382_v5  ;;  %v525_v10 = vsel %vm147_vm3, %v509_v7, 0.0 }
  0xfb   :  { %526 = vadd.xlane.f32.xlu1 %v525_v10  ;;  %v384_v11 = vpop.f32.mrf.mxu1 }
  0xfc   :  { %v385_v12 = vadd.f32 %v384_v11, %v221_v39  ;;  %v457_v13 = vsel %vm147_vm3, %v2497_v9, 0.0  ;;  %v510_v14 = vmul.f32 %v2497_v9, %v2497_v9 }
  0xfd   :  { %458 = vadd.xlane.f32.xlu0 %v457_v13  ;;  %v1921_v15 = vpop.f32.mrf.mxu1 }
  0xfe   :  { %v2505_v16 = vadd.f32 %v2479_v51, %v385_v12  ;;  %v528_v19 = vsel %vm147_vm3, %v510_v14, 0.0 }
  0xff   :  { %v389_v17 = vpop.f32.mrf.mxu1 }
 0x100   :  { %v390_v18 = vadd.f32 %v389_v17, %v226_v43  ;;  %v460_v20 = vsel %vm147_vm3, %v2505_v16, 0.0  ;;  %v511_v21 = vmul.f32 %v2505_v16, %v2505_v16 }
 0x101   :  { %529 = vadd.xlane.f32.xlu0 %v528_v19  ;;  %461 = vadd.xlane.f32.xlu1 %v460_v20  ;;  %v1924_v22 = vpop.f32.mrf.mxu1 }
 0x102   :  { %v2513_v23 = vadd.f32 %v2479_v51, %v390_v18  ;;  %v531_v27 = vsel %vm147_vm3, %v511_v21, 0.0 }
 0x103   :  { %v392_v24 = vpop.f32.mrf.mxu1 }
 0x104   :  { %v393_v25 = vadd.f32 %v392_v24, %v229_v47  ;;  %v463_v28 = vsel %vm147_vm3, %v2513_v23, 0.0  ;;  %v512_v29 = vmul.f32 %v2513_v23, %v2513_v23 }
 0x105   :  { %532 = vadd.xlane.f32.xlu1 %v531_v27  ;;  %464 = vadd.xlane.f32.xlu0 %v463_v28  ;;  %v1925_v31 = vpop.f32.mrf.mxu1 }
 0x106   :  { %v2521_v32 = vadd.f32 %v2479_v51, %v393_v25  ;;  %v534_v36 = vsel %vm147_vm3, %v512_v29, 0.0 }
 0x107   :  { %v397_v33 = vpop.f32.mrf.mxu1 }
 0x108   :  { %v398_v35 = vadd.f32 %v397_v33, %v234_v52  ;;  %v466_v37 = vsel %vm147_vm3, %v2521_v32, 0.0  ;;  %v513_v39 = vmul.f32 %v2521_v32, %v2521_v32 }
 0x109   :  { %535 = vadd.xlane.f32.xlu0 %v534_v36  ;;  %467 = vadd.xlane.f32.xlu1 %v466_v37  ;;  %v1928_v40 = vpop.f32.mrf.mxu1 }
 0x10a   :  { %v2529_v41 = vadd.f32 %v2479_v51, %v398_v35  ;;  %v537_v45 = vsel %vm147_vm3, %v513_v39, 0.0 }
 0x10b   :  { %v400_v43 = vpop.f32.mrf.mxu1 }
 0x10c   :  { %v401_v44 = vadd.f32 %v400_v43, %v237_v58  ;;  %v469_v47 = vsel %vm147_vm3, %v2529_v41, 0.0  ;;  %v514_v48 = vmul.f32 %v2529_v41, %v2529_v41  ;;  %v2074_v43 = vld [vmem:[%s3329_s7 + $0x8] sm:$0xff]  }
 0x10d   :  { %538 = vadd.xlane.f32.xlu1 %v537_v45  ;;  %470 = vadd.xlane.f32.xlu0 %v469_v47  ;;  %v1929_v49 = vpop.f32.mrf.mxu1 }
 0x10e   :  { %v2537_v50 = vadd.f32 %v2479_v51, %v401_v44  ;;  %v540_v54 = vsel %vm147_vm3, %v514_v48, 0.0  ;;  %v2075_v44 = vld [vmem:[%s3329_s7] sm:$0xff]  }
 0x10f   :  { %v405_v52 = vpop.f32.mrf.mxu1 }
 0x110   :  { %v406_v53 = vadd.f32 %v405_v52, %v2464_v26  ;;  %v472_v55 = vsel %vm147_vm3, %v2537_v50, 0.0  ;;  %v515_v57 = vmul.f32 %v2537_v50, %v2537_v50 }
 0x111   :  { %541 = vadd.xlane.f32.xlu0 %v540_v54  ;;  %473 = vadd.xlane.f32.xlu1 %v472_v55  ;;  %v1932_v58 = vpop.f32.mrf.mxu1 }
 0x112   :  { %v2546_v59 = vadd.f32 %v2479_v51, %v406_v53  ;;  %v543_v62 = vsel %vm147_vm3, %v515_v57, 0.0 }
 0x113   :  { %v408_v60 = vpop.f32.mrf.mxu1 }
 0x114   :  { %v409_v61 = vadd.f32 %v408_v60, %v2466_v30  ;;  %v475_v26 = vsel %vm147_vm3, %v2546_v59, 0.0  ;;  %v516_v63 = vmul.f32 %v2546_v59, %v2546_v59 }
 0x115   :  { %544 = vadd.xlane.f32.xlu1 %v543_v62  ;;  %476 = vadd.xlane.f32.xlu0 %v475_v26  ;;  %v1933_v2 = vpop.f32.mrf.mxu1 }
 0x116   :  { %v2555_v3 = vadd.f32 %v2479_v51, %v409_v61  ;;  %v546_v7 = vsel %vm147_vm3, %v516_v63, 0.0 }
 0x117   :  { %v413_v5 = vpop.f32.mrf.mxu1 }
 0x118   :  { %v414_v6 = vadd.f32 %v413_v5, %v2468_v34  ;;  %v478_v30 = vsel %vm147_vm3, %v2555_v3, 0.0  ;;  %v517_v8 = vmul.f32 %v2555_v3, %v2555_v3 }
 0x119   :  { %547 = vadd.xlane.f32.xlu0 %v546_v7  ;;  %479 = vadd.xlane.f32.xlu1 %v478_v30  ;;  %v1936_v10 = vpop.f32.mrf.mxu1 }
 0x11a   :  { %v2564_v11 = vadd.f32 %v2479_v51, %v414_v6  ;;  %v549_v14 = vsel %vm147_vm3, %v517_v8, 0.0 }
 0x11b   :  { %v416_v12 = vpop.f32.mrf.mxu1 }
 0x11c   :  { %v417_v13 = vadd.f32 %v416_v12, %v2470_v38  ;;  %v481_v34 = vsel %vm147_vm3, %v2564_v11, 0.0  ;;  %v518_v15 = vmul.f32 %v2564_v11, %v2564_v11 }
 0x11d   :  { %550 = vadd.xlane.f32.xlu1 %v549_v14  ;;  %482 = vadd.xlane.f32.xlu0 %v481_v34  ;;  %v1937_v17 = vpop.f32.mrf.mxu1 }
 0x11e   :  { %v2573_v18 = vadd.f32 %v2479_v51, %v417_v13  ;;  %v552_v21 = vsel %vm147_vm3, %v518_v15, 0.0 }
 0x11f   :  { %v421_v19 = vpop.f32.mrf.mxu1 }
 0x120   :  { %v422_v20 = vadd.f32 %v421_v19, %v2472_v42  ;;  %v484_v38 = vsel %vm147_vm3, %v2573_v18, 0.0  ;;  %v519_v22 = vmul.f32 %v2573_v18, %v2573_v18  ;;  %v2073_v42 = vld [vmem:[%s3329_s7 + $0x10] ss:$0 sps:$4 sm:$0x33]  }
 0x121   :  { %553 = vadd.xlane.f32.xlu0 %v552_v21  ;;  %485 = vadd.xlane.f32.xlu1 %v484_v38  ;;  %v1940_v24 = vpop.f32.mrf.mxu1  ;;  %v786_v35 = vand.u32 %v2073_v42, %v2348_v4 }
 0x122   :  { %v2582_v25 = vadd.f32 %v2479_v51, %v422_v20  ;;  %v555_v27 = vsel %vm147_vm3, %v519_v22, 0.0 }
 0x123   :  { %v424_v28 = vpop.f32.mrf.mxu1  ;;  %1943 = vmatpush3.bf16.msra.mxu0 %v786_v35 }
 0x124   :  { %v425_v29 = vadd.f32 %v424_v28, %v2474_v46  ;;  %v487_v31 = vsel %vm147_vm3, %v2582_v25, 0.0  ;;  %v520_v33 = vmul.f32 %v2582_v25, %v2582_v25  ;;  %1944 = vmatprep.subr.bf16.mxu0 %v2250_v0 }
 0x125   :  { %556 = vadd.xlane.f32.xlu1 %v555_v27  ;;  %488 = vadd.xlane.f32.xlu0 %v487_v31  ;;  %v1941_v36 = vpop.f32.mrf.mxu1 }
 0x126   :  { %v2595_v37 = vadd.f32 %v2479_v51, %v425_v29  ;;  %v558_v39 = vsel %vm147_vm3, %v520_v33, 0.0 }
 0x127   :  { %1945 = vmatpush3.bf16.msra.mxu0 %v2074_v43  ;;  %v2632_v43 = vld [vmem:[%s3330_s5] ss:$0 sm:$0xff] }
 0x128   :  { %v490_v46 = vsel %vm147_vm3, %v2595_v37, 0.0  ;;  %v521_v40 = vmul.f32 %v2595_v37, %v2595_v37  ;;  %1946 = vmatprep.subr.bf16.mxu0 %v2250_v0 }
 0x129   :  { %559 = vadd.xlane.f32.xlu0 %v558_v39  ;;  %491 = vadd.xlane.f32.xlu1 %v490_v46 }
 0x12a   :  { %v561_v51 = vsel %vm147_vm3, %v521_v40, 0.0 }
 0x12b   :  { %1947 = vmatpush3.bf16.msra.mxu0 %v2075_v44 }
 0x12c   :  { %2010 = vmatprep.subr.bf16.mxu0 %v2250_v0 }
 0x12d   :  { %562 = vadd.xlane.f32.xlu1 %v561_v51 }
 0x17e   :  { %v453_v45 = vpop.xlane.xlu0 %452 }
 0x17f   :  { %v494_v47 = vmul.f32 0.028571429, %v453_v45 }
 0x180   :  { %v524_v48 = vpop.xlane.xlu1 %523 }
 0x181   :  { %v578_v49 = vmul.f32 %v494_v47, %v494_v47  ;;  %v564_v52 = vmul.f32 0.028571429, %v524_v48  ;;  %v648_v31 = vsub.f32 %v2482_v56, %v494_v47 }
 0x182   :  { %v456_v53 = vpop.xlane.xlu0 %455 }
 0x183   :  { %v592_v54 = vsub.f32 %v564_v52, %v578_v49  ;;  %v495_v55 = vmul.f32 0.028571429, %v456_v53 }
 0x184   :  { %v527_v57 = vpop.xlane.xlu1 %526 }
 0x185   :  { %v606_v58 = vmax.f32 %v592_v54, 0.0  ;;  %v579_v60 = vmul.f32 %v495_v55, %v495_v55  ;;  %v565_v61 = vmul.f32 0.028571429, %v527_v57  ;;  %v649_v56 = vsub.f32 %v2489_v1, %v495_v55 }
 0x186   :  { %v459_v62 = vpop.xlane.xlu0 %458 }
 0x187   :  { %v620_v26 = vadd.f32 1e-05, %v606_v58  ;;  %v593_v63 = vsub.f32 %v565_v61, %v579_v60  ;;  %v2612_v2 = vmul.f32 0.028571429, %v459_v62  ;;  %v2641_v58 = vld [vmem:[%s3331_s6] ss:$0 sm:$0xff] }
 0x189   :  { %2082 = vrsqrt.f32 %v620_v26  ;;  %v607_v5 = vmax.f32 %v593_v63, 0.0  ;;  %v580_v8 = vmul.f32 %v2612_v2, %v2612_v2 }
 0x18a   :  { %v530_v6 = vpop.xlane.xlu0 %529  ;;  %v462_v7 = vpop.xlane.xlu1 %461 }
 0x18b   :  { %v621_v30 = vadd.f32 1e-05, %v607_v5  ;;  %v566_v10 = vmul.f32 0.028571429, %v530_v6  ;;  %v2616_v12 = vmul.f32 0.028571429, %v462_v7  ;;  %v650_v6 = vsub.f32 %v2497_v9, %v2612_v2 }
 0x18d   :  { %2084 = vrsqrt.f32 %v621_v30  ;;  %v594_v13 = vsub.f32 %v566_v10, %v580_v8  ;;  %v581_v17 = vmul.f32 %v2616_v12, %v2616_v12  ;;  %v651_v9 = vsub.f32 %v2505_v16, %v2616_v12 }
 0x18e   :  { %v533_v14 = vpop.xlane.xlu1 %532  ;;  %v465_v34 = vpop.xlane.xlu0 %464 }
 0x18f   :  { %v608_v15 = vmax.f32 %v594_v13, 0.0  ;;  %v567_v19 = vmul.f32 0.028571429, %v533_v14  ;;  %v2620_v20 = vmul.f32 0.028571429, %v465_v34 }
 0x191   :  { %v622_v21 = vadd.f32 1e-05, %v608_v15  ;;  %v595_v38 = vsub.f32 %v567_v19, %v581_v17  ;;  %v582_v22 = vmul.f32 %v2620_v20, %v2620_v20  ;;  %v652_v16 = vsub.f32 %v2513_v23, %v2620_v20 }
 0x192   :  { %v536_v24 = vpop.xlane.xlu0 %535  ;;  %v468_v27 = vpop.xlane.xlu1 %467 }
 0x193   :  { %2086 = vrsqrt.f32 %v622_v21  ;;  %v609_v42 = vmax.f32 %v595_v38, 0.0  ;;  %v568_v28 = vmul.f32 0.028571429, %v536_v24  ;;  %v2624_v29 = vmul.f32 0.028571429, %v468_v27 }
 0x195   :  { %v623_v33 = vadd.f32 1e-05, %v609_v42  ;;  %v596_v35 = vsub.f32 %v568_v28, %v582_v22  ;;  %v583_v39 = vmul.f32 %v2624_v29, %v2624_v29  ;;  %v653_v20 = vsub.f32 %v2521_v32, %v2624_v29 }
 0x196   :  { %v2083_v36 = vpop.eup %2082  ;;  %v539_v46 = vpop.xlane.xlu1 %538 }
 0x197   :  { %v471_v40 = vpop.xlane.xlu0 %470  ;;  %v662_v51 = vmul.f32 %v2083_v36, %v648_v31  ;;  %2088 = vrsqrt.f32 %v623_v33  ;;  %v610_v44 = vmax.f32 %v596_v35, 0.0  ;;  %v569_v45 = vmul.f32 0.028571429, %v539_v46 }
 0x198   :  { %v2634_v48 = vmul.f32 0.028571429, %v471_v40 }
 0x199   :  { %v624_v47 = vadd.f32 1e-05, %v610_v44  ;;  %v597_v49 = vsub.f32 %v569_v45, %v583_v39  ;;  %v682_v53 = vmul.f32 %v2632_v43, %v662_v51 }
 0x19a   :  { %v2085_v52 = vpop.eup %2084  ;;  %v474_v57 = vpop.xlane.xlu1 %473  ;;  %v584_v62 = vmul.f32 %v2634_v48, %v2634_v48 }
 0x19b   :  { %v542_v54 = vpop.xlane.xlu0 %541  ;;  %v663_v60 = vmul.f32 %v2085_v52, %v649_v56  ;;  %2090 = vrsqrt.f32 %v624_v47  ;;  %v611_v61 = vmax.f32 %v597_v49, 0.0  ;;  %v2645_v1 = vmul.f32 0.028571429, %v474_v57 }
 0x19c   :  { %v570_v26 = vmul.f32 0.028571429, %v542_v54  ;;  %v702_v5 = vadd.f32 %v2641_v58, %v682_v53 }
 0x19d   :  { %v683_v55 = vmul.f32 %v2632_v43, %v663_v60  ;;  %v625_v63 = vadd.f32 1e-05, %v611_v61  ;;  %v585_v30 = vmul.f32 %v2645_v1, %v2645_v1 }
 0x19e   :  { %v598_v7 = vsub.f32 %v570_v26, %v584_v62  ;;  %v545_v8 = vpop.xlane.xlu1 %544 }
 0x19f   :  { %v477_v10 = vpop.xlane.xlu0 %476  ;;  %v703_v13 = vadd.f32 %v2641_v58, %v683_v55  ;;  %2092 = vrsqrt.f32 %v625_v63  ;;  %v571_v14 = vmul.f32 0.028571429, %v545_v8 }
 0x1a0   :  { %v2654_v34 = vmul.f32 0.028571429, %v477_v10  ;;  %v2087_v15 = vpop.eup %2086  ;;  %v612_v17 = vmax.f32 %v598_v7, 0.0 }
 0x1a1   :  { %2094 = vtanh.f32 %v703_v13  ;;  %v664_v19 = vmul.f32 %v2087_v15, %v650_v6  ;;  %v599_v21 = vsub.f32 %v571_v14, %v585_v30 }
 0x1a2   :  { %2096 = vtanh.f32 %v702_v5  ;;  %v626_v2 = vadd.f32 1e-05, %v612_v17  ;;  %v586_v38 = vmul.f32 %v2654_v34, %v2654_v34  ;;  %v480_v24 = vpop.xlane.xlu1 %479 }
 0x1a3   :  { %v548_v22 = vpop.xlane.xlu0 %547  ;;  %v684_v27 = vmul.f32 %v2632_v43, %v664_v19  ;;  %v613_v42 = vmax.f32 %v599_v21, 0.0  ;;  %v2661_v31 = vmul.f32 0.028571429, %v480_v24  ;;  %v654_v21 = vsub.f32 %v2529_v41, %v2634_v48 }
 0x1a4   :  { %v572_v28 = vmul.f32 0.028571429, %v548_v22  ;;  %v2089_v33 = vpop.eup %2088  ;;  %2098 = vrsqrt.f32 %v626_v2 }
 0x1a5   :  { %v665_v35 = vmul.f32 %v2089_v33, %v651_v9  ;;  %v627_v36 = vadd.f32 1e-05, %v613_v42  ;;  %v587_v12 = vmul.f32 %v2661_v31, %v2661_v31  ;;  %v704_v51 = vadd.f32 %v2641_v58, %v684_v27 }
 0x1a6   :  { %v600_v39 = vsub.f32 %v572_v28, %v586_v38  ;;  %v551_v46 = vpop.xlane.xlu1 %550  ;;  %v655_v28 = vsub.f32 %v2537_v50, %v2645_v1 }
 0x1a7   :  { %v483_v40 = vpop.xlane.xlu0 %482  ;;  %v685_v44 = vmul.f32 %v2632_v43, %v665_v35  ;;  %2100 = vrsqrt.f32 %v627_v36  ;;  %v573_v56 = vmul.f32 0.028571429, %v551_v46 }
 0x1a8   :  { %v614_v45 = vmax.f32 %v600_v39, 0.0  ;;  %v2091_v47 = vpop.eup %2090  ;;  %v2669_v49 = vmul.f32 0.028571429, %v483_v40  ;;  %2102 = vtanh.f32 %v704_v51  ;;  %v656_v40 = vsub.f32 %v2546_v59, %v2654_v34 }
 0x1a9   :  { %v666_v52 = vmul.f32 %v2091_v47, %v652_v16  ;;  %v601_v54 = vsub.f32 %v573_v56, %v587_v12  ;;  %v705_v23 = vadd.f32 %v2641_v58, %v685_v44 }
 0x1aa   :  { %v628_v53 = vadd.f32 1e-05, %v614_v45  ;;  %v588_v57 = vmul.f32 %v2669_v49, %v2669_v49  ;;  %v486_v61 = vpop.xlane.xlu1 %485 }
 0x1ab   :  { %v554_v60 = vpop.xlane.xlu0 %553  ;;  %v686_v62 = vmul.f32 %v2632_v43, %v666_v52  ;;  %v615_v26 = vmax.f32 %v601_v54, 0.0  ;;  %v2677_v5 = vmul.f32 0.028571429, %v486_v61 }
 0x1ac   :  { %2104 = vrsqrt.f32 %v628_v53  ;;  %v574_v55 = vmul.f32 0.028571429, %v554_v60  ;;  %v2093_v63 = vpop.eup %2092 }
 0x1ad   :  { %2106 = vtanh.f32 %v705_v23  ;;  %v667_v6 = vmul.f32 %v2093_v63, %v653_v20  ;;  %v629_v7 = vadd.f32 1e-05, %v615_v26  ;;  %v589_v32 = vmul.f32 %v2677_v5, %v2677_v5 }
 0x1ae   :  { %v602_v30 = vsub.f32 %v574_v55, %v588_v57  ;;  %v2095_v8 = vpop.eup %2094  ;;  %v557_v29 = vpop.xlane.xlu1 %556  ;;  %v706_v13 = vadd.f32 %v2641_v58, %v686_v62  ;;  %v657_v62 = vsub.f32 %v2555_v3, %v2661_v31 }
 0x1af   :  { %v489_v10 = vpop.xlane.xlu0 %488  ;;  %v2097_v14 = vpop.eup %2096  ;;  %v687_v15 = vmul.f32 %v2632_v43, %v667_v6  ;;  %2108 = vrsqrt.f32 %v629_v7  ;;  %v575_v19 = vmul.f32 0.028571429, %v557_v29 }
 0x1b0   :  { %v616_v17 = vmax.f32 %v602_v30, 0.0  ;;  %v2685_v9 = vmul.f32 0.028571429, %v489_v10  ;;  %v736_v2 = vpack.c.bf16 %v2095_v8, %v2097_v14  ;;  %2110 = vtanh.f32 %v706_v13 }
 0x1b1   :  { %v2099_v38 = vpop.eup %2098  ;;  %v603_v24 = vsub.f32 %v575_v19, %v589_v32  ;;  %v707_v27 = vadd.f32 %v2641_v58, %v687_v15  ;;  %v658_v32 = vsub.f32 %v2564_v11, %v2669_v49  ;;  %v659_v15 = vsub.f32 %v2573_v18, %v2677_v5 }
 0x1b2   :  { %v630_v22 = vadd.f32 1e-05, %v616_v17  ;;  %v668_v42 = vmul.f32 %v2099_v38, %v654_v21  ;;  %v590_v33 = vmul.f32 %v2685_v9, %v2685_v9  ;;  %1949 = vmatmul.mubr.msk.bf16.vlgmr.msra.gmra.mxu0 %vm147_vm3, %v736_v2  ;;  %v492_v36 = vpop.xlane.xlu1 %491  ;;  %v660_v2 = vsub.f32 %v2582_v25, %v2685_v9 }
 0x1b3   :  { %v560_v35 = vpop.xlane.xlu0 %559  ;;  %v617_v41 = vmax.f32 %v603_v24, 0.0  ;;  %v2693_v39 = vmul.f32 0.028571429, %v492_v36  ;;  %1952 = vmatprep.mubr.msk.bf16.mxu0 %vm2252_vm2, %v2250_v0 }
 0x1b4   :  { %2112 = vrsqrt.f32 %v630_v22  ;;  %v576_v48 = vmul.f32 0.028571429, %v560_v35  ;;  %v2101_v16 = vpop.eup %2100  ;;  %v688_v12 = vmul.f32 %v2632_v43, %v668_v42 }
 0x1b5   :  { %2114 = vtanh.f32 %v707_v27  ;;  %v669_v50 = vmul.f32 %v2101_v16, %v655_v28  ;;  %v631_v1 = vadd.f32 1e-05, %v617_v41  ;;  %v591_v51 = vmul.f32 %v2693_v39, %v2693_v39  ;;  %v2103_v56 = vpop.eup %2102 }
 0x1b6   :  { %v604_v46 = vsub.f32 %v576_v48, %v590_v33  ;;  %v563_v44 = vpop.xlane.xlu1 %562  ;;  %v708_v45 = vadd.f32 %v2641_v58, %v688_v12  ;;  %v661_v42 = vsub.f32 %v2595_v37, %v2693_v39 }
 0x1b7   :  { %v689_v47 = vmul.f32 %v2632_v43, %v669_v50  ;;  %2116 = vrsqrt.f32 %v631_v1  ;;  %v577_v53 = vmul.f32 0.028571429, %v563_v44 }
 0x1b8   :  { %v618_v52 = vmax.f32 %v604_v46, 0.0  ;;  %2118 = vtanh.f32 %v708_v45  ;;  %v2753_v46 = vld [vmem:[%s3333_s8] ss:$0 sm:$0xff] }
 0x1b9   :  { %v2105_v54 = vpop.eup %2104  ;;  %v605_v60 = vsub.f32 %v577_v53, %v591_v51  ;;  %v709_v61 = vadd.f32 %v2641_v58, %v689_v47 }
 0x1ba   :  { %v2107_v23 = vpop.eup %2106  ;;  %v670_v20 = vmul.f32 %v2105_v54, %v656_v40  ;;  %v632_v57 = vadd.f32 1e-05, %v618_v52 }
 0x1bb   :  { %v737_v59 = vpack.c.bf16 %v2107_v23, %v2103_v56  ;;  %v619_v26 = vmax.f32 %v605_v60, 0.0 }
 0x1bc   :  { %v690_v34 = vmul.f32 %v2632_v43, %v670_v20  ;;  %2120 = vrsqrt.f32 %v632_v57  ;;  %v2109_v55 = vpop.eup %2108 }
 0x1bd   :  { %1953 = vmatmul.mubr.msk.bf16.gmra.mxu0 %vm147_vm3, %v737_v59  ;;  %2122 = vtanh.f32 %v709_v61  ;;  %v671_v63 = vmul.f32 %v2109_v55, %v657_v62  ;;  %v633_v6 = vadd.f32 1e-05, %v619_v26  ;;  %v2111_v30 = vpop.eup %2110 }
 0x1be   :  { %1956 = vmatprep.mubr.msk.bf16.mxu0 %vm2252_vm2, %v2250_v0  ;;  %v710_v7 = vadd.f32 %v2641_v58, %v690_v34 }
 0x1bf   :  { %v691_v8 = vmul.f32 %v2632_v43, %v671_v63  ;;  %2124 = vrsqrt.f32 %v633_v6 }
 0x1c0   :  { %2126 = vtanh.f32 %v710_v7 }
 0x1c1   :  { %v2113_v3 = vpop.eup %2112  ;;  %v711_v10 = vadd.f32 %v2641_v58, %v691_v8 }
 0x1c2   :  { %v2115_v31 = vpop.eup %2114  ;;  %v672_v29 = vmul.f32 %v2113_v3, %v658_v32 }
 0x1c3   :  { %v738_v13 = vpack.c.bf16 %v2115_v31, %v2111_v30  ;;  %2128 = vtanh.f32 %v711_v10 }
 0x1c4   :  { %v692_v14 = vmul.f32 %v2632_v43, %v672_v29  ;;  %v2117_v17 = vpop.eup %2116 }
 0x1c5   :  { %1957 = vmatmul.mubr.msk.bf16.gmra.mxu0 %vm147_vm3, %v738_v13  ;;  %v673_v19 = vmul.f32 %v2117_v17, %v659_v15  ;;  %v2119_v49 = vpop.eup %2118 }
 0x1c6   :  { %1960 = vmatprep.mubr.msk.bf16.mxu0 %vm2252_vm2, %v2250_v0  ;;  %v712_v11 = vadd.f32 %v2641_v58, %v692_v14 }
 0x1c7   :  { %v693_v21 = vmul.f32 %v2632_v43, %v673_v19 }
 0x1c8   :  { %2130 = vtanh.f32 %v712_v11 }
 0x1c9   :  { %v2121_v38 = vpop.eup %2120  ;;  %v713_v18 = vadd.f32 %v2641_v58, %v693_v21 }
 0x1ca   :  { %v2123_v22 = vpop.eup %2122  ;;  %v674_v24 = vmul.f32 %v2121_v38, %v660_v2 }
 0x1cb   :  { %v739_v5 = vpack.c.bf16 %v2123_v22, %v2119_v49  ;;  %2132 = vtanh.f32 %v713_v18 }
 0x1cc   :  { %v694_v27 = vmul.f32 %v2632_v43, %v674_v24  ;;  %v2125_v28 = vpop.eup %2124 }
 0x1cd   :  { %1961 = vmatmul.mubr.msk.bf16.gmra.mxu0 %vm147_vm3, %v739_v5  ;;  %v675_v33 = vmul.f32 %v2125_v28, %v661_v42  ;;  %v2127_v9 = vpop.eup %2126 }
 0x1ce   :  { %1964 = vmatprep.mubr.msk.bf16.mxu0 %vm2252_vm2, %v2250_v0  ;;  %v714_v25 = vadd.f32 %v2641_v58, %v694_v27 }
 0x1cf   :  { %v695_v35 = vmul.f32 %v2632_v43, %v675_v33 }
 0x1d0   :  { %v2129_v36 = vpop.eup %2128  ;;  %2134 = vtanh.f32 %v714_v25 }
 0x1d1   :  { %v740_v41 = vpack.c.bf16 %v2129_v36, %v2127_v9  ;;  %v715_v48 = vadd.f32 %v2641_v58, %v695_v35  ;;  %v2076_v58 = vld [vmem:[%s3332_s11 + $0x10] ss:$0 sps:$4 sm:$0x33]  }
 0x1d2   :  { %v1213_v1 = vand.u32 %v2076_v58, %v2348_v4 }
 0x1d3   :  { %2136 = vtanh.f32 %v715_v48 }
 0x1d4   :  { %1977 = vmatpush3.bf16.msra.mxu1 %v1213_v1 }
 0x1d5   :  { %1965 = vmatmul.mubr.msk.bf16.gmra.mxu0 %vm147_vm3, %v740_v41  ;;  %v2131_v37 = vpop.eup %2130  ;;  %1978 = vmatprep.subr.bf16.mxu1 %v2250_v0 }
 0x1d6   :  { %1968 = vmatprep.mubr.msk.bf16.mxu0 %vm2252_vm2, %v2250_v0 }
 0x1d8   :  { %v2133_v39 = vpop.eup %2132 }
 0x1d9   :  { %v741_v16 = vpack.c.bf16 %v2133_v39, %v2131_v37 }
 0x1dd   :  { %1969 = vmatmul.mubr.msk.bf16.gmra.mxu0 %vm147_vm3, %v741_v16  ;;  %v2135_v43 = vpop.eup %2134 }
 0x1de   :  { %1972 = vmatprep.mubr.msk.bf16.mxu0 %vm2252_vm2, %v2250_v0 }
 0x1e0   :  { %v2137_v12 = vpop.eup %2136 }
 0x1e1   :  { %v742_v50 = vpack.c.bf16 %v2137_v12, %v2135_v43 }
 0x1e5   :  { %1973 = vmatmul.mubr.msk.bf16.gmra.mxu0 %vm147_vm3, %v742_v50 }
 0x1e6   :  { %2016 = vmatprep.mubr.msk.bf16.mxu0 %vm2252_vm2, %v2250_v0 }
 0x272   :  { %v822_v40 = vpop.f32.mrf.mxu0 }
 0x273   :  { %v2756_v51 = vadd.f32 %v2753_v46, %v822_v40 }
 0x274   :  { %v1950_v44 = vpop.f32.mrf.mxu0 }
 0x275   :  { %v879_v45 = vsel %vm147_vm3, %v2756_v51, 0.0  ;;  %v935_v56 = vmul.f32 %v2756_v51, %v2756_v51 }
 0x276   :  { %v825_v47 = vpop.f32.mrf.mxu0  ;;  %880 = vadd.xlane.f32.xlu0 %v879_v45 }
 0x277   :  { %v2763_v52 = vadd.f32 %v2753_v46, %v825_v47  ;;  %v949_v54 = vsel %vm147_vm3, %v935_v56, 0.0 }
 0x278   :  { %v1951_v53 = vpop.f32.mrf.mxu0 }
 0x279   :  { %v882_v23 = vsel %vm147_vm3, %v2763_v52, 0.0  ;;  %v936_v20 = vmul.f32 %v2763_v52, %v2763_v52 }
 0x27a   :  { %950 = vadd.xlane.f32.xlu0 %v949_v54  ;;  %883 = vadd.xlane.f32.xlu1 %v882_v23 }
 0x27b   :  { %v952_v61 = vsel %vm147_vm3, %v936_v20, 0.0 }
 0x27d   :  { %v830_v57 = vpop.f32.mrf.mxu0 }
 0x27e   :  { %v2771_v60 = vadd.f32 %v2753_v46, %v830_v57  ;;  %953 = vadd.xlane.f32.xlu1 %v952_v61 }
 0x27f   :  { %v1954_v59 = vpop.f32.mrf.mxu0 }
 0x280   :  { %v885_v34 = vsel %vm147_vm3, %v2771_v60, 0.0  ;;  %v937_v62 = vmul.f32 %v2771_v60, %v2771_v60 }
 0x281   :  { %v833_v26 = vpop.f32.mrf.mxu0  ;;  %886 = vadd.xlane.f32.xlu0 %v885_v34 }
 0x282   :  { %v2779_v55 = vadd.f32 %v2753_v46, %v833_v26  ;;  %v955_v6 = vsel %vm147_vm3, %v937_v62, 0.0 }
 0x283   :  { %v1955_v63 = vpop.f32.mrf.mxu0 }
 0x284   :  { %v888_v7 = vsel %vm147_vm3, %v2779_v55, 0.0  ;;  %v938_v30 = vmul.f32 %v2779_v55, %v2779_v55 }
 0x285   :  { %v838_v8 = vpop.f32.mrf.mxu0  ;;  %956 = vadd.xlane.f32.xlu0 %v955_v6  ;;  %889 = vadd.xlane.f32.xlu1 %v888_v7 }
 0x286   :  { %v2787_v32 = vadd.f32 %v2753_v46, %v838_v8  ;;  %v958_v29 = vsel %vm147_vm3, %v938_v30, 0.0  ;;  %v2077_v8 = vld [vmem:[%s3332_s11 + $0x8] sm:$0xff]  }
 0x287   :  { %v1958_v3 = vpop.f32.mrf.mxu0  ;;  %1979 = vmatpush3.bf16.msra.mxu1 %v2077_v8  ;;  %v2892_v8 = vld [vmem:[%s3334_s9] ss:$0 sm:$0xff] }
 0x288   :  { %v891_v31 = vsel %vm147_vm3, %v2787_v32, 0.0  ;;  %v939_v10 = vmul.f32 %v2787_v32, %v2787_v32  ;;  %1980 = vmatprep.subr.bf16.mxu1 %v2250_v0 }
 0x289   :  { %v841_v13 = vpop.f32.mrf.mxu0  ;;  %892 = vadd.xlane.f32.xlu0 %v891_v31  ;;  %959 = vadd.xlane.f32.xlu1 %v958_v29 }
 0x28a   :  { %v2795_v14 = vadd.f32 %v2753_v46, %v841_v13  ;;  %v961_v17 = vsel %vm147_vm3, %v939_v10, 0.0  ;;  %v2078_v10 = vld [vmem:[%s3332_s11] sm:$0xff]  }
 0x28b   :  { %v1959_v15 = vpop.f32.mrf.mxu0  ;;  %1981 = vmatpush3.bf16.msra.mxu1 %v2078_v10 }
 0x28c   :  { %v894_v19 = vsel %vm147_vm3, %v2795_v14, 0.0  ;;  %v940_v11 = vmul.f32 %v2795_v14, %v2795_v14 }
 0x28d   :  { %v846_v49 = vpop.f32.mrf.mxu0  ;;  %962 = vadd.xlane.f32.xlu0 %v961_v17  ;;  %895 = vadd.xlane.f32.xlu1 %v894_v19 }
 0x28e   :  { %v2803_v21 = vadd.f32 %v2753_v46, %v846_v49  ;;  %v964_v22 = vsel %vm147_vm3, %v940_v11, 0.0 }
 0x28f   :  { %v1962_v2 = vpop.f32.mrf.mxu0 }
 0x290   :  { %v897_v38 = vsel %vm147_vm3, %v2803_v21, 0.0  ;;  %v941_v24 = vmul.f32 %v2803_v21, %v2803_v21 }
 0x291   :  { %v849_v18 = vpop.f32.mrf.mxu0  ;;  %898 = vadd.xlane.f32.xlu0 %v897_v38  ;;  %965 = vadd.xlane.f32.xlu1 %v964_v22 }
 0x292   :  { %v2811_v5 = vadd.f32 %v2753_v46, %v849_v18  ;;  %v967_v42 = vsel %vm147_vm3, %v941_v24, 0.0 }
 0x293   :  { %v1963_v27 = vpop.f32.mrf.mxu0 }
 0x294   :  { %v900_v28 = vsel %vm147_vm3, %v2811_v5, 0.0  ;;  %v942_v33 = vmul.f32 %v2811_v5, %v2811_v5 }
 0x295   :  { %v854_v25 = vpop.f32.mrf.mxu0  ;;  %968 = vadd.xlane.f32.xlu0 %v967_v42  ;;  %901 = vadd.xlane.f32.xlu1 %v900_v28 }
 0x296   :  { %v2819_v9 = vadd.f32 %v2753_v46, %v854_v25  ;;  %v970_v41 = vsel %vm147_vm3, %v942_v33, 0.0 }
 0x297   :  { %v1966_v35 = vpop.f32.mrf.mxu0 }
 0x298   :  { %v903_v36 = vsel %vm147_vm3, %v2819_v9, 0.0  ;;  %v943_v48 = vmul.f32 %v2819_v9, %v2819_v9 }
 0x299   :  { %v857_v37 = vpop.f32.mrf.mxu0  ;;  %904 = vadd.xlane.f32.xlu0 %v903_v36  ;;  %971 = vadd.xlane.f32.xlu1 %v970_v41 }
 0x29a   :  { %v2827_v39 = vadd.f32 %v2753_v46, %v857_v37  ;;  %v973_v43 = vsel %vm147_vm3, %v943_v48, 0.0 }
 0x29b   :  { %v1967_v16 = vpop.f32.mrf.mxu0 }
 0x29c   :  { %v906_v12 = vsel %vm147_vm3, %v2827_v39, 0.0  ;;  %v944_v50 = vmul.f32 %v2827_v39, %v2827_v39 }
 0x29d   :  { %v862_v58 = vpop.f32.mrf.mxu0  ;;  %974 = vadd.xlane.f32.xlu0 %v973_v43  ;;  %907 = vadd.xlane.f32.xlu1 %v906_v12 }
 0x29e   :  { %v2835_v1 = vadd.f32 %v2753_v46, %v862_v58  ;;  %v976_v45 = vsel %vm147_vm3, %v944_v50, 0.0 }
 0x29f   :  { %v1970_v40 = vpop.f32.mrf.mxu0 }
 0x2a0   :  { %v909_v44 = vsel %vm147_vm3, %v2835_v1, 0.0  ;;  %v945_v56 = vmul.f32 %v2835_v1, %v2835_v1 }
 0x2a1   :  { %v865_v47 = vpop.f32.mrf.mxu0  ;;  %910 = vadd.xlane.f32.xlu0 %v909_v44  ;;  %977 = vadd.xlane.f32.xlu1 %v976_v45 }
 0x2a2   :  { %v2843_v53 = vadd.f32 %v2753_v46, %v865_v47  ;;  %v979_v23 = vsel %vm147_vm3, %v945_v56, 0.0 }
 0x2a3   :  { %v1971_v54 = vpop.f32.mrf.mxu0 }
 0x2a4   :  { %v912_v20 = vsel %vm147_vm3, %v2843_v53, 0.0  ;;  %v946_v57 = vmul.f32 %v2843_v53, %v2843_v53 }
 0x2a5   :  { %980 = vadd.xlane.f32.xlu0 %v979_v23  ;;  %913 = vadd.xlane.f32.xlu1 %v912_v20  ;;  %v870_v61 = vpop.f32.mrf.mxu0 }
 0x2a6   :  { %v2851_v59 = vadd.f32 %v2753_v46, %v870_v61  ;;  %v982_v62 = vsel %vm147_vm3, %v946_v57, 0.0 }
 0x2a7   :  { %v1974_v34 = vpop.f32.mrf.mxu0 }
 0x2a8   :  { %v915_v26 = vsel %vm147_vm3, %v2851_v59, 0.0  ;;  %v947_v63 = vmul.f32 %v2851_v59, %v2851_v59 }
 0x2a9   :  { %983 = vadd.xlane.f32.xlu1 %v982_v62  ;;  %916 = vadd.xlane.f32.xlu0 %v915_v26  ;;  %v873_v6 = vpop.f32.mrf.mxu0 }
 0x2aa   :  { %v2859_v7 = vadd.f32 %v2753_v46, %v873_v6  ;;  %v985_v3 = vsel %vm147_vm3, %v947_v63, 0.0 }
 0x2ab   :  { %v1975_v30 = vpop.f32.mrf.mxu0 }
 0x2ac   :  { %v918_v31 = vsel %vm147_vm3, %v2859_v7, 0.0  ;;  %v948_v29 = vmul.f32 %v2859_v7, %v2859_v7 }
 0x2ad   :  { %986 = vadd.xlane.f32.xlu0 %v985_v3  ;;  %919 = vadd.xlane.f32.xlu1 %v918_v31 }
 0x2ae   :  { %v988_v46 = vsel %vm147_vm3, %v948_v29, 0.0 }
 0x2b1   :  { %989 = vadd.xlane.f32.xlu1 %v988_v46 }
 0x2ff   :  { %v881_v13 = vpop.xlane.xlu0 %880 }
 0x300   :  { %v921_v15 = vmul.f32 0.028571429, %v881_v13  ;;  %v2899_v13 = vld [vmem:[%s3335_s10] ss:$0 sm:$0xff] }
 0x302   :  { %v1005_v11 = vmul.f32 %v921_v15, %v921_v15  ;;  %v1075_v26 = vsub.f32 %v2756_v51, %v921_v15 }
 0x303   :  { %v951_v17 = vpop.xlane.xlu0 %950  ;;  %v884_v19 = vpop.xlane.xlu1 %883 }
 0x304   :  { %v991_v49 = vmul.f32 0.028571429, %v951_v17  ;;  %v922_v2 = vmul.f32 0.028571429, %v884_v19 }
 0x306   :  { %v1019_v38 = vsub.f32 %v991_v49, %v1005_v11  ;;  %v1006_v18 = vmul.f32 %v922_v2, %v922_v2  ;;  %v1076_v19 = vsub.f32 %v2763_v52, %v922_v2 }
 0x307   :  { %v954_v22 = vpop.xlane.xlu1 %953 }
 0x308   :  { %v1033_v24 = vmax.f32 %v1019_v38, 0.0  ;;  %v992_v27 = vmul.f32 0.028571429, %v954_v22 }
 0x30a   :  { %v887_v42 = vpop.xlane.xlu0 %886  ;;  %v1047_v28 = vadd.f32 1e-05, %v1033_v24  ;;  %v1020_v33 = vsub.f32 %v992_v27, %v1006_v18 }
 0x30b   :  { %v2874_v25 = vmul.f32 0.028571429, %v887_v42 }
 0x30c   :  { %2138 = vrsqrt.f32 %v1047_v28  ;;  %v1034_v35 = vmax.f32 %v1020_v33, 0.0 }
 0x30d   :  { %v1007_v37 = vmul.f32 %v2874_v25, %v2874_v25  ;;  %v1077_v52 = vsub.f32 %v2771_v60, %v2874_v25 }
 0x30e   :  { %v957_v36 = vpop.xlane.xlu0 %956  ;;  %v890_v41 = vpop.xlane.xlu1 %889  ;;  %v1048_v48 = vadd.f32 1e-05, %v1034_v35 }
 0x30f   :  { %v993_v16 = vmul.f32 0.028571429, %v957_v36  ;;  %v2878_v43 = vmul.f32 0.028571429, %v890_v41 }
 0x310   :  { %2140 = vrsqrt.f32 %v1048_v48 }
 0x311   :  { %v1021_v12 = vsub.f32 %v993_v16, %v1007_v37  ;;  %v1008_v44 = vmul.f32 %v2878_v43, %v2878_v43  ;;  %v1078_v60 = vsub.f32 %v2779_v55, %v2878_v43 }
 0x312   :  { %v893_v50 = vpop.xlane.xlu0 %892  ;;  %v960_v58 = vpop.xlane.xlu1 %959 }
 0x313   :  { %v1035_v40 = vmax.f32 %v1021_v12, 0.0  ;;  %v2882_v45 = vmul.f32 0.028571429, %v893_v50  ;;  %v994_v56 = vmul.f32 0.028571429, %v960_v58 }
 0x315   :  { %v1049_v47 = vadd.f32 1e-05, %v1035_v40  ;;  %v1022_v54 = vsub.f32 %v994_v56, %v1008_v44  ;;  %v1009_v57 = vmul.f32 %v2882_v45, %v2882_v45 }
 0x316   :  { %v963_v23 = vpop.xlane.xlu0 %962  ;;  %v896_v20 = vpop.xlane.xlu1 %895 }
 0x317   :  { %2142 = vrsqrt.f32 %v1049_v47  ;;  %v1036_v61 = vmax.f32 %v1022_v54, 0.0  ;;  %v995_v34 = vmul.f32 0.028571429, %v963_v23  ;;  %v2886_v62 = vmul.f32 0.028571429, %v896_v20 }
 0x319   :  { %v1050_v63 = vadd.f32 1e-05, %v1036_v61  ;;  %v1023_v6 = vsub.f32 %v995_v34, %v1009_v57  ;;  %v2139_v30 = vpop.eup %2138  ;;  %v1010_v51 = vmul.f32 %v2886_v62, %v2886_v62 }
 0x31a   :  { %v899_v3 = vpop.xlane.xlu0 %898  ;;  %v966_v31 = vpop.xlane.xlu1 %965  ;;  %v1089_v29 = vmul.f32 %v2139_v30, %v1075_v26 }
 0x31b   :  { %2144 = vrsqrt.f32 %v1050_v63  ;;  %v1037_v46 = vmax.f32 %v1023_v6, 0.0  ;;  %v2894_v10 = vmul.f32 0.028571429, %v899_v3  ;;  %v996_v15 = vmul.f32 0.028571429, %v966_v31 }
 0x31c   :  { %v1109_v17 = vmul.f32 %v2892_v8, %v1089_v29  ;;  %v1079_v3 = vsub.f32 %v2787_v32, %v2882_v45 }
 0x31d   :  { %v1051_v11 = vadd.f32 1e-05, %v1037_v46  ;;  %v2141_v49 = vpop.eup %2140  ;;  %v1011_v38 = vmul.f32 %v2894_v10, %v2894_v10  ;;  %v1024_v22 = vsub.f32 %v996_v15, %v1010_v51 }
 0x31e   :  { %v969_v24 = vpop.xlane.xlu0 %968  ;;  %v902_v18 = vpop.xlane.xlu1 %901  ;;  %v1129_v27 = vadd.f32 %v2899_v13, %v1109_v17  ;;  %v1090_v42 = vmul.f32 %v2141_v49, %v1076_v19 }
 0x31f   :  { %2146 = vrsqrt.f32 %v1051_v11  ;;  %v997_v28 = vmul.f32 0.028571429, %v969_v24  ;;  %v1038_v33 = vmax.f32 %v1024_v22, 0.0  ;;  %v2908_v35 = vmul.f32 0.028571429, %v902_v18 }
 0x320   :  { %v1110_v36 = vmul.f32 %v2892_v8, %v1090_v42  ;;  %2148 = vtanh.f32 %v1129_v27 }
 0x321   :  { %v1025_v41 = vsub.f32 %v997_v28, %v1011_v38  ;;  %v1052_v2 = vadd.f32 1e-05, %v1038_v33  ;;  %v1012_v44 = vmul.f32 %v2908_v35, %v2908_v35  ;;  %v1080_v33 = vsub.f32 %v2795_v14, %v2886_v62 }
 0x322   :  { %v905_v48 = vpop.xlane.xlu0 %904  ;;  %v972_v37 = vpop.xlane.xlu1 %971  ;;  %v1130_v16 = vadd.f32 %v2899_v13, %v1110_v36 }
 0x323   :  { %v1039_v12 = vmax.f32 %v1025_v41, 0.0  ;;  %v2914_v50 = vmul.f32 0.028571429, %v905_v48  ;;  %v998_v58 = vmul.f32 0.028571429, %v972_v37  ;;  %2150 = vrsqrt.f32 %v1052_v2 }
 0x324   :  { %v2143_v40 = vpop.eup %2142  ;;  %2152 = vtanh.f32 %v1130_v16  ;;  %v1081_v37 = vsub.f32 %v2803_v21, %v2894_v10 }
 0x325   :  { %v1091_v56 = vmul.f32 %v2143_v40, %v1077_v52  ;;  %v1053_v47 = vadd.f32 1e-05, %v1039_v12  ;;  %v1026_v25 = vsub.f32 %v998_v58, %v1012_v44  ;;  %v1013_v57 = vmul.f32 %v2914_v50, %v2914_v50 }
 0x326   :  { %v975_v54 = vpop.xlane.xlu0 %974  ;;  %v908_v23 = vpop.xlane.xlu1 %907 }
 0x327   :  { %v1111_v20 = vmul.f32 %v2892_v8, %v1091_v56  ;;  %2154 = vrsqrt.f32 %v1053_v47  ;;  %v999_v61 = vmul.f32 0.028571429, %v975_v54  ;;  %v1040_v26 = vmax.f32 %v1026_v25, 0.0 }
 0x328   :  { %v2145_v34 = vpop.eup %2144  ;;  %v2923_v63 = vmul.f32 0.028571429, %v908_v23 }
 0x329   :  { %v1092_v6 = vmul.f32 %v2145_v34, %v1078_v60  ;;  %v1027_v30 = vsub.f32 %v999_v61, %v1013_v57  ;;  %v1054_v55 = vadd.f32 1e-05, %v1040_v26  ;;  %v1131_v29 = vadd.f32 %v2899_v13, %v1111_v20 }
 0x32a   :  { %v911_v43 = vpop.xlane.xlu0 %910  ;;  %v978_v31 = vpop.xlane.xlu1 %977  ;;  %v1014_v11 = vmul.f32 %v2923_v63, %v2923_v63 }
 0x32b   :  { %v1112_v46 = vmul.f32 %v2892_v8, %v1092_v6  ;;  %v1041_v51 = vmax.f32 %v1027_v30, 0.0  ;;  %v2929_v15 = vmul.f32 0.028571429, %v911_v43  ;;  %v1000_v17 = vmul.f32 0.028571429, %v978_v31 }
 0x32c   :  { %v2147_v19 = vpop.eup %2146  ;;  %2156 = vrsqrt.f32 %v1054_v55 }
 0x32d   :  { %v1093_v49 = vmul.f32 %v2147_v19, %v1079_v3  ;;  %v1055_v38 = vadd.f32 1e-05, %v1041_v51  ;;  %v1028_v22 = vsub.f32 %v1000_v17, %v1014_v11  ;;  %v1132_v24 = vadd.f32 %v2899_v13, %v1112_v46  ;;  %v2149_v18 = vpop.eup %2148 }
 0x32e   :  { %v981_v32 = vpop.xlane.xlu0 %980  ;;  %v914_v45 = vpop.xlane.xlu1 %913  ;;  %2158 = vtanh.f32 %v1131_v29  ;;  %v1015_v42 = vmul.f32 %v2929_v15, %v2929_v15  ;;  %v1082_v3 = vsub.f32 %v2811_v5, %v2908_v35  ;;  %v1083_v11 = vsub.f32 %v2819_v9, %v2914_v50 }
 0x32f   :  { %v1113_v27 = vmul.f32 %v2892_v8, %v1093_v49  ;;  %2160 = vrsqrt.f32 %v1055_v38  ;;  %v1001_v28 = vmul.f32 0.028571429, %v981_v32  ;;  %v1042_v36 = vmax.f32 %v1028_v22, 0.0 }
 0x330   :  { %v2939_v41 = vmul.f32 0.028571429, %v914_v45  ;;  %2162 = vtanh.f32 %v1132_v24  ;;  %v2151_v52 = vpop.eup %2150  ;;  %v1084_v50 = vsub.f32 %v2827_v39, %v2923_v63 }
 0x331   :  { %v1029_v2 = vsub.f32 %v1001_v28, %v1015_v42  ;;  %v2153_v48 = vpop.eup %2152  ;;  %v1094_v16 = vmul.f32 %v2151_v52, %v1080_v33  ;;  %v1056_v12 = vadd.f32 1e-05, %v1042_v36  ;;  %v1133_v44 = vadd.f32 %v2899_v13, %v1113_v27 }
 0x332   :  { %v917_v58 = vpop.xlane.xlu0 %916  ;;  %v984_v40 = vpop.xlane.xlu1 %983  ;;  %v1163_v62 = vpack.c.bf16 %v2153_v48, %v2149_v18  ;;  %v1016_v54 = vmul.f32 %v2939_v41, %v2939_v41  ;;  %v1085_v48 = vsub.f32 %v2835_v1, %v2929_v15 }
 0x333   :  { %v1043_v56 = vmax.f32 %v1029_v2, 0.0  ;;  %v2944_v47 = vmul.f32 0.028571429, %v917_v58  ;;  %v1002_v14 = vmul.f32 0.028571429, %v984_v40  ;;  %v1114_v25 = vmul.f32 %v2892_v8, %v1094_v16 }
 0x334   :  { %v2155_v60 = vpop.eup %2154  ;;  %2164 = vrsqrt.f32 %v1056_v12  ;;  %1983 = vmatmul.mubr.msk.bf16.vlgmr.msra.gmra.mxu1 %vm147_vm3, %v1163_v62 }
 0x335   :  { %v1095_v23 = vmul.f32 %v2155_v60, %v1081_v37  ;;  %v1057_v21 = vadd.f32 1e-05, %v1043_v56  ;;  %v1017_v10 = vmul.f32 %v2944_v47, %v2944_v47  ;;  %v1030_v20 = vsub.f32 %v1002_v14, %v1016_v54  ;;  %1986 = vmatprep.mubr.msk.bf16.mxu1 %vm2252_vm2, %v2250_v0 }
 0x336   :  { %v987_v57 = vpop.xlane.xlu0 %986  ;;  %v920_v61 = vpop.xlane.xlu1 %919  ;;  %v1134_v34 = vadd.f32 %v2899_v13, %v1114_v25  ;;  %2166 = vtanh.f32 %v1133_v44  ;;  %v1086_v56 = vsub.f32 %v2843_v53, %v2939_v41  ;;  %v1087_v62 = vsub.f32 %v2851_v59, %v2944_v47 }
 0x337   :  { %v1115_v26 = vmul.f32 %v2892_v8, %v1095_v23  ;;  %2168 = vrsqrt.f32 %v1057_v21  ;;  %v1003_v6 = vmul.f32 0.028571429, %v987_v57  ;;  %v2956_v30 = vmul.f32 0.028571429, %v920_v61 }
 0x338   :  { %v1044_v55 = vmax.f32 %v1030_v20, 0.0  ;;  %2170 = vtanh.f32 %v1134_v34 }
 0x339   :  { %v2157_v43 = vpop.eup %2156  ;;  %v1031_v31 = vsub.f32 %v1003_v6, %v1017_v10  ;;  %v1135_v17 = vadd.f32 %v2899_v13, %v1115_v26  ;;  %v1018_v38 = vmul.f32 %v2956_v30, %v2956_v30  ;;  %v1088_v20 = vsub.f32 %v2859_v7, %v2956_v30 }
 0x33a   :  { %v1096_v29 = vmul.f32 %v2157_v43, %v1082_v3  ;;  %v1058_v46 = vadd.f32 1e-05, %v1044_v55  ;;  %v990_v51 = vpop.xlane.xlu1 %989 }
 0x33b   :  { %v2159_v19 = vpop.eup %2158  ;;  %v1045_v49 = vmax.f32 %v1031_v31, 0.0  ;;  %v1004_v22 = vmul.f32 0.028571429, %v990_v51 }
 0x33c   :  { %v2161_v32 = vpop.eup %2160  ;;  %v1116_v5 = vmul.f32 %v2892_v8, %v1096_v29  ;;  %2172 = vrsqrt.f32 %v1058_v46  ;;  %v3013_v46 = vld [vmem:[%s3337_s12] ss:$0 sm:$0xff] }
 0x33d   :  { %v2163_v35 = vpop.eup %2162  ;;  %v1097_v45 = vmul.f32 %v2161_v32, %v1083_v11  ;;  %v1059_v24 = vadd.f32 1e-05, %v1045_v49  ;;  %v1032_v18 = vsub.f32 %v1004_v22, %v1018_v38  ;;  %2174 = vtanh.f32 %v1135_v17 }
 0x33e   :  { %v1164_v27 = vpack.c.bf16 %v2163_v35, %v2159_v19  ;;  %v1136_v42 = vadd.f32 %v2899_v13, %v1116_v5 }
 0x33f   :  { %v1117_v28 = vmul.f32 %v2892_v8, %v1097_v45  ;;  %2176 = vrsqrt.f32 %v1059_v24  ;;  %v1046_v9 = vmax.f32 %v1032_v18, 0.0 }
 0x340   :  { %1987 = vmatmul.mubr.msk.bf16.gmra.mxu1 %vm147_vm3, %v1164_v27  ;;  %2178 = vtanh.f32 %v1136_v42 }
 0x341   :  { %v2165_v33 = vpop.eup %2164  ;;  %v1060_v36 = vadd.f32 1e-05, %v1046_v9  ;;  %1990 = vmatprep.mubr.msk.bf16.mxu1 %vm2252_vm2, %v2250_v0  ;;  %v1137_v37 = vadd.f32 %v2899_v13, %v1117_v28 }
 0x342   :  { %v1098_v52 = vmul.f32 %v2165_v33, %v1084_v50 }
 0x343   :  { %v2167_v2 = vpop.eup %2166  ;;  %2180 = vrsqrt.f32 %v1060_v36 }
 0x344   :  { %v2169_v16 = vpop.eup %2168  ;;  %v1118_v12 = vmul.f32 %v2892_v8, %v1098_v52  ;;  %2182 = vtanh.f32 %v1137_v37 }
 0x345   :  { %v2171_v39 = vpop.eup %2170  ;;  %v1099_v63 = vmul.f32 %v2169_v16, %v1085_v48 }
 0x346   :  { %v1165_v58 = vpack.c.bf16 %v2171_v39, %v2167_v2  ;;  %v1138_v40 = vadd.f32 %v2899_v13, %v1118_v12 }
 0x347   :  { %v1119_v44 = vmul.f32 %v2892_v8, %v1099_v63 }
 0x348   :  { %1991 = vmatmul.mubr.msk.bf16.gmra.mxu1 %vm147_vm3, %v1165_v58  ;;  %2184 = vtanh.f32 %v1138_v40 }
 0x349   :  { %v2173_v1 = vpop.eup %2172  ;;  %1994 = vmatprep.mubr.msk.bf16.mxu1 %vm2252_vm2, %v2250_v0  ;;  %v1139_v60 = vadd.f32 %v2899_v13, %v1119_v44 }
 0x34a   :  { %v1100_v15 = vmul.f32 %v2173_v1, %v1086_v56  ;;  %v2175_v14 = vpop.eup %2174 }
 0x34b   :  { %2186 = vtanh.f32 %v1139_v60 }
 0x34c   :  { %v2177_v25 = vpop.eup %2176  ;;  %v1120_v54 = vmul.f32 %v2892_v8, %v1100_v15 }
 0x34d   :  { %v2179_v23 = vpop.eup %2178  ;;  %v1101_v21 = vmul.f32 %v2177_v25, %v1087_v62 }
 0x34e   :  { %v1166_v53 = vpack.c.bf16 %v2179_v23, %v2175_v14  ;;  %v1140_v41 = vadd.f32 %v2899_v13, %v1120_v54 }
 0x34f   :  { %v1121_v10 = vmul.f32 %v2892_v8, %v1101_v21 }
 0x350   :  { %v2181_v57 = vpop.eup %2180  ;;  %1995 = vmatmul.mubr.msk.bf16.gmra.mxu1 %vm147_vm3, %v1166_v53  ;;  %2188 = vtanh.f32 %v1140_v41 }
 0x351   :  { %v1102_v59 = vmul.f32 %v2181_v57, %v1088_v20  ;;  %1998 = vmatprep.mubr.msk.bf16.mxu1 %vm2252_vm2, %v2250_v0  ;;  %v1141_v47 = vadd.f32 %v2899_v13, %v1121_v10  ;;  %v2183_v34 = vpop.eup %2182 }
 0x353   :  { %v1122_v61 = vmul.f32 %v2892_v8, %v1102_v59  ;;  %2190 = vtanh.f32 %v1141_v47 }
 0x355   :  { %v2185_v26 = vpop.eup %2184  ;;  %v1142_v6 = vadd.f32 %v2899_v13, %v1122_v61  ;;  %v2079_v13 = vld [vmem:[%s3336_s15 + $0x10] ss:$0 sps:$4 sm:$0x33]  }
 0x356   :  { %v1167_v3 = vpack.c.bf16 %v2185_v26, %v2183_v34  ;;  %v1640_v29 = vand.u32 %v2079_v13, %v2348_v4 }
 0x357   :  { %2192 = vtanh.f32 %v1142_v6 }
 0x358   :  { %1999 = vmatmul.mubr.msk.bf16.gmra.mxu1 %vm147_vm3, %v1167_v3  ;;  %v2187_v7 = vpop.eup %2186  ;;  %2011 = vmatpush3.bf16.msra.mxu0 %v1640_v29 }
 0x359   :  { %2002 = vmatprep.mubr.msk.bf16.mxu1 %vm2252_vm2, %v2250_v0  ;;  %2012 = vmatprep.subr.bf16.mxu0 %v2250_v0 }
 0x35d   :  { %v2189_v30 = vpop.eup %2188 }
 0x35e   :  { %v1168_v55 = vpack.c.bf16 %v2189_v30, %v2187_v7 }
 0x360   :  { %2003 = vmatmul.mubr.msk.bf16.gmra.mxu1 %vm147_vm3, %v1168_v55  ;;  %v2191_v8 = vpop.eup %2190 }
 0x361   :  { %2006 = vmatprep.mubr.msk.bf16.mxu1 %vm2252_vm2, %v2250_v0 }
 0x364   :  { %v2193_v43 = vpop.eup %2192 }
 0x365   :  { %v1169_v31 = vpack.c.bf16 %v2193_v43, %v2191_v8 }
 0x368   :  { %2007 = vmatmul.mubr.msk.bf16.gmra.mxu1 %vm147_vm3, %v1169_v31 }
 0x3f4   :  { %v1249_v51 = vpop.f32.mrf.mxu1 }
 0x3f5   :  { %v3016_v17 = vadd.f32 %v3013_v46, %v1249_v51 }
 0x3f6   :  { %v1984_v19 = vpop.f32.mrf.mxu1 }
 0x3f7   :  { %v1306_v11 = vsel %vm147_vm3, %v3016_v17, 0.0  ;;  %v1362_v49 = vmul.f32 %v3016_v17, %v3016_v17 }
 0x3f8   :  { %1307 = vadd.xlane.f32.xlu0 %v1306_v11  ;;  %v1252_v4 = vpop.f32.mrf.mxu1 }
 0x3f9   :  { %v3023_v38 = vadd.f32 %v3013_v46, %v1252_v4  ;;  %v1376_v32 = vsel %vm147_vm3, %v1362_v49, 0.0 }
 0x3fa   :  { %v1985_v22 = vpop.f32.mrf.mxu1 }
 0x3fb   :  { %v1309_v5 = vsel %vm147_vm3, %v3023_v38, 0.0  ;;  %v1363_v35 = vmul.f32 %v3023_v38, %v3023_v38 }
 0x3fc   :  { %1377 = vadd.xlane.f32.xlu0 %v1376_v32  ;;  %1310 = vadd.xlane.f32.xlu1 %v1309_v5 }
 0x3fd   :  { %v1379_v24 = vsel %vm147_vm3, %v1363_v35, 0.0 }
 0x400   :  { %v1257_v45 = vpop.f32.mrf.mxu1  ;;  %1380 = vadd.xlane.f32.xlu1 %v1379_v24 }
 0x401   :  { %v3032_v18 = vadd.f32 %v3013_v46, %v1257_v45 }
 0x402   :  { %v1988_v27 = vpop.f32.mrf.mxu1 }
 0x403   :  { %v1312_v42 = vsel %vm147_vm3, %v3032_v18, 0.0  ;;  %v1364_v28 = vmul.f32 %v3032_v18, %v3032_v18 }
 0x404   :  { %1313 = vadd.xlane.f32.xlu0 %v1312_v42  ;;  %v1260_v9 = vpop.f32.mrf.mxu1 }
 0x405   :  { %v3039_v50 = vadd.f32 %v3013_v46, %v1260_v9  ;;  %v1382_v36 = vsel %vm147_vm3, %v1364_v28, 0.0 }
 0x406   :  { %v1989_v33 = vpop.f32.mrf.mxu1 }
 0x407   :  { %v1315_v52 = vsel %vm147_vm3, %v3039_v50, 0.0  ;;  %v1365_v2 = vmul.f32 %v3039_v50, %v3039_v50 }
 0x408   :  { %1383 = vadd.xlane.f32.xlu0 %v1382_v36  ;;  %1316 = vadd.xlane.f32.xlu1 %v1315_v52  ;;  %v1265_v48 = vpop.f32.mrf.mxu1 }
 0x409   :  { %v3047_v37 = vadd.f32 %v3013_v46, %v1265_v48  ;;  %v1385_v12 = vsel %vm147_vm3, %v1365_v2, 0.0  ;;  %v2080_v2 = vld [vmem:[%s3336_s15 + $0x8] sm:$0xff]  }
 0x40a   :  { %v1992_v16 = vpop.f32.mrf.mxu1  ;;  %2013 = vmatpush3.bf16.msra.mxu0 %v2080_v2 }
 0x40b   :  { %v1318_v39 = vsel %vm147_vm3, %v3047_v37, 0.0  ;;  %v1366_v63 = vmul.f32 %v3047_v37, %v3047_v37  ;;  %2014 = vmatprep.subr.bf16.mxu0 %v2250_v0 }
 0x40c   :  { %1386 = vadd.xlane.f32.xlu1 %v1385_v12  ;;  %1319 = vadd.xlane.f32.xlu0 %v1318_v39  ;;  %v1268_v58 = vpop.f32.mrf.mxu1  ;;  %v2081_v39 = vld [vmem:[%s3336_s15] sm:$0xff]  }
 0x40d   :  { %v3055_v40 = vadd.f32 %v3013_v46, %v1268_v58  ;;  %v1388_v56 = vsel %vm147_vm3, %v1366_v63, 0.0  ;;  %v22_v63 = vstv %s3338_s16 }
 0x40e   :  { %v1993_v44 = vpop.f32.mrf.mxu1  ;;  %2015 = vmatpush3.bf16.msra.mxu0 %v2081_v39  ;;  %23 = vst [vmem:[#allocation2] sm:$0x1] %v22_v63 }
 0x40f   :  { %v1321_v1 = vsel %vm147_vm3, %v3055_v40, 0.0  ;;  %v1367_v15 = vmul.f32 %v3055_v40, %v3055_v40 }
 0x410   :  { %1389 = vadd.xlane.f32.xlu0 %v1388_v56  ;;  %1322 = vadd.xlane.f32.xlu1 %v1321_v1  ;;  %v1273_v14 = vpop.f32.mrf.mxu1 }
 0x411   :  { %v3063_v62 = vadd.f32 %v3013_v46, %v1273_v14  ;;  %v1391_v25 = vsel %vm147_vm3, %v1367_v15, 0.0 }
 0x412   :  { %v1996_v60 = vpop.f32.mrf.mxu1 }
 0x413   :  { %v1324_v54 = vsel %vm147_vm3, %v3063_v62, 0.0  ;;  %v1368_v23 = vmul.f32 %v3063_v62, %v3063_v62 }
 0x414   :  { %1392 = vadd.xlane.f32.xlu1 %v1391_v25  ;;  %1325 = vadd.xlane.f32.xlu0 %v1324_v54  ;;  %v1276_v21 = vpop.f32.mrf.mxu1 }
 0x415   :  { %v3071_v53 = vadd.f32 %v3013_v46, %v1276_v21  ;;  %v1394_v10 = vsel %vm147_vm3, %v1368_v23, 0.0 }
 0x416   :  { %v1997_v41 = vpop.f32.mrf.mxu1 }
 0x417   :  { %v1327_v20 = vsel %vm147_vm3, %v3071_v53, 0.0  ;;  %v1369_v57 = vmul.f32 %v3071_v53, %v3071_v53 }
 0x418   :  { %1395 = vadd.xlane.f32.xlu0 %v1394_v10  ;;  %1328 = vadd.xlane.f32.xlu1 %v1327_v20  ;;  %v1281_v59 = vpop.f32.mrf.mxu1 }
 0x419   :  { %v3079_v47 = vadd.f32 %v3013_v46, %v1281_v59  ;;  %v1397_v34 = vsel %vm147_vm3, %v1369_v57, 0.0 }
 0x41a   :  { %v2000_v61 = vpop.f32.mrf.mxu1 }
 0x41b   :  { %v1330_v26 = vsel %vm147_vm3, %v3079_v47, 0.0  ;;  %v1370_v6 = vmul.f32 %v3079_v47, %v3079_v47 }
 0x41c   :  { %1398 = vadd.xlane.f32.xlu1 %v1397_v34  ;;  %1331 = vadd.xlane.f32.xlu0 %v1330_v26  ;;  %v1284_v3 = vpop.f32.mrf.mxu1 }
 0x41d   :  { %v3087_v7 = vadd.f32 %v3013_v46, %v1284_v3  ;;  %v1400_v55 = vsel %vm147_vm3, %v1370_v6, 0.0 }
 0x41e   :  { %v2001_v30 = vpop.f32.mrf.mxu1 }
 0x41f   :  { %v1333_v8 = vsel %vm147_vm3, %v3087_v7, 0.0  ;;  %v1371_v43 = vmul.f32 %v3087_v7, %v3087_v7 }
 0x420   :  { %1401 = vadd.xlane.f32.xlu0 %v1400_v55  ;;  %1334 = vadd.xlane.f32.xlu1 %v1333_v8  ;;  %v1289_v31 = vpop.f32.mrf.mxu1 }
 0x421   :  { %v3095_v13 = vadd.f32 %v3013_v46, %v1289_v31  ;;  %v1403_v51 = vsel %vm147_vm3, %v1371_v43, 0.0 }
 0x422   :  { %v2004_v29 = vpop.f32.mrf.mxu1 }
 0x423   :  { %v1336_v19 = vsel %vm147_vm3, %v3095_v13, 0.0  ;;  %v1372_v11 = vmul.f32 %v3095_v13, %v3095_v13 }
 0x424   :  { %1404 = vadd.xlane.f32.xlu1 %v1403_v51  ;;  %1337 = vadd.xlane.f32.xlu0 %v1336_v19  ;;  %v1292_v49 = vpop.f32.mrf.mxu1 }
 0x425   :  { %v3103_v4 = vadd.f32 %v3013_v46, %v1292_v49  ;;  %v1406_v32 = vsel %vm147_vm3, %v1372_v11, 0.0 }
 0x426   :  { %v2005_v22 = vpop.f32.mrf.mxu1 }
 0x427   :  { %v1339_v5 = vsel %vm147_vm3, %v3103_v4, 0.0  ;;  %v1373_v35 = vmul.f32 %v3103_v4, %v3103_v4 }
 0x428   :  { %1407 = vadd.xlane.f32.xlu0 %v1406_v32  ;;  %1340 = vadd.xlane.f32.xlu1 %v1339_v5  ;;  %v1297_v45 = vpop.f32.mrf.mxu1 }
 0x429   :  { %v3111_v24 = vadd.f32 %v3013_v46, %v1297_v45  ;;  %v1409_v42 = vsel %vm147_vm3, %v1373_v35, 0.0 }
 0x42a   :  { %v2008_v27 = vpop.f32.mrf.mxu1 }
 0x42b   :  { %v1342_v28 = vsel %vm147_vm3, %v3111_v24, 0.0  ;;  %v1374_v9 = vmul.f32 %v3111_v24, %v3111_v24 }
 0x42c   :  { %1410 = vadd.xlane.f32.xlu1 %v1409_v42  ;;  %1343 = vadd.xlane.f32.xlu0 %v1342_v28  ;;  %v1300_v33 = vpop.f32.mrf.mxu1 }
 0x42d   :  { %v3119_v36 = vadd.f32 %v3013_v46, %v1300_v33  ;;  %v1412_v48 = vsel %vm147_vm3, %v1374_v9, 0.0  ;;  %v3155_v33 = vld [vmem:[%s3339_s13] ss:$0 sm:$0xff] }
 0x42e   :  { %v2009_v52 = vpop.f32.mrf.mxu1 }
 0x42f   :  { %v1345_v16 = vsel %vm147_vm3, %v3119_v36, 0.0  ;;  %v1375_v12 = vmul.f32 %v3119_v36, %v3119_v36 }
 0x430   :  { %1413 = vadd.xlane.f32.xlu0 %v1412_v48  ;;  %1346 = vadd.xlane.f32.xlu1 %v1345_v16  ;;  %v3160_v48 = vld [vmem:[%s3340_s14] ss:$0 sm:$0xff] }
 0x431   :  { %v1415_v46 = vsel %vm147_vm3, %v1375_v12, 0.0 }
 0x434   :  { %1416 = vadd.xlane.f32.xlu1 %v1415_v46 }
 0x481   :  { %v1308_v58 = vpop.xlane.xlu0 %1307 }
 0x482   :  { %v1348_v44 = vmul.f32 0.028571429, %v1308_v58 }
 0x484   :  { %v1432_v15 = vmul.f32 %v1348_v44, %v1348_v44  ;;  %v1502_v28 = vsub.f32 %v3016_v17, %v1348_v44 }
 0x485   :  { %v1378_v56 = vpop.xlane.xlu0 %1377  ;;  %v1311_v1 = vpop.xlane.xlu1 %1310 }
 0x486   :  { %v1418_v14 = vmul.f32 0.028571429, %v1378_v56  ;;  %v1349_v60 = vmul.f32 0.028571429, %v1311_v1 }
 0x488   :  { %v1446_v25 = vsub.f32 %v1418_v14, %v1432_v15  ;;  %v1433_v21 = vmul.f32 %v1349_v60, %v1349_v60  ;;  %v1503_v56 = vsub.f32 %v3023_v38, %v1349_v60 }
 0x489   :  { %v1381_v54 = vpop.xlane.xlu1 %1380 }
 0x48a   :  { %v1460_v23 = vmax.f32 %v1446_v25, 0.0  ;;  %v1419_v41 = vmul.f32 0.028571429, %v1381_v54 }
 0x48c   :  { %v1474_v10 = vadd.f32 1e-05, %v1460_v23  ;;  %v1447_v20 = vsub.f32 %v1419_v41, %v1433_v21 }
 0x48d   :  { %v1314_v57 = vpop.xlane.xlu0 %1313 }
 0x48e   :  { %v3137_v59 = vmul.f32 0.028571429, %v1314_v57  ;;  %2194 = vrsqrt.f32 %v1474_v10  ;;  %v1461_v61 = vmax.f32 %v1447_v20, 0.0 }
 0x490   :  { %v1475_v34 = vadd.f32 1e-05, %v1461_v61  ;;  %v1434_v3 = vmul.f32 %v3137_v59, %v3137_v59 }
 0x491   :  { %v1384_v26 = vpop.xlane.xlu0 %1383  ;;  %v1317_v6 = vpop.xlane.xlu1 %1316 }
 0x492   :  { %v1420_v30 = vmul.f32 0.028571429, %v1384_v26  ;;  %v3141_v55 = vmul.f32 0.028571429, %v1317_v6  ;;  %2196 = vrsqrt.f32 %v1475_v34  ;;  %v1504_v26 = vsub.f32 %v3032_v18, %v3137_v59 }
 0x494   :  { %v1448_v8 = vsub.f32 %v1420_v30, %v1434_v3  ;;  %v1435_v51 = vmul.f32 %v3141_v55, %v3141_v55 }
 0x495   :  { %v1387_v43 = vpop.xlane.xlu1 %1386  ;;  %v1320_v31 = vpop.xlane.xlu0 %1319 }
 0x496   :  { %v1462_v29 = vmax.f32 %v1448_v8, 0.0  ;;  %v1421_v19 = vmul.f32 0.028571429, %v1387_v43  ;;  %v3145_v11 = vmul.f32 0.028571429, %v1320_v31 }
 0x498   :  { %v1476_v49 = vadd.f32 1e-05, %v1462_v29  ;;  %v1449_v22 = vsub.f32 %v1421_v19, %v1435_v51  ;;  %v1436_v32 = vmul.f32 %v3145_v11, %v3145_v11 }
 0x499   :  { %v1390_v5 = vpop.xlane.xlu0 %1389  ;;  %v1323_v35 = vpop.xlane.xlu1 %1322 }
 0x49a   :  { %2198 = vrsqrt.f32 %v1476_v49  ;;  %v1463_v45 = vmax.f32 %v1449_v22, 0.0  ;;  %v1422_v27 = vmul.f32 0.028571429, %v1390_v5  ;;  %v3149_v42 = vmul.f32 0.028571429, %v1323_v35 }
 0x49b   :  { %v2195_v9 = vpop.eup %2194  ;;  %v1505_v22 = vsub.f32 %v3039_v50, %v3141_v55 }
 0x49c   :  { %v1477_v52 = vadd.f32 1e-05, %v1463_v45  ;;  %v1450_v2 = vsub.f32 %v1422_v27, %v1436_v32  ;;  %v1516_v16 = vmul.f32 %v2195_v9, %v1502_v28  ;;  %v1437_v12 = vmul.f32 %v3149_v42, %v3149_v42 }
 0x49d   :  { %v1393_v46 = vpop.xlane.xlu1 %1392  ;;  %v1326_v39 = vpop.xlane.xlu0 %1325 }
 0x49e   :  { %2200 = vrsqrt.f32 %v1477_v52  ;;  %v1464_v17 = vmax.f32 %v1450_v2, 0.0  ;;  %v1423_v63 = vmul.f32 0.028571429, %v1393_v46  ;;  %v3164_v58 = vmul.f32 0.028571429, %v1326_v39 }
 0x49f   :  { %v1536_v44 = vmul.f32 %v3155_v33, %v1516_v16  ;;  %v2197_v1 = vpop.eup %2196  ;;  %v1506_v16 = vsub.f32 %v3047_v37, %v3145_v11  ;;  %v1507_v11 = vsub.f32 %v3055_v40, %v3149_v42 }
 0x4a0   :  { %v1478_v15 = vadd.f32 1e-05, %v1464_v17  ;;  %v1451_v14 = vsub.f32 %v1423_v63, %v1437_v12  ;;  %v1517_v54 = vmul.f32 %v2197_v1, %v1503_v56  ;;  %v1438_v23 = vmul.f32 %v3164_v58, %v3164_v58 }
 0x4a1   :  { %v1556_v25 = vadd.f32 %v3160_v48, %v1536_v44  ;;  %v1396_v21 = vpop.xlane.xlu0 %1395  ;;  %v1329_v41 = vpop.xlane.xlu1 %1328  ;;  %v1508_v42 = vsub.f32 %v3063_v62, %v3164_v58 }
 0x4a2   :  { %2202 = vrsqrt.f32 %v1478_v15  ;;  %v1465_v10 = vmax.f32 %v1451_v14, 0.0  ;;  %v1424_v20 = vmul.f32 0.028571429, %v1396_v21  ;;  %v3171_v57 = vmul.f32 0.028571429, %v1329_v41 }
 0x4a3   :  { %v1537_v61 = vmul.f32 %v3155_v33, %v1517_v54  ;;  %2204 = vtanh.f32 %v1556_v25 }
 0x4a4   :  { %v1479_v34 = vadd.f32 1e-05, %v1465_v10  ;;  %v1452_v38 = vsub.f32 %v1424_v20, %v1438_v23  ;;  %v1439_v6 = vmul.f32 %v3171_v57, %v3171_v57 }
 0x4a5   :  { %v1557_v60 = vadd.f32 %v3160_v48, %v1537_v61  ;;  %v1399_v3 = vpop.xlane.xlu1 %1398  ;;  %v1332_v30 = vpop.xlane.xlu0 %1331 }
 0x4a6   :  { %2206 = vrsqrt.f32 %v1479_v34  ;;  %v1466_v8 = vmax.f32 %v1452_v38, 0.0  ;;  %v1425_v43 = vmul.f32 0.028571429, %v1399_v3  ;;  %v3179_v31 = vmul.f32 0.028571429, %v1332_v30 }
 0x4a7   :  { %v2199_v29 = vpop.eup %2198  ;;  %2208 = vtanh.f32 %v1557_v60 }
 0x4a8   :  { %v1518_v51 = vmul.f32 %v2199_v29, %v1504_v26  ;;  %v1480_v19 = vadd.f32 1e-05, %v1466_v8  ;;  %v1453_v49 = vsub.f32 %v1425_v43, %v1439_v6  ;;  %v1440_v18 = vmul.f32 %v3179_v31, %v3179_v31 }
 0x4a9   :  { %v1402_v59 = vpop.xlane.xlu0 %1401  ;;  %v1335_v32 = vpop.xlane.xlu1 %1334 }
 0x4aa   :  { %v1538_v5 = vmul.f32 %v3155_v33, %v1518_v51  ;;  %2210 = vrsqrt.f32 %v1480_v19  ;;  %v1467_v35 = vmax.f32 %v1453_v49, 0.0  ;;  %v1426_v45 = vmul.f32 0.028571429, %v1402_v59 }
 0x4ab   :  { %v2201_v27 = vpop.eup %2200  ;;  %v3186_v28 = vmul.f32 0.028571429, %v1335_v32  ;;  %v1509_v32 = vsub.f32 %v3071_v53, %v3171_v57  ;;  %v1510_v53 = vsub.f32 %v3079_v47, %v3179_v31 }
 0x4ac   :  { %v1519_v9 = vmul.f32 %v2201_v27, %v1505_v22  ;;  %v1481_v52 = vadd.f32 1e-05, %v1467_v35  ;;  %v1454_v2 = vsub.f32 %v1426_v45, %v1440_v18  ;;  %v1558_v46 = vadd.f32 %v3160_v48, %v1538_v5 }
 0x4ad   :  { %v1441_v50 = vmul.f32 %v3186_v28, %v3186_v28  ;;  %v1405_v55 = vpop.xlane.xlu1 %1404  ;;  %v1338_v12 = vpop.xlane.xlu0 %1337 }
 0x4ae   :  { %v1539_v39 = vmul.f32 %v3155_v33, %v1519_v9  ;;  %2212 = vrsqrt.f32 %v1481_v52  ;;  %v1468_v17 = vmax.f32 %v1454_v2, 0.0  ;;  %v1427_v63 = vmul.f32 0.028571429, %v1405_v55 }
 0x4af   :  { %v2203_v44 = vpop.eup %2202  ;;  %v3194_v56 = vmul.f32 0.028571429, %v1338_v12  ;;  %2214 = vtanh.f32 %v1558_v46 }
 0x4b0   :  { %v1520_v1 = vmul.f32 %v2203_v44, %v1506_v16  ;;  %v1482_v15 = vadd.f32 1e-05, %v1468_v17  ;;  %v1455_v14 = vsub.f32 %v1427_v63, %v1441_v50  ;;  %v1559_v37 = vadd.f32 %v3160_v48, %v1539_v39  ;;  %v2205_v21 = vpop.eup %2204 }
 0x4b1   :  { %v1442_v25 = vmul.f32 %v3194_v56, %v3194_v56  ;;  %v1408_v54 = vpop.xlane.xlu0 %1407  ;;  %v1341_v23 = vpop.xlane.xlu1 %1340 }
 0x4b2   :  { %v1540_v41 = vmul.f32 %v3155_v33, %v1520_v1  ;;  %2216 = vrsqrt.f32 %v1482_v15  ;;  %v1469_v10 = vmax.f32 %v1455_v14, 0.0  ;;  %v1428_v20 = vmul.f32 0.028571429, %v1408_v54 }
 0x4b3   :  { %v2207_v61 = vpop.eup %2206  ;;  %v3202_v34 = vmul.f32 0.028571429, %v1341_v23  ;;  %2218 = vtanh.f32 %v1559_v37  ;;  %v1511_v23 = vsub.f32 %v3087_v7, %v3186_v28 }
 0x4b4   :  { %v2209_v38 = vpop.eup %2208  ;;  %v1521_v60 = vmul.f32 %v2207_v61, %v1507_v11  ;;  %v1483_v26 = vadd.f32 1e-05, %v1469_v10  ;;  %v1456_v40 = vsub.f32 %v1428_v20, %v1442_v25  ;;  %v1560_v43 = vadd.f32 %v3160_v48, %v1540_v41 }
 0x4b5   :  { %v1443_v6 = vmul.f32 %v3202_v34, %v3202_v34  ;;  %v1411_v3 = vpop.xlane.xlu1 %1410  ;;  %v1344_v30 = vpop.xlane.xlu0 %1343  ;;  %v1590_v8 = vpack.c.bf16 %v2209_v38, %v2205_v21 }
 0x4b6   :  { %v1541_v29 = vmul.f32 %v3155_v33, %v1521_v60  ;;  %2220 = vrsqrt.f32 %v1483_v26  ;;  %v1470_v51 = vmax.f32 %v1456_v40, 0.0  ;;  %v1429_v19 = vmul.f32 0.028571429, %v1411_v3 }
 0x4b7   :  { %v2211_v49 = vpop.eup %2210  ;;  %v3210_v22 = vmul.f32 0.028571429, %v1344_v30  ;;  %2017 = vmatmul.mubr.msk.bf16.vlgmr.msra.gmra.mxu0 %vm147_vm3, %v1590_v8  ;;  %2222 = vtanh.f32 %v1560_v43  ;;  %v1512_v26 = vsub.f32 %v3095_v13, %v3194_v56  ;;  %v1513_v30 = vsub.f32 %v3103_v4, %v3202_v34 }
 0x4b8   :  { %v1522_v18 = vmul.f32 %v2211_v49, %v1508_v42  ;;  %v1484_v62 = vadd.f32 1e-05, %v1470_v51  ;;  %v1457_v58 = vsub.f32 %v1429_v19, %v1443_v6  ;;  %2020 = vmatprep.mubr.msk.bf16.mxu0 %vm2252_vm2, %v2250_v0  ;;  %v1561_v59 = vadd.f32 %v3160_v48, %v1541_v29 }
 0x4b9   :  { %v1444_v5 = vmul.f32 %v3210_v22, %v3210_v22  ;;  %v1414_v35 = vpop.xlane.xlu0 %1413  ;;  %v1347_v45 = vpop.xlane.xlu1 %1346  ;;  %v1514_v51 = vsub.f32 %v3111_v24, %v3210_v22 }
 0x4ba   :  { %v1542_v27 = vmul.f32 %v3155_v33, %v1522_v18  ;;  %2224 = vrsqrt.f32 %v1484_v62  ;;  %v1471_v9 = vmax.f32 %v1457_v58, 0.0  ;;  %v1430_v52 = vmul.f32 0.028571429, %v1414_v35 }
 0x4bb   :  { %v2213_v2 = vpop.eup %2212  ;;  %v3221_v16 = vmul.f32 0.028571429, %v1347_v45  ;;  %2226 = vtanh.f32 %v1561_v59 }
 0x4bc   :  { %v1523_v50 = vmul.f32 %v2213_v2, %v1509_v32  ;;  %v1485_v55 = vadd.f32 1e-05, %v1471_v9  ;;  %v1458_v12 = vsub.f32 %v1430_v52, %v1444_v5  ;;  %v1562_v39 = vadd.f32 %v3160_v48, %v1542_v27  ;;  %v2215_v17 = vpop.eup %2214 }
 0x4bd   :  { %v1445_v57 = vmul.f32 %v3221_v16, %v3221_v16  ;;  %v1417_v46 = vpop.xlane.xlu1 %1416  ;;  %v1515_v58 = vsub.f32 %v3119_v36, %v3221_v16 }
 0x4be   :  { %v1543_v63 = vmul.f32 %v3155_v33, %v1523_v50  ;;  %2228 = vrsqrt.f32 %v1485_v55  ;;  %v1472_v44 = vmax.f32 %v1458_v12, 0.0  ;;  %v1431_v1 = vmul.f32 0.028571429, %v1417_v46 }
 0x4bf   :  { %v2217_v15 = vpop.eup %2216  ;;  %2230 = vtanh.f32 %v1562_v39 }
 0x4c0   :  { %v2219_v14 = vpop.eup %2218  ;;  %v1524_v37 = vmul.f32 %v2217_v15, %v1510_v53  ;;  %v1486_v11 = vadd.f32 1e-05, %v1472_v44  ;;  %v1459_v25 = vsub.f32 %v1431_v1, %v1445_v57  ;;  %v1563_v54 = vadd.f32 %v3160_v48, %v1543_v63 }
 0x4c1   :  { %v1591_v47 = vpack.c.bf16 %v2219_v14, %v2215_v17 }
 0x4c2   :  { %v1544_v31 = vmul.f32 %v3155_v33, %v1524_v37  ;;  %2232 = vrsqrt.f32 %v1486_v11  ;;  %v1473_v21 = vmax.f32 %v1459_v25, 0.0 }
 0x4c3   :  { %v2221_v41 = vpop.eup %2220  ;;  %2021 = vmatmul.mubr.msk.bf16.gmra.mxu0 %vm147_vm3, %v1591_v47  ;;  %2234 = vtanh.f32 %v1563_v54 }
 0x4c4   :  { %v1525_v10 = vmul.f32 %v2221_v41, %v1511_v23  ;;  %v1487_v20 = vadd.f32 1e-05, %v1473_v21  ;;  %2024 = vmatprep.mubr.msk.bf16.mxu0 %vm2252_vm2, %v2250_v0  ;;  %v1564_v61 = vadd.f32 %v3160_v48, %v1544_v31  ;;  %v2223_v38 = vpop.eup %2222 }
 0x4c6   :  { %v1545_v60 = vmul.f32 %v3155_v33, %v1525_v10  ;;  %2236 = vrsqrt.f32 %v1487_v20 }
 0x4c7   :  { %v2225_v7 = vpop.eup %2224  ;;  %2238 = vtanh.f32 %v1564_v61 }
 0x4c8   :  { %v2227_v28 = vpop.eup %2226  ;;  %v1526_v40 = vmul.f32 %v2225_v7, %v1512_v26  ;;  %v1565_v42 = vadd.f32 %v3160_v48, %v1545_v60 }
 0x4c9   :  { %v1592_v6 = vpack.c.bf16 %v2227_v28, %v2223_v38 }
 0x4ca   :  { %v1546_v3 = vmul.f32 %v3155_v33, %v1526_v40  ;;  %2240 = vtanh.f32 %v1565_v42 }
 0x4cb   :  { %v2229_v8 = vpop.eup %2228  ;;  %2025 = vmatmul.mubr.msk.bf16.gmra.mxu0 %vm147_vm3, %v1592_v6 }
 0x4cc   :  { %v1527_v43 = vmul.f32 %v2229_v8, %v1513_v30  ;;  %2028 = vmatprep.mubr.msk.bf16.mxu0 %vm2252_vm2, %v2250_v0  ;;  %v1566_v13 = vadd.f32 %v3160_v48, %v1546_v3  ;;  %v2231_v56 = vpop.eup %2230 }
 0x4ce   :  { %v1547_v29 = vmul.f32 %v3155_v33, %v1527_v43  ;;  %2242 = vtanh.f32 %v1566_v13 }
 0x4cf   :  { %v2233_v19 = vpop.eup %2232 }
 0x4d0   :  { %v2235_v49 = vpop.eup %2234  ;;  %v1528_v18 = vmul.f32 %v2233_v19, %v1514_v51  ;;  %v1567_v4 = vadd.f32 %v3160_v48, %v1547_v29 }
 0x4d1   :  { %v1593_v34 = vpack.c.bf16 %v2235_v49, %v2231_v56 }
 0x4d2   :  { %v1548_v62 = vmul.f32 %v3155_v33, %v1528_v18  ;;  %2244 = vtanh.f32 %v1567_v4 }
 0x4d3   :  { %v2237_v59 = vpop.eup %2236  ;;  %2029 = vmatmul.mubr.msk.bf16.gmra.mxu0 %vm147_vm3, %v1593_v34 }
 0x4d4   :  { %v1529_v32 = vmul.f32 %v2237_v59, %v1515_v58  ;;  %2032 = vmatprep.mubr.msk.bf16.mxu0 %vm2252_vm2, %v2250_v0  ;;  %v1568_v24 = vadd.f32 %v3160_v48, %v1548_v62  ;;  %v2239_v22 = vpop.eup %2238 }
 0x4d6   :  { %v1549_v5 = vmul.f32 %v3155_v33, %v1529_v32  ;;  %2246 = vtanh.f32 %v1568_v24 }
 0x4d7   :  { %v2241_v35 = vpop.eup %2240 }
 0x4d8   :  { %v1569_v45 = vadd.f32 %v3160_v48, %v1549_v5  ;;  %v1594_v27 = vpack.c.bf16 %v2241_v35, %v2239_v22  ;;  %v1813_v48 = vld [vmem:[#allocation2] ss:$0 sm:$0xff] }
 0x4da   :  { %2248 = vtanh.f32 %v1569_v45 }
 0x4db   :  { %2033 = vmatmul.mubr.msk.bf16.gmra.mxu0 %vm147_vm3, %v1594_v27  ;;  %v2243_v36 = vpop.eup %2242 }
 0x4dc   :  { %2036 = vmatprep.mubr.msk.bf16.mxu0 %vm2252_vm2, %v2250_v0 }
 0x4df   :  { %v2245_v9 = vpop.eup %2244 }
 0x4e0   :  { %v1595_v52 = vpack.c.bf16 %v2245_v9, %v2243_v36 }
 0x4e3   :  { %2037 = vmatmul.mubr.msk.bf16.gmra.mxu0 %vm147_vm3, %v1595_v52  ;;  %v2247_v33 = vpop.eup %2246 }
 0x4e4   :  { %2040 = vmatprep.mubr.msk.bf16.mxu0 %vm2252_vm2, %v2250_v0 }
 0x4e7   :  { %v2249_v2 = vpop.eup %2248 }
 0x4e8   :  { %v1596_v16 = vpack.c.bf16 %v2249_v2, %v2247_v33 }
 0x4eb   :  { %2041 = vmatmul.mubr.msk.bf16.gmra.mxu0 %vm147_vm3, %v1596_v16 }
 0x577   :  { %v1676_v50 = vpop.f32.mrf.mxu0 }
 0x578   :  { %v1677_v55 = vadd.f32 %v1813_v48, %v1676_v50 }
 0x579   :  { %v2018_v12 = vpop.f32.mrf.mxu0 }
 0x57a   :  { %1732 = vst.msk [vmem:[%s3341_s17] sm:$0xff] %vm1731_vm4, %v1677_v55 }
 0x57b   :  { %v1679_v53 = vpop.f32.mrf.mxu0 }
 0x57c   :  { %v1680_v57 = vadd.f32 %v1813_v48, %v1679_v53 }
 0x57d   :  { %v2019_v46 = vpop.f32.mrf.mxu0 }
 0x57e   :  { %1733 = vst.msk [vmem:[%s3341_s17 + $0x8] sm:$0xff] %vm1731_vm4, %v1680_v57 }
 0x583   :  { %v1684_v0 = vpop.f32.mrf.mxu0 }
 0x584   :  { %v1685_v39 = vadd.f32 %v1813_v48, %v1684_v0 }
 0x585   :  { %v2022_v17 = vpop.f32.mrf.mxu0 }
 0x586   :  { %1734 = vst.msk [vmem:[%s3341_s17 + $0x10] sm:$0xff] %vm1731_vm4, %v1685_v39 }
 0x587   :  { %v1687_v63 = vpop.f32.mrf.mxu0 }
 0x588   :  { %v1688_v44 = vadd.f32 %v1813_v48, %v1687_v63 }
 0x589   :  { %v2023_v1 = vpop.f32.mrf.mxu0 }
 0x58a   :  { %1735 = vst.msk [vmem:[%s3341_s17 + $0x18] sm:$0xff] %vm1731_vm4, %v1688_v44 }
 0x58b   :  { %v1692_v15 = vpop.f32.mrf.mxu0 }
 0x58c   :  { %v1693_v14 = vadd.f32 %v1813_v48, %v1692_v15 }
 0x58d   :  { %v2026_v37 = vpop.f32.mrf.mxu0 }
 0x58e   :  { %1736 = vst.msk [vmem:[%s3341_s17 + $0x20] sm:$0xff] %vm1731_vm4, %v1693_v14 }
 0x58f   :  { %v1695_v11 = vpop.f32.mrf.mxu0 }
 0x590   :  { %v1696_v25 = vadd.f32 %v1813_v48, %v1695_v11 }
 0x591   :  { %v2027_v54 = vpop.f32.mrf.mxu0 }
 0x592   :  { %1737 = vst.msk [vmem:[%s3341_s17 + $0x28] sm:$0xff] %vm1731_vm4, %v1696_v25 }
 0x593   :  { %v1700_v47 = vpop.f32.mrf.mxu0 }
 0x594   :  { %v1701_v31 = vadd.f32 %v1813_v48, %v1700_v47 }
 0x595   :  { %v2030_v23 = vpop.f32.mrf.mxu0 }
 0x596   :  { %1738 = vst.msk [vmem:[%s3341_s17 + $0x30] sm:$0xff] %vm1731_vm4, %v1701_v31 }
 0x597   :  { %v1703_v21 = vpop.f32.mrf.mxu0 }
 0x598   :  { %v1704_v41 = vadd.f32 %v1813_v48, %v1703_v21 }
 0x599   :  { %v2031_v10 = vpop.f32.mrf.mxu0 }
 0x59a   :  { %1739 = vst.msk [vmem:[%s3341_s17 + $0x38] sm:$0xff] %vm1731_vm4, %v1704_v41 }
 0x59b   :  { %v1708_v20 = vpop.f32.mrf.mxu0 }
 0x59c   :  { %v1709_v61 = vadd.f32 %v1813_v48, %v1708_v20 }
 0x59d   :  { %v2034_v38 = vpop.f32.mrf.mxu0 }
 0x59e   :  { %1740 = vst.msk [vmem:[%s3341_s17 + $0x40] sm:$0xff] %vm1731_vm4, %v1709_v61 }
 0x59f   :  { %v1711_v60 = vpop.f32.mrf.mxu0 }
 0x5a0   :  { %v1712_v26 = vadd.f32 %v1813_v48, %v1711_v60 }
 0x5a1   :  { %v2035_v7 = vpop.f32.mrf.mxu0 }
 0x5a2   :  { %1741 = vst.msk [vmem:[%s3341_s17 + $0x48] sm:$0xff] %vm1731_vm4, %v1712_v26 }
 0x5a3   :  { %v1716_v28 = vpop.f32.mrf.mxu0 }
 0x5a4   :  { %v1717_v40 = vadd.f32 %v1813_v48, %v1716_v28 }
 0x5a5   :  { %v2038_v42 = vpop.f32.mrf.mxu0 }
 0x5a6   :  { %1742 = vst.msk [vmem:[%s3341_s17 + $0x50] sm:$0xff] %vm1731_vm4, %v1717_v40 }
 0x5a7   :  { %v1719_v6 = vpop.f32.mrf.mxu0 }
 0x5a8   :  { %v1720_v3 = vadd.f32 %v1813_v48, %v1719_v6 }
 0x5a9   :  { %v2039_v30 = vpop.f32.mrf.mxu0 }
 0x5aa   :  { %1743 = vst.msk [vmem:[%s3341_s17 + $0x58] sm:$0xff] %vm1731_vm4, %v1720_v3 }
 0x5ab   :  { %v1724_v8 = vpop.f32.mrf.mxu0 }
 0x5ac   :  { %v1725_v43 = vadd.f32 %v1813_v48, %v1724_v8 }
 0x5ad   :  { %v2042_v13 = vpop.f32.mrf.mxu0 }
 0x5ae   :  { %1744 = vst.msk [vmem:[%s3341_s17 + $0x60] sm:$0xff] %vm1731_vm4, %v1725_v43 }
 0x5af   :  { %v1727_v56 = vpop.f32.mrf.mxu0 }
 0x5b0   :  { %v1728_v29 = vadd.f32 %v1813_v48, %v1727_v56 }
 0x5b1   :  { %v2043_v51 = vpop.f32.mrf.mxu0 }
 0x5b2   :  { %1745 = vst.msk [vmem:[%s3341_s17 + $0x68] sm:$0xff] %vm1731_vm4, %v1728_v29 }

</bundles_post_ra>
